<compile_context>
chip_gen: v7x
topology: tpu7x:2x2x1
jax: 0.10.0
libtpu: 0.0.40
codegen_flags: <defaults>
</compile_context>

<pallas_src>
import math

import jax
import jax.numpy as jnp
from jax.experimental import pallas as pl
from jax.experimental.pallas import tpu as pltpu

IMG = 32
PATCH = 4
IN_CH = 3
EMBED = 64
DEPTH = 4
HEADS = 4
HEAD_DIM = EMBED // HEADS
MLP_HIDDEN = int(EMBED * 2.0)
NUM_CLASSES = 10
N_PATCHES = (IMG // PATCH) ** 2
PATCH_DIM = IN_CH * PATCH * PATCH
LN_EPS = 1e-5

# TODO(synk): nn.Dropout / attention dropout are stochastic training-time ops;
# they are treated as identity here (eval-mode semantics).


def _layernorm(x, w, b):
    mu = jnp.mean(x, axis=-1, keepdims=True)
    var = jnp.mean(jnp.square(x - mu), axis=-1, keepdims=True)
    return (x - mu) * jax.lax.rsqrt(var + LN_EPS) * w + b


def _gelu(x):
    # exact (erf-based) GELU, matching nn.GELU() default
    return 0.5 * x * (1.0 + jax.lax.erf(x * (1.0 / math.sqrt(2.0))))


def _bf16(x):
    return x.astype(jnp.bfloat16)


# ---------------------------------------------------------------------------
# Fused ViT kernel
# ---------------------------------------------------------------------------
def _vit_kernel(patches_ref, pos_ref, mh_ref, mt_ref, pw_ref, pb_ref,
                ln1w_ref, ln1b_ref, wq_ref, wk_ref, wv_ref,
                bq_ref, bk_ref, bv_ref, wo_ref, bo_ref,
                ln2w_ref, ln2b_ref, w1_ref, b1_ref, w2_ref, b2_ref,
                nw_ref, nb_ref, hw1_ref, hb1_ref, hw2_ref, hb2_ref,
                hw3_ref, hb3_ref, out_ref):
    BN, _ = patches_ref.shape
    D = pw_ref.shape[1]
    N = N_PATCHES
    B = BN // N
    scale = 1.0 / math.sqrt(HEAD_DIM)

    # Constant head-indicator matrices (hoisted out of the block loop).
    mh = mh_ref[...]     # (D, HEADS) bf16, block-diagonal 0/1
    mt = mt_ref[...]     # (HEADS, D) bf16

    # ---- patch embedding (Conv2d k=stride=patch == per-patch linear) + pos ----
    x = jnp.dot(_bf16(patches_ref[...]), pw_ref[...],
                preferred_element_type=jnp.float32) + pb_ref[...] + pos_ref[...]
    # x: (B*N, D) f32, resident in VMEM/vregs for the whole forward.

    # ---- transformer blocks (statically unrolled; weights stacked on DEPTH) ----
    # NOTE: attention runs over the image-batch axis (length B), matching the
    # reference nn.MultiheadAttention(batch_first=False) on a [B, N, D] tensor.
    for d in range(DEPTH):
        # attention branch: x = x + OutProj(MHA(LN1(x)))
        h = _layernorm(x, ln1w_ref[d], ln1b_ref[d])
        hb = _bf16(h)
        q = jnp.dot(hb, wq_ref[d], preferred_element_type=jnp.float32) + bq_ref[d]
        k = jnp.dot(hb, wk_ref[d], preferred_element_type=jnp.float32) + bk_ref[d]
        v = jnp.dot(hb, wv_ref[d], preferred_element_type=jnp.float32) + bv_ref[d]
        q3 = q.reshape(B, N, D)
        k3 = k.reshape(B, N, D)
        v3 = v.reshape(B, N, D)

        # scores: s[j][(i, n), h] = <q[i, n, head h], k[j, n, head h]> * scale
        # The per-head contraction runs on the MXU via the indicator matrix mh.
        s = []
        for j in range(B):
            e = (q3 * k3[j][None, :, :]).reshape(BN, D)
            s.append(jnp.dot(_bf16(e), mh,
                             preferred_element_type=jnp.float32) * scale)

        # softmax over the key axis j (length B)
        m = s[0]
        for sj in s[1:]:
            m = jnp.maximum(m, sj)
        ps = [jnp.exp(sj - m) for sj in s]
        den = ps[0]
        for pj in ps[1:]:
            den = den + pj
        inv = pl.reciprocal(den, approx=True)          # (B*N, HEADS)

        attn = None
        for j in range(B):
            # expand per-head softmax weights back to the embed axis via mt (MXU)
            a = jnp.dot(_bf16(ps[j] * inv), mt,
                        preferred_element_type=jnp.float32)          # (B*N, D)
            contrib = a.reshape(B, N, D) * v3[j][None, :, :]
            attn = contrib if attn is None else attn + contrib
        attn = jnp.dot(_bf16(attn.reshape(BN, D)), wo_ref[d],
                       preferred_element_type=jnp.float32) + bo_ref[d]
        x = x + attn

        # MLP branch: x = x + W2 @ GELU(W1 @ LN2(x))
        h = _layernorm(x, ln2w_ref[d], ln2b_ref[d])
        h1 = _gelu(jnp.dot(_bf16(h), w1_ref[d],
                           preferred_element_type=jnp.float32) + b1_ref[d])
        h2 = jnp.dot(_bf16(h1), w2_ref[d],
                     preferred_element_type=jnp.float32) + b2_ref[d]
        x = x + h2

    # ---- final norm, mean pool over patches, classifier head ----
    h = _layernorm(x, nw_ref[...], nb_ref[...])
    pooled = jnp.mean(h.reshape(B, N, D), axis=1)                     # (B, D)
    z = _gelu(jnp.dot(_bf16(pooled), hw1_ref[...],
                      preferred_element_type=jnp.float32) + hb1_ref[...])
    z = _gelu(jnp.dot(_bf16(z), hw2_ref[...],
                      preferred_element_type=jnp.float32) + hb2_ref[...])
    out_ref[...] = jnp.dot(_bf16(z), hw3_ref[...],
                           preferred_element_type=jnp.float32) + hb3_ref[...]


# ---------------------------------------------------------------------------
# Parameters (deterministic, in-script); per-block weights stacked on DEPTH
# ---------------------------------------------------------------------------
def init_params(key):
    def dense(k, fan_in, fan_out, leading=None):
        bound = 1.0 / math.sqrt(fan_in)
        shape = (fan_in, fan_out) if leading is None else (leading, fan_in, fan_out)
        # stored pre-transposed as (in, out) so kernels do x @ W directly
        return jax.random.uniform(k, shape, jnp.float32, -bound, bound)

    keys = iter(jax.random.split(key, 16))
    return {
        "patch_w": dense(next(keys), PATCH_DIM, EMBED),
        "patch_b": jnp.zeros((1, EMBED), jnp.float32),
        "pos": 0.02 * jax.random.normal(next(keys), (N_PATCHES, EMBED), jnp.float32),
        # transformer blocks (stacked over DEPTH)
        "ln1w": jnp.ones((DEPTH, 1, EMBED), jnp.float32),
        "ln1b": jnp.zeros((DEPTH, 1, EMBED), jnp.float32),
        "wq": dense(next(keys), EMBED, EMBED, DEPTH),
        "wk": dense(next(keys), EMBED, EMBED, DEPTH),
        "wv": dense(next(keys), EMBED, EMBED, DEPTH),
        "bq": jnp.zeros((DEPTH, 1, EMBED), jnp.float32),
        "bk": jnp.zeros((DEPTH, 1, EMBED), jnp.float32),
        "bv": jnp.zeros((DEPTH, 1, EMBED), jnp.float32),
        "wo": dense(next(keys), EMBED, EMBED, DEPTH),
        "bo": jnp.zeros((DEPTH, 1, EMBED), jnp.float32),
        "ln2w": jnp.ones((DEPTH, 1, EMBED), jnp.float32),
        "ln2b": jnp.zeros((DEPTH, 1, EMBED), jnp.float32),
        "w1": dense(next(keys), EMBED, MLP_HIDDEN, DEPTH),
        "b1": jnp.zeros((DEPTH, 1, MLP_HIDDEN), jnp.float32),
        "w2": dense(next(keys), MLP_HIDDEN, EMBED, DEPTH),
        "b2": jnp.zeros((DEPTH, 1, EMBED), jnp.float32),
        # final norm + classifier head
        "normw": jnp.ones((1, EMBED), jnp.float32),
        "normb": jnp.zeros((1, EMBED), jnp.float32),
        "hw1": dense(next(keys), EMBED, 128), "hb1": jnp.zeros((1, 128), jnp.float32),
        "hw2": dense(next(keys), 128, 64), "hb2": jnp.zeros((1, 64), jnp.float32),
        "hw3": dense(next(keys), 64, NUM_CLASSES),
        "hb3": jnp.zeros((1, NUM_CLASSES), jnp.float32),
    }


# ---------------------------------------------------------------------------
# Forward
# ---------------------------------------------------------------------------
def vit_forward(params, x):
    B = x.shape[0]
    gh = gw = IMG // PATCH
    # Conv2d(k=stride=patch) == per-patch linear projection: extract patches in
    # (c, kh, kw) order to match the flattened conv weight.
    patches = x.reshape(B, IN_CH, gh, PATCH, gw, PATCH)
    patches = jnp.transpose(patches, (0, 2, 4, 1, 3, 5)).reshape(B * gh * gw, PATCH_DIM)

    pos = jnp.tile(params["pos"], (B, 1))                           # (B*N, D)

    # Block-diagonal head-indicator matrices so the per-head score reduction and
    # the softmax-weight expansion run as MXU matmuls inside the kernel.
    head_of_dim = jnp.arange(EMBED) // HEAD_DIM
    mh = (head_of_dim[:, None] == jnp.arange(HEADS)[None, :]).astype(jnp.bfloat16)
    mt = jnp.transpose(mh)

    bf = lambda a: a.astype(jnp.bfloat16)    # matmul weights fed to the MXU as bf16
    args = (
        patches, pos, mh, mt,
        bf(params["patch_w"]), params["patch_b"],
        params["ln1w"], params["ln1b"],
        bf(params["wq"]), bf(params["wk"]), bf(params["wv"]),
        params["bq"], params["bk"], params["bv"],
        bf(params["wo"]), params["bo"],
        params["ln2w"], params["ln2b"],
        bf(params["w1"]), params["b1"], bf(params["w2"]), params["b2"],
        params["normw"], params["normb"],
        bf(params["hw1"]), params["hb1"],
        bf(params["hw2"]), params["hb2"],
        bf(params["hw3"]), params["hb3"],
    )

    # Whole model (< 1 MiB of weights + activations) fits VMEM on every TPU
    # generation, so a single no-grid pallas_call with full-array VMEM specs is
    # the right structure: one dispatch, zero intermediate HBM round-trips.
    return pl.pallas_call(
        _vit_kernel,
        out_shape=jax.ShapeDtypeStruct((B, NUM_CLASSES), jnp.float32),
        in_specs=[pl.BlockSpec(memory_space=pltpu.MemorySpace.VMEM)] * len(args),
        out_specs=pl.BlockSpec(memory_space=pltpu.MemorySpace.VMEM),
        cost_estimate=pl.CostEstimate(
            flops=36_000_000, transcendentals=72_000, bytes_accessed=400_000),
    )(*args)


if __name__ == "__main__":
    key = jax.random.PRNGKey(0)
    pkey, xkey = jax.random.split(key)
    params = init_params(pkey)
    x = jax.random.normal(xkey, (2, IN_CH, IMG, IMG), jnp.float32)  # NCHW like PyTorch

    logits = jax.jit(vit_forward)(params, x)
    logits = jax.block_until_ready(logits)
    assert logits.shape == (2, NUM_CLASSES) and logits.dtype == jnp.float32
    print("KERNEL_OK")
</pallas_src>

<mosaic_0001>
module attributes {stable_mosaic.version = 11 : i64} {
  func.func @_vit_kernel(%arg0: memref<128x48xf32, #tpu.memory_space<vmem>>, %arg1: memref<128x64xf32, #tpu.memory_space<vmem>>, %arg2: memref<64x4xbf16, #tpu.memory_space<vmem>>, %arg3: memref<4x64xbf16, #tpu.memory_space<vmem>>, %arg4: memref<48x64xbf16, #tpu.memory_space<vmem>>, %arg5: memref<1x64xf32, #tpu.memory_space<vmem>>, %arg6: memref<4x1x64xf32, #tpu.memory_space<vmem>>, %arg7: memref<4x1x64xf32, #tpu.memory_space<vmem>>, %arg8: memref<4x64x64xbf16, #tpu.memory_space<vmem>>, %arg9: memref<4x64x64xbf16, #tpu.memory_space<vmem>>, %arg10: memref<4x64x64xbf16, #tpu.memory_space<vmem>>, %arg11: memref<4x1x64xf32, #tpu.memory_space<vmem>>, %arg12: memref<4x1x64xf32, #tpu.memory_space<vmem>>, %arg13: memref<4x1x64xf32, #tpu.memory_space<vmem>>, %arg14: memref<4x64x64xbf16, #tpu.memory_space<vmem>>, %arg15: memref<4x1x64xf32, #tpu.memory_space<vmem>>, %arg16: memref<4x1x64xf32, #tpu.memory_space<vmem>>, %arg17: memref<4x1x64xf32, #tpu.memory_space<vmem>>, %arg18: memref<4x64x128xbf16, #tpu.memory_space<vmem>>, %arg19: memref<4x1x128xf32, #tpu.memory_space<vmem>>, %arg20: memref<4x128x64xbf16, #tpu.memory_space<vmem>>, %arg21: memref<4x1x64xf32, #tpu.memory_space<vmem>>, %arg22: memref<1x64xf32, #tpu.memory_space<vmem>>, %arg23: memref<1x64xf32, #tpu.memory_space<vmem>>, %arg24: memref<64x128xbf16, #tpu.memory_space<vmem>>, %arg25: memref<1x128xf32, #tpu.memory_space<vmem>>, %arg26: memref<128x64xbf16, #tpu.memory_space<vmem>>, %arg27: memref<1x64xf32, #tpu.memory_space<vmem>>, %arg28: memref<64x10xbf16, #tpu.memory_space<vmem>>, %arg29: memref<1x10xf32, #tpu.memory_space<vmem>>, %arg30: memref<2x10xf32, #tpu.memory_space<vmem>>) attributes {dimension_semantics = [], scalar_prefetch = 0 : i64, scratch_operands = 0 : i64, tpu.core_type = #tpu.core_type<tc>} {
    %c0 = arith.constant 0 : index
    %c0_0 = arith.constant 0 : index
    %0 = vector.load %arg2[%c0, %c0_0] : memref<64x4xbf16, #tpu.memory_space<vmem>>, vector<64x4xbf16>
    %c0_1 = arith.constant 0 : index
    %c0_2 = arith.constant 0 : index
    %1 = vector.load %arg3[%c0_1, %c0_2] : memref<4x64xbf16, #tpu.memory_space<vmem>>, vector<4x64xbf16>
    %c0_3 = arith.constant 0 : index
    %c0_4 = arith.constant 0 : index
    %2 = vector.load %arg0[%c0_3, %c0_4] : memref<128x48xf32, #tpu.memory_space<vmem>>, vector<128x48xf32>
    %3 = arith.truncf %2 : vector<128x48xf32> to vector<128x48xbf16>
    %c0_5 = arith.constant 0 : index
    %c0_6 = arith.constant 0 : index
    %4 = vector.load %arg4[%c0_5, %c0_6] : memref<48x64xbf16, #tpu.memory_space<vmem>>, vector<48x64xbf16>
    %cst = arith.constant dense<0.000000e+00> : vector<128x64xf32>
    %5 = tpu.matmul %3, %4, %cst {dimension_numbers = #tpu.dot_dimension_numbers<[1], [0], [0], [1], [0, 0, 1, 1], [], []>} : vector<128x48xbf16>, vector<48x64xbf16>, vector<128x64xf32> -> vector<128x64xf32>
    %c0_7 = arith.constant 0 : index
    %c0_8 = arith.constant 0 : index
    %6 = vector.load %arg5[%c0_7, %c0_8] : memref<1x64xf32, #tpu.memory_space<vmem>>, vector<1x64xf32>
    %7 = vector.broadcast %6 : vector<1x64xf32> to vector<128x64xf32>
    %8 = arith.addf %5, %7 : vector<128x64xf32>
    %c0_9 = arith.constant 0 : index
    %c0_10 = arith.constant 0 : index
    %9 = vector.load %arg1[%c0_9, %c0_10] : memref<128x64xf32, #tpu.memory_space<vmem>>, vector<128x64xf32>
    %10 = arith.addf %8, %9 : vector<128x64xf32>
    %c0_11 = arith.constant 0 : index
    %c0_12 = arith.constant 0 : index
    %c0_13 = arith.constant 0 : index
    %11 = vector.load %arg6[%c0_11, %c0_12, %c0_13] : memref<4x1x64xf32, #tpu.memory_space<vmem>>, vector<1x1x64xf32>
    %12 = vector.shape_cast %11 : vector<1x1x64xf32> to vector<1x64xf32>
    %c0_14 = arith.constant 0 : index
    %c0_15 = arith.constant 0 : index
    %c0_16 = arith.constant 0 : index
    %13 = vector.load %arg7[%c0_14, %c0_15, %c0_16] : memref<4x1x64xf32, #tpu.memory_space<vmem>>, vector<1x1x64xf32>
    %14 = vector.shape_cast %13 : vector<1x1x64xf32> to vector<1x64xf32>
    %cst_17 = arith.constant dense<0.000000e+00> : vector<128xf32>
    %15 = vector.multi_reduction <add>, %10, %cst_17 [1] : vector<128x64xf32> to vector<128xf32>
    %16 = vector.shape_cast %15 : vector<128xf32> to vector<128x1xf32>
    %cst_18 = arith.constant 6.400000e+01 : f32
    %17 = vector.broadcast %cst_18 : f32 to vector<128x1xf32>
    %18 = arith.divf %16, %17 : vector<128x1xf32>
    %19 = vector.broadcast %18 : vector<128x1xf32> to vector<128x64xf32>
    %20 = arith.subf %10, %19 : vector<128x64xf32>
    %21 = arith.mulf %20, %20 : vector<128x64xf32>
    %cst_19 = arith.constant dense<0.000000e+00> : vector<128xf32>
    %22 = vector.multi_reduction <add>, %21, %cst_19 [1] : vector<128x64xf32> to vector<128xf32>
    %23 = vector.shape_cast %22 : vector<128xf32> to vector<128x1xf32>
    %cst_20 = arith.constant 6.400000e+01 : f32
    %24 = vector.broadcast %cst_20 : f32 to vector<128x1xf32>
    %25 = arith.divf %23, %24 : vector<128x1xf32>
    %26 = vector.broadcast %18 : vector<128x1xf32> to vector<128x64xf32>
    %27 = arith.subf %10, %26 : vector<128x64xf32>
    %cst_21 = arith.constant 9.99999974E-6 : f32
    %28 = vector.broadcast %cst_21 : f32 to vector<128x1xf32>
    %29 = arith.addf %25, %28 : vector<128x1xf32>
    %30 = math.rsqrt %29 : vector<128x1xf32>
    %31 = vector.broadcast %30 : vector<128x1xf32> to vector<128x64xf32>
    %32 = arith.mulf %27, %31 : vector<128x64xf32>
    %33 = vector.broadcast %12 : vector<1x64xf32> to vector<128x64xf32>
    %34 = arith.mulf %32, %33 : vector<128x64xf32>
    %35 = vector.broadcast %14 : vector<1x64xf32> to vector<128x64xf32>
    %36 = arith.addf %34, %35 : vector<128x64xf32>
    %37 = arith.truncf %36 : vector<128x64xf32> to vector<128x64xbf16>
    %c0_22 = arith.constant 0 : index
    %c0_23 = arith.constant 0 : index
    %c0_24 = arith.constant 0 : index
    %38 = vector.load %arg8[%c0_22, %c0_23, %c0_24] : memref<4x64x64xbf16, #tpu.memory_space<vmem>>, vector<1x64x64xbf16>
    %39 = vector.shape_cast %38 : vector<1x64x64xbf16> to vector<64x64xbf16>
    %cst_25 = arith.constant dense<0.000000e+00> : vector<128x64xf32>
    %40 = tpu.matmul %37, %39, %cst_25 {dimension_numbers = #tpu.dot_dimension_numbers<[1], [0], [0], [1], [0, 0, 1, 1], [], []>} : vector<128x64xbf16>, vector<64x64xbf16>, vector<128x64xf32> -> vector<128x64xf32>
    %c0_26 = arith.constant 0 : index
    %c0_27 = arith.constant 0 : index
    %c0_28 = arith.constant 0 : index
    %41 = vector.load %arg11[%c0_26, %c0_27, %c0_28] : memref<4x1x64xf32, #tpu.memory_space<vmem>>, vector<1x1x64xf32>
    %42 = vector.shape_cast %41 : vector<1x1x64xf32> to vector<1x64xf32>
    %43 = vector.broadcast %42 : vector<1x64xf32> to vector<128x64xf32>
    %44 = arith.addf %40, %43 : vector<128x64xf32>
    %c0_29 = arith.constant 0 : index
    %c0_30 = arith.constant 0 : index
    %c0_31 = arith.constant 0 : index
    %45 = vector.load %arg9[%c0_29, %c0_30, %c0_31] : memref<4x64x64xbf16, #tpu.memory_space<vmem>>, vector<1x64x64xbf16>
    %46 = vector.shape_cast %45 : vector<1x64x64xbf16> to vector<64x64xbf16>
    %cst_32 = arith.constant dense<0.000000e+00> : vector<128x64xf32>
    %47 = tpu.matmul %37, %46, %cst_32 {dimension_numbers = #tpu.dot_dimension_numbers<[1], [0], [0], [1], [0, 0, 1, 1], [], []>} : vector<128x64xbf16>, vector<64x64xbf16>, vector<128x64xf32> -> vector<128x64xf32>
    %c0_33 = arith.constant 0 : index
    %c0_34 = arith.constant 0 : index
    %c0_35 = arith.constant 0 : index
    %48 = vector.load %arg12[%c0_33, %c0_34, %c0_35] : memref<4x1x64xf32, #tpu.memory_space<vmem>>, vector<1x1x64xf32>
    %49 = vector.shape_cast %48 : vector<1x1x64xf32> to vector<1x64xf32>
    %50 = vector.broadcast %49 : vector<1x64xf32> to vector<128x64xf32>
    %51 = arith.addf %47, %50 : vector<128x64xf32>
    %c0_36 = arith.constant 0 : index
    %c0_37 = arith.constant 0 : index
    %c0_38 = arith.constant 0 : index
    %52 = vector.load %arg10[%c0_36, %c0_37, %c0_38] : memref<4x64x64xbf16, #tpu.memory_space<vmem>>, vector<1x64x64xbf16>
    %53 = vector.shape_cast %52 : vector<1x64x64xbf16> to vector<64x64xbf16>
    %cst_39 = arith.constant dense<0.000000e+00> : vector<128x64xf32>
    %54 = tpu.matmul %37, %53, %cst_39 {dimension_numbers = #tpu.dot_dimension_numbers<[1], [0], [0], [1], [0, 0, 1, 1], [], []>} : vector<128x64xbf16>, vector<64x64xbf16>, vector<128x64xf32> -> vector<128x64xf32>
    %c0_40 = arith.constant 0 : index
    %c0_41 = arith.constant 0 : index
    %c0_42 = arith.constant 0 : index
    %55 = vector.load %arg13[%c0_40, %c0_41, %c0_42] : memref<4x1x64xf32, #tpu.memory_space<vmem>>, vector<1x1x64xf32>
    %56 = vector.shape_cast %55 : vector<1x1x64xf32> to vector<1x64xf32>
    %57 = vector.broadcast %56 : vector<1x64xf32> to vector<128x64xf32>
    %58 = arith.addf %54, %57 : vector<128x64xf32>
    %59 = vector.shape_cast %44 : vector<128x64xf32> to vector<2x64x64xf32>
    %60 = vector.shape_cast %51 : vector<128x64xf32> to vector<2x64x64xf32>
    %61 = vector.shape_cast %58 : vector<128x64xf32> to vector<2x64x64xf32>
    %62 = vector.extract_strided_slice %60 {offsets = [0, 0, 0], sizes = [1, 64, 64], strides = [1, 1, 1]} : vector<2x64x64xf32> to vector<1x64x64xf32>
    %63 = vector.shape_cast %62 : vector<1x64x64xf32> to vector<64x64xf32>
    %64 = vector.shape_cast %63 : vector<64x64xf32> to vector<1x64x64xf32>
    %65 = vector.broadcast %64 : vector<1x64x64xf32> to vector<2x64x64xf32>
    %66 = arith.mulf %59, %65 : vector<2x64x64xf32>
    %67 = vector.shape_cast %66 : vector<2x64x64xf32> to vector<128x64xf32>
    %68 = arith.truncf %67 : vector<128x64xf32> to vector<128x64xbf16>
    %cst_43 = arith.constant dense<0.000000e+00> : vector<128x4xf32>
    %69 = tpu.matmul %68, %0, %cst_43 {dimension_numbers = #tpu.dot_dimension_numbers<[1], [0], [0], [1], [0, 0, 1, 1], [], []>} : vector<128x64xbf16>, vector<64x4xbf16>, vector<128x4xf32> -> vector<128x4xf32>
    %cst_44 = arith.constant 2.500000e-01 : f32
    %70 = vector.broadcast %cst_44 : f32 to vector<128x4xf32>
    %71 = arith.mulf %69, %70 : vector<128x4xf32>
    %72 = vector.extract_strided_slice %60 {offsets = [1, 0, 0], sizes = [1, 64, 64], strides = [1, 1, 1]} : vector<2x64x64xf32> to vector<1x64x64xf32>
    %73 = vector.shape_cast %72 : vector<1x64x64xf32> to vector<64x64xf32>
    %74 = vector.shape_cast %73 : vector<64x64xf32> to vector<1x64x64xf32>
    %75 = vector.broadcast %74 : vector<1x64x64xf32> to vector<2x64x64xf32>
    %76 = arith.mulf %59, %75 : vector<2x64x64xf32>
    %77 = vector.shape_cast %76 : vector<2x64x64xf32> to vector<128x64xf32>
    %78 = arith.truncf %77 : vector<128x64xf32> to vector<128x64xbf16>
    %cst_45 = arith.constant dense<0.000000e+00> : vector<128x4xf32>
    %79 = tpu.matmul %78, %0, %cst_45 {dimension_numbers = #tpu.dot_dimension_numbers<[1], [0], [0], [1], [0, 0, 1, 1], [], []>} : vector<128x64xbf16>, vector<64x4xbf16>, vector<128x4xf32> -> vector<128x4xf32>
    %cst_46 = arith.constant 2.500000e-01 : f32
    %80 = vector.broadcast %cst_46 : f32 to vector<128x4xf32>
    %81 = arith.mulf %79, %80 : vector<128x4xf32>
    %82 = arith.maximumf %71, %81 : vector<128x4xf32>
    %83 = arith.subf %71, %82 : vector<128x4xf32>
    %84 = math.exp %83 : vector<128x4xf32>
    %85 = arith.subf %81, %82 : vector<128x4xf32>
    %86 = math.exp %85 : vector<128x4xf32>
    %87 = arith.addf %84, %86 : vector<128x4xf32>
    %88 = tpu.reciprocal %87 {approx = true} : vector<128x4xf32> -> vector<128x4xf32>
    %89 = arith.mulf %84, %88 : vector<128x4xf32>
    %90 = arith.truncf %89 : vector<128x4xf32> to vector<128x4xbf16>
    %cst_47 = arith.constant dense<0.000000e+00> : vector<128x64xf32>
    %91 = tpu.matmul %90, %1, %cst_47 {dimension_numbers = #tpu.dot_dimension_numbers<[1], [0], [0], [1], [0, 0, 1, 1], [], []>} : vector<128x4xbf16>, vector<4x64xbf16>, vector<128x64xf32> -> vector<128x64xf32>
    %92 = vector.shape_cast %91 : vector<128x64xf32> to vector<2x64x64xf32>
    %93 = vector.extract_strided_slice %61 {offsets = [0, 0, 0], sizes = [1, 64, 64], strides = [1, 1, 1]} : vector<2x64x64xf32> to vector<1x64x64xf32>
    %94 = vector.shape_cast %93 : vector<1x64x64xf32> to vector<64x64xf32>
    %95 = vector.shape_cast %94 : vector<64x64xf32> to vector<1x64x64xf32>
    %96 = vector.broadcast %95 : vector<1x64x64xf32> to vector<2x64x64xf32>
    %97 = arith.mulf %92, %96 : vector<2x64x64xf32>
    %98 = arith.mulf %86, %88 : vector<128x4xf32>
    %99 = arith.truncf %98 : vector<128x4xf32> to vector<128x4xbf16>
    %cst_48 = arith.constant dense<0.000000e+00> : vector<128x64xf32>
    %100 = tpu.matmul %99, %1, %cst_48 {dimension_numbers = #tpu.dot_dimension_numbers<[1], [0], [0], [1], [0, 0, 1, 1], [], []>} : vector<128x4xbf16>, vector<4x64xbf16>, vector<128x64xf32> -> vector<128x64xf32>
    %101 = vector.shape_cast %100 : vector<128x64xf32> to vector<2x64x64xf32>
    %102 = vector.extract_strided_slice %61 {offsets = [1, 0, 0], sizes = [1, 64, 64], strides = [1, 1, 1]} : vector<2x64x64xf32> to vector<1x64x64xf32>
    %103 = vector.shape_cast %102 : vector<1x64x64xf32> to vector<64x64xf32>
    %104 = vector.shape_cast %103 : vector<64x64xf32> to vector<1x64x64xf32>
    %105 = vector.broadcast %104 : vector<1x64x64xf32> to vector<2x64x64xf32>
    %106 = arith.mulf %101, %105 : vector<2x64x64xf32>
    %107 = arith.addf %97, %106 : vector<2x64x64xf32>
    %108 = vector.shape_cast %107 : vector<2x64x64xf32> to vector<128x64xf32>
    %109 = arith.truncf %108 : vector<128x64xf32> to vector<128x64xbf16>
    %c0_49 = arith.constant 0 : index
    %c0_50 = arith.constant 0 : index
    %c0_51 = arith.constant 0 : index
    %110 = vector.load %arg14[%c0_49, %c0_50, %c0_51] : memref<4x64x64xbf16, #tpu.memory_space<vmem>>, vector<1x64x64xbf16>
    %111 = vector.shape_cast %110 : vector<1x64x64xbf16> to vector<64x64xbf16>
    %cst_52 = arith.constant dense<0.000000e+00> : vector<128x64xf32>
    %112 = tpu.matmul %109, %111, %cst_52 {dimension_numbers = #tpu.dot_dimension_numbers<[1], [0], [0], [1], [0, 0, 1, 1], [], []>} : vector<128x64xbf16>, vector<64x64xbf16>, vector<128x64xf32> -> vector<128x64xf32>
    %c0_53 = arith.constant 0 : index
    %c0_54 = arith.constant 0 : index
    %c0_55 = arith.constant 0 : index
    %113 = vector.load %arg15[%c0_53, %c0_54, %c0_55] : memref<4x1x64xf32, #tpu.memory_space<vmem>>, vector<1x1x64xf32>
    %114 = vector.shape_cast %113 : vector<1x1x64xf32> to vector<1x64xf32>
    %115 = vector.broadcast %114 : vector<1x64xf32> to vector<128x64xf32>
    %116 = arith.addf %112, %115 : vector<128x64xf32>
    %117 = arith.addf %10, %116 : vector<128x64xf32>
    %c0_56 = arith.constant 0 : index
    %c0_57 = arith.constant 0 : index
    %c0_58 = arith.constant 0 : index
    %118 = vector.load %arg16[%c0_56, %c0_57, %c0_58] : memref<4x1x64xf32, #tpu.memory_space<vmem>>, vector<1x1x64xf32>
    %119 = vector.shape_cast %118 : vector<1x1x64xf32> to vector<1x64xf32>
    %c0_59 = arith.constant 0 : index
    %c0_60 = arith.constant 0 : index
    %c0_61 = arith.constant 0 : index
    %120 = vector.load %arg17[%c0_59, %c0_60, %c0_61] : memref<4x1x64xf32, #tpu.memory_space<vmem>>, vector<1x1x64xf32>
    %121 = vector.shape_cast %120 : vector<1x1x64xf32> to vector<1x64xf32>
    %cst_62 = arith.constant dense<0.000000e+00> : vector<128xf32>
    %122 = vector.multi_reduction <add>, %117, %cst_62 [1] : vector<128x64xf32> to vector<128xf32>
    %123 = vector.shape_cast %122 : vector<128xf32> to vector<128x1xf32>
    %cst_63 = arith.constant 6.400000e+01 : f32
    %124 = vector.broadcast %cst_63 : f32 to vector<128x1xf32>
    %125 = arith.divf %123, %124 : vector<128x1xf32>
    %126 = vector.broadcast %125 : vector<128x1xf32> to vector<128x64xf32>
    %127 = arith.subf %117, %126 : vector<128x64xf32>
    %128 = arith.mulf %127, %127 : vector<128x64xf32>
    %cst_64 = arith.constant dense<0.000000e+00> : vector<128xf32>
    %129 = vector.multi_reduction <add>, %128, %cst_64 [1] : vector<128x64xf32> to vector<128xf32>
    %130 = vector.shape_cast %129 : vector<128xf32> to vector<128x1xf32>
    %cst_65 = arith.constant 6.400000e+01 : f32
    %131 = vector.broadcast %cst_65 : f32 to vector<128x1xf32>
    %132 = arith.divf %130, %131 : vector<128x1xf32>
    %133 = vector.broadcast %125 : vector<128x1xf32> to vector<128x64xf32>
    %134 = arith.subf %117, %133 : vector<128x64xf32>
    %cst_66 = arith.constant 9.99999974E-6 : f32
    %135 = vector.broadcast %cst_66 : f32 to vector<128x1xf32>
    %136 = arith.addf %132, %135 : vector<128x1xf32>
    %137 = math.rsqrt %136 : vector<128x1xf32>
    %138 = vector.broadcast %137 : vector<128x1xf32> to vector<128x64xf32>
    %139 = arith.mulf %134, %138 : vector<128x64xf32>
    %140 = vector.broadcast %119 : vector<1x64xf32> to vector<128x64xf32>
    %141 = arith.mulf %139, %140 : vector<128x64xf32>
    %142 = vector.broadcast %121 : vector<1x64xf32> to vector<128x64xf32>
    %143 = arith.addf %141, %142 : vector<128x64xf32>
    %144 = arith.truncf %143 : vector<128x64xf32> to vector<128x64xbf16>
    %c0_67 = arith.constant 0 : index
    %c0_68 = arith.constant 0 : index
    %c0_69 = arith.constant 0 : index
    %145 = vector.load %arg18[%c0_67, %c0_68, %c0_69] : memref<4x64x128xbf16, #tpu.memory_space<vmem>>, vector<1x64x128xbf16>
    %146 = vector.shape_cast %145 : vector<1x64x128xbf16> to vector<64x128xbf16>
    %cst_70 = arith.constant dense<0.000000e+00> : vector<128x128xf32>
    %147 = tpu.matmul %144, %146, %cst_70 {dimension_numbers = #tpu.dot_dimension_numbers<[1], [0], [0], [1], [0, 0, 1, 1], [], []>} : vector<128x64xbf16>, vector<64x128xbf16>, vector<128x128xf32> -> vector<128x128xf32>
    %c0_71 = arith.constant 0 : index
    %c0_72 = arith.constant 0 : index
    %c0_73 = arith.constant 0 : index
    %148 = vector.load %arg19[%c0_71, %c0_72, %c0_73] : memref<4x1x128xf32, #tpu.memory_space<vmem>>, vector<1x1x128xf32>
    %149 = vector.shape_cast %148 : vector<1x1x128xf32> to vector<1x128xf32>
    %150 = vector.broadcast %149 : vector<1x128xf32> to vector<128x128xf32>
    %151 = arith.addf %147, %150 : vector<128x128xf32>
    %cst_74 = arith.constant 5.000000e-01 : f32
    %152 = vector.broadcast %cst_74 : f32 to vector<128x128xf32>
    %153 = arith.mulf %152, %151 : vector<128x128xf32>
    %cst_75 = arith.constant 0.707106769 : f32
    %154 = vector.broadcast %cst_75 : f32 to vector<128x128xf32>
    %155 = arith.mulf %151, %154 : vector<128x128xf32>
    %156 = math.erf %155 : vector<128x128xf32>
    %cst_76 = arith.constant 1.000000e+00 : f32
    %157 = vector.broadcast %cst_76 : f32 to vector<128x128xf32>
    %158 = arith.addf %157, %156 : vector<128x128xf32>
    %159 = arith.mulf %153, %158 : vector<128x128xf32>
    %160 = arith.truncf %159 : vector<128x128xf32> to vector<128x128xbf16>
    %c0_77 = arith.constant 0 : index
    %c0_78 = arith.constant 0 : index
    %c0_79 = arith.constant 0 : index
    %161 = vector.load %arg20[%c0_77, %c0_78, %c0_79] : memref<4x128x64xbf16, #tpu.memory_space<vmem>>, vector<1x128x64xbf16>
    %162 = vector.shape_cast %161 : vector<1x128x64xbf16> to vector<128x64xbf16>
    %cst_80 = arith.constant dense<0.000000e+00> : vector<128x64xf32>
    %163 = tpu.matmul %160, %162, %cst_80 {dimension_numbers = #tpu.dot_dimension_numbers<[1], [0], [0], [1], [0, 0, 1, 1], [], []>} : vector<128x128xbf16>, vector<128x64xbf16>, vector<128x64xf32> -> vector<128x64xf32>
    %c0_81 = arith.constant 0 : index
    %c0_82 = arith.constant 0 : index
    %c0_83 = arith.constant 0 : index
    %164 = vector.load %arg21[%c0_81, %c0_82, %c0_83] : memref<4x1x64xf32, #tpu.memory_space<vmem>>, vector<1x1x64xf32>
    %165 = vector.shape_cast %164 : vector<1x1x64xf32> to vector<1x64xf32>
    %166 = vector.broadcast %165 : vector<1x64xf32> to vector<128x64xf32>
    %167 = arith.addf %163, %166 : vector<128x64xf32>
    %168 = arith.addf %117, %167 : vector<128x64xf32>
    %c1 = arith.constant 1 : index
    %c0_84 = arith.constant 0 : index
    %c0_85 = arith.constant 0 : index
    %169 = vector.load %arg6[%c1, %c0_84, %c0_85] : memref<4x1x64xf32, #tpu.memory_space<vmem>>, vector<1x1x64xf32>
    %170 = vector.shape_cast %169 : vector<1x1x64xf32> to vector<1x64xf32>
    %c1_86 = arith.constant 1 : index
    %c0_87 = arith.constant 0 : index
    %c0_88 = arith.constant 0 : index
    %171 = vector.load %arg7[%c1_86, %c0_87, %c0_88] : memref<4x1x64xf32, #tpu.memory_space<vmem>>, vector<1x1x64xf32>
    %172 = vector.shape_cast %171 : vector<1x1x64xf32> to vector<1x64xf32>
    %cst_89 = arith.constant dense<0.000000e+00> : vector<128xf32>
    %173 = vector.multi_reduction <add>, %168, %cst_89 [1] : vector<128x64xf32> to vector<128xf32>
    %174 = vector.shape_cast %173 : vector<128xf32> to vector<128x1xf32>
    %cst_90 = arith.constant 6.400000e+01 : f32
    %175 = vector.broadcast %cst_90 : f32 to vector<128x1xf32>
    %176 = arith.divf %174, %175 : vector<128x1xf32>
    %177 = vector.broadcast %176 : vector<128x1xf32> to vector<128x64xf32>
    %178 = arith.subf %168, %177 : vector<128x64xf32>
    %179 = arith.mulf %178, %178 : vector<128x64xf32>
    %cst_91 = arith.constant dense<0.000000e+00> : vector<128xf32>
    %180 = vector.multi_reduction <add>, %179, %cst_91 [1] : vector<128x64xf32> to vector<128xf32>
    %181 = vector.shape_cast %180 : vector<128xf32> to vector<128x1xf32>
    %cst_92 = arith.constant 6.400000e+01 : f32
    %182 = vector.broadcast %cst_92 : f32 to vector<128x1xf32>
    %183 = arith.divf %181, %182 : vector<128x1xf32>
    %184 = vector.broadcast %176 : vector<128x1xf32> to vector<128x64xf32>
    %185 = arith.subf %168, %184 : vector<128x64xf32>
    %cst_93 = arith.constant 9.99999974E-6 : f32
    %186 = vector.broadcast %cst_93 : f32 to vector<128x1xf32>
    %187 = arith.addf %183, %186 : vector<128x1xf32>
    %188 = math.rsqrt %187 : vector<128x1xf32>
    %189 = vector.broadcast %188 : vector<128x1xf32> to vector<128x64xf32>
    %190 = arith.mulf %185, %189 : vector<128x64xf32>
    %191 = vector.broadcast %170 : vector<1x64xf32> to vector<128x64xf32>
    %192 = arith.mulf %190, %191 : vector<128x64xf32>
    %193 = vector.broadcast %172 : vector<1x64xf32> to vector<128x64xf32>
    %194 = arith.addf %192, %193 : vector<128x64xf32>
    %195 = arith.truncf %194 : vector<128x64xf32> to vector<128x64xbf16>
    %c1_94 = arith.constant 1 : index
    %c0_95 = arith.constant 0 : index
    %c0_96 = arith.constant 0 : index
    %196 = vector.load %arg8[%c1_94, %c0_95, %c0_96] : memref<4x64x64xbf16, #tpu.memory_space<vmem>>, vector<1x64x64xbf16>
    %197 = vector.shape_cast %196 : vector<1x64x64xbf16> to vector<64x64xbf16>
    %cst_97 = arith.constant dense<0.000000e+00> : vector<128x64xf32>
    %198 = tpu.matmul %195, %197, %cst_97 {dimension_numbers = #tpu.dot_dimension_numbers<[1], [0], [0], [1], [0, 0, 1, 1], [], []>} : vector<128x64xbf16>, vector<64x64xbf16>, vector<128x64xf32> -> vector<128x64xf32>
    %c1_98 = arith.constant 1 : index
    %c0_99 = arith.constant 0 : index
    %c0_100 = arith.constant 0 : index
    %199 = vector.load %arg11[%c1_98, %c0_99, %c0_100] : memref<4x1x64xf32, #tpu.memory_space<vmem>>, vector<1x1x64xf32>
    %200 = vector.shape_cast %199 : vector<1x1x64xf32> to vector<1x64xf32>
    %201 = vector.broadcast %200 : vector<1x64xf32> to vector<128x64xf32>
    %202 = arith.addf %198, %201 : vector<128x64xf32>
    %c1_101 = arith.constant 1 : index
    %c0_102 = arith.constant 0 : index
    %c0_103 = arith.constant 0 : index
    %203 = vector.load %arg9[%c1_101, %c0_102, %c0_103] : memref<4x64x64xbf16, #tpu.memory_space<vmem>>, vector<1x64x64xbf16>
    %204 = vector.shape_cast %203 : vector<1x64x64xbf16> to vector<64x64xbf16>
    %cst_104 = arith.constant dense<0.000000e+00> : vector<128x64xf32>
    %205 = tpu.matmul %195, %204, %cst_104 {dimension_numbers = #tpu.dot_dimension_numbers<[1], [0], [0], [1], [0, 0, 1, 1], [], []>} : vector<128x64xbf16>, vector<64x64xbf16>, vector<128x64xf32> -> vector<128x64xf32>
    %c1_105 = arith.constant 1 : index
    %c0_106 = arith.constant 0 : index
    %c0_107 = arith.constant 0 : index
    %206 = vector.load %arg12[%c1_105, %c0_106, %c0_107] : memref<4x1x64xf32, #tpu.memory_space<vmem>>, vector<1x1x64xf32>
    %207 = vector.shape_cast %206 : vector<1x1x64xf32> to vector<1x64xf32>
    %208 = vector.broadcast %207 : vector<1x64xf32> to vector<128x64xf32>
    %209 = arith.addf %205, %208 : vector<128x64xf32>
    %c1_108 = arith.constant 1 : index
    %c0_109 = arith.constant 0 : index
    %c0_110 = arith.constant 0 : index
    %210 = vector.load %arg10[%c1_108, %c0_109, %c0_110] : memref<4x64x64xbf16, #tpu.memory_space<vmem>>, vector<1x64x64xbf16>
    %211 = vector.shape_cast %210 : vector<1x64x64xbf16> to vector<64x64xbf16>
    %cst_111 = arith.constant dense<0.000000e+00> : vector<128x64xf32>
    %212 = tpu.matmul %195, %211, %cst_111 {dimension_numbers = #tpu.dot_dimension_numbers<[1], [0], [0], [1], [0, 0, 1, 1], [], []>} : vector<128x64xbf16>, vector<64x64xbf16>, vector<128x64xf32> -> vector<128x64xf32>
    %c1_112 = arith.constant 1 : index
    %c0_113 = arith.constant 0 : index
    %c0_114 = arith.constant 0 : index
    %213 = vector.load %arg13[%c1_112, %c0_113, %c0_114] : memref<4x1x64xf32, #tpu.memory_space<vmem>>, vector<1x1x64xf32>
    %214 = vector.shape_cast %213 : vector<1x1x64xf32> to vector<1x64xf32>
    %215 = vector.broadcast %214 : vector<1x64xf32> to vector<128x64xf32>
    %216 = arith.addf %212, %215 : vector<128x64xf32>
    %217 = vector.shape_cast %202 : vector<128x64xf32> to vector<2x64x64xf32>
    %218 = vector.shape_cast %209 : vector<128x64xf32> to vector<2x64x64xf32>
    %219 = vector.shape_cast %216 : vector<128x64xf32> to vector<2x64x64xf32>
    %220 = vector.extract_strided_slice %218 {offsets = [0, 0, 0], sizes = [1, 64, 64], strides = [1, 1, 1]} : vector<2x64x64xf32> to vector<1x64x64xf32>
    %221 = vector.shape_cast %220 : vector<1x64x64xf32> to vector<64x64xf32>
    %222 = vector.shape_cast %221 : vector<64x64xf32> to vector<1x64x64xf32>
    %223 = vector.broadcast %222 : vector<1x64x64xf32> to vector<2x64x64xf32>
    %224 = arith.mulf %217, %223 : vector<2x64x64xf32>
    %225 = vector.shape_cast %224 : vector<2x64x64xf32> to vector<128x64xf32>
    %226 = arith.truncf %225 : vector<128x64xf32> to vector<128x64xbf16>
    %cst_115 = arith.constant dense<0.000000e+00> : vector<128x4xf32>
    %227 = tpu.matmul %226, %0, %cst_115 {dimension_numbers = #tpu.dot_dimension_numbers<[1], [0], [0], [1], [0, 0, 1, 1], [], []>} : vector<128x64xbf16>, vector<64x4xbf16>, vector<128x4xf32> -> vector<128x4xf32>
    %cst_116 = arith.constant 2.500000e-01 : f32
    %228 = vector.broadcast %cst_116 : f32 to vector<128x4xf32>
    %229 = arith.mulf %227, %228 : vector<128x4xf32>
    %230 = vector.extract_strided_slice %218 {offsets = [1, 0, 0], sizes = [1, 64, 64], strides = [1, 1, 1]} : vector<2x64x64xf32> to vector<1x64x64xf32>
    %231 = vector.shape_cast %230 : vector<1x64x64xf32> to vector<64x64xf32>
    %232 = vector.shape_cast %231 : vector<64x64xf32> to vector<1x64x64xf32>
    %233 = vector.broadcast %232 : vector<1x64x64xf32> to vector<2x64x64xf32>
    %234 = arith.mulf %217, %233 : vector<2x64x64xf32>
    %235 = vector.shape_cast %234 : vector<2x64x64xf32> to vector<128x64xf32>
    %236 = arith.truncf %235 : vector<128x64xf32> to vector<128x64xbf16>
    %cst_117 = arith.constant dense<0.000000e+00> : vector<128x4xf32>
    %237 = tpu.matmul %236, %0, %cst_117 {dimension_numbers = #tpu.dot_dimension_numbers<[1], [0], [0], [1], [0, 0, 1, 1], [], []>} : vector<128x64xbf16>, vector<64x4xbf16>, vector<128x4xf32> -> vector<128x4xf32>
    %cst_118 = arith.constant 2.500000e-01 : f32
    %238 = vector.broadcast %cst_118 : f32 to vector<128x4xf32>
    %239 = arith.mulf %237, %238 : vector<128x4xf32>
    %240 = arith.maximumf %229, %239 : vector<128x4xf32>
    %241 = arith.subf %229, %240 : vector<128x4xf32>
    %242 = math.exp %241 : vector<128x4xf32>
    %243 = arith.subf %239, %240 : vector<128x4xf32>
    %244 = math.exp %243 : vector<128x4xf32>
    %245 = arith.addf %242, %244 : vector<128x4xf32>
    %246 = tpu.reciprocal %245 {approx = true} : vector<128x4xf32> -> vector<128x4xf32>
    %247 = arith.mulf %242, %246 : vector<128x4xf32>
    %248 = arith.truncf %247 : vector<128x4xf32> to vector<128x4xbf16>
    %cst_119 = arith.constant dense<0.000000e+00> : vector<128x64xf32>
    %249 = tpu.matmul %248, %1, %cst_119 {dimension_numbers = #tpu.dot_dimension_numbers<[1], [0], [0], [1], [0, 0, 1, 1], [], []>} : vector<128x4xbf16>, vector<4x64xbf16>, vector<128x64xf32> -> vector<128x64xf32>
    %250 = vector.shape_cast %249 : vector<128x64xf32> to vector<2x64x64xf32>
    %251 = vector.extract_strided_slice %219 {offsets = [0, 0, 0], sizes = [1, 64, 64], strides = [1, 1, 1]} : vector<2x64x64xf32> to vector<1x64x64xf32>
    %252 = vector.shape_cast %251 : vector<1x64x64xf32> to vector<64x64xf32>
    %253 = vector.shape_cast %252 : vector<64x64xf32> to vector<1x64x64xf32>
    %254 = vector.broadcast %253 : vector<1x64x64xf32> to vector<2x64x64xf32>
    %255 = arith.mulf %250, %254 : vector<2x64x64xf32>
    %256 = arith.mulf %244, %246 : vector<128x4xf32>
    %257 = arith.truncf %256 : vector<128x4xf32> to vector<128x4xbf16>
    %cst_120 = arith.constant dense<0.000000e+00> : vector<128x64xf32>
    %258 = tpu.matmul %257, %1, %cst_120 {dimension_numbers = #tpu.dot_dimension_numbers<[1], [0], [0], [1], [0, 0, 1, 1], [], []>} : vector<128x4xbf16>, vector<4x64xbf16>, vector<128x64xf32> -> vector<128x64xf32>
    %259 = vector.shape_cast %258 : vector<128x64xf32> to vector<2x64x64xf32>
    %260 = vector.extract_strided_slice %219 {offsets = [1, 0, 0], sizes = [1, 64, 64], strides = [1, 1, 1]} : vector<2x64x64xf32> to vector<1x64x64xf32>
    %261 = vector.shape_cast %260 : vector<1x64x64xf32> to vector<64x64xf32>
    %262 = vector.shape_cast %261 : vector<64x64xf32> to vector<1x64x64xf32>
    %263 = vector.broadcast %262 : vector<1x64x64xf32> to vector<2x64x64xf32>
    %264 = arith.mulf %259, %263 : vector<2x64x64xf32>
    %265 = arith.addf %255, %264 : vector<2x64x64xf32>
    %266 = vector.shape_cast %265 : vector<2x64x64xf32> to vector<128x64xf32>
    %267 = arith.truncf %266 : vector<128x64xf32> to vector<128x64xbf16>
    %c1_121 = arith.constant 1 : index
    %c0_122 = arith.constant 0 : index
    %c0_123 = arith.constant 0 : index
    %268 = vector.load %arg14[%c1_121, %c0_122, %c0_123] : memref<4x64x64xbf16, #tpu.memory_space<vmem>>, vector<1x64x64xbf16>
    %269 = vector.shape_cast %268 : vector<1x64x64xbf16> to vector<64x64xbf16>
    %cst_124 = arith.constant dense<0.000000e+00> : vector<128x64xf32>
    %270 = tpu.matmul %267, %269, %cst_124 {dimension_numbers = #tpu.dot_dimension_numbers<[1], [0], [0], [1], [0, 0, 1, 1], [], []>} : vector<128x64xbf16>, vector<64x64xbf16>, vector<128x64xf32> -> vector<128x64xf32>
    %c1_125 = arith.constant 1 : index
    %c0_126 = arith.constant 0 : index
    %c0_127 = arith.constant 0 : index
    %271 = vector.load %arg15[%c1_125, %c0_126, %c0_127] : memref<4x1x64xf32, #tpu.memory_space<vmem>>, vector<1x1x64xf32>
    %272 = vector.shape_cast %271 : vector<1x1x64xf32> to vector<1x64xf32>
    %273 = vector.broadcast %272 : vector<1x64xf32> to vector<128x64xf32>
    %274 = arith.addf %270, %273 : vector<128x64xf32>
    %275 = arith.addf %168, %274 : vector<128x64xf32>
    %c1_128 = arith.constant 1 : index
    %c0_129 = arith.constant 0 : index
    %c0_130 = arith.constant 0 : index
    %276 = vector.load %arg16[%c1_128, %c0_129, %c0_130] : memref<4x1x64xf32, #tpu.memory_space<vmem>>, vector<1x1x64xf32>
    %277 = vector.shape_cast %276 : vector<1x1x64xf32> to vector<1x64xf32>
    %c1_131 = arith.constant 1 : index
    %c0_132 = arith.constant 0 : index
    %c0_133 = arith.constant 0 : index
    %278 = vector.load %arg17[%c1_131, %c0_132, %c0_133] : memref<4x1x64xf32, #tpu.memory_space<vmem>>, vector<1x1x64xf32>
    %279 = vector.shape_cast %278 : vector<1x1x64xf32> to vector<1x64xf32>
    %cst_134 = arith.constant dense<0.000000e+00> : vector<128xf32>
    %280 = vector.multi_reduction <add>, %275, %cst_134 [1] : vector<128x64xf32> to vector<128xf32>
    %281 = vector.shape_cast %280 : vector<128xf32> to vector<128x1xf32>
    %cst_135 = arith.constant 6.400000e+01 : f32
    %282 = vector.broadcast %cst_135 : f32 to vector<128x1xf32>
    %283 = arith.divf %281, %282 : vector<128x1xf32>
    %284 = vector.broadcast %283 : vector<128x1xf32> to vector<128x64xf32>
    %285 = arith.subf %275, %284 : vector<128x64xf32>
    %286 = arith.mulf %285, %285 : vector<128x64xf32>
    %cst_136 = arith.constant dense<0.000000e+00> : vector<128xf32>
    %287 = vector.multi_reduction <add>, %286, %cst_136 [1] : vector<128x64xf32> to vector<128xf32>
    %288 = vector.shape_cast %287 : vector<128xf32> to vector<128x1xf32>
    %cst_137 = arith.constant 6.400000e+01 : f32
    %289 = vector.broadcast %cst_137 : f32 to vector<128x1xf32>
    %290 = arith.divf %288, %289 : vector<128x1xf32>
    %291 = vector.broadcast %283 : vector<128x1xf32> to vector<128x64xf32>
    %292 = arith.subf %275, %291 : vector<128x64xf32>
    %cst_138 = arith.constant 9.99999974E-6 : f32
    %293 = vector.broadcast %cst_138 : f32 to vector<128x1xf32>
    %294 = arith.addf %290, %293 : vector<128x1xf32>
    %295 = math.rsqrt %294 : vector<128x1xf32>
    %296 = vector.broadcast %295 : vector<128x1xf32> to vector<128x64xf32>
    %297 = arith.mulf %292, %296 : vector<128x64xf32>
    %298 = vector.broadcast %277 : vector<1x64xf32> to vector<128x64xf32>
    %299 = arith.mulf %297, %298 : vector<128x64xf32>
    %300 = vector.broadcast %279 : vector<1x64xf32> to vector<128x64xf32>
    %301 = arith.addf %299, %300 : vector<128x64xf32>
    %302 = arith.truncf %301 : vector<128x64xf32> to vector<128x64xbf16>
    %c1_139 = arith.constant 1 : index
    %c0_140 = arith.constant 0 : index
    %c0_141 = arith.constant 0 : index
    %303 = vector.load %arg18[%c1_139, %c0_140, %c0_141] : memref<4x64x128xbf16, #tpu.memory_space<vmem>>, vector<1x64x128xbf16>
    %304 = vector.shape_cast %303 : vector<1x64x128xbf16> to vector<64x128xbf16>
    %cst_142 = arith.constant dense<0.000000e+00> : vector<128x128xf32>
    %305 = tpu.matmul %302, %304, %cst_142 {dimension_numbers = #tpu.dot_dimension_numbers<[1], [0], [0], [1], [0, 0, 1, 1], [], []>} : vector<128x64xbf16>, vector<64x128xbf16>, vector<128x128xf32> -> vector<128x128xf32>
    %c1_143 = arith.constant 1 : index
    %c0_144 = arith.constant 0 : index
    %c0_145 = arith.constant 0 : index
    %306 = vector.load %arg19[%c1_143, %c0_144, %c0_145] : memref<4x1x128xf32, #tpu.memory_space<vmem>>, vector<1x1x128xf32>
    %307 = vector.shape_cast %306 : vector<1x1x128xf32> to vector<1x128xf32>
    %308 = vector.broadcast %307 : vector<1x128xf32> to vector<128x128xf32>
    %309 = arith.addf %305, %308 : vector<128x128xf32>
    %cst_146 = arith.constant 5.000000e-01 : f32
    %310 = vector.broadcast %cst_146 : f32 to vector<128x128xf32>
    %311 = arith.mulf %310, %309 : vector<128x128xf32>
    %cst_147 = arith.constant 0.707106769 : f32
    %312 = vector.broadcast %cst_147 : f32 to vector<128x128xf32>
    %313 = arith.mulf %309, %312 : vector<128x128xf32>
    %314 = math.erf %313 : vector<128x128xf32>
    %cst_148 = arith.constant 1.000000e+00 : f32
    %315 = vector.broadcast %cst_148 : f32 to vector<128x128xf32>
    %316 = arith.addf %315, %314 : vector<128x128xf32>
    %317 = arith.mulf %311, %316 : vector<128x128xf32>
    %318 = arith.truncf %317 : vector<128x128xf32> to vector<128x128xbf16>
    %c1_149 = arith.constant 1 : index
    %c0_150 = arith.constant 0 : index
    %c0_151 = arith.constant 0 : index
    %319 = vector.load %arg20[%c1_149, %c0_150, %c0_151] : memref<4x128x64xbf16, #tpu.memory_space<vmem>>, vector<1x128x64xbf16>
    %320 = vector.shape_cast %319 : vector<1x128x64xbf16> to vector<128x64xbf16>
    %cst_152 = arith.constant dense<0.000000e+00> : vector<128x64xf32>
    %321 = tpu.matmul %318, %320, %cst_152 {dimension_numbers = #tpu.dot_dimension_numbers<[1], [0], [0], [1], [0, 0, 1, 1], [], []>} : vector<128x128xbf16>, vector<128x64xbf16>, vector<128x64xf32> -> vector<128x64xf32>
    %c1_153 = arith.constant 1 : index
    %c0_154 = arith.constant 0 : index
    %c0_155 = arith.constant 0 : index
    %322 = vector.load %arg21[%c1_153, %c0_154, %c0_155] : memref<4x1x64xf32, #tpu.memory_space<vmem>>, vector<1x1x64xf32>
    %323 = vector.shape_cast %322 : vector<1x1x64xf32> to vector<1x64xf32>
    %324 = vector.broadcast %323 : vector<1x64xf32> to vector<128x64xf32>
    %325 = arith.addf %321, %324 : vector<128x64xf32>
    %326 = arith.addf %275, %325 : vector<128x64xf32>
    %c2 = arith.constant 2 : index
    %c0_156 = arith.constant 0 : index
    %c0_157 = arith.constant 0 : index
    %327 = vector.load %arg6[%c2, %c0_156, %c0_157] : memref<4x1x64xf32, #tpu.memory_space<vmem>>, vector<1x1x64xf32>
    %328 = vector.shape_cast %327 : vector<1x1x64xf32> to vector<1x64xf32>
    %c2_158 = arith.constant 2 : index
    %c0_159 = arith.constant 0 : index
    %c0_160 = arith.constant 0 : index
    %329 = vector.load %arg7[%c2_158, %c0_159, %c0_160] : memref<4x1x64xf32, #tpu.memory_space<vmem>>, vector<1x1x64xf32>
    %330 = vector.shape_cast %329 : vector<1x1x64xf32> to vector<1x64xf32>
    %cst_161 = arith.constant dense<0.000000e+00> : vector<128xf32>
    %331 = vector.multi_reduction <add>, %326, %cst_161 [1] : vector<128x64xf32> to vector<128xf32>
    %332 = vector.shape_cast %331 : vector<128xf32> to vector<128x1xf32>
    %cst_162 = arith.constant 6.400000e+01 : f32
    %333 = vector.broadcast %cst_162 : f32 to vector<128x1xf32>
    %334 = arith.divf %332, %333 : vector<128x1xf32>
    %335 = vector.broadcast %334 : vector<128x1xf32> to vector<128x64xf32>
    %336 = arith.subf %326, %335 : vector<128x64xf32>
    %337 = arith.mulf %336, %336 : vector<128x64xf32>
    %cst_163 = arith.constant dense<0.000000e+00> : vector<128xf32>
    %338 = vector.multi_reduction <add>, %337, %cst_163 [1] : vector<128x64xf32> to vector<128xf32>
    %339 = vector.shape_cast %338 : vector<128xf32> to vector<128x1xf32>
    %cst_164 = arith.constant 6.400000e+01 : f32
    %340 = vector.broadcast %cst_164 : f32 to vector<128x1xf32>
    %341 = arith.divf %339, %340 : vector<128x1xf32>
    %342 = vector.broadcast %334 : vector<128x1xf32> to vector<128x64xf32>
    %343 = arith.subf %326, %342 : vector<128x64xf32>
    %cst_165 = arith.constant 9.99999974E-6 : f32
    %344 = vector.broadcast %cst_165 : f32 to vector<128x1xf32>
    %345 = arith.addf %341, %344 : vector<128x1xf32>
    %346 = math.rsqrt %345 : vector<128x1xf32>
    %347 = vector.broadcast %346 : vector<128x1xf32> to vector<128x64xf32>
    %348 = arith.mulf %343, %347 : vector<128x64xf32>
    %349 = vector.broadcast %328 : vector<1x64xf32> to vector<128x64xf32>
    %350 = arith.mulf %348, %349 : vector<128x64xf32>
    %351 = vector.broadcast %330 : vector<1x64xf32> to vector<128x64xf32>
    %352 = arith.addf %350, %351 : vector<128x64xf32>
    %353 = arith.truncf %352 : vector<128x64xf32> to vector<128x64xbf16>
    %c2_166 = arith.constant 2 : index
    %c0_167 = arith.constant 0 : index
    %c0_168 = arith.constant 0 : index
    %354 = vector.load %arg8[%c2_166, %c0_167, %c0_168] : memref<4x64x64xbf16, #tpu.memory_space<vmem>>, vector<1x64x64xbf16>
    %355 = vector.shape_cast %354 : vector<1x64x64xbf16> to vector<64x64xbf16>
    %cst_169 = arith.constant dense<0.000000e+00> : vector<128x64xf32>
    %356 = tpu.matmul %353, %355, %cst_169 {dimension_numbers = #tpu.dot_dimension_numbers<[1], [0], [0], [1], [0, 0, 1, 1], [], []>} : vector<128x64xbf16>, vector<64x64xbf16>, vector<128x64xf32> -> vector<128x64xf32>
    %c2_170 = arith.constant 2 : index
    %c0_171 = arith.constant 0 : index
    %c0_172 = arith.constant 0 : index
    %357 = vector.load %arg11[%c2_170, %c0_171, %c0_172] : memref<4x1x64xf32, #tpu.memory_space<vmem>>, vector<1x1x64xf32>
    %358 = vector.shape_cast %357 : vector<1x1x64xf32> to vector<1x64xf32>
    %359 = vector.broadcast %358 : vector<1x64xf32> to vector<128x64xf32>
    %360 = arith.addf %356, %359 : vector<128x64xf32>
    %c2_173 = arith.constant 2 : index
    %c0_174 = arith.constant 0 : index
    %c0_175 = arith.constant 0 : index
    %361 = vector.load %arg9[%c2_173, %c0_174, %c0_175] : memref<4x64x64xbf16, #tpu.memory_space<vmem>>, vector<1x64x64xbf16>
    %362 = vector.shape_cast %361 : vector<1x64x64xbf16> to vector<64x64xbf16>
    %cst_176 = arith.constant dense<0.000000e+00> : vector<128x64xf32>
    %363 = tpu.matmul %353, %362, %cst_176 {dimension_numbers = #tpu.dot_dimension_numbers<[1], [0], [0], [1], [0, 0, 1, 1], [], []>} : vector<128x64xbf16>, vector<64x64xbf16>, vector<128x64xf32> -> vector<128x64xf32>
    %c2_177 = arith.constant 2 : index
    %c0_178 = arith.constant 0 : index
    %c0_179 = arith.constant 0 : index
    %364 = vector.load %arg12[%c2_177, %c0_178, %c0_179] : memref<4x1x64xf32, #tpu.memory_space<vmem>>, vector<1x1x64xf32>
    %365 = vector.shape_cast %364 : vector<1x1x64xf32> to vector<1x64xf32>
    %366 = vector.broadcast %365 : vector<1x64xf32> to vector<128x64xf32>
    %367 = arith.addf %363, %366 : vector<128x64xf32>
    %c2_180 = arith.constant 2 : index
    %c0_181 = arith.constant 0 : index
    %c0_182 = arith.constant 0 : index
    %368 = vector.load %arg10[%c2_180, %c0_181, %c0_182] : memref<4x64x64xbf16, #tpu.memory_space<vmem>>, vector<1x64x64xbf16>
    %369 = vector.shape_cast %368 : vector<1x64x64xbf16> to vector<64x64xbf16>
    %cst_183 = arith.constant dense<0.000000e+00> : vector<128x64xf32>
    %370 = tpu.matmul %353, %369, %cst_183 {dimension_numbers = #tpu.dot_dimension_numbers<[1], [0], [0], [1], [0, 0, 1, 1], [], []>} : vector<128x64xbf16>, vector<64x64xbf16>, vector<128x64xf32> -> vector<128x64xf32>
    %c2_184 = arith.constant 2 : index
    %c0_185 = arith.constant 0 : index
    %c0_186 = arith.constant 0 : index
    %371 = vector.load %arg13[%c2_184, %c0_185, %c0_186] : memref<4x1x64xf32, #tpu.memory_space<vmem>>, vector<1x1x64xf32>
    %372 = vector.shape_cast %371 : vector<1x1x64xf32> to vector<1x64xf32>
    %373 = vector.broadcast %372 : vector<1x64xf32> to vector<128x64xf32>
    %374 = arith.addf %370, %373 : vector<128x64xf32>
    %375 = vector.shape_cast %360 : vector<128x64xf32> to vector<2x64x64xf32>
    %376 = vector.shape_cast %367 : vector<128x64xf32> to vector<2x64x64xf32>
    %377 = vector.shape_cast %374 : vector<128x64xf32> to vector<2x64x64xf32>
    %378 = vector.extract_strided_slice %376 {offsets = [0, 0, 0], sizes = [1, 64, 64], strides = [1, 1, 1]} : vector<2x64x64xf32> to vector<1x64x64xf32>
    %379 = vector.shape_cast %378 : vector<1x64x64xf32> to vector<64x64xf32>
    %380 = vector.shape_cast %379 : vector<64x64xf32> to vector<1x64x64xf32>
    %381 = vector.broadcast %380 : vector<1x64x64xf32> to vector<2x64x64xf32>
    %382 = arith.mulf %375, %381 : vector<2x64x64xf32>
    %383 = vector.shape_cast %382 : vector<2x64x64xf32> to vector<128x64xf32>
    %384 = arith.truncf %383 : vector<128x64xf32> to vector<128x64xbf16>
    %cst_187 = arith.constant dense<0.000000e+00> : vector<128x4xf32>
    %385 = tpu.matmul %384, %0, %cst_187 {dimension_numbers = #tpu.dot_dimension_numbers<[1], [0], [0], [1], [0, 0, 1, 1], [], []>} : vector<128x64xbf16>, vector<64x4xbf16>, vector<128x4xf32> -> vector<128x4xf32>
    %cst_188 = arith.constant 2.500000e-01 : f32
    %386 = vector.broadcast %cst_188 : f32 to vector<128x4xf32>
    %387 = arith.mulf %385, %386 : vector<128x4xf32>
    %388 = vector.extract_strided_slice %376 {offsets = [1, 0, 0], sizes = [1, 64, 64], strides = [1, 1, 1]} : vector<2x64x64xf32> to vector<1x64x64xf32>
    %389 = vector.shape_cast %388 : vector<1x64x64xf32> to vector<64x64xf32>
    %390 = vector.shape_cast %389 : vector<64x64xf32> to vector<1x64x64xf32>
    %391 = vector.broadcast %390 : vector<1x64x64xf32> to vector<2x64x64xf32>
    %392 = arith.mulf %375, %391 : vector<2x64x64xf32>
    %393 = vector.shape_cast %392 : vector<2x64x64xf32> to vector<128x64xf32>
    %394 = arith.truncf %393 : vector<128x64xf32> to vector<128x64xbf16>
    %cst_189 = arith.constant dense<0.000000e+00> : vector<128x4xf32>
    %395 = tpu.matmul %394, %0, %cst_189 {dimension_numbers = #tpu.dot_dimension_numbers<[1], [0], [0], [1], [0, 0, 1, 1], [], []>} : vector<128x64xbf16>, vector<64x4xbf16>, vector<128x4xf32> -> vector<128x4xf32>
    %cst_190 = arith.constant 2.500000e-01 : f32
    %396 = vector.broadcast %cst_190 : f32 to vector<128x4xf32>
    %397 = arith.mulf %395, %396 : vector<128x4xf32>
    %398 = arith.maximumf %387, %397 : vector<128x4xf32>
    %399 = arith.subf %387, %398 : vector<128x4xf32>
    %400 = math.exp %399 : vector<128x4xf32>
    %401 = arith.subf %397, %398 : vector<128x4xf32>
    %402 = math.exp %401 : vector<128x4xf32>
    %403 = arith.addf %400, %402 : vector<128x4xf32>
    %404 = tpu.reciprocal %403 {approx = true} : vector<128x4xf32> -> vector<128x4xf32>
    %405 = arith.mulf %400, %404 : vector<128x4xf32>
    %406 = arith.truncf %405 : vector<128x4xf32> to vector<128x4xbf16>
    %cst_191 = arith.constant dense<0.000000e+00> : vector<128x64xf32>
    %407 = tpu.matmul %406, %1, %cst_191 {dimension_numbers = #tpu.dot_dimension_numbers<[1], [0], [0], [1], [0, 0, 1, 1], [], []>} : vector<128x4xbf16>, vector<4x64xbf16>, vector<128x64xf32> -> vector<128x64xf32>
    %408 = vector.shape_cast %407 : vector<128x64xf32> to vector<2x64x64xf32>
    %409 = vector.extract_strided_slice %377 {offsets = [0, 0, 0], sizes = [1, 64, 64], strides = [1, 1, 1]} : vector<2x64x64xf32> to vector<1x64x64xf32>
    %410 = vector.shape_cast %409 : vector<1x64x64xf32> to vector<64x64xf32>
    %411 = vector.shape_cast %410 : vector<64x64xf32> to vector<1x64x64xf32>
    %412 = vector.broadcast %411 : vector<1x64x64xf32> to vector<2x64x64xf32>
    %413 = arith.mulf %408, %412 : vector<2x64x64xf32>
    %414 = arith.mulf %402, %404 : vector<128x4xf32>
    %415 = arith.truncf %414 : vector<128x4xf32> to vector<128x4xbf16>
    %cst_192 = arith.constant dense<0.000000e+00> : vector<128x64xf32>
    %416 = tpu.matmul %415, %1, %cst_192 {dimension_numbers = #tpu.dot_dimension_numbers<[1], [0], [0], [1], [0, 0, 1, 1], [], []>} : vector<128x4xbf16>, vector<4x64xbf16>, vector<128x64xf32> -> vector<128x64xf32>
    %417 = vector.shape_cast %416 : vector<128x64xf32> to vector<2x64x64xf32>
    %418 = vector.extract_strided_slice %377 {offsets = [1, 0, 0], sizes = [1, 64, 64], strides = [1, 1, 1]} : vector<2x64x64xf32> to vector<1x64x64xf32>
    %419 = vector.shape_cast %418 : vector<1x64x64xf32> to vector<64x64xf32>
    %420 = vector.shape_cast %419 : vector<64x64xf32> to vector<1x64x64xf32>
    %421 = vector.broadcast %420 : vector<1x64x64xf32> to vector<2x64x64xf32>
    %422 = arith.mulf %417, %421 : vector<2x64x64xf32>
    %423 = arith.addf %413, %422 : vector<2x64x64xf32>
    %424 = vector.shape_cast %423 : vector<2x64x64xf32> to vector<128x64xf32>
    %425 = arith.truncf %424 : vector<128x64xf32> to vector<128x64xbf16>
    %c2_193 = arith.constant 2 : index
    %c0_194 = arith.constant 0 : index
    %c0_195 = arith.constant 0 : index
    %426 = vector.load %arg14[%c2_193, %c0_194, %c0_195] : memref<4x64x64xbf16, #tpu.memory_space<vmem>>, vector<1x64x64xbf16>
    %427 = vector.shape_cast %426 : vector<1x64x64xbf16> to vector<64x64xbf16>
    %cst_196 = arith.constant dense<0.000000e+00> : vector<128x64xf32>
    %428 = tpu.matmul %425, %427, %cst_196 {dimension_numbers = #tpu.dot_dimension_numbers<[1], [0], [0], [1], [0, 0, 1, 1], [], []>} : vector<128x64xbf16>, vector<64x64xbf16>, vector<128x64xf32> -> vector<128x64xf32>
    %c2_197 = arith.constant 2 : index
    %c0_198 = arith.constant 0 : index
    %c0_199 = arith.constant 0 : index
    %429 = vector.load %arg15[%c2_197, %c0_198, %c0_199] : memref<4x1x64xf32, #tpu.memory_space<vmem>>, vector<1x1x64xf32>
    %430 = vector.shape_cast %429 : vector<1x1x64xf32> to vector<1x64xf32>
    %431 = vector.broadcast %430 : vector<1x64xf32> to vector<128x64xf32>
    %432 = arith.addf %428, %431 : vector<128x64xf32>
    %433 = arith.addf %326, %432 : vector<128x64xf32>
    %c2_200 = arith.constant 2 : index
    %c0_201 = arith.constant 0 : index
    %c0_202 = arith.constant 0 : index
    %434 = vector.load %arg16[%c2_200, %c0_201, %c0_202] : memref<4x1x64xf32, #tpu.memory_space<vmem>>, vector<1x1x64xf32>
    %435 = vector.shape_cast %434 : vector<1x1x64xf32> to vector<1x64xf32>
    %c2_203 = arith.constant 2 : index
    %c0_204 = arith.constant 0 : index
    %c0_205 = arith.constant 0 : index
    %436 = vector.load %arg17[%c2_203, %c0_204, %c0_205] : memref<4x1x64xf32, #tpu.memory_space<vmem>>, vector<1x1x64xf32>
    %437 = vector.shape_cast %436 : vector<1x1x64xf32> to vector<1x64xf32>
    %cst_206 = arith.constant dense<0.000000e+00> : vector<128xf32>
    %438 = vector.multi_reduction <add>, %433, %cst_206 [1] : vector<128x64xf32> to vector<128xf32>
    %439 = vector.shape_cast %438 : vector<128xf32> to vector<128x1xf32>
    %cst_207 = arith.constant 6.400000e+01 : f32
    %440 = vector.broadcast %cst_207 : f32 to vector<128x1xf32>
    %441 = arith.divf %439, %440 : vector<128x1xf32>
    %442 = vector.broadcast %441 : vector<128x1xf32> to vector<128x64xf32>
    %443 = arith.subf %433, %442 : vector<128x64xf32>
    %444 = arith.mulf %443, %443 : vector<128x64xf32>
    %cst_208 = arith.constant dense<0.000000e+00> : vector<128xf32>
    %445 = vector.multi_reduction <add>, %444, %cst_208 [1] : vector<128x64xf32> to vector<128xf32>
    %446 = vector.shape_cast %445 : vector<128xf32> to vector<128x1xf32>
    %cst_209 = arith.constant 6.400000e+01 : f32
    %447 = vector.broadcast %cst_209 : f32 to vector<128x1xf32>
    %448 = arith.divf %446, %447 : vector<128x1xf32>
    %449 = vector.broadcast %441 : vector<128x1xf32> to vector<128x64xf32>
    %450 = arith.subf %433, %449 : vector<128x64xf32>
    %cst_210 = arith.constant 9.99999974E-6 : f32
    %451 = vector.broadcast %cst_210 : f32 to vector<128x1xf32>
    %452 = arith.addf %448, %451 : vector<128x1xf32>
    %453 = math.rsqrt %452 : vector<128x1xf32>
    %454 = vector.broadcast %453 : vector<128x1xf32> to vector<128x64xf32>
    %455 = arith.mulf %450, %454 : vector<128x64xf32>
    %456 = vector.broadcast %435 : vector<1x64xf32> to vector<128x64xf32>
    %457 = arith.mulf %455, %456 : vector<128x64xf32>
    %458 = vector.broadcast %437 : vector<1x64xf32> to vector<128x64xf32>
    %459 = arith.addf %457, %458 : vector<128x64xf32>
    %460 = arith.truncf %459 : vector<128x64xf32> to vector<128x64xbf16>
    %c2_211 = arith.constant 2 : index
    %c0_212 = arith.constant 0 : index
    %c0_213 = arith.constant 0 : index
    %461 = vector.load %arg18[%c2_211, %c0_212, %c0_213] : memref<4x64x128xbf16, #tpu.memory_space<vmem>>, vector<1x64x128xbf16>
    %462 = vector.shape_cast %461 : vector<1x64x128xbf16> to vector<64x128xbf16>
    %cst_214 = arith.constant dense<0.000000e+00> : vector<128x128xf32>
    %463 = tpu.matmul %460, %462, %cst_214 {dimension_numbers = #tpu.dot_dimension_numbers<[1], [0], [0], [1], [0, 0, 1, 1], [], []>} : vector<128x64xbf16>, vector<64x128xbf16>, vector<128x128xf32> -> vector<128x128xf32>
    %c2_215 = arith.constant 2 : index
    %c0_216 = arith.constant 0 : index
    %c0_217 = arith.constant 0 : index
    %464 = vector.load %arg19[%c2_215, %c0_216, %c0_217] : memref<4x1x128xf32, #tpu.memory_space<vmem>>, vector<1x1x128xf32>
    %465 = vector.shape_cast %464 : vector<1x1x128xf32> to vector<1x128xf32>
    %466 = vector.broadcast %465 : vector<1x128xf32> to vector<128x128xf32>
    %467 = arith.addf %463, %466 : vector<128x128xf32>
    %cst_218 = arith.constant 5.000000e-01 : f32
    %468 = vector.broadcast %cst_218 : f32 to vector<128x128xf32>
    %469 = arith.mulf %468, %467 : vector<128x128xf32>
    %cst_219 = arith.constant 0.707106769 : f32
    %470 = vector.broadcast %cst_219 : f32 to vector<128x128xf32>
    %471 = arith.mulf %467, %470 : vector<128x128xf32>
    %472 = math.erf %471 : vector<128x128xf32>
    %cst_220 = arith.constant 1.000000e+00 : f32
    %473 = vector.broadcast %cst_220 : f32 to vector<128x128xf32>
    %474 = arith.addf %473, %472 : vector<128x128xf32>
    %475 = arith.mulf %469, %474 : vector<128x128xf32>
    %476 = arith.truncf %475 : vector<128x128xf32> to vector<128x128xbf16>
    %c2_221 = arith.constant 2 : index
    %c0_222 = arith.constant 0 : index
    %c0_223 = arith.constant 0 : index
    %477 = vector.load %arg20[%c2_221, %c0_222, %c0_223] : memref<4x128x64xbf16, #tpu.memory_space<vmem>>, vector<1x128x64xbf16>
    %478 = vector.shape_cast %477 : vector<1x128x64xbf16> to vector<128x64xbf16>
    %cst_224 = arith.constant dense<0.000000e+00> : vector<128x64xf32>
    %479 = tpu.matmul %476, %478, %cst_224 {dimension_numbers = #tpu.dot_dimension_numbers<[1], [0], [0], [1], [0, 0, 1, 1], [], []>} : vector<128x128xbf16>, vector<128x64xbf16>, vector<128x64xf32> -> vector<128x64xf32>
    %c2_225 = arith.constant 2 : index
    %c0_226 = arith.constant 0 : index
    %c0_227 = arith.constant 0 : index
    %480 = vector.load %arg21[%c2_225, %c0_226, %c0_227] : memref<4x1x64xf32, #tpu.memory_space<vmem>>, vector<1x1x64xf32>
    %481 = vector.shape_cast %480 : vector<1x1x64xf32> to vector<1x64xf32>
    %482 = vector.broadcast %481 : vector<1x64xf32> to vector<128x64xf32>
    %483 = arith.addf %479, %482 : vector<128x64xf32>
    %484 = arith.addf %433, %483 : vector<128x64xf32>
    %c3 = arith.constant 3 : index
    %c0_228 = arith.constant 0 : index
    %c0_229 = arith.constant 0 : index
    %485 = vector.load %arg6[%c3, %c0_228, %c0_229] : memref<4x1x64xf32, #tpu.memory_space<vmem>>, vector<1x1x64xf32>
    %486 = vector.shape_cast %485 : vector<1x1x64xf32> to vector<1x64xf32>
    %c3_230 = arith.constant 3 : index
    %c0_231 = arith.constant 0 : index
    %c0_232 = arith.constant 0 : index
    %487 = vector.load %arg7[%c3_230, %c0_231, %c0_232] : memref<4x1x64xf32, #tpu.memory_space<vmem>>, vector<1x1x64xf32>
    %488 = vector.shape_cast %487 : vector<1x1x64xf32> to vector<1x64xf32>
    %cst_233 = arith.constant dense<0.000000e+00> : vector<128xf32>
    %489 = vector.multi_reduction <add>, %484, %cst_233 [1] : vector<128x64xf32> to vector<128xf32>
    %490 = vector.shape_cast %489 : vector<128xf32> to vector<128x1xf32>
    %cst_234 = arith.constant 6.400000e+01 : f32
    %491 = vector.broadcast %cst_234 : f32 to vector<128x1xf32>
    %492 = arith.divf %490, %491 : vector<128x1xf32>
    %493 = vector.broadcast %492 : vector<128x1xf32> to vector<128x64xf32>
    %494 = arith.subf %484, %493 : vector<128x64xf32>
    %495 = arith.mulf %494, %494 : vector<128x64xf32>
    %cst_235 = arith.constant dense<0.000000e+00> : vector<128xf32>
    %496 = vector.multi_reduction <add>, %495, %cst_235 [1] : vector<128x64xf32> to vector<128xf32>
    %497 = vector.shape_cast %496 : vector<128xf32> to vector<128x1xf32>
    %cst_236 = arith.constant 6.400000e+01 : f32
    %498 = vector.broadcast %cst_236 : f32 to vector<128x1xf32>
    %499 = arith.divf %497, %498 : vector<128x1xf32>
    %500 = vector.broadcast %492 : vector<128x1xf32> to vector<128x64xf32>
    %501 = arith.subf %484, %500 : vector<128x64xf32>
    %cst_237 = arith.constant 9.99999974E-6 : f32
    %502 = vector.broadcast %cst_237 : f32 to vector<128x1xf32>
    %503 = arith.addf %499, %502 : vector<128x1xf32>
    %504 = math.rsqrt %503 : vector<128x1xf32>
    %505 = vector.broadcast %504 : vector<128x1xf32> to vector<128x64xf32>
    %506 = arith.mulf %501, %505 : vector<128x64xf32>
    %507 = vector.broadcast %486 : vector<1x64xf32> to vector<128x64xf32>
    %508 = arith.mulf %506, %507 : vector<128x64xf32>
    %509 = vector.broadcast %488 : vector<1x64xf32> to vector<128x64xf32>
    %510 = arith.addf %508, %509 : vector<128x64xf32>
    %511 = arith.truncf %510 : vector<128x64xf32> to vector<128x64xbf16>
    %c3_238 = arith.constant 3 : index
    %c0_239 = arith.constant 0 : index
    %c0_240 = arith.constant 0 : index
    %512 = vector.load %arg8[%c3_238, %c0_239, %c0_240] : memref<4x64x64xbf16, #tpu.memory_space<vmem>>, vector<1x64x64xbf16>
    %513 = vector.shape_cast %512 : vector<1x64x64xbf16> to vector<64x64xbf16>
    %cst_241 = arith.constant dense<0.000000e+00> : vector<128x64xf32>
    %514 = tpu.matmul %511, %513, %cst_241 {dimension_numbers = #tpu.dot_dimension_numbers<[1], [0], [0], [1], [0, 0, 1, 1], [], []>} : vector<128x64xbf16>, vector<64x64xbf16>, vector<128x64xf32> -> vector<128x64xf32>
    %c3_242 = arith.constant 3 : index
    %c0_243 = arith.constant 0 : index
    %c0_244 = arith.constant 0 : index
    %515 = vector.load %arg11[%c3_242, %c0_243, %c0_244] : memref<4x1x64xf32, #tpu.memory_space<vmem>>, vector<1x1x64xf32>
    %516 = vector.shape_cast %515 : vector<1x1x64xf32> to vector<1x64xf32>
    %517 = vector.broadcast %516 : vector<1x64xf32> to vector<128x64xf32>
    %518 = arith.addf %514, %517 : vector<128x64xf32>
    %c3_245 = arith.constant 3 : index
    %c0_246 = arith.constant 0 : index
    %c0_247 = arith.constant 0 : index
    %519 = vector.load %arg9[%c3_245, %c0_246, %c0_247] : memref<4x64x64xbf16, #tpu.memory_space<vmem>>, vector<1x64x64xbf16>
    %520 = vector.shape_cast %519 : vector<1x64x64xbf16> to vector<64x64xbf16>
    %cst_248 = arith.constant dense<0.000000e+00> : vector<128x64xf32>
    %521 = tpu.matmul %511, %520, %cst_248 {dimension_numbers = #tpu.dot_dimension_numbers<[1], [0], [0], [1], [0, 0, 1, 1], [], []>} : vector<128x64xbf16>, vector<64x64xbf16>, vector<128x64xf32> -> vector<128x64xf32>
    %c3_249 = arith.constant 3 : index
    %c0_250 = arith.constant 0 : index
    %c0_251 = arith.constant 0 : index
    %522 = vector.load %arg12[%c3_249, %c0_250, %c0_251] : memref<4x1x64xf32, #tpu.memory_space<vmem>>, vector<1x1x64xf32>
    %523 = vector.shape_cast %522 : vector<1x1x64xf32> to vector<1x64xf32>
    %524 = vector.broadcast %523 : vector<1x64xf32> to vector<128x64xf32>
    %525 = arith.addf %521, %524 : vector<128x64xf32>
    %c3_252 = arith.constant 3 : index
    %c0_253 = arith.constant 0 : index
    %c0_254 = arith.constant 0 : index
    %526 = vector.load %arg10[%c3_252, %c0_253, %c0_254] : memref<4x64x64xbf16, #tpu.memory_space<vmem>>, vector<1x64x64xbf16>
    %527 = vector.shape_cast %526 : vector<1x64x64xbf16> to vector<64x64xbf16>
    %cst_255 = arith.constant dense<0.000000e+00> : vector<128x64xf32>
    %528 = tpu.matmul %511, %527, %cst_255 {dimension_numbers = #tpu.dot_dimension_numbers<[1], [0], [0], [1], [0, 0, 1, 1], [], []>} : vector<128x64xbf16>, vector<64x64xbf16>, vector<128x64xf32> -> vector<128x64xf32>
    %c3_256 = arith.constant 3 : index
    %c0_257 = arith.constant 0 : index
    %c0_258 = arith.constant 0 : index
    %529 = vector.load %arg13[%c3_256, %c0_257, %c0_258] : memref<4x1x64xf32, #tpu.memory_space<vmem>>, vector<1x1x64xf32>
    %530 = vector.shape_cast %529 : vector<1x1x64xf32> to vector<1x64xf32>
    %531 = vector.broadcast %530 : vector<1x64xf32> to vector<128x64xf32>
    %532 = arith.addf %528, %531 : vector<128x64xf32>
    %533 = vector.shape_cast %518 : vector<128x64xf32> to vector<2x64x64xf32>
    %534 = vector.shape_cast %525 : vector<128x64xf32> to vector<2x64x64xf32>
    %535 = vector.shape_cast %532 : vector<128x64xf32> to vector<2x64x64xf32>
    %536 = vector.extract_strided_slice %534 {offsets = [0, 0, 0], sizes = [1, 64, 64], strides = [1, 1, 1]} : vector<2x64x64xf32> to vector<1x64x64xf32>
    %537 = vector.shape_cast %536 : vector<1x64x64xf32> to vector<64x64xf32>
    %538 = vector.shape_cast %537 : vector<64x64xf32> to vector<1x64x64xf32>
    %539 = vector.broadcast %538 : vector<1x64x64xf32> to vector<2x64x64xf32>
    %540 = arith.mulf %533, %539 : vector<2x64x64xf32>
    %541 = vector.shape_cast %540 : vector<2x64x64xf32> to vector<128x64xf32>
    %542 = arith.truncf %541 : vector<128x64xf32> to vector<128x64xbf16>
    %cst_259 = arith.constant dense<0.000000e+00> : vector<128x4xf32>
    %543 = tpu.matmul %542, %0, %cst_259 {dimension_numbers = #tpu.dot_dimension_numbers<[1], [0], [0], [1], [0, 0, 1, 1], [], []>} : vector<128x64xbf16>, vector<64x4xbf16>, vector<128x4xf32> -> vector<128x4xf32>
    %cst_260 = arith.constant 2.500000e-01 : f32
    %544 = vector.broadcast %cst_260 : f32 to vector<128x4xf32>
    %545 = arith.mulf %543, %544 : vector<128x4xf32>
    %546 = vector.extract_strided_slice %534 {offsets = [1, 0, 0], sizes = [1, 64, 64], strides = [1, 1, 1]} : vector<2x64x64xf32> to vector<1x64x64xf32>
    %547 = vector.shape_cast %546 : vector<1x64x64xf32> to vector<64x64xf32>
    %548 = vector.shape_cast %547 : vector<64x64xf32> to vector<1x64x64xf32>
    %549 = vector.broadcast %548 : vector<1x64x64xf32> to vector<2x64x64xf32>
    %550 = arith.mulf %533, %549 : vector<2x64x64xf32>
    %551 = vector.shape_cast %550 : vector<2x64x64xf32> to vector<128x64xf32>
    %552 = arith.truncf %551 : vector<128x64xf32> to vector<128x64xbf16>
    %cst_261 = arith.constant dense<0.000000e+00> : vector<128x4xf32>
    %553 = tpu.matmul %552, %0, %cst_261 {dimension_numbers = #tpu.dot_dimension_numbers<[1], [0], [0], [1], [0, 0, 1, 1], [], []>} : vector<128x64xbf16>, vector<64x4xbf16>, vector<128x4xf32> -> vector<128x4xf32>
    %cst_262 = arith.constant 2.500000e-01 : f32
    %554 = vector.broadcast %cst_262 : f32 to vector<128x4xf32>
    %555 = arith.mulf %553, %554 : vector<128x4xf32>
    %556 = arith.maximumf %545, %555 : vector<128x4xf32>
    %557 = arith.subf %545, %556 : vector<128x4xf32>
    %558 = math.exp %557 : vector<128x4xf32>
    %559 = arith.subf %555, %556 : vector<128x4xf32>
    %560 = math.exp %559 : vector<128x4xf32>
    %561 = arith.addf %558, %560 : vector<128x4xf32>
    %562 = tpu.reciprocal %561 {approx = true} : vector<128x4xf32> -> vector<128x4xf32>
    %563 = arith.mulf %558, %562 : vector<128x4xf32>
    %564 = arith.truncf %563 : vector<128x4xf32> to vector<128x4xbf16>
    %cst_263 = arith.constant dense<0.000000e+00> : vector<128x64xf32>
    %565 = tpu.matmul %564, %1, %cst_263 {dimension_numbers = #tpu.dot_dimension_numbers<[1], [0], [0], [1], [0, 0, 1, 1], [], []>} : vector<128x4xbf16>, vector<4x64xbf16>, vector<128x64xf32> -> vector<128x64xf32>
    %566 = vector.shape_cast %565 : vector<128x64xf32> to vector<2x64x64xf32>
    %567 = vector.extract_strided_slice %535 {offsets = [0, 0, 0], sizes = [1, 64, 64], strides = [1, 1, 1]} : vector<2x64x64xf32> to vector<1x64x64xf32>
    %568 = vector.shape_cast %567 : vector<1x64x64xf32> to vector<64x64xf32>
    %569 = vector.shape_cast %568 : vector<64x64xf32> to vector<1x64x64xf32>
    %570 = vector.broadcast %569 : vector<1x64x64xf32> to vector<2x64x64xf32>
    %571 = arith.mulf %566, %570 : vector<2x64x64xf32>
    %572 = arith.mulf %560, %562 : vector<128x4xf32>
    %573 = arith.truncf %572 : vector<128x4xf32> to vector<128x4xbf16>
    %cst_264 = arith.constant dense<0.000000e+00> : vector<128x64xf32>
    %574 = tpu.matmul %573, %1, %cst_264 {dimension_numbers = #tpu.dot_dimension_numbers<[1], [0], [0], [1], [0, 0, 1, 1], [], []>} : vector<128x4xbf16>, vector<4x64xbf16>, vector<128x64xf32> -> vector<128x64xf32>
    %575 = vector.shape_cast %574 : vector<128x64xf32> to vector<2x64x64xf32>
    %576 = vector.extract_strided_slice %535 {offsets = [1, 0, 0], sizes = [1, 64, 64], strides = [1, 1, 1]} : vector<2x64x64xf32> to vector<1x64x64xf32>
    %577 = vector.shape_cast %576 : vector<1x64x64xf32> to vector<64x64xf32>
    %578 = vector.shape_cast %577 : vector<64x64xf32> to vector<1x64x64xf32>
    %579 = vector.broadcast %578 : vector<1x64x64xf32> to vector<2x64x64xf32>
    %580 = arith.mulf %575, %579 : vector<2x64x64xf32>
    %581 = arith.addf %571, %580 : vector<2x64x64xf32>
    %582 = vector.shape_cast %581 : vector<2x64x64xf32> to vector<128x64xf32>
    %583 = arith.truncf %582 : vector<128x64xf32> to vector<128x64xbf16>
    %c3_265 = arith.constant 3 : index
    %c0_266 = arith.constant 0 : index
    %c0_267 = arith.constant 0 : index
    %584 = vector.load %arg14[%c3_265, %c0_266, %c0_267] : memref<4x64x64xbf16, #tpu.memory_space<vmem>>, vector<1x64x64xbf16>
    %585 = vector.shape_cast %584 : vector<1x64x64xbf16> to vector<64x64xbf16>
    %cst_268 = arith.constant dense<0.000000e+00> : vector<128x64xf32>
    %586 = tpu.matmul %583, %585, %cst_268 {dimension_numbers = #tpu.dot_dimension_numbers<[1], [0], [0], [1], [0, 0, 1, 1], [], []>} : vector<128x64xbf16>, vector<64x64xbf16>, vector<128x64xf32> -> vector<128x64xf32>
    %c3_269 = arith.constant 3 : index
    %c0_270 = arith.constant 0 : index
    %c0_271 = arith.constant 0 : index
    %587 = vector.load %arg15[%c3_269, %c0_270, %c0_271] : memref<4x1x64xf32, #tpu.memory_space<vmem>>, vector<1x1x64xf32>
    %588 = vector.shape_cast %587 : vector<1x1x64xf32> to vector<1x64xf32>
    %589 = vector.broadcast %588 : vector<1x64xf32> to vector<128x64xf32>
    %590 = arith.addf %586, %589 : vector<128x64xf32>
    %591 = arith.addf %484, %590 : vector<128x64xf32>
    %c3_272 = arith.constant 3 : index
    %c0_273 = arith.constant 0 : index
    %c0_274 = arith.constant 0 : index
    %592 = vector.load %arg16[%c3_272, %c0_273, %c0_274] : memref<4x1x64xf32, #tpu.memory_space<vmem>>, vector<1x1x64xf32>
    %593 = vector.shape_cast %592 : vector<1x1x64xf32> to vector<1x64xf32>
    %c3_275 = arith.constant 3 : index
    %c0_276 = arith.constant 0 : index
    %c0_277 = arith.constant 0 : index
    %594 = vector.load %arg17[%c3_275, %c0_276, %c0_277] : memref<4x1x64xf32, #tpu.memory_space<vmem>>, vector<1x1x64xf32>
    %595 = vector.shape_cast %594 : vector<1x1x64xf32> to vector<1x64xf32>
    %cst_278 = arith.constant dense<0.000000e+00> : vector<128xf32>
    %596 = vector.multi_reduction <add>, %591, %cst_278 [1] : vector<128x64xf32> to vector<128xf32>
    %597 = vector.shape_cast %596 : vector<128xf32> to vector<128x1xf32>
    %cst_279 = arith.constant 6.400000e+01 : f32
    %598 = vector.broadcast %cst_279 : f32 to vector<128x1xf32>
    %599 = arith.divf %597, %598 : vector<128x1xf32>
    %600 = vector.broadcast %599 : vector<128x1xf32> to vector<128x64xf32>
    %601 = arith.subf %591, %600 : vector<128x64xf32>
    %602 = arith.mulf %601, %601 : vector<128x64xf32>
    %cst_280 = arith.constant dense<0.000000e+00> : vector<128xf32>
    %603 = vector.multi_reduction <add>, %602, %cst_280 [1] : vector<128x64xf32> to vector<128xf32>
    %604 = vector.shape_cast %603 : vector<128xf32> to vector<128x1xf32>
    %cst_281 = arith.constant 6.400000e+01 : f32
    %605 = vector.broadcast %cst_281 : f32 to vector<128x1xf32>
    %606 = arith.divf %604, %605 : vector<128x1xf32>
    %607 = vector.broadcast %599 : vector<128x1xf32> to vector<128x64xf32>
    %608 = arith.subf %591, %607 : vector<128x64xf32>
    %cst_282 = arith.constant 9.99999974E-6 : f32
    %609 = vector.broadcast %cst_282 : f32 to vector<128x1xf32>
    %610 = arith.addf %606, %609 : vector<128x1xf32>
    %611 = math.rsqrt %610 : vector<128x1xf32>
    %612 = vector.broadcast %611 : vector<128x1xf32> to vector<128x64xf32>
    %613 = arith.mulf %608, %612 : vector<128x64xf32>
    %614 = vector.broadcast %593 : vector<1x64xf32> to vector<128x64xf32>
    %615 = arith.mulf %613, %614 : vector<128x64xf32>
    %616 = vector.broadcast %595 : vector<1x64xf32> to vector<128x64xf32>
    %617 = arith.addf %615, %616 : vector<128x64xf32>
    %618 = arith.truncf %617 : vector<128x64xf32> to vector<128x64xbf16>
    %c3_283 = arith.constant 3 : index
    %c0_284 = arith.constant 0 : index
    %c0_285 = arith.constant 0 : index
    %619 = vector.load %arg18[%c3_283, %c0_284, %c0_285] : memref<4x64x128xbf16, #tpu.memory_space<vmem>>, vector<1x64x128xbf16>
    %620 = vector.shape_cast %619 : vector<1x64x128xbf16> to vector<64x128xbf16>
    %cst_286 = arith.constant dense<0.000000e+00> : vector<128x128xf32>
    %621 = tpu.matmul %618, %620, %cst_286 {dimension_numbers = #tpu.dot_dimension_numbers<[1], [0], [0], [1], [0, 0, 1, 1], [], []>} : vector<128x64xbf16>, vector<64x128xbf16>, vector<128x128xf32> -> vector<128x128xf32>
    %c3_287 = arith.constant 3 : index
    %c0_288 = arith.constant 0 : index
    %c0_289 = arith.constant 0 : index
    %622 = vector.load %arg19[%c3_287, %c0_288, %c0_289] : memref<4x1x128xf32, #tpu.memory_space<vmem>>, vector<1x1x128xf32>
    %623 = vector.shape_cast %622 : vector<1x1x128xf32> to vector<1x128xf32>
    %624 = vector.broadcast %623 : vector<1x128xf32> to vector<128x128xf32>
    %625 = arith.addf %621, %624 : vector<128x128xf32>
    %cst_290 = arith.constant 5.000000e-01 : f32
    %626 = vector.broadcast %cst_290 : f32 to vector<128x128xf32>
    %627 = arith.mulf %626, %625 : vector<128x128xf32>
    %cst_291 = arith.constant 0.707106769 : f32
    %628 = vector.broadcast %cst_291 : f32 to vector<128x128xf32>
    %629 = arith.mulf %625, %628 : vector<128x128xf32>
    %630 = math.erf %629 : vector<128x128xf32>
    %cst_292 = arith.constant 1.000000e+00 : f32
    %631 = vector.broadcast %cst_292 : f32 to vector<128x128xf32>
    %632 = arith.addf %631, %630 : vector<128x128xf32>
    %633 = arith.mulf %627, %632 : vector<128x128xf32>
    %634 = arith.truncf %633 : vector<128x128xf32> to vector<128x128xbf16>
    %c3_293 = arith.constant 3 : index
    %c0_294 = arith.constant 0 : index
    %c0_295 = arith.constant 0 : index
    %635 = vector.load %arg20[%c3_293, %c0_294, %c0_295] : memref<4x128x64xbf16, #tpu.memory_space<vmem>>, vector<1x128x64xbf16>
    %636 = vector.shape_cast %635 : vector<1x128x64xbf16> to vector<128x64xbf16>
    %cst_296 = arith.constant dense<0.000000e+00> : vector<128x64xf32>
    %637 = tpu.matmul %634, %636, %cst_296 {dimension_numbers = #tpu.dot_dimension_numbers<[1], [0], [0], [1], [0, 0, 1, 1], [], []>} : vector<128x128xbf16>, vector<128x64xbf16>, vector<128x64xf32> -> vector<128x64xf32>
    %c3_297 = arith.constant 3 : index
    %c0_298 = arith.constant 0 : index
    %c0_299 = arith.constant 0 : index
    %638 = vector.load %arg21[%c3_297, %c0_298, %c0_299] : memref<4x1x64xf32, #tpu.memory_space<vmem>>, vector<1x1x64xf32>
    %639 = vector.shape_cast %638 : vector<1x1x64xf32> to vector<1x64xf32>
    %640 = vector.broadcast %639 : vector<1x64xf32> to vector<128x64xf32>
    %641 = arith.addf %637, %640 : vector<128x64xf32>
    %642 = arith.addf %591, %641 : vector<128x64xf32>
    %c0_300 = arith.constant 0 : index
    %c0_301 = arith.constant 0 : index
    %643 = vector.load %arg22[%c0_300, %c0_301] : memref<1x64xf32, #tpu.memory_space<vmem>>, vector<1x64xf32>
    %c0_302 = arith.constant 0 : index
    %c0_303 = arith.constant 0 : index
    %644 = vector.load %arg23[%c0_302, %c0_303] : memref<1x64xf32, #tpu.memory_space<vmem>>, vector<1x64xf32>
    %cst_304 = arith.constant dense<0.000000e+00> : vector<128xf32>
    %645 = vector.multi_reduction <add>, %642, %cst_304 [1] : vector<128x64xf32> to vector<128xf32>
    %646 = vector.shape_cast %645 : vector<128xf32> to vector<128x1xf32>
    %cst_305 = arith.constant 6.400000e+01 : f32
    %647 = vector.broadcast %cst_305 : f32 to vector<128x1xf32>
    %648 = arith.divf %646, %647 : vector<128x1xf32>
    %649 = vector.broadcast %648 : vector<128x1xf32> to vector<128x64xf32>
    %650 = arith.subf %642, %649 : vector<128x64xf32>
    %651 = arith.mulf %650, %650 : vector<128x64xf32>
    %cst_306 = arith.constant dense<0.000000e+00> : vector<128xf32>
    %652 = vector.multi_reduction <add>, %651, %cst_306 [1] : vector<128x64xf32> to vector<128xf32>
    %653 = vector.shape_cast %652 : vector<128xf32> to vector<128x1xf32>
    %cst_307 = arith.constant 6.400000e+01 : f32
    %654 = vector.broadcast %cst_307 : f32 to vector<128x1xf32>
    %655 = arith.divf %653, %654 : vector<128x1xf32>
    %656 = vector.broadcast %648 : vector<128x1xf32> to vector<128x64xf32>
    %657 = arith.subf %642, %656 : vector<128x64xf32>
    %cst_308 = arith.constant 9.99999974E-6 : f32
    %658 = vector.broadcast %cst_308 : f32 to vector<128x1xf32>
    %659 = arith.addf %655, %658 : vector<128x1xf32>
    %660 = math.rsqrt %659 : vector<128x1xf32>
    %661 = vector.broadcast %660 : vector<128x1xf32> to vector<128x64xf32>
    %662 = arith.mulf %657, %661 : vector<128x64xf32>
    %663 = vector.broadcast %643 : vector<1x64xf32> to vector<128x64xf32>
    %664 = arith.mulf %662, %663 : vector<128x64xf32>
    %665 = vector.broadcast %644 : vector<1x64xf32> to vector<128x64xf32>
    %666 = arith.addf %664, %665 : vector<128x64xf32>
    %667 = vector.shape_cast %666 : vector<128x64xf32> to vector<2x64x64xf32>
    %cst_309 = arith.constant dense<0.000000e+00> : vector<2x64xf32>
    %668 = vector.multi_reduction <add>, %667, %cst_309 [1] : vector<2x64x64xf32> to vector<2x64xf32>
    %cst_310 = arith.constant 6.400000e+01 : f32
    %669 = vector.broadcast %cst_310 : f32 to vector<2x64xf32>
    %670 = arith.divf %668, %669 : vector<2x64xf32>
    %671 = arith.truncf %670 : vector<2x64xf32> to vector<2x64xbf16>
    %c0_311 = arith.constant 0 : index
    %c0_312 = arith.constant 0 : index
    %672 = vector.load %arg24[%c0_311, %c0_312] : memref<64x128xbf16, #tpu.memory_space<vmem>>, vector<64x128xbf16>
    %cst_313 = arith.constant dense<0.000000e+00> : vector<2x128xf32>
    %673 = tpu.matmul %671, %672, %cst_313 {dimension_numbers = #tpu.dot_dimension_numbers<[1], [0], [0], [1], [0, 0, 1, 1], [], []>} : vector<2x64xbf16>, vector<64x128xbf16>, vector<2x128xf32> -> vector<2x128xf32>
    %c0_314 = arith.constant 0 : index
    %c0_315 = arith.constant 0 : index
    %674 = vector.load %arg25[%c0_314, %c0_315] : memref<1x128xf32, #tpu.memory_space<vmem>>, vector<1x128xf32>
    %675 = vector.broadcast %674 : vector<1x128xf32> to vector<2x128xf32>
    %676 = arith.addf %673, %675 : vector<2x128xf32>
    %cst_316 = arith.constant 5.000000e-01 : f32
    %677 = vector.broadcast %cst_316 : f32 to vector<2x128xf32>
    %678 = arith.mulf %677, %676 : vector<2x128xf32>
    %cst_317 = arith.constant 0.707106769 : f32
    %679 = vector.broadcast %cst_317 : f32 to vector<2x128xf32>
    %680 = arith.mulf %676, %679 : vector<2x128xf32>
    %681 = math.erf %680 : vector<2x128xf32>
    %cst_318 = arith.constant 1.000000e+00 : f32
    %682 = vector.broadcast %cst_318 : f32 to vector<2x128xf32>
    %683 = arith.addf %682, %681 : vector<2x128xf32>
    %684 = arith.mulf %678, %683 : vector<2x128xf32>
    %685 = arith.truncf %684 : vector<2x128xf32> to vector<2x128xbf16>
    %c0_319 = arith.constant 0 : index
    %c0_320 = arith.constant 0 : index
    %686 = vector.load %arg26[%c0_319, %c0_320] : memref<128x64xbf16, #tpu.memory_space<vmem>>, vector<128x64xbf16>
    %cst_321 = arith.constant dense<0.000000e+00> : vector<2x64xf32>
    %687 = tpu.matmul %685, %686, %cst_321 {dimension_numbers = #tpu.dot_dimension_numbers<[1], [0], [0], [1], [0, 0, 1, 1], [], []>} : vector<2x128xbf16>, vector<128x64xbf16>, vector<2x64xf32> -> vector<2x64xf32>
    %c0_322 = arith.constant 0 : index
    %c0_323 = arith.constant 0 : index
    %688 = vector.load %arg27[%c0_322, %c0_323] : memref<1x64xf32, #tpu.memory_space<vmem>>, vector<1x64xf32>
    %689 = vector.broadcast %688 : vector<1x64xf32> to vector<2x64xf32>
    %690 = arith.addf %687, %689 : vector<2x64xf32>
    %cst_324 = arith.constant 5.000000e-01 : f32
    %691 = vector.broadcast %cst_324 : f32 to vector<2x64xf32>
    %692 = arith.mulf %691, %690 : vector<2x64xf32>
    %cst_325 = arith.constant 0.707106769 : f32
    %693 = vector.broadcast %cst_325 : f32 to vector<2x64xf32>
    %694 = arith.mulf %690, %693 : vector<2x64xf32>
    %695 = math.erf %694 : vector<2x64xf32>
    %cst_326 = arith.constant 1.000000e+00 : f32
    %696 = vector.broadcast %cst_326 : f32 to vector<2x64xf32>
    %697 = arith.addf %696, %695 : vector<2x64xf32>
    %698 = arith.mulf %692, %697 : vector<2x64xf32>
    %699 = arith.truncf %698 : vector<2x64xf32> to vector<2x64xbf16>
    %c0_327 = arith.constant 0 : index
    %c0_328 = arith.constant 0 : index
    %700 = vector.load %arg28[%c0_327, %c0_328] : memref<64x10xbf16, #tpu.memory_space<vmem>>, vector<64x10xbf16>
    %cst_329 = arith.constant dense<0.000000e+00> : vector<2x10xf32>
    %701 = tpu.matmul %699, %700, %cst_329 {dimension_numbers = #tpu.dot_dimension_numbers<[1], [0], [0], [1], [0, 0, 1, 1], [], []>} : vector<2x64xbf16>, vector<64x10xbf16>, vector<2x10xf32> -> vector<2x10xf32>
    %c0_330 = arith.constant 0 : index
    %c0_331 = arith.constant 0 : index
    %702 = vector.load %arg29[%c0_330, %c0_331] : memref<1x10xf32, #tpu.memory_space<vmem>>, vector<1x10xf32>
    %703 = vector.broadcast %702 : vector<1x10xf32> to vector<2x10xf32>
    %704 = arith.addf %701, %703 : vector<2x10xf32>
    %c0_332 = arith.constant 0 : index
    %c0_333 = arith.constant 0 : index
    %705 = vector.load %arg30[%c0_332, %c0_333] : memref<2x10xf32, #tpu.memory_space<vmem>>, vector<2x10xf32>
    tpu.vector_store %arg30[%c0_332, %c0_333], %704 {strides = array<i32>} : memref<2x10xf32, #tpu.memory_space<vmem>>, vector<2x10xf32>,
    return
  }
}

</mosaic_0001>

<bundles_post_ra>
// kernel: vit_forward.1
= control target key start
LH: loop header
LB: loop body
LE: loop exit
PB: predicated region body
PF: predicated region fallthrough
CT: control target
= control target key end

     0   :  { %s13777_s6 = smov 1   ;;  %s13778_s10 = smov 2   ;;  %s18205_s0 = inlined_call_operand.smem [shape: u32[31], index: -1, kind: input, shape index: {}] }
   0x1   :  { %s13818_s5 = sld [smem:[%s18205_s0]]   ;;  %s13779_s14 = smov 3  }
   0x2   :  { %s13823_s9 = sld [smem:[%s18205_s0 + %s13777_s6]]   ;;  %s13780_s18 = smov 4  }
   0x3   :  { %s13828_s13 = sld [smem:[%s18205_s0 + %s13778_s10]]   ;;  %s13781_s22 = smov 5  }
   0x4   :  { %s13833_s17 = sld [smem:[%s18205_s0 + %s13779_s14]]   ;;  %s13782_s26 = smov 6  }
   0x5   :  { %s13838_s21 = sld [smem:[%s18205_s0 + %s13780_s18]]   ;;  %s13783_s30 = smov 7  }
   0x6   :  { %s13843_s25 = sld [smem:[%s18205_s0 + %s13781_s22]]   ;;  %s13784_s4 = smov 8  }
   0x7   :  { %s13848_s29 = sld [smem:[%s18205_s0 + %s13782_s26]]   ;;  %s13785_s10 = smov 9  }
   0x8   :  { %s13853_s3 = sld [smem:[%s18205_s0 + %s13783_s30]]   ;;  %s13786_s15 = smov 10  }
   0x9   :  { %s13858_s8 = sld [smem:[%s18205_s0 + %s13784_s4]]   ;;  %s13787_s20 = smov 11  }
   0xa   :  { %s13863_s14 = sld [smem:[%s18205_s0 + %s13785_s10]]   ;;  %s13788_s26 = smov 12  }
   0xb   :  { %s13868_s19 = sld [smem:[%s18205_s0 + %s13786_s15]]   ;;  %s13789_s1 = smov 13  }
   0xc   :  { %s13873_s24 = sld [smem:[%s18205_s0 + %s13787_s20]]   ;;  %s13790_s7 = smov 14  }
   0xd   :  { %s13878_s30 = sld [smem:[%s18205_s0 + %s13788_s26]]   ;;  %s13791_s15 = smov 15  }
   0xe   :  { %s13883_s6 = sld [smem:[%s18205_s0 + %s13789_s1]]   ;;  %s13792_s22 = smov 16  }
   0xf   :  { %s13888_s12 = sld [smem:[%s18205_s0 + %s13790_s7]]   ;;  %s13793_s28 = smov 17  }
  0x10   :  { %s13893_s20 = sld [smem:[%s18205_s0 + %s13791_s15]]   ;;  %s13794_s7 = smov 18  }
  0x11   :  { %s13898_s27 = sld [smem:[%s18205_s0 + %s13792_s22]]   ;;  %s13795_s15 = smov 19  }
  0x12   :  { %s13903_s4 = sld [smem:[%s18205_s0 + %s13793_s28]]   ;;  %s13796_s22 = smov 20  }
  0x13   :  { %s13797_s28 = smov 21  }
  0x14   :  { %18257 = sst [smem:[#allocation5_spill]] %s13883_s6 }
  0x15   :  { %s13908_s6 = sld [smem:[%s18205_s0 + %s13794_s7]]   ;;  %s13798_s7 = smov 22  }
  0x16   :  { %18258 = sst [smem:[#allocation6_spill]] %s13893_s20 }
  0x17   :  { %18259 = sst [smem:[#allocation7_spill]] %s13898_s27 }
  0x18   :  { %18260 = sst [smem:[#allocation8_spill]] %s13903_s4 }
  0x19   :  { %s13913_s20 = sld [smem:[%s18205_s0 + %s13795_s15]]   ;;  %s13799_s15 = smov 23  }
  0x1a   :  { %s13918_s27 = sld [smem:[%s18205_s0 + %s13796_s22]]   ;;  %s13800_s22 = smov 24  }
  0x1b   :  { %18261 = sst [smem:[#allocation9_spill]] %s13908_s6 }
  0x1c   :  { %s13923_s4 = sld [smem:[%s18205_s0 + %s13797_s28]]   ;;  %s13801_s28 = smov 25  }
  0x1d   :  { %s13928_s6 = sld [smem:[%s18205_s0 + %s13798_s7]]   ;;  %s13802_s7 = smov 26  }
  0x1f   :  { %18262 = sst [smem:[#allocation10_spill]] %s13913_s20 }
  0x20   :  { %18263 = sst [smem:[#allocation11_spill]] %s13918_s27 }
  0x21   :  { %s13933_s20 = sld [smem:[%s18205_s0 + %s13799_s15]]   ;;  %s13803_s15 = smov 27  }
  0x22   :  { %18264 = sst [smem:[#allocation12_spill]] %s13923_s4 }
  0x23   :  { %18265 = sst [smem:[#allocation13_spill]] %s13928_s6 }
  0x24   :  { %s13938_s27 = sld [smem:[%s18205_s0 + %s13800_s22]]   ;;  %s13804_s22 = smov 28  }
  0x25   :  { %s13943_s4 = sld [smem:[%s18205_s0 + %s13801_s28]]   ;;  %s13805_s28 = smov 29  }
  0x26   :  { %s13948_s6 = sld [smem:[%s18205_s0 + %s13802_s7]]   ;;  %s13806_s7 = smov 30  }
  0x27   :  { %18266 = sst [smem:[#allocation14_spill]] %s13933_s20 }
  0x28   :  { %s13953_s20 = sld [smem:[%s18205_s0 + %s13803_s15]]  }
  0x2a   :  { %18267 = sst [smem:[#allocation15_spill]] %s13938_s27 }
  0x2b   :  { %18268 = sst [smem:[#allocation16_spill]] %s13943_s4 }
  0x2c   :  { %18269 = sst [smem:[#allocation17_spill]] %s13948_s6 }
  0x2d   :  { %s13958_s27 = sld [smem:[%s18205_s0 + %s13804_s22]]  }
  0x2e   :  { %s13963_s4 = sld [smem:[%s18205_s0 + %s13805_s28]]  }
  0x2f   :  { %s13968_s6 = sld [smem:[%s18205_s0 + %s13806_s7]]  }
  0x30   :  { %v12799_v0 = vld [vmem:[%s13838_s21] sm:$0xff]   ;;  %v12800_v1 = vld [vmem:[%s13838_s21 + $0x8] sm:$0xff]   ;;  %vm192_vm0 = vcmask 392192   ;;  %v12801_v4 = vld [vmem:[%s13838_s21 + $0x10] sm:$0xff]  }
  0x31   :  { %11748 = vmatprep.subr.bf16.mxu0 %v12799_v0  ;;  %v137_v2 = vld [vmem:[%s13818_s5] sm:$0xff]  ;;  %v138_v3 = vld [vmem:[%s13818_s5 + $0x8] sm:$0xff]  ;;  %v139_v6 = vld [vmem:[%s13818_s5 + $0x10] sm:$0xff] }
  0x32   :  { %11749 = vmatpush3.bf16.msra.mxu0 %v12799_v0  ;;  %v153_v5 = vpack.c.bf16 %v138_v3, %v137_v2  ;;  %v140_v7 = vld [vmem:[%s13818_s5 + $0x18] sm:$0xff]  ;;  %v141_v8 = vld [vmem:[%s13818_s5 + $0x20] sm:$0xff]  ;;  %v142_v9 = vld [vmem:[%s13818_s5 + $0x28] sm:$0xff] }
  0x33   :  { %11750 = vmatprep.subr.bf16.mxu0 %v12800_v1  ;;  %v154_v10 = vpack.c.bf16 %v140_v7, %v139_v6  ;;  %v155_v11 = vpack.c.bf16 %v142_v9, %v141_v8  ;;  %v143_v12 = vld [vmem:[%s13818_s5 + $0x30] sm:$0xff]  ;;  %v144_v13 = vld [vmem:[%s13818_s5 + $0x38] sm:$0xff]  ;;  %v145_v14 = vld [vmem:[%s13818_s5 + $0x40] sm:$0xff] }
  0x34   :  { %11754 = vmatprep.mubr.msk.bf16.mxu0 %vm192_vm0, %v153_v5  ;;  %v146_v15 = vld [vmem:[%s13818_s5 + $0x48] sm:$0xff]  ;;  %v156_v16 = vpack.c.bf16 %v144_v13, %v143_v12  ;;  %v147_v18 = vld [vmem:[%s13818_s5 + $0x50] sm:$0xff]  ;;  %v148_v19 = vld [vmem:[%s13818_s5 + $0x58] sm:$0xff] }
  0x35   :  { %v157_v17 = vpack.c.bf16 %v146_v15, %v145_v14  ;;  %v149_v20 = vld [vmem:[%s13818_s5 + $0x60] sm:$0xff]  ;;  %v150_v21 = vld [vmem:[%s13818_s5 + $0x68] sm:$0xff]  ;;  %v158_v22 = vpack.c.bf16 %v148_v19, %v147_v18  ;;  %v151_v24 = vld [vmem:[%s13818_s5 + $0x70] sm:$0xff] }
  0x36   :  { %11751 = vmatpush3.bf16.msra.mxu0 %v12800_v1  ;;  %v159_v23 = vpack.c.bf16 %v150_v21, %v149_v20  ;;  %v152_v25 = vld [vmem:[%s13818_s5 + $0x78] sm:$0xff] }
  0x37   :  { %11752 = vmatprep.subr.bf16.mxu0 %v12801_v4  ;;  %v160_v26 = vpack.c.bf16 %v152_v25, %v151_v24 }
  0x3a   :  { %11753 = vmatpush3.bf16.msra.mxu0 %v12801_v4 }
  0x3d   :  { %11755 = vmatmul.mubr.msk.bf16.vlgmr.msra.gmra.mrb[0].mxu0 %vm192_vm0, %v154_v10 }
  0x3e   :  { %11758 = vmatprep.mubr.msk.bf16.mxu0 %vm192_vm0, %v155_v11 }
  0x45   :  { %11759 = vmatmul.mubr.msk.bf16.gmra.mrb[4].mxu0 %vm192_vm0, %v156_v16 }
  0x46   :  { %11762 = vmatprep.mubr.msk.bf16.mxu0 %vm192_vm0, %v157_v17 }
  0x4d   :  { %11763 = vmatmul.mubr.msk.bf16.gmra.mrb[8].mxu0 %vm192_vm0, %v158_v22 }
  0x4e   :  { %11766 = vmatprep.mubr.msk.bf16.mxu0 %vm192_vm0, %v159_v23 }
  0x55   :  { %11767 = vmatmul.mubr.msk.bf16.gmra.mrb[12].mxu0 %vm192_vm0, %v160_v26 }
  0x56   :  { %66 = vsyncpa [#allocation3], 0  ;;  %v13998_v27 = vld [vmem:[%s13843_s25] ss:$0 sm:$0xff]  ;;  %v316_v29 = vld [vmem:[%s13823_s9 + $0x10] sm:$0xff]  ;;  %vm348_vm1 = vcmask 523264  }
  0x57   :  { %v314_v32 = vld [vmem:[%s13823_s9] sm:$0xff]  ;;  %v317_v35 = vld [vmem:[%s13823_s9 + $0x18] sm:$0xff]  ;;  %v315_v39 = vld [vmem:[%s13823_s9 + $0x8] sm:$0xff]  ;;  %vm1581_vm2 = vcmask 1041408   ;;  %vm1556_vm3 = vcmask 31744   ;;  %s18281_s0 = sld [smem:[#allocation5_spill]] }
  0x58   :  { %v318_v49 = vld [vmem:[%s13823_s9 + $0x20] sm:$0xff]  ;;  %v319_v55 = vld [vmem:[%s13823_s9 + $0x28] sm:$0xff]  ;;  %v320_v56 = vld [vmem:[%s13823_s9 + $0x30] sm:$0xff]  ;;  %s18282_s5 = sld [smem:[#allocation6_spill]]  ;;  %s18294_s21 = sld [smem:[#allocation11_spill]]  ;;  %vm13808_vm4 = vmmov 0  }
  0x59   :  { %v321_v60 = vld [vmem:[%s13823_s9 + $0x38] sm:$0xff]  ;;  %v322_v4 = vld [vmem:[%s13823_s9 + $0x40] sm:$0xff]  ;;  %v323_v10 = vld [vmem:[%s13823_s9 + $0x48] sm:$0xff]  ;;  %s18295_s25 = sld [smem:[#allocation7_spill]]  ;;  %s18296_s15 = sld [smem:[#allocation8_spill]]  ;;  %vm10248_vm5 = vcmask 1041409  }
  0x5a   :  { %v324_v11 = vld [vmem:[%s13823_s9 + $0x50] sm:$0xff]  ;;  %v325_v16 = vld [vmem:[%s13823_s9 + $0x58] sm:$0xff]  ;;  %v326_v24 = vld [vmem:[%s13823_s9 + $0x60] sm:$0xff]  ;;  %s18297_s16 = sld [smem:[#allocation10_spill]]  ;;  %s18298_s18 = sld [smem:[#allocation12_spill]]  ;;  %vm10523_vm6 = vcmask 74752  }
 0x110   :  { %v11756_v28 = vpop.f32.mrb[0].mxu0 }
 0x111   :  { %v260_v30 = vadd.f32 %v11756_v28, %v13998_v27  ;;  %v251_v31 = vpop.f32.mrb[1].mxu0 }
 0x112   :  { %v252_v33 = vadd.f32 %v13998_v27, %v251_v31  ;;  %v11757_v34 = vpop.f32.mrb[2].mxu0  ;;  %v327_v31 = vld [vmem:[%s13823_s9 + $0x68] sm:$0xff] }
 0x113   :  { %v263_v36 = vadd.f32 %v11757_v34, %v13998_v27  ;;  %v254_v37 = vpop.f32.mrb[3].mxu0  ;;  %v14006_v38 = vadd.f32 %v316_v29, %v260_v30 }
 0x114   :  { %v255_v40 = vadd.f32 %v13998_v27, %v254_v37  ;;  %v14010_v41 = vadd.f32 %v314_v32, %v252_v33  ;;  %v328_v32 = vld [vmem:[%s13823_s9 + $0x70] sm:$0xff]  ;;  %v329_v37 = vld [vmem:[%s13823_s9 + $0x78] sm:$0xff]  ;;  %s18289_s9 = sld [smem:[#allocation9_spill]] }
 0x115   :  { %v355_v42 = vsel %vm348_vm1, %v14006_v38, 0.0  ;;  %v14014_v43 = vadd.f32 %v317_v35, %v263_v36 }
 0x116   :  { %356 = vadd.xlane.f32.xlu1 %v355_v42  ;;  %v349_v44 = vsel %vm348_vm1, %v14010_v41, 0.0  ;;  %v14018_v45 = vadd.f32 %v315_v39, %v255_v40 }
 0x117   :  { %350 = vadd.xlane.f32.xlu0 %v349_v44  ;;  %v358_v48 = vsel %vm348_vm1, %v14014_v43, 0.0 }
 0x118   :  { %v11760_v46 = vpop.f32.mrb[4].mxu0  ;;  %v352_v53 = vsel %vm348_vm1, %v14018_v45, 0.0 }
 0x119   :  { %v267_v47 = vpop.f32.mrb[5].mxu0  ;;  %v276_v50 = vadd.f32 %v11760_v46, %v13998_v27 }
 0x11a   :  { %v268_v51 = vadd.f32 %v13998_v27, %v267_v47  ;;  %359 = vadd.xlane.f32.xlu1 %v358_v48  ;;  %v11761_v52 = vpop.f32.mrb[6].mxu0  ;;  %v12802_v48 = vld [vmem:[%s13863_s14] sm:$0xff]  }
 0x11b   :  { %v270_v54 = vpop.f32.mrb[7].mxu0  ;;  %353 = vadd.xlane.f32.xlu0 %v352_v53  ;;  %v279_v57 = vadd.f32 %v11761_v52, %v13998_v27  ;;  %v14038_v63 = vadd.f32 %v320_v56, %v276_v50  ;;  %11794 = vmatprep.subr.bf16.mxu0 %v12802_v48 }
 0x11c   :  { %v271_v58 = vadd.f32 %v13998_v27, %v270_v54  ;;  %v14031_v59 = vadd.f32 %v318_v49, %v268_v51  ;;  %11795 = vmatpush3.bf16.msra.mxu0 %v12802_v48 }
 0x11d   :  { %18270 = vst [vmem:[#allocation18_spill] sm:$0xff] %v14038_v63  ;;  %v14042_v2 = vadd.f32 %v321_v60, %v279_v57  ;;  %v367_v8 = vsel %vm348_vm1, %v14038_v63, 0.0 }
 0x11e   :  { %v361_v61 = vsel %vm348_vm1, %v14031_v59, 0.0  ;;  %v14036_v62 = vadd.f32 %v319_v55, %v271_v58 }
 0x11f   :  { %362 = vadd.xlane.f32.xlu0 %v361_v61  ;;  %18271 = vst [vmem:[#allocation19_spill] sm:$0xff] %v14042_v2  ;;  %v370_v14 = vsel %vm348_vm1, %v14042_v2, 0.0 }
 0x120   :  { %v11764_v0 = vpop.f32.mrb[8].mxu0  ;;  %v364_v1 = vsel %vm348_vm1, %v14036_v62, 0.0 }
 0x121   :  { %v283_v3 = vpop.f32.mrb[9].mxu0  ;;  %365 = vadd.xlane.f32.xlu1 %v364_v1  ;;  %v292_v5 = vadd.f32 %v11764_v0, %v13998_v27 }
 0x122   :  { %v284_v6 = vadd.f32 %v13998_v27, %v283_v3  ;;  %v11765_v7 = vpop.f32.mrb[10].mxu0 }
 0x123   :  { %v286_v9 = vpop.f32.mrb[11].mxu0  ;;  %368 = vadd.xlane.f32.xlu0 %v367_v8  ;;  %v295_v12 = vadd.f32 %v11765_v7, %v13998_v27  ;;  %v14062_v19 = vadd.f32 %v324_v11, %v292_v5 }
 0x124   :  { %v287_v13 = vadd.f32 %v13998_v27, %v286_v9  ;;  %v14055_v15 = vadd.f32 %v322_v4, %v284_v6 }
 0x125   :  { %371 = vadd.xlane.f32.xlu1 %v370_v14  ;;  %18274 = vst [vmem:[#allocation22_spill] sm:$0xff] %v14062_v19  ;;  %v14066_v22 = vadd.f32 %v325_v16, %v295_v12  ;;  %v379_v29 = vsel %vm348_vm1, %v14062_v19, 0.0 }
 0x126   :  { %18272 = vst [vmem:[#allocation20_spill] sm:$0xff] %v14055_v15  ;;  %v373_v17 = vsel %vm348_vm1, %v14055_v15, 0.0  ;;  %v14060_v18 = vadd.f32 %v323_v10, %v287_v13 }
 0x127   :  { %374 = vadd.xlane.f32.xlu0 %v373_v17  ;;  %18275 = vst [vmem:[#allocation23_spill] sm:$0xff] %v14066_v22  ;;  %v382_v35 = vsel %vm348_vm1, %v14066_v22, 0.0 }
 0x128   :  { %18273 = vst [vmem:[#allocation21_spill] sm:$0xff] %v14060_v18  ;;  %v11768_v20 = vpop.f32.mrb[12].mxu0  ;;  %v376_v21 = vsel %vm348_vm1, %v14060_v18, 0.0 }
 0x129   :  { %v299_v23 = vpop.f32.mrb[13].mxu0  ;;  %377 = vadd.xlane.f32.xlu1 %v376_v21  ;;  %v308_v25 = vadd.f32 %v11768_v20, %v13998_v27 }
 0x12a   :  { %v300_v26 = vadd.f32 %v13998_v27, %v299_v23  ;;  %v11769_v28 = vpop.f32.mrb[14].mxu0 }
 0x12b   :  { %v302_v30 = vpop.f32.mrb[15].mxu0  ;;  %380 = vadd.xlane.f32.xlu0 %v379_v29  ;;  %v311_v33 = vadd.f32 %v11769_v28, %v13998_v27  ;;  %v14086_v42 = vadd.f32 %v328_v32, %v308_v25 }
 0x12c   :  { %v303_v34 = vadd.f32 %v13998_v27, %v302_v30  ;;  %v14079_v36 = vadd.f32 %v326_v24, %v300_v26 }
 0x12d   :  { %383 = vadd.xlane.f32.xlu1 %v382_v35  ;;  %18278 = vst [vmem:[#allocation26_spill] sm:$0xff] %v14086_v42  ;;  %v14090_v27 = vadd.f32 %v329_v37, %v311_v33  ;;  %v391_v46 = vsel %vm348_vm1, %v14086_v42, 0.0 }
 0x12e   :  { %18276 = vst [vmem:[#allocation24_spill] sm:$0xff] %v14079_v36  ;;  %v385_v39 = vsel %vm348_vm1, %v14079_v36, 0.0  ;;  %v14084_v40 = vadd.f32 %v327_v31, %v303_v34 }
 0x12f   :  { %386 = vadd.xlane.f32.xlu0 %v385_v39  ;;  %18279 = vst [vmem:[#allocation27_spill] sm:$0xff] %v14090_v27  ;;  %v394_v47 = vsel %vm348_vm1, %v14090_v27, 0.0 }
 0x130   :  { %18277 = vst [vmem:[#allocation25_spill] sm:$0xff] %v14084_v40  ;;  %v388_v44 = vsel %vm348_vm1, %v14084_v40, 0.0 }
 0x131   :  { %389 = vadd.xlane.f32.xlu1 %v388_v44 }
 0x133   :  { %392 = vadd.xlane.f32.xlu0 %v391_v46 }
 0x135   :  { %395 = vadd.xlane.f32.xlu1 %v394_v47 }
 0x1a3   :  { %v357_v49 = vpop.xlane.xlu1 %356 }
 0x1a4   :  { %v400_v50 = vmul.f32 0.015625, %v357_v49  ;;  %v351_v51 = vpop.xlane.xlu0 %350 }
 0x1a5   :  { %v398_v52 = vmul.f32 0.015625, %v351_v51 }
 0x1a6   :  { %v14098_v53 = vsub.f32 %v14006_v38, %v400_v50 }
 0x1a7   :  { %v14101_v54 = vsub.f32 %v14010_v41, %v398_v52  ;;  %v360_v55 = vpop.xlane.xlu1 %359 }
 0x1a8   :  { %v401_v56 = vmul.f32 0.015625, %v360_v55  ;;  %v354_v57 = vpop.xlane.xlu0 %353  ;;  %v432_v3 = vmul.f32 %v14098_v53, %v14098_v53 }
 0x1a9   :  { %v399_v58 = vmul.f32 0.015625, %v354_v57  ;;  %v430_v60 = vmul.f32 %v14101_v54, %v14101_v54 }
 0x1aa   :  { %v14106_v61 = vsub.f32 %v14014_v43, %v401_v56  ;;  %v452_v11 = vsel %vm348_vm1, %v432_v3, 0.0 }
 0x1ab   :  { %v14109_v0 = vsub.f32 %v14018_v45, %v399_v58  ;;  %v446_v1 = vsel %vm348_vm1, %v430_v60, 0.0 }
 0x1ac   :  { %447 = vadd.xlane.f32.xlu0 %v446_v1  ;;  %v363_v4 = vpop.xlane.xlu0 %362  ;;  %v433_v8 = vmul.f32 %v14106_v61, %v14106_v61 }
 0x1ad   :  { %v402_v5 = vmul.f32 0.015625, %v363_v4  ;;  %v431_v6 = vmul.f32 %v14109_v0, %v14109_v0 }
 0x1ae   :  { %v366_v7 = vpop.xlane.xlu1 %365  ;;  %v455_v21 = vsel %vm348_vm1, %v433_v8, 0.0 }
 0x1af   :  { %v14119_v9 = vsub.f32 %v14031_v59, %v402_v5  ;;  %v403_v10 = vmul.f32 0.015625, %v366_v7  ;;  %v449_v12 = vsel %vm348_vm1, %v431_v6, 0.0 }
 0x1b0   :  { %453 = vadd.xlane.f32.xlu0 %v452_v11  ;;  %450 = vadd.xlane.f32.xlu1 %v449_v12  ;;  %v369_v13 = vpop.xlane.xlu0 %368 }
 0x1b1   :  { %v14124_v14 = vsub.f32 %v14036_v62, %v403_v10  ;;  %v404_v16 = vmul.f32 0.015625, %v369_v13  ;;  %v434_v17 = vmul.f32 %v14119_v9, %v14119_v9 }
 0x1b2   :  { %v372_v20 = vpop.xlane.xlu1 %371 }
 0x1b3   :  { %v14130_v23 = vsub.f32 %v14038_v63, %v404_v16  ;;  %v405_v24 = vmul.f32 0.015625, %v372_v20  ;;  %v458_v25 = vsel %vm348_vm1, %v434_v17, 0.0  ;;  %v435_v26 = vmul.f32 %v14124_v14, %v14124_v14 }
 0x1b4   :  { %456 = vadd.xlane.f32.xlu1 %v455_v21  ;;  %459 = vadd.xlane.f32.xlu0 %v458_v25  ;;  %v375_v28 = vpop.xlane.xlu0 %374 }
 0x1b5   :  { %v14136_v29 = vsub.f32 %v14042_v2, %v405_v24  ;;  %v406_v30 = vmul.f32 0.015625, %v375_v28  ;;  %v436_v31 = vmul.f32 %v14130_v23, %v14130_v23  ;;  %v461_v33 = vsel %vm348_vm1, %v435_v26, 0.0  ;;  %v12803_v26 = vld [vmem:[%s13863_s14 + $0x8] sm:$0xff]  }
 0x1b6   :  { %v378_v32 = vpop.xlane.xlu1 %377  ;;  %11796 = vmatprep.subr.bf16.mxu0 %v12803_v26 }
 0x1b7   :  { %v14142_v34 = vsub.f32 %v14055_v15, %v406_v30  ;;  %v407_v35 = vmul.f32 0.015625, %v378_v32  ;;  %v464_v37 = vsel %vm348_vm1, %v436_v31, 0.0  ;;  %v437_v39 = vmul.f32 %v14136_v29, %v14136_v29  ;;  %11797 = vmatpush3.bf16.msra.mxu0 %v12803_v26 }
 0x1b8   :  { %462 = vadd.xlane.f32.xlu1 %v461_v33  ;;  %465 = vadd.xlane.f32.xlu0 %v464_v37  ;;  %v381_v44 = vpop.xlane.xlu0 %380 }
 0x1b9   :  { %v14148_v46 = vsub.f32 %v14060_v18, %v407_v35  ;;  %v408_v47 = vmul.f32 0.015625, %v381_v44  ;;  %v438_v48 = vmul.f32 %v14142_v34, %v14142_v34  ;;  %v467_v50 = vsel %vm348_vm1, %v437_v39, 0.0  ;;  %v12805_v35 = vld [vmem:[%s13858_s8] sm:$0xff]   ;;  %v12804_v39 = vld [vmem:[%s13863_s14 + $0x10] sm:$0xff]   ;;  %v12806_v44 = vld [vmem:[%s13858_s8 + $0x8] sm:$0xff]  }
 0x1ba   :  { %v384_v49 = vpop.xlane.xlu1 %383  ;;  %11770 = vmatprep.subr.bf16.mxu1 %v12805_v35  ;;  %11798 = vmatprep.subr.bf16.mxu0 %v12804_v39 }
 0x1bb   :  { %v14154_v51 = vsub.f32 %v14062_v19, %v408_v47  ;;  %v409_v52 = vmul.f32 0.015625, %v384_v49  ;;  %v470_v55 = vsel %vm348_vm1, %v438_v48, 0.0  ;;  %v439_v56 = vmul.f32 %v14148_v46, %v14148_v46  ;;  %11771 = vmatpush3.bf16.msra.mxu1 %v12805_v35  ;;  %11799 = vmatpush3.bf16.msra.mxu0 %v12804_v39  ;;  %v12808_v47 = vld [vmem:[%s13858_s8 + $0x10] sm:$0xff]   ;;  %v12807_v48 = vld [vmem:[%s13863_s14 + $0x18] sm:$0xff]  }
 0x1bc   :  { %468 = vadd.xlane.f32.xlu1 %v467_v50  ;;  %471 = vadd.xlane.f32.xlu0 %v470_v55  ;;  %v387_v57 = vpop.xlane.xlu0 %386  ;;  %v12809_v49 = vld [vmem:[%s13858_s8 + $0x18] sm:$0xff]   ;;  %v14201_v50 = vld [vmem:[%s13868_s19] sm:$0xff]  }
 0x1bd   :  { %v14160_v58 = vsub.f32 %v14066_v22, %v409_v52  ;;  %v410_v60 = vmul.f32 0.015625, %v387_v57  ;;  %v440_v1 = vmul.f32 %v14154_v51, %v14154_v51  ;;  %v473_v4 = vsel %vm348_vm1, %v439_v56, 0.0  ;;  %11772 = vmatprep.subr.bf16.mxu1 %v12806_v44  ;;  %11800 = vmatprep.subr.bf16.mxu0 %v12807_v48  ;;  %v14205_v52 = vld [vmem:[%s13828_s13] sm:$0xff]  }
 0x1be   :  { %v390_v3 = vpop.xlane.xlu1 %389 }
 0x1bf   :  { %v14166_v5 = vsub.f32 %v14079_v36, %v410_v60  ;;  %v411_v6 = vmul.f32 0.015625, %v390_v3  ;;  %v476_v7 = vsel %vm348_vm1, %v440_v1, 0.0  ;;  %v441_v8 = vmul.f32 %v14160_v58, %v14160_v58  ;;  %11773 = vmatpush3.bf16.msra.mxu1 %v12806_v44  ;;  %11801 = vmatpush3.bf16.msra.mxu0 %v12807_v48 }
 0x1c0   :  { %474 = vadd.xlane.f32.xlu1 %v473_v4  ;;  %477 = vadd.xlane.f32.xlu0 %v476_v7  ;;  %v393_v10 = vpop.xlane.xlu0 %392 }
 0x1c1   :  { %v14172_v11 = vsub.f32 %v14084_v40, %v411_v6  ;;  %v412_v12 = vmul.f32 0.015625, %v393_v10  ;;  %v442_v13 = vmul.f32 %v14166_v5, %v14166_v5  ;;  %v479_v17 = vsel %vm348_vm1, %v441_v8, 0.0  ;;  %11774 = vmatprep.subr.bf16.mxu1 %v12808_v47  ;;  %11842 = vmatprep.subr.bf16.mxu0 %v14205_v52 }
 0x1c2   :  { %v396_v16 = vpop.xlane.xlu1 %395 }
 0x1c3   :  { %v14178_v20 = vsub.f32 %v14086_v42, %v412_v12  ;;  %v413_v21 = vmul.f32 0.015625, %v396_v16  ;;  %v482_v24 = vsel %vm348_vm1, %v442_v13, 0.0  ;;  %v443_v25 = vmul.f32 %v14172_v11, %v14172_v11  ;;  %11775 = vmatpush3.bf16.msra.mxu1 %v12808_v47  ;;  %v14210_v47 = vld [vmem:[%s13848_s29] ss:$0 sm:$0xff] }
 0x1c4   :  { %480 = vadd.xlane.f32.xlu1 %v479_v17  ;;  %483 = vadd.xlane.f32.xlu0 %v482_v24 }
 0x1c5   :  { %v14185_v28 = vsub.f32 %v14090_v27, %v413_v21  ;;  %v444_v30 = vmul.f32 %v14178_v20, %v14178_v20  ;;  %v485_v31 = vsel %vm348_vm1, %v443_v25, 0.0  ;;  %11776 = vmatprep.subr.bf16.mxu1 %v12809_v49 }
 0x1c7   :  { %v488_v32 = vsel %vm348_vm1, %v444_v30, 0.0  ;;  %v445_v33 = vmul.f32 %v14185_v28, %v14185_v28  ;;  %11777 = vmatpush3.bf16.msra.mxu1 %v12809_v49 }
 0x1c8   :  { %486 = vadd.xlane.f32.xlu1 %v485_v31  ;;  %489 = vadd.xlane.f32.xlu0 %v488_v32 }
 0x1c9   :  { %v491_v37 = vsel %vm348_vm1, %v445_v33, 0.0  ;;  %11818 = vmatprep.subr.bf16.mxu1 %v14201_v50 }
 0x1cc   :  { %492 = vadd.xlane.f32.xlu1 %v491_v37 }
 0x239   :  { %v448_v55 = vpop.xlane.xlu0 %447 }
 0x23a   :  { %v494_v56 = vmul.f32 0.015625, %v448_v55 }
 0x23c   :  { %v510_v57 = vadd.f32 1e-05, %v494_v56 }
 0x23d   :  { %v451_v60 = vpop.xlane.xlu1 %450  ;;  %v454_v1 = vpop.xlane.xlu0 %453 }
 0x23e   :  { %12934 = vrsqrt.f32 %v510_v57  ;;  %v495_v3 = vmul.f32 0.015625, %v451_v60  ;;  %v496_v4 = vmul.f32 0.015625, %v454_v1 }
 0x240   :  { %v511_v6 = vadd.f32 1e-05, %v495_v3  ;;  %v512_v7 = vadd.f32 1e-05, %v496_v4 }
 0x241   :  { %v457_v8 = vpop.xlane.xlu1 %456  ;;  %v460_v10 = vpop.xlane.xlu0 %459 }
 0x242   :  { %12936 = vrsqrt.f32 %v511_v6  ;;  %v497_v12 = vmul.f32 0.015625, %v457_v8  ;;  %v498_v13 = vmul.f32 0.015625, %v460_v10  ;;  %v14215_v6 = vld [vmem:[%s13853_s3] ss:$0 sm:$0xff] }
 0x243   :  { %12938 = vrsqrt.f32 %v512_v7 }
 0x244   :  { %v513_v16 = vadd.f32 1e-05, %v497_v12  ;;  %v514_v17 = vadd.f32 1e-05, %v498_v13 }
 0x245   :  { %v463_v21 = vpop.xlane.xlu1 %462  ;;  %v466_v24 = vpop.xlane.xlu0 %465 }
 0x246   :  { %12940 = vrsqrt.f32 %v513_v16  ;;  %v499_v25 = vmul.f32 0.015625, %v463_v21  ;;  %v500_v26 = vmul.f32 0.015625, %v466_v24 }
 0x247   :  { %12942 = vrsqrt.f32 %v514_v17 }
 0x248   :  { %v12935_v30 = vpop.eup %12934  ;;  %v515_v31 = vadd.f32 1e-05, %v499_v25  ;;  %v516_v32 = vadd.f32 1e-05, %v500_v26 }
 0x249   :  { %v469_v33 = vpop.xlane.xlu1 %468  ;;  %v472_v35 = vpop.xlane.xlu0 %471  ;;  %v542_v37 = vmul.f32 %v12935_v30, %v14101_v54 }
 0x24a   :  { %12944 = vrsqrt.f32 %v515_v31  ;;  %v501_v39 = vmul.f32 0.015625, %v469_v33  ;;  %v502_v44 = vmul.f32 0.015625, %v472_v35 }
 0x24b   :  { %12946 = vrsqrt.f32 %v516_v32  ;;  %v564_v3 = vmul.f32 %v14210_v47, %v542_v37 }
 0x24c   :  { %v12937_v48 = vpop.eup %12936  ;;  %v517_v49 = vadd.f32 1e-05, %v501_v39  ;;  %v518_v55 = vadd.f32 1e-05, %v502_v44 }
 0x24d   :  { %v12939_v56 = vpop.eup %12938  ;;  %v475_v57 = vpop.xlane.xlu1 %474  ;;  %v543_v1 = vmul.f32 %v12937_v48, %v14109_v0  ;;  %v586_v24 = vadd.f32 %v14215_v6, %v564_v3 }
 0x24e   :  { %v478_v60 = vpop.xlane.xlu0 %477  ;;  %12948 = vrsqrt.f32 %v517_v49  ;;  %v503_v4 = vmul.f32 0.015625, %v475_v57  ;;  %v544_v7 = vmul.f32 %v12939_v56, %v14098_v53 }
 0x24f   :  { %v504_v54 = vmul.f32 0.015625, %v478_v60  ;;  %12950 = vrsqrt.f32 %v518_v55  ;;  %v565_v8 = vmul.f32 %v14210_v47, %v543_v1 }
 0x250   :  { %v12941_v10 = vpop.eup %12940  ;;  %v519_v12 = vadd.f32 1e-05, %v503_v4  ;;  %v566_v16 = vmul.f32 %v14210_v47, %v544_v7  ;;  %v14241_v7 = vld [vmem:[%s13828_s13 + $0x8] sm:$0xff]  }
 0x251   :  { %v520_v13 = vadd.f32 1e-05, %v504_v54  ;;  %v12943_v17 = vpop.eup %12942  ;;  %v481_v21 = vpop.xlane.xlu1 %480  ;;  %v587_v25 = vadd.f32 %v14215_v6, %v565_v8  ;;  %v545_v26 = vmul.f32 %v12941_v10, %v14106_v61  ;;  %v12811_v54 = vld [vmem:[%s13868_s19 + $0x8] sm:$0xff]  }
 0x252   :  { %v484_v0 = vpop.xlane.xlu0 %483  ;;  %12952 = vrsqrt.f32 %v519_v12  ;;  %v505_v30 = vmul.f32 0.015625, %v481_v21  ;;  %v546_v33 = vmul.f32 %v12943_v17, %v14119_v9  ;;  %v588_v44 = vadd.f32 %v14215_v6, %v566_v16 }
 0x253   :  { %v506_v53 = vmul.f32 0.015625, %v484_v0  ;;  %12954 = vrsqrt.f32 %v520_v13  ;;  %v14223_v31 = vpack.c.bf16 %v587_v25, %v586_v24  ;;  %v567_v32 = vmul.f32 %v14210_v47, %v545_v26 }
 0x254   :  { %v12945_v35 = vpop.eup %12944  ;;  %v521_v37 = vadd.f32 1e-05, %v505_v30  ;;  %v568_v56 = vmul.f32 %v14210_v47, %v546_v33  ;;  %v12812_v30 = vld [vmem:[%s13868_s19 + $0x10] sm:$0xff]  }
 0x255   :  { %v522_v39 = vadd.f32 1e-05, %v506_v53  ;;  %v12947_v48 = vpop.eup %12946  ;;  %v487_v49 = vpop.xlane.xlu1 %486  ;;  %11778 = vmatprep.mubr.msk.bf16.mxu1 %vm348_vm1, %v14223_v31  ;;  %11802 = vmatprep.mubr.msk.bf16.mxu0 %vm348_vm1, %v14223_v31  ;;  %v589_v55 = vadd.f32 %v14215_v6, %v567_v32  ;;  %v547_v9 = vmul.f32 %v12945_v35, %v14124_v14 }
 0x256   :  { %v490_v61 = vpop.xlane.xlu0 %489  ;;  %12956 = vrsqrt.f32 %v521_v37  ;;  %v507_v57 = vmul.f32 0.015625, %v487_v49  ;;  %v548_v1 = vmul.f32 %v12947_v48, %v14130_v23  ;;  %v590_v14 = vadd.f32 %v14215_v6, %v568_v56  ;;  %v12813_v48 = vld [vmem:[%s13868_s19 + $0x18] sm:$0xff]  }
 0x257   :  { %v508_v60 = vmul.f32 0.015625, %v490_v61  ;;  %12958 = vrsqrt.f32 %v522_v39  ;;  %v14236_v3 = vpack.c.bf16 %v589_v55, %v588_v44  ;;  %v569_v4 = vmul.f32 %v14210_v47, %v547_v9 }
 0x258   :  { %v12949_v8 = vpop.eup %12948  ;;  %v523_v10 = vadd.f32 1e-05, %v507_v57  ;;  %v570_v21 = vmul.f32 %v14210_v47, %v548_v1 }
 0x259   :  { %v524_v12 = vadd.f32 1e-05, %v508_v60  ;;  %v12951_v13 = vpop.eup %12950  ;;  %v493_v16 = vpop.xlane.xlu1 %492  ;;  %11779 = vmatmul.mubr.msk.bf16.vlgmr.msra.gmra.mrb[0].mxu1 %vm348_vm1, %v14236_v3  ;;  %11803 = vmatmul.mubr.msk.bf16.vlgmr.msra.gmra.mrb[16].mxu0 %vm348_vm1, %v14236_v3  ;;  %v591_v23 = vadd.f32 %v14215_v6, %v569_v4  ;;  %v549_v17 = vmul.f32 %v12949_v8, %v14136_v29 }
 0x25a   :  { %12960 = vrsqrt.f32 %v523_v10  ;;  %v509_v0 = vmul.f32 0.015625, %v493_v16  ;;  %v550_v24 = vmul.f32 %v12951_v13, %v14142_v34  ;;  %11819 = vmatpush3.bf16.msra.mxu1 %v14201_v50  ;;  %11843 = vmatpush3.bf16.msra.mxu0 %v14205_v52  ;;  %v592_v34 = vadd.f32 %v14215_v6, %v570_v21 }
 0x25b   :  { %12962 = vrsqrt.f32 %v524_v12  ;;  %v14254_v25 = vpack.c.bf16 %v591_v23, %v590_v14  ;;  %v571_v26 = vmul.f32 %v14210_v47, %v549_v17  ;;  %11820 = vmatprep.subr.bf16.mxu1 %v12811_v54  ;;  %11844 = vmatprep.subr.bf16.mxu0 %v14241_v7 }
 0x25c   :  { %v12953_v29 = vpop.eup %12952  ;;  %v525_v53 = vadd.f32 1e-05, %v509_v0  ;;  %v572_v32 = vmul.f32 %v14210_v47, %v550_v24 }
 0x25d   :  { %v12955_v33 = vpop.eup %12954  ;;  %11782 = vmatprep.mubr.msk.bf16.mxu1 %vm348_vm1, %v14254_v25  ;;  %11806 = vmatprep.mubr.msk.bf16.mxu0 %vm348_vm1, %v14254_v25  ;;  %v593_v50 = vadd.f32 %v14215_v6, %v571_v26  ;;  %v551_v35 = vmul.f32 %v12953_v29, %v14148_v46 }
 0x25e   :  { %12964 = vrsqrt.f32 %v525_v53  ;;  %v552_v37 = vmul.f32 %v12955_v33, %v14154_v51  ;;  %11821 = vmatpush3.bf16.msra.mxu1 %v12811_v54  ;;  %11845 = vmatpush3.bf16.msra.mxu0 %v14241_v7  ;;  %v594_v61 = vadd.f32 %v14215_v6, %v572_v32 }
 0x25f   :  { %v605_v39 = vpack.c.bf16 %v593_v50, %v592_v34  ;;  %v573_v44 = vmul.f32 %v14210_v47, %v551_v35  ;;  %11822 = vmatprep.subr.bf16.mxu1 %v12812_v30 }
 0x260   :  { %v12957_v49 = vpop.eup %12956  ;;  %v574_v9 = vmul.f32 %v14210_v47, %v552_v37 }
 0x261   :  { %v12959_v55 = vpop.eup %12958  ;;  %11783 = vmatmul.mubr.msk.bf16.gmra.mrb[4].mxu1 %vm348_vm1, %v605_v39  ;;  %11807 = vmatmul.mubr.msk.bf16.gmra.mrb[20].mxu0 %vm348_vm1, %v605_v39  ;;  %v595_v46 = vadd.f32 %v14215_v6, %v573_v44  ;;  %v553_v51 = vmul.f32 %v12957_v49, %v14160_v58 }
 0x262   :  { %v554_v56 = vmul.f32 %v12959_v55, %v14166_v5  ;;  %11823 = vmatpush3.bf16.msra.mxu1 %v12812_v30  ;;  %v596_v8 = vadd.f32 %v14215_v6, %v574_v9 }
 0x263   :  { %v606_v57 = vpack.c.bf16 %v595_v46, %v594_v61  ;;  %v575_v60 = vmul.f32 %v14210_v47, %v553_v51  ;;  %11824 = vmatprep.subr.bf16.mxu1 %v12813_v48 }
 0x264   :  { %v12961_v1 = vpop.eup %12960  ;;  %v576_v4 = vmul.f32 %v14210_v47, %v554_v56 }
 0x265   :  { %v12963_v54 = vpop.eup %12962  ;;  %11786 = vmatprep.mubr.msk.bf16.mxu1 %vm348_vm1, %v606_v57  ;;  %11810 = vmatprep.mubr.msk.bf16.mxu0 %vm348_vm1, %v606_v57  ;;  %v597_v58 = vadd.f32 %v14215_v6, %v575_v60  ;;  %v555_v10 = vmul.f32 %v12961_v1, %v14172_v11 }
 0x266   :  { %v556_v5 = vmul.f32 %v12963_v54, %v14178_v20  ;;  %11825 = vmatpush3.bf16.msra.mxu1 %v12813_v48  ;;  %v598_v16 = vadd.f32 %v14215_v6, %v576_v4 }
 0x267   :  { %v607_v12 = vpack.c.bf16 %v597_v58, %v596_v8  ;;  %v577_v14 = vmul.f32 %v14210_v47, %v555_v10  ;;  %11866 = vmatprep.subr.bf16.mxu1 %v14205_v52 }
 0x268   :  { %v12965_v13 = vpop.eup %12964  ;;  %v578_v11 = vmul.f32 %v14210_v47, %v556_v5 }
 0x269   :  { %11787 = vmatmul.mubr.msk.bf16.gmra.mrb[8].mxu1 %vm348_vm1, %v607_v12  ;;  %11811 = vmatmul.mubr.msk.bf16.gmra.mrb[24].mxu0 %vm348_vm1, %v607_v12  ;;  %v599_v23 = vadd.f32 %v14215_v6, %v577_v14  ;;  %v557_v17 = vmul.f32 %v12965_v13, %v14185_v28  ;;  %v12816_v28 = vld [vmem:[%s13828_s13 + $0x10] sm:$0xff]  }
 0x26a   :  { %v600_v0 = vadd.f32 %v14215_v6, %v578_v11  ;;  %11846 = vmatprep.subr.bf16.mxu0 %v12816_v28 }
 0x26b   :  { %v608_v20 = vpack.c.bf16 %v599_v23, %v598_v16  ;;  %v579_v21 = vmul.f32 %v14210_v47, %v557_v17  ;;  %11847 = vmatpush3.bf16.msra.mxu0 %v12816_v28  ;;  %v14318_v47 = vld [vmem:[%s13873_s24] ss:$0 sm:$0xff] }
 0x26d   :  { %11790 = vmatprep.mubr.msk.bf16.mxu1 %vm348_vm1, %v608_v20  ;;  %11814 = vmatprep.mubr.msk.bf16.mxu0 %vm348_vm1, %v608_v20  ;;  %v601_v24 = vadd.f32 %v14215_v6, %v579_v21  ;;  %v14321_v6 = vld [vmem:[%s13878_s30] ss:$0 sm:$0xff] }
 0x26f   :  { %v609_v26 = vpack.c.bf16 %v601_v24, %v600_v0 }
 0x271   :  { %11791 = vmatmul.mubr.msk.bf16.gmra.mrb[12].mxu1 %vm348_vm1, %v609_v26  ;;  %11815 = vmatmul.mubr.msk.bf16.gmra.mrb[28].mxu0 %vm348_vm1, %v609_v26 }
 0x272   :  { %11826 = vmatprep.mubr.msk.bf16.mxu1 %vm348_vm1, %v14223_v31 }
 0x279   :  { %11827 = vmatmul.mubr.msk.bf16.vlgmr.msra.gmra.mrb[16].mxu1 %vm348_vm1, %v14236_v3 }
 0x27a   :  { %11830 = vmatprep.mubr.msk.bf16.mxu1 %vm348_vm1, %v14254_v25  ;;  %11867 = vmatpush3.bf16.msra.mxu1 %v14205_v52  ;;  %v12817_v52 = vld [vmem:[%s13828_s13 + $0x18] sm:$0xff]  }
 0x27b   :  { %11868 = vmatprep.subr.bf16.mxu1 %v14241_v7  ;;  %11848 = vmatprep.subr.bf16.mxu0 %v12817_v52 }
 0x27c   :  { %11849 = vmatpush3.bf16.msra.mxu0 %v12817_v52 }
 0x27e   :  { %11869 = vmatpush3.bf16.msra.mxu1 %v14241_v7 }
 0x27f   :  { %11870 = vmatprep.subr.bf16.mxu1 %v12816_v28 }
 0x281   :  { %11831 = vmatmul.mubr.msk.bf16.gmra.mrb[20].mxu1 %vm348_vm1, %v605_v39 }
 0x282   :  { %11834 = vmatprep.mubr.msk.bf16.mxu1 %vm348_vm1, %v606_v57  ;;  %11871 = vmatpush3.bf16.msra.mxu1 %v12816_v28 }
 0x283   :  { %11872 = vmatprep.subr.bf16.mxu1 %v12817_v52 }
 0x286   :  { %11873 = vmatpush3.bf16.msra.mxu1 %v12817_v52 }
 0x289   :  { %11835 = vmatmul.mubr.msk.bf16.gmra.mrb[24].mxu1 %vm348_vm1, %v607_v12 }
 0x28a   :  { %11838 = vmatprep.mubr.msk.bf16.mxu1 %vm348_vm1, %v608_v20 }
 0x291   :  { %11839 = vmatmul.mubr.msk.bf16.gmra.mrb[28].mxu1 %vm348_vm1, %v609_v26 }
 0x32c   :  { %v11780_v31 = vpop.f32.mrb[0].mxu1  ;;  %v11804_v3 = vpop.f32.mrb[16].mxu0 }
 0x32d   :  { %v716_v7 = vadd.f32 %v11780_v31, %v14318_v47  ;;  %v852_v25 = vadd.f32 %v11804_v3, %v14321_v6  ;;  %v707_v30 = vpop.f32.mrb[1].mxu1  ;;  %v843_v29 = vpop.f32.mrb[17].mxu0 }
 0x32e   :  { %v708_v53 = vadd.f32 %v14318_v47, %v707_v30  ;;  %v844_v32 = vadd.f32 %v14321_v6, %v843_v29  ;;  %v11781_v33 = vpop.f32.mrb[2].mxu1  ;;  %v11805_v34 = vpop.f32.mrb[18].mxu0 }
 0x32f   :  { %v1044_v50 = vmul.f32 %v852_v25, %v716_v7  ;;  %v719_v35 = vadd.f32 %v11781_v33, %v14318_v47  ;;  %v855_v37 = vadd.f32 %v11805_v34, %v14321_v6  ;;  %v710_v39 = vpop.f32.mrb[3].mxu1  ;;  %v846_v44 = vpop.f32.mrb[19].mxu0 }
 0x330   :  { %v1042_v48 = vmul.f32 %v844_v32, %v708_v53  ;;  %v711_v49 = vadd.f32 %v14318_v47, %v710_v39  ;;  %v847_v61 = vadd.f32 %v14321_v6, %v846_v44 }
 0x331   :  { %v1045_v55 = vmul.f32 %v855_v37, %v719_v35 }
 0x332   :  { %v1043_v46 = vmul.f32 %v847_v61, %v711_v49 }
 0x333   :  { %v1059_v51 = vpack.c.bf16 %v1045_v55, %v1044_v50 }
 0x334   :  { %v11784_v9 = vpop.f32.mrb[4].mxu1  ;;  %v11808_v56 = vpop.f32.mrb[20].mxu0  ;;  %v1058_v57 = vpack.c.bf16 %v1043_v46, %v1042_v48 }
 0x335   :  { %v14332_v60 = vadd.f32 %v11784_v9, %v14318_v47  ;;  %v14335_v1 = vadd.f32 %v11808_v56, %v14321_v6  ;;  %v723_v4 = vpop.f32.mrb[5].mxu1  ;;  %v859_v54 = vpop.f32.mrb[21].mxu0 }
 0x336   :  { %v14338_v8 = vadd.f32 %v14318_v47, %v723_v4  ;;  %v14341_v58 = vadd.f32 %v14321_v6, %v859_v54  ;;  %v11785_v10 = vpop.f32.mrb[6].mxu1  ;;  %v11809_v5 = vpop.f32.mrb[22].mxu0  ;;  %11850 = vmatprep.mubr.msk.bf16.mxu0 %vm348_vm1, %v1058_v57 }
 0x337   :  { %v1048_v12 = vmul.f32 %v14335_v1, %v14332_v60  ;;  %v14347_v14 = vadd.f32 %v11785_v10, %v14318_v47  ;;  %v14350_v13 = vadd.f32 %v11809_v5, %v14321_v6  ;;  %v726_v16 = vpop.f32.mrb[7].mxu1  ;;  %v862_v23 = vpop.f32.mrb[23].mxu0  ;;  %11851 = vmatmul.mubr.msk.bf16.vlgmr.msra.gmra.mrb[32].mxu0 %vm348_vm1, %v1059_v51 }
 0x338   :  { %v1046_v17 = vmul.f32 %v14341_v58, %v14338_v8  ;;  %v14356_v11 = vadd.f32 %v14318_v47, %v726_v16  ;;  %v14359_v20 = vadd.f32 %v14321_v6, %v862_v23 }
 0x339   :  { %v1049_v21 = vmul.f32 %v14350_v13, %v14347_v14 }
 0x33a   :  { %v1047_v0 = vmul.f32 %v14359_v20, %v14356_v11 }
 0x33b   :  { %v1061_v24 = vpack.c.bf16 %v1049_v21, %v1048_v12 }
 0x33c   :  { %v11788_v26 = vpop.f32.mrb[8].mxu1  ;;  %v11812_v28 = vpop.f32.mrb[24].mxu0  ;;  %v1060_v52 = vpack.c.bf16 %v1047_v0, %v1046_v17 }
 0x33d   :  { %v748_v31 = vadd.f32 %v11788_v26, %v14318_v47  ;;  %v884_v3 = vadd.f32 %v11812_v28, %v14321_v6  ;;  %v739_v30 = vpop.f32.mrb[9].mxu1  ;;  %v875_v29 = vpop.f32.mrb[25].mxu0 }
 0x33e   :  { %v740_v33 = vadd.f32 %v14318_v47, %v739_v30  ;;  %v876_v34 = vadd.f32 %v14321_v6, %v875_v29  ;;  %v11789_v50 = vpop.f32.mrb[10].mxu1  ;;  %v11813_v39 = vpop.f32.mrb[26].mxu0  ;;  %11854 = vmatprep.mubr.msk.bf16.mxu0 %vm348_vm1, %v1060_v52 }
 0x33f   :  { %v1052_v44 = vmul.f32 %v852_v25, %v748_v31  ;;  %v1229_v48 = vmul.f32 %v884_v3, %v716_v7  ;;  %v14370_v55 = vmul.f32 %v884_v3, %v748_v31  ;;  %v751_v46 = vadd.f32 %v11789_v50, %v14318_v47  ;;  %v742_v51 = vpop.f32.mrb[11].mxu1  ;;  %v878_v9 = vpop.f32.mrb[27].mxu0  ;;  %11855 = vmatmul.mubr.msk.bf16.gmra.mrb[36].mxu0 %vm348_vm1, %v1061_v24 }
 0x340   :  { %v1050_v56 = vmul.f32 %v844_v32, %v740_v33  ;;  %v1227_v57 = vmul.f32 %v876_v34, %v708_v53  ;;  %v14374_v4 = vmul.f32 %v876_v34, %v740_v33  ;;  %v887_v54 = vadd.f32 %v11813_v39, %v14321_v6 }
 0x341   :  { %v1053_v10 = vmul.f32 %v855_v37, %v751_v46  ;;  %v743_v5 = vadd.f32 %v14318_v47, %v742_v51  ;;  %v879_v25 = vadd.f32 %v14321_v6, %v878_v9 }
 0x342   :  { %v1230_v7 = vmul.f32 %v887_v54, %v719_v35  ;;  %v1238_v12 = vmul.f32 %v887_v54, %v751_v46 }
 0x343   :  { %v1051_v16 = vmul.f32 %v847_v61, %v743_v5  ;;  %v1228_v23 = vmul.f32 %v879_v25, %v711_v49  ;;  %v1236_v17 = vmul.f32 %v879_v25, %v743_v5  ;;  %v1063_v21 = vpack.c.bf16 %v1053_v10, %v1052_v44 }
 0x344   :  { %v1244_v0 = vpack.c.bf16 %v1230_v7, %v1229_v48  ;;  %v11792_v26 = vpop.f32.mrb[12].mxu1  ;;  %v11816_v24 = vpop.f32.mrb[28].mxu0  ;;  %v1248_v53 = vpack.c.bf16 %v1238_v12, %v14370_v55 }
 0x345   :  { %v764_v32 = vadd.f32 %v11792_v26, %v14318_v47  ;;  %v900_v28 = vadd.f32 %v11816_v24, %v14321_v6  ;;  %v755_v37 = vpop.f32.mrb[13].mxu1  ;;  %v891_v52 = vpop.f32.mrb[29].mxu0  ;;  %v1062_v31 = vpack.c.bf16 %v1051_v16, %v1050_v56  ;;  %v1243_v3 = vpack.c.bf16 %v1228_v23, %v1227_v57 }
 0x346   :  { %v756_v35 = vadd.f32 %v14318_v47, %v755_v37  ;;  %v892_v61 = vadd.f32 %v14321_v6, %v891_v52  ;;  %v11793_v49 = vpop.f32.mrb[14].mxu1  ;;  %v11817_v30 = vpop.f32.mrb[30].mxu0  ;;  %v1247_v29 = vpack.c.bf16 %v1236_v17, %v14374_v4  ;;  %v136_v52 = vld [vmem:[%s13833_s17] sm:$0x3] }
 0x347   :  { %v1056_v33 = vmul.f32 %v14335_v1, %v764_v32  ;;  %v1233_v34 = vmul.f32 %v900_v28, %v14332_v60  ;;  %v1241_v50 = vmul.f32 %v900_v28, %v764_v32  ;;  %v767_v39 = vadd.f32 %v11793_v49, %v14318_v47  ;;  %11858 = vmatprep.mubr.msk.bf16.mxu0 %vm348_vm1, %v1062_v31  ;;  %v758_v44 = vpop.f32.mrb[15].mxu1  ;;  %v894_v48 = vpop.f32.mrb[31].mxu0 }
 0x348   :  { %v1054_v55 = vmul.f32 %v14341_v58, %v756_v35  ;;  %v1231_v46 = vmul.f32 %v892_v61, %v14338_v8  ;;  %v1239_v51 = vmul.f32 %v892_v61, %v756_v35  ;;  %v903_v9 = vadd.f32 %v11817_v30, %v14321_v6  ;;  %11874 = vmatprep.mubr.msk.bf16.mxu1 %vm348_vm1, %v1243_v3  ;;  %v14450_v3 = vld [vmem:[%s13888_s12] sm:$0xff]  }
 0x349   :  { %v1057_v1 = vmul.f32 %v14350_v13, %v767_v39  ;;  %v759_v60 = vadd.f32 %v14318_v47, %v758_v44  ;;  %v895_v56 = vadd.f32 %v14321_v6, %v894_v48  ;;  %11859 = vmatmul.mubr.msk.bf16.gmra.mrb[40].mxu0 %vm348_vm1, %v1063_v21  ;;  %11875 = vmatmul.mubr.msk.bf16.vlgmr.msra.gmra.mrb[32].mxu1 %vm348_vm1, %v1244_v0  ;;  %v14445_v31 = vsel %vm1581_vm2, %v136_v52, 0 }
 0x34a   :  { %v1234_v57 = vmul.f32 %v903_v9, %v14347_v14  ;;  %v1242_v58 = vmul.f32 %v903_v9, %v767_v39  ;;  %12758 = vmatprep.subr.msk.bf16.mxu0 %vm1581_vm2, %v136_v52  ;;  %12759 = vmatprep.subr.msk.bf16.mxu1 %vm1581_vm2, %v136_v52  ;;  %18280 = vst [vmem:[#allocation28_spill] sm:$0xff] %v14445_v31 }
 0x34b   :  { %v1055_v8 = vmul.f32 %v14359_v20, %v759_v60  ;;  %v1232_v4 = vmul.f32 %v895_v56, %v14356_v11  ;;  %v1240_v54 = vmul.f32 %v895_v56, %v759_v60  ;;  %v1065_v10 = vpack.c.bf16 %v1057_v1, %v1056_v33  ;;  %11891 = vmatpush3.bf16.msra.mxu0 %v14445_v31 }
 0x34c   :  { %v14401_v5 = vpop.f32.mrb[16].mxu1  ;;  %v1246_v13 = vpack.c.bf16 %v1234_v57, %v1233_v34  ;;  %v1250_v25 = vpack.c.bf16 %v1242_v58, %v1241_v50  ;;  %11909 = vmatpush3.bf16.msra.mxu1 %v14445_v31  ;;  %11926 = vmatprep.subr.bf16.mxu0 %v14450_v3 }
 0x34d   :  { %v14403_v47 = vpop.f32.mrb[17].mxu1  ;;  %v1064_v6 = vpack.c.bf16 %v1055_v8, %v1054_v55  ;;  %v1245_v7 = vpack.c.bf16 %v1232_v4, %v1231_v46  ;;  %v1249_v12 = vpack.c.bf16 %v1240_v54, %v1239_v51 }
 0x34e   :  { %v14405_v16 = vpop.f32.mrb[18].mxu1 }
 0x34f   :  { %11862 = vmatprep.mubr.msk.bf16.mxu0 %vm348_vm1, %v1064_v6  ;;  %11878 = vmatprep.mubr.msk.bf16.mxu1 %vm348_vm1, %v1245_v7  ;;  %v14409_v14 = vpop.f32.mrb[19].mxu1 }
 0x351   :  { %11863 = vmatmul.mubr.msk.bf16.gmra.mrb[44].mxu0 %vm348_vm1, %v1065_v10  ;;  %11879 = vmatmul.mubr.msk.bf16.gmra.mrb[36].mxu1 %vm348_vm1, %v1246_v13 }
 0x352   :  { %11882 = vmatprep.mubr.msk.bf16.mxu1 %vm348_vm1, %v1247_v29 }
 0x354   :  { %v14414_v11 = vpop.f32.mrb[20].mxu1 }
 0x355   :  { %v14416_v20 = vpop.f32.mrb[21].mxu1 }
 0x356   :  { %v14418_v23 = vpop.f32.mrb[22].mxu1 }
 0x357   :  { %v14420_v17 = vpop.f32.mrb[23].mxu1 }
 0x359   :  { %11883 = vmatmul.mubr.msk.bf16.gmra.mrb[40].mxu1 %vm348_vm1, %v1248_v53 }
 0x35a   :  { %11886 = vmatprep.mubr.msk.bf16.mxu1 %vm348_vm1, %v1249_v12 }
 0x35c   :  { %v14424_v21 = vpop.f32.mrb[24].mxu1 }
 0x35d   :  { %v14426_v0 = vpop.f32.mrb[25].mxu1 }
 0x35e   :  { %v14428_v26 = vpop.f32.mrb[26].mxu1 }
 0x35f   :  { %v14430_v24 = vpop.f32.mrb[27].mxu1 }
 0x361   :  { %11887 = vmatmul.mubr.msk.bf16.gmra.mrb[44].mxu1 %vm348_vm1, %v1250_v25 }
 0x364   :  { %v14433_v32 = vpop.f32.mrb[28].mxu1 }
 0x365   :  { %v14435_v28 = vpop.f32.mrb[29].mxu1 }
 0x366   :  { %v14437_v37 = vpop.f32.mrb[30].mxu1 }
 0x367   :  { %v14439_v53 = vpop.f32.mrb[31].mxu1 }
 0x40a   :  { %v11852_v35 = vpop.f32.mrb[32].mxu0 }
 0x40b   :  { %v1148_v61 = vpop.f32.mrb[33].mxu0  ;;  %v1213_v48 = vmul.f32 0.25, %v11852_v35 }
 0x40c   :  { %v11853_v49 = vpop.f32.mrb[34].mxu0  ;;  %v1211_v9 = vmul.f32 0.25, %v1148_v61 }
 0x40d   :  { %v1151_v30 = vpop.f32.mrb[35].mxu0  ;;  %v1214_v57 = vmul.f32 0.25, %v11853_v49 }
 0x40e   :  { %v1212_v10 = vmul.f32 0.25, %v1151_v30 }
 0x412   :  { %v11856_v29 = vpop.f32.mrb[36].mxu0 }
 0x413   :  { %v1164_v33 = vpop.f32.mrb[37].mxu0  ;;  %v1217_v13 = vmul.f32 0.25, %v11856_v29 }
 0x414   :  { %v11857_v34 = vpop.f32.mrb[38].mxu0  ;;  %v1215_v7 = vmul.f32 0.25, %v1164_v33 }
 0x415   :  { %v1167_v50 = vpop.f32.mrb[39].mxu0 }
 0x416   :  { %v1216_v18 = vmul.f32 0.25, %v1167_v50 }
 0x41c   :  { %v11860_v39 = vpop.f32.mrb[40].mxu0  ;;  %v11876_v44 = vpop.f32.mrb[32].mxu1 }
 0x41d   :  { %v1374_v55 = vmul.f32 0.25, %v11876_v44  ;;  %v1180_v46 = vpop.f32.mrb[41].mxu0  ;;  %v1309_v51 = vpop.f32.mrb[33].mxu1  ;;  %v1218_v44 = vmul.f32 0.25, %v11857_v34 }
 0x41e   :  { %v1372_v1 = vmul.f32 0.25, %v1309_v51  ;;  %v11861_v60 = vpop.f32.mrb[42].mxu0  ;;  %v11877_v56 = vpop.f32.mrb[34].mxu1  ;;  %v14457_v34 = vmul.f32 0.25, %v1180_v46 }
 0x41f   :  { %v1390_v58 = vmax.f32 %v1213_v48, %v1374_v55  ;;  %v1375_v8 = vmul.f32 0.25, %v11877_v56  ;;  %v1183_v4 = vpop.f32.mrb[43].mxu0  ;;  %v1312_v54 = vpop.f32.mrb[35].mxu1 }
 0x420   :  { %v1388_v25 = vmax.f32 %v1211_v9, %v1372_v1  ;;  %v1373_v6 = vmul.f32 0.25, %v1312_v54  ;;  %v14453_v54 = vmul.f32 0.25, %v11860_v39  ;;  %v14465_v46 = vmul.f32 0.25, %v1183_v4 }
 0x421   :  { %v1406_v12 = vsub.f32 %v1213_v48, %v1390_v58  ;;  %v1454_v52 = vsub.f32 %v1374_v55, %v1390_v58  ;;  %v1391_v35 = vmax.f32 %v1214_v57, %v1375_v8 }
 0x422   :  { %v1404_v31 = vsub.f32 %v1211_v9, %v1388_v25  ;;  %v1452_v27 = vsub.f32 %v1372_v1, %v1388_v25  ;;  %v1389_v61 = vmax.f32 %v1212_v10, %v1373_v6 }
 0x423   :  { %v1424_v51 = vmul.f32 1.442695, %v1406_v12  ;;  %v1472_v42 = vmul.f32 1.442695, %v1454_v52  ;;  %v1407_v40 = vsub.f32 %v1214_v57, %v1391_v35  ;;  %v1455_v49 = vsub.f32 %v1375_v8, %v1391_v35 }
 0x424   :  { %v1420_v36 = vmul.f32 1.442695, %v1404_v31  ;;  %v1468_v56 = vmul.f32 1.442695, %v1452_v27  ;;  %v1405_v22 = vsub.f32 %v1212_v10, %v1389_v61  ;;  %v1453_v19 = vsub.f32 %v1373_v6, %v1389_v61  ;;  %v11864_v30 = vpop.f32.mrb[44].mxu0  ;;  %v11880_v29 = vpop.f32.mrb[36].mxu1 }
 0x425   :  { %12966 = vpow2.f32 %v1424_v51  ;;  %v1426_v33 = vmul.f32 1.442695, %v1407_v40  ;;  %v14455_v48 = vpop.f32.mrb[45].mxu0  ;;  %v1474_v55 = vmul.f32 1.442695, %v1455_v49  ;;  %v1378_v9 = vmul.f32 0.25, %v11880_v29 }
 0x426   :  { %12968 = vpow2.f32 %v1472_v42  ;;  %v1325_v1 = vpop.f32.mrb[37].mxu1  ;;  %v14459_v31 = vmul.f32 0.25, %v11861_v60  ;;  %v1422_v27 = vmul.f32 1.442695, %v1405_v22  ;;  %v14461_v58 = vpop.f32.mrb[46].mxu0 }
 0x427   :  { %12970 = vpow2.f32 %v1420_v36  ;;  %v1376_v57 = vmul.f32 0.25, %v1325_v1  ;;  %v11881_v50 = vpop.f32.mrb[38].mxu1  ;;  %v1470_v39 = vmul.f32 1.442695, %v1453_v19  ;;  %v1394_v8 = vmax.f32 %v1217_v13, %v1378_v9  ;;  %v14463_v10 = vpop.f32.mrb[47].mxu0 }
 0x428   :  { %12972 = vpow2.f32 %v1468_v56  ;;  %v1379_v40 = vmul.f32 0.25, %v11881_v50  ;;  %v1328_v42 = vpop.f32.mrb[39].mxu1 }
 0x429   :  { %12974 = vpow2.f32 %v1426_v33  ;;  %v1392_v25 = vmax.f32 %v1215_v7, %v1376_v57  ;;  %v1377_v6 = vmul.f32 0.25, %v1328_v42  ;;  %v1410_v36 = vsub.f32 %v1217_v13, %v1394_v8 }
 0x42a   :  { %12976 = vpow2.f32 %v1474_v55  ;;  %v1458_v60 = vsub.f32 %v1378_v9, %v1394_v8  ;;  %v1395_v22 = vmax.f32 %v1218_v44, %v1379_v40 }
 0x42b   :  { %12978 = vpow2.f32 %v1422_v27  ;;  %v1408_v12 = vsub.f32 %v1215_v7, %v1392_v25  ;;  %v1456_v52 = vsub.f32 %v1376_v57, %v1392_v25  ;;  %v1393_v35 = vmax.f32 %v1216_v18, %v1377_v6 }
 0x42c   :  { %12980 = vpow2.f32 %v1470_v39  ;;  %v1432_v19 = vmul.f32 1.442695, %v1410_v36  ;;  %v1480_v61 = vmul.f32 1.442695, %v1458_v60  ;;  %v1411_v51 = vsub.f32 %v1218_v44, %v1395_v22  ;;  %v11884_v49 = vpop.f32.mrb[40].mxu1 }
 0x42d   :  { %v1428_v56 = vmul.f32 1.442695, %v1408_v12  ;;  %v1476_v29 = vmul.f32 1.442695, %v1456_v52  ;;  %v1459_v33 = vsub.f32 %v1379_v40, %v1395_v22  ;;  %v1409_v4 = vsub.f32 %v1216_v18, %v1393_v35  ;;  %v1341_v1 = vpop.f32.mrb[41].mxu1 }
 0x42e   :  { %12982 = vpow2.f32 %v1432_v19  ;;  %v1434_v50 = vmul.f32 1.442695, %v1411_v51  ;;  %v1457_v55 = vsub.f32 %v1377_v6, %v1393_v35  ;;  %v1382_v13 = vmul.f32 0.25, %v11884_v49  ;;  %v11885_v9 = vpop.f32.mrb[42].mxu1 }
 0x42f   :  { %v14467_v8 = vpop.eup %12966  ;;  %v14469_v7 = vmul.f32 0.25, %v11864_v30  ;;  %12984 = vpow2.f32 %v1480_v61  ;;  %v1482_v27 = vmul.f32 1.442695, %v1459_v33  ;;  %v1380_v57 = vmul.f32 0.25, %v1341_v1  ;;  %v1344_v39 = vpop.f32.mrb[43].mxu1 }
 0x430   :  { %v14471_v44 = vpop.eup %12968  ;;  %12986 = vpow2.f32 %v1428_v56  ;;  %v1430_v42 = vmul.f32 1.442695, %v1409_v4  ;;  %v1398_v18 = vmax.f32 %v14453_v54, %v1382_v13  ;;  %v14474_v40 = vmul.f32 0.25, %v11885_v9 }
 0x431   :  { %v14476_v25 = vpop.eup %12970  ;;  %v1502_v6 = vadd.f32 %v14471_v44, %v14467_v8  ;;  %12988 = vpow2.f32 %v1476_v29  ;;  %v1396_v30 = vmax.f32 %v14457_v34, %v1380_v57  ;;  %v14481_v36 = vmul.f32 0.25, %v1344_v39 }
 0x432   :  { %v14483_v60 = vpop.eup %12972  ;;  %12990 = vpow2.f32 %v1434_v50  ;;  %v1414_v22 = vsub.f32 %v14453_v54, %v1398_v18  ;;  %v1462_v12 = vsub.f32 %v1382_v13, %v1398_v18  ;;  %v1399_v52 = vmax.f32 %v14459_v31, %v14474_v40 }
 0x433   :  { %v14488_v35 = vpop.eup %12974  ;;  %12992 = vrcp.f32 %v1502_v6  ;;  %v1500_v19 = vadd.f32 %v14483_v60, %v14476_v25  ;;  %v1412_v61 = vsub.f32 %v14457_v34, %v1396_v30  ;;  %v1460_v51 = vsub.f32 %v1380_v57, %v1396_v30 }
 0x434   :  { %v14493_v49 = vpop.eup %12976  ;;  %v14496_v56 = vmul.f32 0.25, %v14455_v48  ;;  %12994 = vpow2.f32 %v1482_v27  ;;  %v1478_v54 = vmul.f32 1.442695, %v1457_v55  ;;  %v1415_v29 = vsub.f32 %v14459_v31, %v1399_v52  ;;  %v11888_v33 = vpop.f32.mrb[44].mxu1 }
 0x435   :  { %v14499_v4 = vpop.eup %12978  ;;  %12996 = vrcp.f32 %v1500_v19  ;;  %v1503_v1 = vadd.f32 %v14493_v49, %v14488_v35  ;;  %v14504_v50 = vmul.f32 0.25, %v14461_v58  ;;  %v1440_v34 = vmul.f32 1.442695, %v1414_v22  ;;  %v1357_v13 = vpop.f32.mrb[45].mxu1 }
 0x436   :  { %v14506_v9 = vpop.eup %12980  ;;  %12998 = vpow2.f32 %v1430_v42  ;;  %v1488_v48 = vmul.f32 1.442695, %v1462_v12  ;;  %v1463_v55 = vsub.f32 %v14474_v40, %v1399_v52  ;;  %v1397_v31 = vmax.f32 %v14465_v46, %v14481_v36  ;;  %v11889_v27 = vpop.f32.mrb[46].mxu1 }
 0x437   :  { %13000 = vrcp.f32 %v1503_v1  ;;  %v1501_v57 = vadd.f32 %v14506_v9, %v14499_v4  ;;  %v1386_v39 = vmul.f32 0.25, %v11888_v33  ;;  %v14513_v18 = vmul.f32 0.25, %v1357_v13  ;;  %v1360_v58 = vpop.f32.mrb[47].mxu1 }
 0x438   :  { %v14515_v6 = vpop.eup %12982  ;;  %13002 = vpow2.f32 %v1478_v54  ;;  %v1436_v30 = vmul.f32 1.442695, %v1412_v61  ;;  %v1413_v42 = vsub.f32 %v14465_v46, %v1397_v31  ;;  %v1461_v40 = vsub.f32 %v14481_v36, %v1397_v31 }
 0x439   :  { %v14519_v22 = vpop.eup %12984  ;;  %13004 = vrcp.f32 %v1501_v57  ;;  %v1402_v12 = vmax.f32 %v14469_v7, %v1386_v39  ;;  %v1400_v52 = vmax.f32 %v14496_v56, %v14513_v18  ;;  %v14524_v19 = vmul.f32 0.25, %v11889_v27 }
 0x43a   :  { %v14526_v33 = vpop.eup %12986  ;;  %v1506_v54 = vadd.f32 %v14519_v22, %v14515_v6  ;;  %13006 = vpow2.f32 %v1440_v34  ;;  %v1484_v61 = vmul.f32 1.442695, %v1460_v51  ;;  %v1442_v46 = vmul.f32 1.442695, %v1415_v29 }
 0x43b   :  { %v14530_v1 = vpop.eup %12988  ;;  %13008 = vpow2.f32 %v1488_v48  ;;  %v1418_v36 = vsub.f32 %v14469_v7, %v1402_v12  ;;  %v1466_v13 = vsub.f32 %v1386_v39, %v1402_v12  ;;  %v1416_v31 = vsub.f32 %v14496_v56, %v1400_v52 }
 0x43c   :  { %v14534_v57 = vpop.eup %12990  ;;  %13010 = vrcp.f32 %v1506_v54  ;;  %v1504_v27 = vadd.f32 %v14530_v1, %v14526_v33  ;;  %v1464_v15 = vsub.f32 %v14513_v18, %v1400_v52  ;;  %v14541_v51 = vmax.f32 %v14504_v50, %v14524_v19 }
 0x43d   :  { %v12993_v29 = vpop.eup %12992  ;;  %v14544_v34 = vmul.f32 0.25, %v14463_v10  ;;  %13012 = vpow2.f32 %v1436_v30  ;;  %v1490_v7 = vmul.f32 1.442695, %v1463_v55  ;;  %v1438_v39 = vmul.f32 1.442695, %v1413_v42 }
 0x43e   :  { %v14546_v56 = vpop.eup %12994  ;;  %v1700_v48 = vmul.f32 %v12993_v29, %v14471_v44  ;;  %13014 = vrcp.f32 %v1504_v27  ;;  %v1419_v18 = vsub.f32 %v14504_v50, %v14541_v51  ;;  %v1467_v10 = vsub.f32 %v14524_v19, %v14541_v51 }
 0x43f   :  { %v12997_v12 = vpop.eup %12996  ;;  %v1507_v52 = vadd.f32 %v14546_v56, %v14534_v57  ;;  %13016 = vpow2.f32 %v1484_v61  ;;  %v14555_v30 = vmul.f32 0.25, %v1360_v58  ;;  %v1486_v54 = vmul.f32 1.442695, %v1461_v40 }
 0x440   :  { %v14557_v55 = vpop.eup %12998  ;;  %13018 = vpow2.f32 %v1442_v46  ;;  %v1532_v44 = vmul.f32 %v12997_v12, %v14476_v25  ;;  %v1698_v42 = vmul.f32 %v12997_v12, %v14483_v60  ;;  %v1448_v50 = vmul.f32 1.442695, %v1418_v36 }
 0x441   :  { %v13001_v27 = vpop.eup %13000  ;;  %13020 = vrcp.f32 %v1507_v52  ;;  %v1401_v2 = vmax.f32 %v14544_v34, %v14555_v30  ;;  %v1534_v61 = vmul.f32 %v12993_v29, %v14467_v8  ;;  %v1496_v19 = vmul.f32 1.442695, %v1466_v13 }
 0x442   :  { %v14564_v63 = vpop.eup %13002  ;;  %v1701_v58 = vmul.f32 %v13001_v27, %v14493_v49  ;;  %13022 = vpow2.f32 %v1490_v7  ;;  %v1535_v40 = vmul.f32 %v13001_v27, %v14488_v35  ;;  %v1444_v35 = vmul.f32 1.442695, %v1416_v31  ;;  %v12819_v27 = vld [vmem:[%s13888_s12 + $0x8] sm:$0xff]  }
 0x443   :  { %v13005_v46 = vpop.eup %13004  ;;  %v1505_v25 = vadd.f32 %v14564_v63, %v14557_v55  ;;  %13024 = vpow2.f32 %v1438_v39  ;;  %v1417_v60 = vsub.f32 %v14544_v34, %v1401_v2  ;;  %v1465_v36 = vsub.f32 %v14555_v30, %v1401_v2 }
 0x444   :  { %v14572_v51 = vpop.eup %13006  ;;  %13026 = vpow2.f32 %v1486_v54  ;;  %v1533_v8 = vmul.f32 %v13005_v46, %v14499_v4  ;;  %v1699_v49 = vmul.f32 %v13005_v46, %v14506_v9  ;;  %v1549_v29 = vpack.c.bf16 %v1535_v40, %v1534_v61 }
 0x445   :  { %v14576_v13 = vpop.eup %13008  ;;  %13028 = vrcp.f32 %v1505_v25  ;;  %v1492_v7 = vmul.f32 1.442695, %v1464_v15  ;;  %v1715_v12 = vpack.c.bf16 %v1701_v58, %v1700_v48  ;;  %v1450_v4 = vmul.f32 1.442695, %v1419_v18 }
 0x446   :  { %v13011_v39 = vpop.eup %13010  ;;  %v1510_v34 = vadd.f32 %v14576_v13, %v14572_v51  ;;  %13030 = vpow2.f32 %v1448_v50  ;;  %v1548_v2 = vpack.c.bf16 %v1533_v8, %v1532_v44  ;;  %v1714_v52 = vpack.c.bf16 %v1699_v49, %v1698_v42  ;;  %v12820_v50 = vld [vmem:[%s13888_s12 + $0x10] sm:$0xff]  }
 0x447   :  { %v14580_v30 = vpop.eup %13012  ;;  %13032 = vpow2.f32 %v1496_v19  ;;  %v1538_v9 = vmul.f32 %v13011_v39, %v14515_v6  ;;  %v1704_v54 = vmul.f32 %v13011_v39, %v14519_v22  ;;  %v1498_v31 = vmul.f32 1.442695, %v1467_v10 }
 0x448   :  { %v13015_v61 = vpop.eup %13014  ;;  %13034 = vrcp.f32 %v1510_v34  ;;  %11892 = vmatprep.mubr.msk.bf16.mxu0 %vm1556_vm3, %v1548_v2  ;;  %11910 = vmatprep.mubr.msk.bf16.mxu1 %vm1556_vm3, %v1714_v52  ;;  %v1446_v44 = vmul.f32 1.442695, %v1417_v60  ;;  %v1494_v58 = vmul.f32 1.442695, %v1465_v36 }
 0x449   :  { %v13017_v15 = vpop.eup %13016  ;;  %13036 = vpow2.f32 %v1444_v35  ;;  %11893 = vmatmul.mubr.msk.bf16.vlgmr.msra.gmra.mrb[48].mxu0 %vm1556_vm3, %v1549_v29  ;;  %11911 = vmatmul.mubr.msk.bf16.vlgmr.msra.gmra.mrb[48].mxu1 %vm1556_vm3, %v1715_v12  ;;  %v1536_v48 = vmul.f32 %v13015_v61, %v14526_v33  ;;  %v1702_v6 = vmul.f32 %v13015_v61, %v14530_v1 }
 0x44a   :  { %v13019_v22 = vpop.eup %13018  ;;  %v1508_v18 = vadd.f32 %v13017_v15, %v14580_v30  ;;  %13038 = vpow2.f32 %v1492_v7  ;;  %11927 = vmatpush3.bf16.msra.mxu0 %v14450_v3 }
 0x44b   :  { %v13021_v42 = vpop.eup %13020  ;;  %13040 = vpow2.f32 %v1450_v4  ;;  %11928 = vmatprep.subr.bf16.mxu0 %v12819_v27 }
 0x44c   :  { %v13023_v10 = vpop.eup %13022  ;;  %13042 = vrcp.f32 %v1508_v18  ;;  %v1539_v19 = vmul.f32 %v13021_v42, %v14534_v57  ;;  %v1705_v33 = vmul.f32 %v13021_v42, %v14546_v56 }
 0x44d   :  { %v13025_v40 = vpop.eup %13024  ;;  %v1511_v1 = vadd.f32 %v13023_v10, %v13019_v22  ;;  %13044 = vpow2.f32 %v1498_v31 }
 0x44e   :  { %v13027_v46 = vpop.eup %13026  ;;  %13046 = vpow2.f32 %v1446_v44  ;;  %v1551_v25 = vpack.c.bf16 %v1539_v19, %v1538_v9  ;;  %v1717_v60 = vpack.c.bf16 %v1705_v33, %v1704_v54  ;;  %11929 = vmatpush3.bf16.msra.mxu0 %v12819_v27 }
 0x44f   :  { %v13029_v3 = vpop.eup %13028  ;;  %13048 = vrcp.f32 %v1511_v1  ;;  %v1509_v8 = vadd.f32 %v13027_v46, %v13025_v40  ;;  %11930 = vmatprep.subr.bf16.mxu0 %v12820_v50 }
 0x450   :  { %v13031_v49 = vpop.eup %13030  ;;  %13050 = vpow2.f32 %v1494_v58  ;;  %v1537_v36 = vmul.f32 %v13029_v3, %v14557_v55  ;;  %v1703_v57 = vmul.f32 %v13029_v3, %v14564_v63 }
 0x451   :  { %v13033_v29 = vpop.eup %13032  ;;  %13052 = vrcp.f32 %v1509_v8 }
 0x452   :  { %v13035_v56 = vpop.eup %13034  ;;  %v1514_v35 = vadd.f32 %v13033_v29, %v13031_v49  ;;  %v1550_v7 = vpack.c.bf16 %v1537_v36, %v1536_v48  ;;  %v1716_v12 = vpack.c.bf16 %v1703_v57, %v1702_v6  ;;  %11931 = vmatpush3.bf16.msra.mxu0 %v12820_v50 }
 0x453   :  { %v13037_v39 = vpop.eup %13036  ;;  %v1542_v34 = vmul.f32 %v13035_v56, %v14572_v51  ;;  %v1708_v2 = vmul.f32 %v13035_v56, %v14576_v13 }
 0x454   :  { %v13039_v52 = vpop.eup %13038  ;;  %13054 = vrcp.f32 %v1514_v35  ;;  %11896 = vmatprep.mubr.msk.bf16.mxu0 %vm1556_vm3, %v1550_v7  ;;  %11914 = vmatprep.mubr.msk.bf16.mxu1 %vm1556_vm3, %v1716_v12  ;;  %v12821_v7 = vld [vmem:[%s13888_s12 + $0x18] sm:$0xff]   ;;  %v10609_v12 = vld [vmem:[%s18281_s0] ss:$0 sm:$0xff] }
 0x455   :  { %v13041_v55 = vpop.eup %13040  ;;  %v1512_v63 = vadd.f32 %v13039_v52, %v13037_v39  ;;  %11897 = vmatmul.mubr.msk.bf16.gmra.mrb[52].mxu0 %vm1556_vm3, %v1551_v25  ;;  %11915 = vmatmul.mubr.msk.bf16.gmra.mrb[52].mxu1 %vm1556_vm3, %v1717_v60 }
 0x456   :  { %v13043_v4 = vpop.eup %13042  ;;  %11932 = vmatprep.subr.bf16.mxu0 %v12821_v7 }
 0x457   :  { %v13045_v9 = vpop.eup %13044  ;;  %13056 = vrcp.f32 %v1512_v63  ;;  %v1540_v54 = vmul.f32 %v13043_v4, %v14580_v30  ;;  %v1706_v51 = vmul.f32 %v13043_v4, %v13017_v15  ;;  %11933 = vmatpush3.bf16.msra.mxu0 %v12821_v7  ;;  %v14628_v4 = vadd.f32 %v14405_v16, %v10609_v12 }
 0x458   :  { %v13047_v27 = vpop.eup %13046  ;;  %v1515_v13 = vadd.f32 %v13045_v9, %v13041_v55 }
 0x459   :  { %v13049_v61 = vpop.eup %13048 }
 0x45a   :  { %v13051_v31 = vpop.eup %13050  ;;  %13058 = vrcp.f32 %v1515_v13  ;;  %v1543_v48 = vmul.f32 %v13049_v61, %v13019_v22  ;;  %v1709_v6 = vmul.f32 %v13049_v61, %v13023_v10 }
 0x45b   :  { %v13053_v18 = vpop.eup %13052  ;;  %v1513_v44 = vadd.f32 %v13051_v31, %v13047_v27 }
 0x45c   :  { %v1541_v42 = vmul.f32 %v13053_v18, %v13025_v40  ;;  %v1707_v50 = vmul.f32 %v13053_v18, %v13027_v46  ;;  %v1553_v58 = vpack.c.bf16 %v1543_v48, %v1542_v34  ;;  %v1719_v19 = vpack.c.bf16 %v1709_v6, %v1708_v2 }
 0x45d   :  { %13060 = vrcp.f32 %v1513_v44  ;;  %v14619_v34 = vadd.f32 %v14424_v21, %v10609_v12  ;;  %v14622_v2 = vadd.f32 %v10609_v12, %v14403_v47  ;;  %v14636_v47 = vadd.f32 %v10609_v12, %v14409_v14 }
 0x45e   :  { %v13055_v33 = vpop.eup %13054  ;;  %v1552_v1 = vpack.c.bf16 %v1541_v42, %v1540_v54  ;;  %v1718_v25 = vpack.c.bf16 %v1707_v50, %v1706_v51 }
 0x45f   :  { %v1546_v60 = vmul.f32 %v13055_v33, %v13031_v49  ;;  %v1712_v30 = vmul.f32 %v13055_v33, %v13033_v29  ;;  %v1004_v33 = vadd.f32 %v14414_v11, %v10609_v12  ;;  %v999_v11 = vadd.f32 %v10609_v12, %v14420_v17 }
 0x460   :  { %11900 = vmatprep.mubr.msk.bf16.mxu0 %vm1556_vm3, %v1552_v1  ;;  %11918 = vmatprep.mubr.msk.bf16.mxu1 %vm1556_vm3, %v1718_v25  ;;  %v1036_v1 = vadd.f32 %v14433_v32, %v10609_v12  ;;  %v996_v25 = vadd.f32 %v10609_v12, %v14416_v20  ;;  %v1031_v32 = vadd.f32 %v10609_v12, %v14439_v53 }
 0x461   :  { %v13057_v15 = vpop.eup %13056  ;;  %11901 = vmatmul.mubr.msk.bf16.gmra.mrb[56].mxu0 %vm1556_vm3, %v1553_v58  ;;  %11919 = vmatmul.mubr.msk.bf16.gmra.mrb[56].mxu1 %vm1556_vm3, %v1719_v19 }
 0x462   :  { %v1544_v22 = vmul.f32 %v13057_v15, %v13037_v39  ;;  %v1710_v10 = vmul.f32 %v13057_v15, %v13039_v52  ;;  %v14616_v39 = vadd.f32 %v14401_v5, %v10609_v12  ;;  %v14625_v52 = vadd.f32 %v10609_v12, %v14426_v0 }
 0x463   :  { %v14639_v0 = vadd.f32 %v10609_v12, %v14430_v24 }
 0x464   :  { %v13059_v40 = vpop.eup %13058 }
 0x465   :  { %v1547_v46 = vmul.f32 %v13059_v40, %v13041_v55  ;;  %v1713_v3 = vmul.f32 %v13059_v40, %v13045_v9  ;;  %v14631_v9 = vadd.f32 %v14428_v26, %v10609_v12 }
 0x467   :  { %v13061_v8 = vpop.eup %13060  ;;  %v1555_v36 = vpack.c.bf16 %v1547_v46, %v1546_v60  ;;  %v1721_v49 = vpack.c.bf16 %v1713_v3, %v1712_v30  ;;  %v1028_v60 = vadd.f32 %v10609_v12, %v14435_v28 }
 0x468   :  { %v1545_v57 = vmul.f32 %v13061_v8, %v13047_v27  ;;  %v1711_v29 = vmul.f32 %v13061_v8, %v13051_v31 }
 0x46a   :  { %v1554_v56 = vpack.c.bf16 %v1545_v57, %v1544_v22  ;;  %v1720_v35 = vpack.c.bf16 %v1711_v29, %v1710_v10  ;;  %v1007_v22 = vadd.f32 %v14418_v23, %v10609_v12  ;;  %v1039_v10 = vadd.f32 %v14437_v37, %v10609_v12 }
 0x46c   :  { %11904 = vmatprep.mubr.msk.bf16.mxu0 %vm1556_vm3, %v1554_v56  ;;  %11922 = vmatprep.mubr.msk.bf16.mxu1 %vm1556_vm3, %v1720_v35 }
 0x46d   :  { %11905 = vmatmul.mubr.msk.bf16.gmra.mrb[60].mxu0 %vm1556_vm3, %v1555_v36  ;;  %11923 = vmatmul.mubr.msk.bf16.gmra.mrb[60].mxu1 %vm1556_vm3, %v1721_v49 }
 0x51c   :  { %v11894_v55 = vpop.f32.mrb[48].mxu0  ;;  %v11912_v63 = vpop.f32.mrb[48].mxu1 }
 0x51d   :  { %v1684_v5 = vmul.f32 %v11894_v55, %v14616_v39  ;;  %v1845_v54 = vmul.f32 %v11912_v63, %v14619_v34  ;;  %v1619_v21 = vpop.f32.mrb[49].mxu0  ;;  %v1780_v51 = vpop.f32.mrb[49].mxu1 }
 0x51e   :  { %v1682_v27 = vmul.f32 %v1619_v21, %v14622_v2  ;;  %v1843_v16 = vmul.f32 %v1780_v51, %v14625_v52  ;;  %v11895_v13 = vpop.f32.mrb[50].mxu0  ;;  %v11913_v61 = vpop.f32.mrb[50].mxu1 }
 0x51f   :  { %v1861_v26 = vadd.f32 %v1845_v54, %v1684_v5  ;;  %v1685_v31 = vmul.f32 %v11895_v13, %v14628_v4  ;;  %v1846_v48 = vmul.f32 %v11913_v61, %v14631_v9  ;;  %v1622_v6 = vpop.f32.mrb[51].mxu0  ;;  %v1783_v18 = vpop.f32.mrb[51].mxu1 }
 0x520   :  { %v1859_v44 = vadd.f32 %v1843_v16, %v1682_v27  ;;  %v1683_v14 = vmul.f32 %v1622_v6, %v14636_v47  ;;  %v1844_v42 = vmul.f32 %v1783_v18, %v14639_v0 }
 0x521   :  { %v1862_v24 = vadd.f32 %v1846_v48, %v1685_v31 }
 0x522   :  { %v1860_v50 = vadd.f32 %v1844_v42, %v1683_v14 }
 0x523   :  { %v1876_v58 = vpack.c.bf16 %v1862_v24, %v1861_v26 }
 0x524   :  { %v1875_v19 = vpack.c.bf16 %v1860_v50, %v1859_v44 }
 0x526   :  { %11934 = vmatprep.mubr.msk.bf16.mxu0 %vm348_vm1, %v1875_v19 }
 0x527   :  { %11935 = vmatmul.mubr.msk.bf16.vlgmr.msra.gmra.mrb[64].mxu0 %vm348_vm1, %v1876_v58 }
 0x528   :  { %v11898_v30 = vpop.f32.mrb[52].mxu0  ;;  %v11916_v15 = vpop.f32.mrb[52].mxu1 }
 0x529   :  { %v1688_v40 = vmul.f32 %v11898_v30, %v1004_v33  ;;  %v1849_v46 = vmul.f32 %v11916_v15, %v1036_v1  ;;  %v1635_v3 = vpop.f32.mrb[53].mxu0  ;;  %v1796_v8 = vpop.f32.mrb[53].mxu1 }
 0x52a   :  { %v1686_v36 = vmul.f32 %v1635_v3, %v996_v25  ;;  %v1847_v49 = vmul.f32 %v1796_v8, %v1028_v60  ;;  %v11899_v57 = vpop.f32.mrb[54].mxu0  ;;  %v11917_v20 = vpop.f32.mrb[54].mxu1 }
 0x52b   :  { %v1865_v29 = vadd.f32 %v1849_v46, %v1688_v40  ;;  %v1689_v28 = vmul.f32 %v11899_v57, %v1007_v22  ;;  %v1850_v56 = vmul.f32 %v11917_v20, %v1039_v10  ;;  %v1638_v35 = vpop.f32.mrb[55].mxu0  ;;  %v1799_v7 = vpop.f32.mrb[55].mxu1 }
 0x52c   :  { %v1863_v23 = vadd.f32 %v1847_v49, %v1686_v36  ;;  %v1687_v55 = vmul.f32 %v1638_v35, %v999_v11  ;;  %v1848_v37 = vmul.f32 %v1799_v7, %v1031_v32 }
 0x52d   :  { %v1866_v63 = vadd.f32 %v1850_v56, %v1689_v28 }
 0x52e   :  { %v1864_v5 = vadd.f32 %v1848_v37, %v1687_v55 }
 0x52f   :  { %v1878_v54 = vpack.c.bf16 %v1866_v63, %v1865_v29 }
 0x530   :  { %v1877_v21 = vpack.c.bf16 %v1864_v5, %v1863_v23 }
 0x532   :  { %11938 = vmatprep.mubr.msk.bf16.mxu0 %vm348_vm1, %v1877_v21 }
 0x533   :  { %11939 = vmatmul.mubr.msk.bf16.gmra.mrb[68].mxu0 %vm348_vm1, %v1878_v54 }
 0x534   :  { %v11902_v17 = vpop.f32.mrb[56].mxu0  ;;  %v11920_v53 = vpop.f32.mrb[56].mxu1 }
 0x535   :  { %v1692_v12 = vmul.f32 %v11902_v17, %v14616_v39  ;;  %v1853_v51 = vmul.f32 %v11920_v53, %v14619_v34  ;;  %v1651_v27 = vpop.f32.mrb[57].mxu0  ;;  %v1812_v16 = vpop.f32.mrb[57].mxu1 }
 0x536   :  { %v1690_v13 = vmul.f32 %v1651_v27, %v14622_v2  ;;  %v1851_v61 = vmul.f32 %v1812_v16, %v14625_v52  ;;  %v11903_v26 = vpop.f32.mrb[58].mxu0  ;;  %v11921_v31 = vpop.f32.mrb[58].mxu1 }
 0x537   :  { %v1869_v48 = vadd.f32 %v1853_v51, %v1692_v12  ;;  %v1693_v6 = vmul.f32 %v11903_v26, %v14628_v4  ;;  %v1854_v18 = vmul.f32 %v11921_v31, %v14631_v9  ;;  %v1654_v44 = vpop.f32.mrb[59].mxu0  ;;  %v1815_v14 = vpop.f32.mrb[59].mxu1 }
 0x538   :  { %v1867_v42 = vadd.f32 %v1851_v61, %v1690_v13  ;;  %v1691_v39 = vmul.f32 %v1654_v44, %v14636_v47  ;;  %v1852_v34 = vmul.f32 %v1815_v14, %v14639_v0  ;;  %v18284_v44 = vld [vmem:[#allocation19_spill] sm:$0xff] }
 0x539   :  { %v1870_v24 = vadd.f32 %v1854_v18, %v1693_v6 }
 0x53a   :  { %v1868_v50 = vadd.f32 %v1852_v34, %v1691_v39 }
 0x53b   :  { %v1880_v58 = vpack.c.bf16 %v1870_v24, %v1869_v48  ;;  %v18283_v48 = vld [vmem:[#allocation18_spill] sm:$0xff] }
 0x53c   :  { %v1879_v2 = vpack.c.bf16 %v1868_v50, %v1867_v42 }
 0x53e   :  { %11942 = vmatprep.mubr.msk.bf16.mxu0 %vm348_vm1, %v1879_v2 }
 0x53f   :  { %11943 = vmatmul.mubr.msk.bf16.gmra.mrb[72].mxu0 %vm348_vm1, %v1880_v58 }
 0x540   :  { %v11906_v52 = vpop.f32.mrb[60].mxu0  ;;  %v11924_v19 = vpop.f32.mrb[60].mxu1 }
 0x541   :  { %v1696_v4 = vmul.f32 %v11906_v52, %v1004_v33  ;;  %v1857_v30 = vmul.f32 %v11924_v19, %v1036_v1  ;;  %v1667_v9 = vpop.f32.mrb[61].mxu0  ;;  %v1828_v15 = vpop.f32.mrb[61].mxu1  ;;  %v14672_v1 = vld [vmem:[%s18282_s5] ss:$0 sm:$0xff]  ;;  %v18285_v19 = vld [vmem:[#allocation20_spill] sm:$0xff] }
 0x542   :  { %v1694_v40 = vmul.f32 %v1667_v9, %v996_v25  ;;  %v1855_v46 = vmul.f32 %v1828_v15, %v1028_v60  ;;  %v11907_v3 = vpop.f32.mrb[62].mxu0  ;;  %v11925_v47 = vpop.f32.mrb[62].mxu1  ;;  %v18286_v9 = vld [vmem:[#allocation21_spill] sm:$0xff] }
 0x543   :  { %v1873_v0 = vadd.f32 %v1857_v30, %v1696_v4  ;;  %v1697_v8 = vmul.f32 %v11907_v3, %v1007_v22  ;;  %v1858_v36 = vmul.f32 %v11925_v47, %v1039_v10  ;;  %v1670_v49 = vpop.f32.mrb[63].mxu0  ;;  %v1831_v57 = vpop.f32.mrb[63].mxu1  ;;  %v18288_v47 = vld [vmem:[#allocation23_spill] sm:$0xff] }
 0x544   :  { %v1871_v20 = vadd.f32 %v1855_v46, %v1694_v40  ;;  %v1695_v29 = vmul.f32 %v1670_v49, %v999_v11  ;;  %v1856_v28 = vmul.f32 %v1831_v57, %v1031_v32  ;;  %v18287_v40 = vld [vmem:[#allocation22_spill] sm:$0xff] }
 0x545   :  { %v1874_v56 = vadd.f32 %v1858_v36, %v1697_v8 }
 0x546   :  { %v1872_v35 = vadd.f32 %v1856_v28, %v1695_v29 }
 0x547   :  { %v1882_v7 = vpack.c.bf16 %v1874_v56, %v1873_v0 }
 0x548   :  { %v1881_v33 = vpack.c.bf16 %v1872_v35, %v1871_v20 }
 0x54a   :  { %11946 = vmatprep.mubr.msk.bf16.mxu0 %vm348_vm1, %v1881_v33  ;;  %v18290_v33 = vld [vmem:[#allocation24_spill] sm:$0xff] }
 0x54b   :  { %11947 = vmatmul.mubr.msk.bf16.gmra.mrb[76].mxu0 %vm348_vm1, %v1882_v7 }
 0x5fa   :  { %v11936_v25 = vpop.f32.mrb[64].mxu0 }
 0x5fb   :  { %v1980_v60 = vpop.f32.mrb[65].mxu0  ;;  %v1989_v22 = vadd.f32 %v11936_v25, %v14672_v1 }
 0x5fc   :  { %v1981_v10 = vadd.f32 %v14672_v1, %v1980_v60  ;;  %v11937_v23 = vpop.f32.mrb[66].mxu0 }
 0x5fd   :  { %v1983_v55 = vpop.f32.mrb[67].mxu0  ;;  %v1992_v11 = vadd.f32 %v11937_v23, %v14672_v1  ;;  %v14687_v54 = vadd.f32 %v1989_v22, %v14006_v38  ;;  %v18291_v22 = vld [vmem:[#allocation25_spill] sm:$0xff]  ;;  %v18292_v23 = vld [vmem:[#allocation26_spill] sm:$0xff] }
 0x5fe   :  { %v1984_v32 = vadd.f32 %v14672_v1, %v1983_v55  ;;  %v14679_v37 = vadd.f32 %v1981_v10, %v14010_v41 }
 0x5ff   :  { %v14692_v17 = vadd.f32 %v1992_v11, %v14014_v43  ;;  %v2067_v41 = vsel %vm348_vm1, %v14687_v54, 0.0 }
 0x600   :  { %v2061_v63 = vsel %vm348_vm1, %v14679_v37, 0.0  ;;  %v14684_v5 = vadd.f32 %v1984_v32, %v14018_v45  ;;  %v18293_v32 = vld [vmem:[#allocation27_spill] sm:$0xff] }
 0x601   :  { %2062 = vadd.xlane.f32.xlu0 %v2061_v63  ;;  %v2070_v45 = vsel %vm348_vm1, %v14692_v17, 0.0 }
 0x602   :  { %v2064_v21 = vsel %vm348_vm1, %v14684_v5, 0.0 }
 0x603   :  { %2065 = vadd.xlane.f32.xlu1 %v2064_v21 }
 0x605   :  { %2068 = vadd.xlane.f32.xlu0 %v2067_v41  ;;  %v12822_v41 = vld [vmem:[%s18289_s9] sm:$0xff]  }
 0x606   :  { %v11940_v53 = vpop.f32.mrb[68].mxu0  ;;  %11950 = vmatprep.subr.bf16.mxu1 %v12822_v41 }
 0x607   :  { %v1996_v12 = vpop.f32.mrb[69].mxu0  ;;  %2071 = vadd.xlane.f32.xlu1 %v2070_v45  ;;  %v2005_v38 = vadd.f32 %v11940_v53, %v14672_v1  ;;  %11951 = vmatpush3.bf16.msra.mxu1 %v12822_v41 }
 0x608   :  { %v1997_v51 = vadd.f32 %v14672_v1, %v1996_v12  ;;  %v11941_v27 = vpop.f32.mrb[70].mxu0 }
 0x609   :  { %v1999_v16 = vpop.f32.mrb[71].mxu0  ;;  %v2008_v43 = vadd.f32 %v11941_v27, %v14672_v1  ;;  %v14711_v6 = vadd.f32 %v2005_v38, %v18283_v48 }
 0x60a   :  { %v2000_v13 = vadd.f32 %v14672_v1, %v1999_v16  ;;  %v14703_v61 = vadd.f32 %v1997_v51, %v14031_v59 }
 0x60b   :  { %v14716_v14 = vadd.f32 %v2008_v43, %v18284_v44  ;;  %v2079_v59 = vsel %vm348_vm1, %v14711_v6, 0.0 }
 0x60c   :  { %v2073_v26 = vsel %vm348_vm1, %v14703_v61, 0.0  ;;  %v14708_v31 = vadd.f32 %v2000_v13, %v14036_v62 }
 0x60d   :  { %2074 = vadd.xlane.f32.xlu0 %v2073_v26  ;;  %v2082_v62 = vsel %vm348_vm1, %v14716_v14, 0.0 }
 0x60e   :  { %v2076_v18 = vsel %vm348_vm1, %v14708_v31, 0.0 }
 0x60f   :  { %2077 = vadd.xlane.f32.xlu1 %v2076_v18 }
 0x611   :  { %2080 = vadd.xlane.f32.xlu0 %v2079_v59 }
 0x612   :  { %v11944_v42 = vpop.f32.mrb[72].mxu0 }
 0x613   :  { %v2012_v39 = vpop.f32.mrb[73].mxu0  ;;  %2083 = vadd.xlane.f32.xlu1 %v2082_v62  ;;  %v2021_v34 = vadd.f32 %v11944_v42, %v14672_v1 }
 0x614   :  { %v2013_v24 = vadd.f32 %v14672_v1, %v2012_v39  ;;  %v11945_v50 = vpop.f32.mrb[74].mxu0 }
 0x615   :  { %v2015_v58 = vpop.f32.mrb[75].mxu0  ;;  %v2024_v2 = vadd.f32 %v11945_v50, %v14672_v1  ;;  %v14735_v46 = vadd.f32 %v2021_v34, %v18287_v40 }
 0x616   :  { %v2016_v52 = vadd.f32 %v14672_v1, %v2015_v58  ;;  %v14727_v4 = vadd.f32 %v2013_v24, %v18285_v19 }
 0x617   :  { %v14740_v0 = vadd.f32 %v2024_v2, %v18288_v47  ;;  %v2091_v8 = vsel %vm348_vm1, %v14735_v46, 0.0 }
 0x618   :  { %v2085_v30 = vsel %vm348_vm1, %v14727_v4, 0.0  ;;  %v14732_v15 = vadd.f32 %v2016_v52, %v18286_v9 }
 0x619   :  { %2086 = vadd.xlane.f32.xlu0 %v2085_v30  ;;  %v2094_v49 = vsel %vm348_vm1, %v14740_v0, 0.0 }
 0x61a   :  { %v2088_v3 = vsel %vm348_vm1, %v14732_v15, 0.0 }
 0x61b   :  { %2089 = vadd.xlane.f32.xlu1 %v2088_v3 }
 0x61d   :  { %2092 = vadd.xlane.f32.xlu0 %v2091_v8 }
 0x61e   :  { %v11948_v36 = vpop.f32.mrb[76].mxu0 }
 0x61f   :  { %v2028_v57 = vpop.f32.mrb[77].mxu0  ;;  %2095 = vadd.xlane.f32.xlu1 %v2094_v49  ;;  %v2037_v20 = vadd.f32 %v11948_v36, %v14672_v1 }
 0x620   :  { %v2029_v29 = vadd.f32 %v14672_v1, %v2028_v57  ;;  %v11949_v28 = vpop.f32.mrb[78].mxu0 }
 0x621   :  { %v2031_v56 = vpop.f32.mrb[79].mxu0  ;;  %v2040_v35 = vadd.f32 %v11949_v28, %v14672_v1  ;;  %v14759_v55 = vadd.f32 %v2037_v20, %v18292_v23 }
 0x622   :  { %v2032_v7 = vadd.f32 %v14672_v1, %v2031_v56  ;;  %v14751_v25 = vadd.f32 %v2029_v29, %v18290_v33 }
 0x623   :  { %v14764_v63 = vadd.f32 %v2040_v35, %v18293_v32  ;;  %v2103_v1 = vsel %vm348_vm1, %v14759_v55, 0.0 }
 0x624   :  { %v2097_v60 = vsel %vm348_vm1, %v14751_v25, 0.0  ;;  %v14756_v10 = vadd.f32 %v2032_v7, %v18291_v22 }
 0x625   :  { %2098 = vadd.xlane.f32.xlu0 %v2097_v60  ;;  %v2106_v21 = vsel %vm348_vm1, %v14764_v63, 0.0 }
 0x626   :  { %v2100_v11 = vsel %vm348_vm1, %v14756_v10, 0.0 }
 0x627   :  { %2101 = vadd.xlane.f32.xlu1 %v2100_v11 }
 0x629   :  { %2104 = vadd.xlane.f32.xlu0 %v2103_v1 }
 0x62b   :  { %2107 = vadd.xlane.f32.xlu1 %v2106_v21 }
 0x68e   :  { %v2063_v53 = vpop.xlane.xlu0 %2062 }
 0x68f   :  { %v2109_v45 = vmul.f32 0.015625, %v2063_v53 }
 0x690   :  { %v2066_v12 = vpop.xlane.xlu1 %2065 }
 0x691   :  { %v14772_v38 = vsub.f32 %v14679_v37, %v2109_v45  ;;  %v2110_v51 = vmul.f32 0.015625, %v2066_v12 }
 0x692   :  { %v2069_v27 = vpop.xlane.xlu0 %2068 }
 0x693   :  { %v14775_v16 = vsub.f32 %v14684_v5, %v2110_v51  ;;  %v2111_v43 = vmul.f32 0.015625, %v2069_v27  ;;  %v2141_v13 = vmul.f32 %v14772_v38, %v14772_v38 }
 0x694   :  { %v2072_v26 = vpop.xlane.xlu1 %2071 }
 0x695   :  { %v14780_v48 = vsub.f32 %v14687_v54, %v2111_v43  ;;  %v2112_v18 = vmul.f32 0.015625, %v2072_v26  ;;  %v2157_v44 = vsel %vm348_vm1, %v2141_v13, 0.0  ;;  %v2142_v59 = vmul.f32 %v14775_v16, %v14775_v16 }
 0x696   :  { %2158 = vadd.xlane.f32.xlu0 %v2157_v44 }
 0x697   :  { %v14786_v42 = vsub.f32 %v14692_v17, %v2112_v18  ;;  %v2160_v62 = vsel %vm348_vm1, %v2142_v59, 0.0  ;;  %v2143_v39 = vmul.f32 %v14780_v48, %v14780_v48 }
 0x698   :  { %2161 = vadd.xlane.f32.xlu1 %v2160_v62 }
 0x699   :  { %v2163_v34 = vsel %vm348_vm1, %v2143_v39, 0.0  ;;  %v2144_v24 = vmul.f32 %v14786_v42, %v14786_v42 }
 0x69a   :  { %v2075_v50 = vpop.xlane.xlu0 %2074  ;;  %2164 = vadd.xlane.f32.xlu0 %v2163_v34 }
 0x69b   :  { %v2113_v58 = vmul.f32 0.015625, %v2075_v50  ;;  %v2166_v2 = vsel %vm348_vm1, %v2144_v24, 0.0 }
 0x69c   :  { %v2078_v52 = vpop.xlane.xlu1 %2077  ;;  %2167 = vadd.xlane.f32.xlu1 %v2166_v2 }
 0x69d   :  { %v14796_v19 = vsub.f32 %v14703_v61, %v2113_v58  ;;  %v2114_v30 = vmul.f32 0.015625, %v2078_v52 }
 0x69e   :  { %v2081_v9 = vpop.xlane.xlu0 %2080 }
 0x69f   :  { %v14799_v40 = vsub.f32 %v14708_v31, %v2114_v30  ;;  %v2115_v3 = vmul.f32 0.015625, %v2081_v9  ;;  %v2145_v47 = vmul.f32 %v14796_v19, %v14796_v19 }
 0x6a0   :  { %v2084_v8 = vpop.xlane.xlu1 %2083 }
 0x6a1   :  { %v14804_v36 = vsub.f32 %v14711_v6, %v2115_v3  ;;  %v2116_v49 = vmul.f32 0.015625, %v2084_v8  ;;  %v2169_v57 = vsel %vm348_vm1, %v2145_v47, 0.0  ;;  %v2146_v20 = vmul.f32 %v14799_v40, %v14799_v40 }
 0x6a2   :  { %2170 = vadd.xlane.f32.xlu0 %v2169_v57 }
 0x6a3   :  { %v14810_v29 = vsub.f32 %v14716_v14, %v2116_v49  ;;  %v2172_v28 = vsel %vm348_vm1, %v2146_v20, 0.0  ;;  %v2147_v56 = vmul.f32 %v14804_v36, %v14804_v36 }
 0x6a4   :  { %2173 = vadd.xlane.f32.xlu1 %v2172_v28 }
 0x6a5   :  { %v2175_v35 = vsel %vm348_vm1, %v2147_v56, 0.0  ;;  %v2148_v7 = vmul.f32 %v14810_v29, %v14810_v29 }
 0x6a6   :  { %v2087_v33 = vpop.xlane.xlu0 %2086  ;;  %2176 = vadd.xlane.f32.xlu0 %v2175_v35  ;;  %v12823_v35 = vld [vmem:[%s18289_s9 + $0x8] sm:$0xff]  }
 0x6a7   :  { %v2117_v60 = vmul.f32 0.015625, %v2087_v33  ;;  %v2178_v22 = vsel %vm348_vm1, %v2148_v7, 0.0  ;;  %11952 = vmatprep.subr.bf16.mxu1 %v12823_v35 }
 0x6a8   :  { %v2090_v23 = vpop.xlane.xlu1 %2089  ;;  %2179 = vadd.xlane.f32.xlu1 %v2178_v22  ;;  %11953 = vmatpush3.bf16.msra.mxu1 %v12823_v35 }
 0x6a9   :  { %v14820_v11 = vsub.f32 %v14727_v4, %v2117_v60  ;;  %v2118_v32 = vmul.f32 0.015625, %v2090_v23  ;;  %v12824_v60 = vld [vmem:[%s18289_s9 + $0x10] sm:$0xff]   ;;  %v12825_v23 = vld [vmem:[%s18289_s9 + $0x18] sm:$0xff]  }
 0x6aa   :  { %v2093_v1 = vpop.xlane.xlu0 %2092  ;;  %11954 = vmatprep.subr.bf16.mxu1 %v12824_v60 }
 0x6ab   :  { %v14823_v21 = vsub.f32 %v14732_v15, %v2118_v32  ;;  %v2119_v41 = vmul.f32 0.015625, %v2093_v1  ;;  %v2149_v53 = vmul.f32 %v14820_v11, %v14820_v11  ;;  %v12826_v32 = vld [vmem:[%s18294_s21] sm:$0xff]   ;;  %v12827_v1 = vld [vmem:[%s18294_s21 + $0x8] sm:$0xff]  }
 0x6ac   :  { %v2096_v45 = vpop.xlane.xlu1 %2095  ;;  %11955 = vmatpush3.bf16.msra.mxu1 %v12824_v60  ;;  %11974 = vmatprep.subr.bf16.mxu0 %v12826_v32 }
 0x6ad   :  { %v14828_v12 = vsub.f32 %v14735_v46, %v2119_v41  ;;  %v2120_v51 = vmul.f32 0.015625, %v2096_v45  ;;  %v2181_v27 = vsel %vm348_vm1, %v2149_v53, 0.0  ;;  %v2150_v43 = vmul.f32 %v14823_v21, %v14823_v21  ;;  %11956 = vmatprep.subr.bf16.mxu1 %v12825_v23  ;;  %11975 = vmatpush3.bf16.msra.mxu0 %v12826_v32 }
 0x6ae   :  { %2182 = vadd.xlane.f32.xlu0 %v2181_v27  ;;  %11976 = vmatprep.subr.bf16.mxu0 %v12827_v1 }
 0x6af   :  { %v14834_v13 = vsub.f32 %v14740_v0, %v2120_v51  ;;  %v2184_v26 = vsel %vm348_vm1, %v2150_v43, 0.0  ;;  %v2151_v18 = vmul.f32 %v14828_v12, %v14828_v12 }
 0x6b0   :  { %2185 = vadd.xlane.f32.xlu1 %v2184_v26  ;;  %11957 = vmatpush3.bf16.msra.mxu1 %v12825_v23 }
 0x6b1   :  { %v2187_v44 = vsel %vm348_vm1, %v2151_v18, 0.0  ;;  %v2152_v59 = vmul.f32 %v14834_v13, %v14834_v13  ;;  %11977 = vmatpush3.bf16.msra.mxu0 %v12827_v1 }
 0x6b2   :  { %v2099_v62 = vpop.xlane.xlu0 %2098  ;;  %2188 = vadd.xlane.f32.xlu0 %v2187_v44 }
 0x6b3   :  { %v2121_v39 = vmul.f32 0.015625, %v2099_v62  ;;  %v2190_v34 = vsel %vm348_vm1, %v2152_v59, 0.0 }
 0x6b4   :  { %v2102_v24 = vpop.xlane.xlu1 %2101  ;;  %2191 = vadd.xlane.f32.xlu1 %v2190_v34 }
 0x6b5   :  { %v14844_v50 = vsub.f32 %v14751_v25, %v2121_v39  ;;  %v2122_v58 = vmul.f32 0.015625, %v2102_v24 }
 0x6b6   :  { %v2105_v2 = vpop.xlane.xlu0 %2104 }
 0x6b7   :  { %v14847_v52 = vsub.f32 %v14756_v10, %v2122_v58  ;;  %v2123_v30 = vmul.f32 0.015625, %v2105_v2  ;;  %v2153_v9 = vmul.f32 %v14844_v50, %v14844_v50 }
 0x6b8   :  { %v2108_v3 = vpop.xlane.xlu1 %2107 }
 0x6b9   :  { %v14852_v47 = vsub.f32 %v14759_v55, %v2123_v30  ;;  %v2124_v8 = vmul.f32 0.015625, %v2108_v3  ;;  %v2193_v49 = vsel %vm348_vm1, %v2153_v9, 0.0  ;;  %v2154_v57 = vmul.f32 %v14847_v52, %v14847_v52  ;;  %v14873_v30 = vld [vmem:[%s18295_s25] ss:$0 sm:$0xff] }
 0x6ba   :  { %2194 = vadd.xlane.f32.xlu0 %v2193_v49 }
 0x6bb   :  { %v14858_v20 = vsub.f32 %v14764_v63, %v2124_v8  ;;  %v2196_v28 = vsel %vm348_vm1, %v2154_v57, 0.0  ;;  %v2155_v56 = vmul.f32 %v14852_v47, %v14852_v47 }
 0x6bc   :  { %2197 = vadd.xlane.f32.xlu1 %v2196_v28 }
 0x6bd   :  { %v2199_v7 = vsel %vm348_vm1, %v2155_v56, 0.0  ;;  %v2156_v33 = vmul.f32 %v14858_v20, %v14858_v20 }
 0x6be   :  { %2200 = vadd.xlane.f32.xlu0 %v2199_v7 }
 0x6bf   :  { %v2202_v22 = vsel %vm348_vm1, %v2156_v33, 0.0 }
 0x6c0   :  { %2203 = vadd.xlane.f32.xlu1 %v2202_v22  ;;  %v14879_v22 = vld [vmem:[%s18296_s15] ss:$0 sm:$0xff] }
 0x723   :  { %v2159_v41 = vpop.xlane.xlu0 %2158 }
 0x724   :  { %v2205_v53 = vmul.f32 0.015625, %v2159_v41 }
 0x725   :  { %v2162_v45 = vpop.xlane.xlu1 %2161 }
 0x726   :  { %v2221_v51 = vadd.f32 1e-05, %v2205_v53  ;;  %v2206_v27 = vmul.f32 0.015625, %v2162_v45 }
 0x727   :  { %v2165_v43 = vpop.xlane.xlu0 %2164 }
 0x728   :  { %13062 = vrsqrt.f32 %v2221_v51  ;;  %v2222_v26 = vadd.f32 1e-05, %v2206_v27  ;;  %v2207_v18 = vmul.f32 0.015625, %v2165_v43 }
 0x729   :  { %v2168_v44 = vpop.xlane.xlu1 %2167 }
 0x72a   :  { %13064 = vrsqrt.f32 %v2222_v26  ;;  %v2223_v59 = vadd.f32 1e-05, %v2207_v18  ;;  %v2208_v62 = vmul.f32 0.015625, %v2168_v44 }
 0x72c   :  { %13066 = vrsqrt.f32 %v2223_v59  ;;  %v2224_v39 = vadd.f32 1e-05, %v2208_v62 }
 0x72e   :  { %13068 = vrsqrt.f32 %v2224_v39 }
 0x72f   :  { %v2171_v34 = vpop.xlane.xlu0 %2170 }
 0x730   :  { %v2209_v24 = vmul.f32 0.015625, %v2171_v34 }
 0x731   :  { %v2174_v58 = vpop.xlane.xlu1 %2173 }
 0x732   :  { %v13063_v2 = vpop.eup %13062  ;;  %v2225_v9 = vadd.f32 1e-05, %v2209_v24  ;;  %v2210_v3 = vmul.f32 0.015625, %v2174_v58 }
 0x733   :  { %v2177_v8 = vpop.xlane.xlu0 %2176  ;;  %v2253_v49 = vmul.f32 %v13063_v2, %v14772_v38 }
 0x734   :  { %v13065_v57 = vpop.eup %13064  ;;  %13070 = vrsqrt.f32 %v2225_v9  ;;  %v2226_v28 = vadd.f32 1e-05, %v2210_v3  ;;  %v2211_v56 = vmul.f32 0.015625, %v2177_v8 }
 0x735   :  { %v2180_v35 = vpop.xlane.xlu1 %2179  ;;  %v2254_v7 = vmul.f32 %v13065_v57, %v14775_v16  ;;  %v2275_v33 = vmul.f32 %v14873_v30, %v2253_v49 }
 0x736   :  { %v13067_v60 = vpop.eup %13066  ;;  %13072 = vrsqrt.f32 %v2226_v28  ;;  %v2227_v23 = vadd.f32 1e-05, %v2211_v56  ;;  %v2212_v32 = vmul.f32 0.015625, %v2180_v35 }
 0x737   :  { %v2255_v1 = vmul.f32 %v13067_v60, %v14780_v48  ;;  %v2276_v41 = vmul.f32 %v14873_v30, %v2254_v7  ;;  %v2297_v16 = vadd.f32 %v14879_v22, %v2275_v33 }
 0x738   :  { %v13069_v38 = vpop.eup %13068  ;;  %13074 = vrsqrt.f32 %v2227_v23  ;;  %v2228_v53 = vadd.f32 1e-05, %v2212_v32 }
 0x739   :  { %v2277_v45 = vmul.f32 %v14873_v30, %v2255_v1  ;;  %v2256_v51 = vmul.f32 %v13069_v38, %v14786_v42  ;;  %v2298_v27 = vadd.f32 %v14879_v22, %v2276_v41 }
 0x73a   :  { %13076 = vrsqrt.f32 %v2228_v53 }
 0x73b   :  { %v2278_v43 = vmul.f32 %v14873_v30, %v2256_v51  ;;  %v2183_v26 = vpop.xlane.xlu0 %2182  ;;  %v2313_v18 = vpack.c.bf16 %v2298_v27, %v2297_v16  ;;  %v2299_v48 = vadd.f32 %v14879_v22, %v2277_v45 }
 0x73c   :  { %v2213_v44 = vmul.f32 0.015625, %v2183_v26 }
 0x73d   :  { %v2300_v59 = vadd.f32 %v14879_v22, %v2278_v43  ;;  %v2186_v62 = vpop.xlane.xlu1 %2185  ;;  %11958 = vmatprep.mubr.msk.bf16.mxu1 %vm348_vm1, %v2313_v18 }
 0x73e   :  { %v13071_v39 = vpop.eup %13070  ;;  %v2229_v34 = vadd.f32 1e-05, %v2213_v44  ;;  %v2214_v42 = vmul.f32 0.015625, %v2186_v62 }
 0x73f   :  { %v2189_v24 = vpop.xlane.xlu0 %2188  ;;  %v2314_v58 = vpack.c.bf16 %v2300_v59, %v2299_v48  ;;  %v2257_v2 = vmul.f32 %v13071_v39, %v14796_v19 }
 0x740   :  { %v13073_v9 = vpop.eup %13072  ;;  %13078 = vrsqrt.f32 %v2229_v34  ;;  %v2230_v3 = vadd.f32 1e-05, %v2214_v42  ;;  %v2215_v8 = vmul.f32 0.015625, %v2189_v24 }
 0x741   :  { %v2192_v49 = vpop.xlane.xlu1 %2191  ;;  %11959 = vmatmul.mubr.msk.bf16.vlgmr.msra.gmra.mrb[64].mxu1 %vm348_vm1, %v2314_v58  ;;  %v2258_v57 = vmul.f32 %v13073_v9, %v14799_v40  ;;  %v2279_v28 = vmul.f32 %v14873_v30, %v2257_v2 }
 0x742   :  { %v13075_v56 = vpop.eup %13074  ;;  %13080 = vrsqrt.f32 %v2230_v3  ;;  %v2231_v35 = vadd.f32 1e-05, %v2215_v8  ;;  %v2216_v7 = vmul.f32 0.015625, %v2192_v49 }
 0x743   :  { %v2280_v33 = vmul.f32 %v14873_v30, %v2258_v57  ;;  %v2259_v60 = vmul.f32 %v13075_v56, %v14804_v36  ;;  %v2301_v32 = vadd.f32 %v14879_v22, %v2279_v28 }
 0x744   :  { %v13077_v19 = vpop.eup %13076  ;;  %13082 = vrsqrt.f32 %v2231_v35  ;;  %v2232_v23 = vadd.f32 1e-05, %v2216_v7 }
 0x745   :  { %v2302_v1 = vadd.f32 %v14879_v22, %v2280_v33  ;;  %v2260_v41 = vmul.f32 %v13077_v19, %v14810_v29  ;;  %v2281_v40 = vmul.f32 %v14873_v30, %v2259_v60 }
 0x746   :  { %13084 = vrsqrt.f32 %v2232_v23 }
 0x747   :  { %v2195_v38 = vpop.xlane.xlu0 %2194  ;;  %v2315_v53 = vpack.c.bf16 %v2302_v1, %v2301_v32  ;;  %v2282_v45 = vmul.f32 %v14873_v30, %v2260_v41  ;;  %v2303_v36 = vadd.f32 %v14879_v22, %v2281_v40 }
 0x748   :  { %v2217_v51 = vmul.f32 0.015625, %v2195_v38 }
 0x749   :  { %v2198_v16 = vpop.xlane.xlu1 %2197  ;;  %11962 = vmatprep.mubr.msk.bf16.mxu1 %vm348_vm1, %v2315_v53  ;;  %v2304_v27 = vadd.f32 %v14879_v22, %v2282_v45 }
 0x74a   :  { %v13079_v43 = vpop.eup %13078  ;;  %v2233_v26 = vadd.f32 1e-05, %v2217_v51  ;;  %v2218_v18 = vmul.f32 0.015625, %v2198_v16 }
 0x74b   :  { %v2201_v44 = vpop.xlane.xlu0 %2200  ;;  %v2316_v29 = vpack.c.bf16 %v2304_v27, %v2303_v36  ;;  %v2261_v48 = vmul.f32 %v13079_v43, %v14820_v11 }
 0x74c   :  { %v13081_v59 = vpop.eup %13080  ;;  %13086 = vrsqrt.f32 %v2233_v26  ;;  %v2234_v62 = vadd.f32 1e-05, %v2218_v18  ;;  %v2219_v39 = vmul.f32 0.015625, %v2201_v44  ;;  %v12828_v26 = vld [vmem:[%s18294_s21 + $0x10] sm:$0xff]   ;;  %v12830_v18 = vld [vmem:[%s18294_s21 + $0x20] sm:$0xff]  }
 0x74d   :  { %v2204_v34 = vpop.xlane.xlu1 %2203  ;;  %11963 = vmatmul.mubr.msk.bf16.gmra.mrb[68].mxu1 %vm348_vm1, %v2316_v29  ;;  %v2262_v42 = vmul.f32 %v13081_v59, %v14823_v21  ;;  %v2283_v24 = vmul.f32 %v14873_v30, %v2261_v48  ;;  %11978 = vmatprep.subr.bf16.mxu0 %v12828_v26  ;;  %v12832_v44 = vld [vmem:[%s18294_s21 + $0x30] sm:$0xff]   ;;  %v14941_v29 = vld [vmem:[%s18297_s16] ss:$0 sm:$0xff] }
 0x74e   :  { %v13083_v58 = vpop.eup %13082  ;;  %13088 = vrsqrt.f32 %v2234_v62  ;;  %v2235_v2 = vadd.f32 1e-05, %v2219_v39  ;;  %v2220_v9 = vmul.f32 0.015625, %v2204_v34  ;;  %11979 = vmatpush3.bf16.msra.mxu0 %v12828_v26 }
 0x74f   :  { %v2284_v3 = vmul.f32 %v14873_v30, %v2262_v42  ;;  %v2263_v8 = vmul.f32 %v13083_v58, %v14828_v12  ;;  %v2305_v57 = vadd.f32 %v14879_v22, %v2283_v24 }
 0x750   :  { %v13085_v11 = vpop.eup %13084  ;;  %13090 = vrsqrt.f32 %v2235_v2  ;;  %v2236_v49 = vadd.f32 1e-05, %v2220_v9 }
 0x751   :  { %v2306_v28 = vadd.f32 %v14879_v22, %v2284_v3  ;;  %v2264_v56 = vmul.f32 %v13085_v11, %v14834_v13  ;;  %v2285_v21 = vmul.f32 %v14873_v30, %v2263_v8 }
 0x752   :  { %13092 = vrsqrt.f32 %v2236_v49 }
 0x753   :  { %v2317_v35 = vpack.c.bf16 %v2306_v28, %v2305_v57  ;;  %v2286_v7 = vmul.f32 %v14873_v30, %v2264_v56  ;;  %v2307_v33 = vadd.f32 %v14879_v22, %v2285_v21 }
 0x755   :  { %11966 = vmatprep.mubr.msk.bf16.mxu1 %vm348_vm1, %v2317_v35  ;;  %v2308_v12 = vadd.f32 %v14879_v22, %v2286_v7 }
 0x756   :  { %v13087_v60 = vpop.eup %13086 }
 0x757   :  { %v2318_v19 = vpack.c.bf16 %v2308_v12, %v2307_v33  ;;  %v2265_v23 = vmul.f32 %v13087_v60, %v14844_v50 }
 0x758   :  { %v13089_v32 = vpop.eup %13088 }
 0x759   :  { %11967 = vmatmul.mubr.msk.bf16.gmra.mrb[72].mxu1 %vm348_vm1, %v2318_v19  ;;  %v2266_v13 = vmul.f32 %v13089_v32, %v14847_v52  ;;  %v2287_v1 = vmul.f32 %v14873_v30, %v2265_v23 }
 0x75a   :  { %v13091_v41 = vpop.eup %13090 }
 0x75b   :  { %v2288_v40 = vmul.f32 %v14873_v30, %v2266_v13  ;;  %v2267_v38 = vmul.f32 %v13091_v41, %v14852_v47  ;;  %v2309_v45 = vadd.f32 %v14879_v22, %v2287_v1 }
 0x75c   :  { %v13093_v53 = vpop.eup %13092 }
 0x75d   :  { %v2310_v51 = vadd.f32 %v14879_v22, %v2288_v40  ;;  %v2268_v50 = vmul.f32 %v13093_v53, %v14858_v20  ;;  %v2289_v16 = vmul.f32 %v14873_v30, %v2267_v38  ;;  %v12829_v20 = vld [vmem:[%s18294_s21 + $0x18] sm:$0xff]  }
 0x75e   :  { %11980 = vmatprep.subr.bf16.mxu0 %v12829_v20 }
 0x75f   :  { %v2319_v52 = vpack.c.bf16 %v2310_v51, %v2309_v45  ;;  %v2290_v36 = vmul.f32 %v14873_v30, %v2268_v50  ;;  %v2311_v27 = vadd.f32 %v14879_v22, %v2289_v16  ;;  %11981 = vmatpush3.bf16.msra.mxu0 %v12829_v20  ;;  %v12831_v30 = vld [vmem:[%s18294_s21 + $0x28] sm:$0xff]  }
 0x760   :  { %11982 = vmatprep.subr.bf16.mxu0 %v12830_v18 }
 0x761   :  { %11970 = vmatprep.mubr.msk.bf16.mxu1 %vm348_vm1, %v2319_v52  ;;  %v2312_v47 = vadd.f32 %v14879_v22, %v2290_v36  ;;  %v12833_v22 = vld [vmem:[%s18294_s21 + $0x38] sm:$0xff]  }
 0x763   :  { %v2320_v43 = vpack.c.bf16 %v2312_v47, %v2311_v27  ;;  %11983 = vmatpush3.bf16.msra.mxu0 %v12830_v18 }
 0x764   :  { %11984 = vmatprep.subr.bf16.mxu0 %v12831_v30 }
 0x765   :  { %11971 = vmatmul.mubr.msk.bf16.gmra.mrb[76].mxu1 %vm348_vm1, %v2320_v43 }
 0x767   :  { %11985 = vmatpush3.bf16.msra.mxu0 %v12831_v30 }
 0x768   :  { %11986 = vmatprep.subr.bf16.mxu0 %v12832_v44 }
 0x76b   :  { %11987 = vmatpush3.bf16.msra.mxu0 %v12832_v44 }
 0x76c   :  { %11988 = vmatprep.subr.bf16.mxu0 %v12833_v22 }
 0x76f   :  { %11989 = vmatpush3.bf16.msra.mxu0 %v12833_v22 }
 0x814   :  { %v11960_v48 = vpop.f32.mrb[64].mxu1 }
 0x815   :  { %v2427_v59 = vadd.f32 %v11960_v48, %v14941_v29  ;;  %v2418_v62 = vpop.f32.mrb[65].mxu1 }
 0x816   :  { %v2419_v39 = vadd.f32 %v14941_v29, %v2418_v62  ;;  %v11961_v34 = vpop.f32.mrb[66].mxu1 }
 0x817   :  { %v2499_v42 = vmul.f32 0.70710677, %v2427_v59  ;;  %v2430_v24 = vadd.f32 %v11961_v34, %v14941_v29  ;;  %v2421_v58 = vpop.f32.mrb[67].mxu1  ;;  %v2483_v13 = vmul.f32 0.5, %v2427_v59 }
 0x818   :  { %v2497_v2 = vmul.f32 0.70710677, %v2419_v39  ;;  %v2422_v9 = vadd.f32 %v14941_v29, %v2421_v58  ;;  %v2481_v38 = vmul.f32 0.5, %v2419_v39 }
 0x819   :  { %13094 = verf.f32 %v2499_v42  ;;  %v2500_v3 = vmul.f32 0.70710677, %v2430_v24  ;;  %v2484_v53 = vmul.f32 0.5, %v2430_v24 }
 0x81a   :  { %13096 = verf.f32 %v2497_v2  ;;  %v2498_v8 = vmul.f32 0.70710677, %v2422_v9  ;;  %v2482_v51 = vmul.f32 0.5, %v2422_v9 }
 0x81b   :  { %13098 = verf.f32 %v2500_v3 }
 0x81c   :  { %13100 = verf.f32 %v2498_v8 }
 0x820   :  { %v11964_v11 = vpop.f32.mrb[68].mxu1 }
 0x821   :  { %v2443_v49 = vadd.f32 %v11964_v11, %v14941_v29  ;;  %v2434_v57 = vpop.f32.mrb[69].mxu1 }
 0x822   :  { %v2435_v28 = vadd.f32 %v14941_v29, %v2434_v57  ;;  %v11965_v56 = vpop.f32.mrb[70].mxu1 }
 0x823   :  { %v13095_v21 = vpop.eup %13094  ;;  %v2503_v35 = vmul.f32 0.70710677, %v2443_v49  ;;  %v2446_v7 = vadd.f32 %v11965_v56, %v14941_v29  ;;  %v2437_v33 = vpop.f32.mrb[71].mxu1  ;;  %v2487_v9 = vmul.f32 0.5, %v2443_v49 }
 0x824   :  { %v13097_v12 = vpop.eup %13096  ;;  %v2531_v60 = vadd.f32 1.0, %v13095_v21  ;;  %v2501_v19 = vmul.f32 0.70710677, %v2435_v28  ;;  %v2438_v23 = vadd.f32 %v14941_v29, %v2437_v33 }
 0x825   :  { %v13099_v32 = vpop.eup %13098  ;;  %13102 = verf.f32 %v2503_v35  ;;  %v2504_v1 = vmul.f32 0.70710677, %v2446_v7  ;;  %v2529_v41 = vadd.f32 1.0, %v13097_v12  ;;  %v2488_v3 = vmul.f32 0.5, %v2446_v7 }
 0x826   :  { %v13101_v40 = vpop.eup %13100  ;;  %v2532_v45 = vadd.f32 1.0, %v13099_v32  ;;  %13104 = verf.f32 %v2501_v19  ;;  %v2502_v50 = vmul.f32 0.70710677, %v2438_v23  ;;  %v2547_v52 = vmul.f32 %v2531_v60, %v2483_v13 }
 0x827   :  { %13106 = verf.f32 %v2504_v1  ;;  %v2530_v16 = vadd.f32 1.0, %v13101_v40  ;;  %v2545_v27 = vmul.f32 %v2529_v41, %v2481_v38  ;;  %v2485_v35 = vmul.f32 0.5, %v2435_v28 }
 0x828   :  { %v2548_v36 = vmul.f32 %v2532_v45, %v2484_v53  ;;  %13108 = verf.f32 %v2502_v50  ;;  %v2486_v33 = vmul.f32 0.5, %v2438_v23 }
 0x829   :  { %v2546_v47 = vmul.f32 %v2530_v16, %v2482_v51 }
 0x82a   :  { %v2562_v43 = vpack.c.bf16 %v2548_v36, %v2547_v52 }
 0x82b   :  { %v2561_v26 = vpack.c.bf16 %v2546_v47, %v2545_v27 }
 0x82c   :  { %v11968_v20 = vpop.f32.mrb[72].mxu1 }
 0x82d   :  { %v2459_v18 = vadd.f32 %v11968_v20, %v14941_v29  ;;  %v2450_v30 = vpop.f32.mrb[73].mxu1  ;;  %11990 = vmatprep.mubr.bf16.mxu0 %v2561_v26 }
 0x82e   :  { %v2451_v44 = vadd.f32 %v14941_v29, %v2450_v30  ;;  %v11969_v22 = vpop.f32.mrb[74].mxu1  ;;  %11991 = vmatmul.mubr.bf16.vlgmr.msra.gmra.mrb[80].mxu0 %v2562_v43 }
 0x82f   :  { %v13103_v48 = vpop.eup %13102  ;;  %v2507_v59 = vmul.f32 0.70710677, %v2459_v18  ;;  %v2462_v62 = vadd.f32 %v11969_v22, %v14941_v29  ;;  %v2453_v39 = vpop.f32.mrb[75].mxu1  ;;  %v2491_v47 = vmul.f32 0.5, %v2459_v18 }
 0x830   :  { %v13105_v34 = vpop.eup %13104  ;;  %v2505_v42 = vmul.f32 0.70710677, %v2451_v44  ;;  %v2454_v24 = vadd.f32 %v14941_v29, %v2453_v39  ;;  %v2535_v58 = vadd.f32 1.0, %v13103_v48  ;;  %v2489_v30 = vmul.f32 0.5, %v2451_v44 }
 0x831   :  { %v13107_v2 = vpop.eup %13106  ;;  %13110 = verf.f32 %v2507_v59  ;;  %v2508_v8 = vmul.f32 0.70710677, %v2462_v62  ;;  %v2533_v57 = vadd.f32 1.0, %v13105_v34  ;;  %v2492_v22 = vmul.f32 0.5, %v2462_v62 }
 0x832   :  { %13112 = verf.f32 %v2505_v42  ;;  %v2506_v11 = vmul.f32 0.70710677, %v2454_v24  ;;  %v2536_v56 = vadd.f32 1.0, %v13107_v2  ;;  %v13109_v21 = vpop.eup %13108  ;;  %v2551_v60 = vmul.f32 %v2535_v58, %v2487_v9 }
 0x833   :  { %13114 = verf.f32 %v2508_v8  ;;  %v2534_v12 = vadd.f32 1.0, %v13109_v21  ;;  %v2549_v32 = vmul.f32 %v2533_v57, %v2485_v35  ;;  %v2490_v59 = vmul.f32 0.5, %v2454_v24 }
 0x834   :  { %13116 = verf.f32 %v2506_v11  ;;  %v2552_v19 = vmul.f32 %v2536_v56, %v2488_v3 }
 0x835   :  { %v2550_v13 = vmul.f32 %v2534_v12, %v2486_v33 }
 0x836   :  { %v2564_v1 = vpack.c.bf16 %v2552_v19, %v2551_v60 }
 0x837   :  { %v2563_v49 = vpack.c.bf16 %v2550_v13, %v2549_v32 }
 0x838   :  { %v11972_v41 = vpop.f32.mrb[76].mxu1 }
 0x839   :  { %v2475_v7 = vadd.f32 %v11972_v41, %v14941_v29  ;;  %v2466_v40 = vpop.f32.mrb[77].mxu1  ;;  %11994 = vmatprep.mubr.bf16.mxu0 %v2563_v49  ;;  %v14960_v49 = vld [vmem:[%s18298_s18] ss:$0 sm:$0xff] }
 0x83a   :  { %v2467_v38 = vadd.f32 %v14941_v29, %v2466_v40  ;;  %v11973_v53 = vpop.f32.mrb[78].mxu1  ;;  %11995 = vmatmul.mubr.bf16.gmra.mrb[84].mxu0 %v2564_v1 }
 0x83b   :  { %v13111_v45 = vpop.eup %13110  ;;  %v2511_v28 = vmul.f32 0.70710677, %v2475_v7  ;;  %v2478_v23 = vadd.f32 %v11973_v53, %v14941_v29  ;;  %v2469_v51 = vpop.f32.mrb[79].mxu1  ;;  %v2495_v62 = vmul.f32 0.5, %v2475_v7 }
 0x83c   :  { %v13113_v50 = vpop.eup %13112  ;;  %v2539_v16 = vadd.f32 1.0, %v13111_v45  ;;  %v2509_v52 = vmul.f32 0.70710677, %v2467_v38  ;;  %v2470_v36 = vadd.f32 %v14941_v29, %v2469_v51  ;;  %v2493_v35 = vmul.f32 0.5, %v2467_v38 }
 0x83d   :  { %v13115_v27 = vpop.eup %13114  ;;  %v2537_v43 = vadd.f32 1.0, %v13113_v50  ;;  %13118 = verf.f32 %v2511_v28  ;;  %v2512_v26 = vmul.f32 0.70710677, %v2478_v23  ;;  %v2496_v24 = vmul.f32 0.5, %v2478_v23 }
 0x83e   :  { %v13117_v20 = vpop.eup %13116  ;;  %v2540_v48 = vadd.f32 1.0, %v13115_v27  ;;  %13120 = verf.f32 %v2509_v52  ;;  %v2510_v34 = vmul.f32 0.70710677, %v2470_v36  ;;  %v2555_v42 = vmul.f32 %v2539_v16, %v2491_v47 }
 0x83f   :  { %v2538_v39 = vadd.f32 1.0, %v13117_v20  ;;  %13122 = verf.f32 %v2512_v26  ;;  %v2553_v2 = vmul.f32 %v2537_v43, %v2489_v30  ;;  %v2494_v60 = vmul.f32 0.5, %v2470_v36 }
 0x840   :  { %v2556_v58 = vmul.f32 %v2540_v48, %v2492_v22  ;;  %13124 = verf.f32 %v2510_v34 }
 0x841   :  { %v2554_v9 = vmul.f32 %v2538_v39, %v2490_v59 }
 0x842   :  { %v2566_v29 = vpack.c.bf16 %v2556_v58, %v2555_v42 }
 0x843   :  { %v2565_v3 = vpack.c.bf16 %v2554_v9, %v2553_v2 }
 0x845   :  { %11998 = vmatprep.mubr.bf16.mxu0 %v2565_v3 }
 0x846   :  { %11999 = vmatmul.mubr.bf16.gmra.mrb[88].mxu0 %v2566_v29 }
 0x847   :  { %v13119_v18 = vpop.eup %13118 }
 0x848   :  { %v13121_v8 = vpop.eup %13120  ;;  %v2543_v11 = vadd.f32 1.0, %v13119_v18 }
 0x849   :  { %v13123_v44 = vpop.eup %13122  ;;  %v2541_v57 = vadd.f32 1.0, %v13121_v8 }
 0x84a   :  { %v2544_v56 = vadd.f32 1.0, %v13123_v44  ;;  %v13125_v21 = vpop.eup %13124  ;;  %v2559_v33 = vmul.f32 %v2543_v11, %v2495_v62 }
 0x84b   :  { %v2542_v19 = vadd.f32 1.0, %v13125_v21  ;;  %v2557_v32 = vmul.f32 %v2541_v57, %v2493_v35 }
 0x84c   :  { %v2560_v12 = vmul.f32 %v2544_v56, %v2496_v24 }
 0x84d   :  { %v2558_v13 = vmul.f32 %v2542_v19, %v2494_v60 }
 0x84e   :  { %v2568_v1 = vpack.c.bf16 %v2560_v12, %v2559_v33 }
 0x84f   :  { %v2567_v41 = vpack.c.bf16 %v2558_v13, %v2557_v32 }
 0x851   :  { %12002 = vmatprep.mubr.bf16.mxu0 %v2567_v41 }
 0x852   :  { %12003 = vmatmul.mubr.bf16.gmra.mrb[92].mxu0 %v2568_v1 }
 0x901   :  { %v11992_v40 = vpop.f32.mrb[80].mxu0 }
 0x902   :  { %v2674_v7 = vpop.f32.mrb[81].mxu0  ;;  %v2683_v53 = vadd.f32 %v11992_v40, %v14960_v49 }
 0x903   :  { %v2675_v45 = vadd.f32 %v14960_v49, %v2674_v7  ;;  %v11993_v28 = vpop.f32.mrb[82].mxu0 }
 0x904   :  { %v2677_v38 = vpop.f32.mrb[83].mxu0  ;;  %v2686_v23 = vadd.f32 %v11993_v28, %v14960_v49  ;;  %v14975_v36 = vadd.f32 %v2683_v53, %v14687_v54 }
 0x905   :  { %v2678_v51 = vadd.f32 %v14960_v49, %v2677_v38  ;;  %v14967_v50 = vadd.f32 %v2675_v45, %v14679_v37 }
 0x906   :  { %v14980_v47 = vadd.f32 %v2686_v23, %v14692_v17  ;;  %v2763_v37 = vsel %vm348_vm1, %v14975_v36, 0.0 }
 0x907   :  { %v2757_v16 = vsel %vm348_vm1, %v14967_v50, 0.0  ;;  %v14972_v52 = vadd.f32 %v2678_v51, %v14684_v5 }
 0x908   :  { %2758 = vadd.xlane.f32.xlu0 %v2757_v16  ;;  %v2766_v43 = vsel %vm348_vm1, %v14980_v47, 0.0 }
 0x909   :  { %v2760_v27 = vsel %vm348_vm1, %v14972_v52, 0.0 }
 0x90a   :  { %2761 = vadd.xlane.f32.xlu1 %v2760_v27 }
 0x90c   :  { %2764 = vadd.xlane.f32.xlu0 %v2763_v37 }
 0x90d   :  { %v11996_v5 = vpop.f32.mrb[84].mxu0 }
 0x90e   :  { %2767 = vadd.xlane.f32.xlu1 %v2766_v43  ;;  %v2690_v26 = vpop.f32.mrb[85].mxu0  ;;  %v2699_v54 = vadd.f32 %v11996_v5, %v14960_v49 }
 0x90f   :  { %v2691_v20 = vadd.f32 %v14960_v49, %v2690_v26  ;;  %v11997_v30 = vpop.f32.mrb[86].mxu0 }
 0x910   :  { %v2693_v22 = vpop.f32.mrb[87].mxu0  ;;  %v2702_v48 = vadd.f32 %v11997_v30, %v14960_v49  ;;  %v14994_v39 = vadd.f32 %v2699_v54, %v14711_v6 }
 0x911   :  { %v14989_v17 = vadd.f32 %v2691_v20, %v14703_v61  ;;  %v2694_v59 = vadd.f32 %v14960_v49, %v2693_v22 }
 0x912   :  { %v15002_v58 = vadd.f32 %v2702_v48, %v14716_v14  ;;  %v2775_v2 = vsel %vm348_vm1, %v14994_v39, 0.0 }
 0x913   :  { %v14997_v34 = vadd.f32 %v2694_v59, %v14708_v31  ;;  %v2769_v42 = vsel %vm348_vm1, %v14989_v17, 0.0 }
 0x914   :  { %2770 = vadd.xlane.f32.xlu0 %v2769_v42  ;;  %18299 = vst [vmem:[#allocation18_spill] sm:$0xff] %v15002_v58  ;;  %v2778_v31 = vsel %vm348_vm1, %v15002_v58, 0.0 }
 0x915   :  { %v2772_v61 = vsel %vm348_vm1, %v14997_v34, 0.0 }
 0x916   :  { %2773 = vadd.xlane.f32.xlu1 %v2772_v61 }
 0x918   :  { %2776 = vadd.xlane.f32.xlu0 %v2775_v2 }
 0x919   :  { %v12000_v9 = vpop.f32.mrb[88].mxu0 }
 0x91a   :  { %v2706_v6 = vpop.f32.mrb[89].mxu0  ;;  %v2715_v29 = vadd.f32 %v12000_v9, %v14960_v49  ;;  %2779 = vadd.xlane.f32.xlu1 %v2778_v31 }
 0x91b   :  { %v2707_v3 = vadd.f32 %v14960_v49, %v2706_v6  ;;  %v12001_v18 = vpop.f32.mrb[90].mxu0 }
 0x91c   :  { %v2709_v14 = vpop.f32.mrb[91].mxu0  ;;  %v2718_v11 = vadd.f32 %v12001_v18, %v14960_v49  ;;  %v15018_v62 = vadd.f32 %v2715_v29, %v14735_v46 }
 0x91d   :  { %v15013_v8 = vadd.f32 %v2707_v3, %v14727_v4  ;;  %v2710_v44 = vadd.f32 %v14960_v49, %v2709_v14 }
 0x91e   :  { %18301 = vst [vmem:[#allocation20_spill] sm:$0xff] %v15018_v62  ;;  %v15026_v56 = vadd.f32 %v2718_v11, %v14740_v0  ;;  %v2787_v21 = vsel %vm348_vm1, %v15018_v62, 0.0 }
 0x91f   :  { %18300 = vst [vmem:[#allocation19_spill] sm:$0xff] %v15013_v8  ;;  %v15021_v57 = vadd.f32 %v2710_v44, %v14732_v15  ;;  %v2781_v24 = vsel %vm348_vm1, %v15013_v8, 0.0 }
 0x920   :  { %2782 = vadd.xlane.f32.xlu0 %v2781_v24  ;;  %18303 = vst [vmem:[#allocation22_spill] sm:$0xff] %v15026_v56  ;;  %v2790_v46 = vsel %vm348_vm1, %v15026_v56, 0.0 }
 0x921   :  { %18302 = vst [vmem:[#allocation21_spill] sm:$0xff] %v15021_v57  ;;  %v2784_v4 = vsel %vm348_vm1, %v15021_v57, 0.0 }
 0x922   :  { %2785 = vadd.xlane.f32.xlu1 %v2784_v4 }
 0x924   :  { %2788 = vadd.xlane.f32.xlu0 %v2787_v21 }
 0x925   :  { %v12004_v15 = vpop.f32.mrb[92].mxu0 }
 0x926   :  { %2791 = vadd.xlane.f32.xlu1 %v2790_v46  ;;  %v2722_v35 = vpop.f32.mrb[93].mxu0  ;;  %v2731_v33 = vadd.f32 %v12004_v15, %v14960_v49 }
 0x927   :  { %v2723_v12 = vadd.f32 %v14960_v49, %v2722_v35  ;;  %v12005_v0 = vpop.f32.mrb[94].mxu0 }
 0x928   :  { %v2725_v60 = vpop.f32.mrb[95].mxu0  ;;  %v2734_v32 = vadd.f32 %v12005_v0, %v14960_v49  ;;  %v15042_v1 = vadd.f32 %v2731_v33, %v14759_v55 }
 0x929   :  { %v15037_v19 = vadd.f32 %v2723_v12, %v14751_v25  ;;  %v2726_v13 = vadd.f32 %v14960_v49, %v2725_v60 }
 0x92a   :  { %18305 = vst [vmem:[#allocation24_spill] sm:$0xff] %v15042_v1  ;;  %v15050_v7 = vadd.f32 %v2734_v32, %v14764_v63  ;;  %v2799_v49 = vsel %vm348_vm1, %v15042_v1, 0.0 }
 0x92b   :  { %18304 = vst [vmem:[#allocation23_spill] sm:$0xff] %v15037_v19  ;;  %v15045_v41 = vadd.f32 %v2726_v13, %v14756_v10  ;;  %v2793_v40 = vsel %vm348_vm1, %v15037_v19, 0.0  ;;  %v12834_v10 = vld [vmem:[%s13863_s14 + $0x20] sm:$0xff]  }
 0x92c   :  { %2794 = vadd.xlane.f32.xlu0 %v2793_v40  ;;  %18307 = vst [vmem:[#allocation26_spill] sm:$0xff] %v15050_v7  ;;  %v2802_v55 = vsel %vm348_vm1, %v15050_v7, 0.0  ;;  %12030 = vmatprep.subr.bf16.mxu0 %v12834_v10 }
 0x92d   :  { %18306 = vst [vmem:[#allocation25_spill] sm:$0xff] %v15045_v41  ;;  %v2796_v25 = vsel %vm348_vm1, %v15045_v41, 0.0  ;;  %12031 = vmatpush3.bf16.msra.mxu0 %v12834_v10 }
 0x92e   :  { %2797 = vadd.xlane.f32.xlu1 %v2796_v25 }
 0x930   :  { %2800 = vadd.xlane.f32.xlu0 %v2799_v49 }
 0x932   :  { %2803 = vadd.xlane.f32.xlu1 %v2802_v55 }
 0x995   :  { %v2759_v53 = vpop.xlane.xlu0 %2758 }
 0x996   :  { %v2805_v45 = vmul.f32 0.015625, %v2759_v53 }
 0x997   :  { %v2762_v28 = vpop.xlane.xlu1 %2761 }
 0x998   :  { %v15060_v63 = vsub.f32 %v14967_v50, %v2805_v45  ;;  %v2806_v38 = vmul.f32 0.015625, %v2762_v28 }
 0x999   :  { %v2765_v23 = vpop.xlane.xlu0 %2764 }
 0x99a   :  { %v15063_v51 = vsub.f32 %v14972_v52, %v2806_v38  ;;  %v2807_v16 = vmul.f32 0.015625, %v2765_v23  ;;  %v2837_v27 = vmul.f32 %v15060_v63, %v15060_v63 }
 0x99b   :  { %v2768_v37 = vpop.xlane.xlu1 %2767 }
 0x99c   :  { %v15068_v43 = vsub.f32 %v14975_v36, %v2807_v16  ;;  %v2808_v5 = vmul.f32 0.015625, %v2768_v37  ;;  %v2853_v26 = vsel %vm348_vm1, %v2837_v27, 0.0  ;;  %v2838_v54 = vmul.f32 %v15063_v51, %v15063_v51 }
 0x99d   :  { %2854 = vadd.xlane.f32.xlu0 %v2853_v26 }
 0x99e   :  { %v15074_v20 = vsub.f32 %v14980_v47, %v2808_v5  ;;  %v2856_v30 = vsel %vm348_vm1, %v2838_v54, 0.0  ;;  %v2839_v22 = vmul.f32 %v15068_v43, %v15068_v43 }
 0x99f   :  { %2857 = vadd.xlane.f32.xlu1 %v2856_v30 }
 0x9a0   :  { %v2859_v48 = vsel %vm348_vm1, %v2839_v22, 0.0  ;;  %v2840_v59 = vmul.f32 %v15074_v20, %v15074_v20 }
 0x9a1   :  { %2860 = vadd.xlane.f32.xlu0 %v2859_v48  ;;  %v2771_v42 = vpop.xlane.xlu0 %2770 }
 0x9a2   :  { %v2862_v61 = vsel %vm348_vm1, %v2840_v59, 0.0  ;;  %v2809_v2 = vmul.f32 0.015625, %v2771_v42 }
 0x9a3   :  { %2863 = vadd.xlane.f32.xlu1 %v2862_v61  ;;  %v2774_v9 = vpop.xlane.xlu1 %2773 }
 0x9a4   :  { %v15084_v6 = vsub.f32 %v14989_v17, %v2809_v2  ;;  %v2810_v31 = vmul.f32 0.015625, %v2774_v9 }
 0x9a5   :  { %v2777_v29 = vpop.xlane.xlu0 %2776 }
 0x9a6   :  { %v15087_v3 = vsub.f32 %v14997_v34, %v2810_v31  ;;  %v2811_v18 = vmul.f32 0.015625, %v2777_v29  ;;  %v2841_v14 = vmul.f32 %v15084_v6, %v15084_v6 }
 0x9a7   :  { %v2780_v11 = vpop.xlane.xlu1 %2779 }
 0x9a8   :  { %v15092_v44 = vsub.f32 %v14994_v39, %v2811_v18  ;;  %v2812_v24 = vmul.f32 0.015625, %v2780_v11  ;;  %v2865_v4 = vsel %vm348_vm1, %v2841_v14, 0.0  ;;  %v2842_v21 = vmul.f32 %v15087_v3, %v15087_v3 }
 0x9a9   :  { %2866 = vadd.xlane.f32.xlu0 %v2865_v4 }
 0x9aa   :  { %v15098_v46 = vsub.f32 %v15002_v58, %v2812_v24  ;;  %v2868_v15 = vsel %vm348_vm1, %v2842_v21, 0.0  ;;  %v2843_v35 = vmul.f32 %v15092_v44, %v15092_v44  ;;  %v12835_v21 = vld [vmem:[%s13863_s14 + $0x28] sm:$0xff]  }
 0x9ab   :  { %2869 = vadd.xlane.f32.xlu1 %v2868_v15  ;;  %12032 = vmatprep.subr.bf16.mxu0 %v12835_v21 }
 0x9ac   :  { %v2871_v12 = vsel %vm348_vm1, %v2843_v35, 0.0  ;;  %v2844_v0 = vmul.f32 %v15098_v46, %v15098_v46  ;;  %12033 = vmatpush3.bf16.msra.mxu0 %v12835_v21 }
 0x9ad   :  { %v2783_v33 = vpop.xlane.xlu0 %2782  ;;  %2872 = vadd.xlane.f32.xlu0 %v2871_v12  ;;  %v12836_v12 = vld [vmem:[%s13858_s8 + $0x20] sm:$0xff]  }
 0x9ae   :  { %v2813_v60 = vmul.f32 0.015625, %v2783_v33  ;;  %v2874_v13 = vsel %vm348_vm1, %v2844_v0, 0.0  ;;  %v12837_v0 = vld [vmem:[%s13863_s14 + $0x30] sm:$0xff]   ;;  %12006 = vmatprep.subr.bf16.mxu1 %v12836_v12 }
 0x9af   :  { %v2786_v32 = vpop.xlane.xlu1 %2785  ;;  %2875 = vadd.xlane.f32.xlu1 %v2874_v13  ;;  %12034 = vmatprep.subr.bf16.mxu0 %v12837_v0 }
 0x9b0   :  { %v15108_v40 = vsub.f32 %v15013_v8, %v2813_v60  ;;  %v2814_v25 = vmul.f32 0.015625, %v2786_v32  ;;  %12007 = vmatpush3.bf16.msra.mxu1 %v12836_v12  ;;  %12035 = vmatpush3.bf16.msra.mxu0 %v12837_v0 }
 0x9b1   :  { %v2789_v49 = vpop.xlane.xlu0 %2788 }
 0x9b2   :  { %v15111_v55 = vsub.f32 %v15021_v57, %v2814_v25  ;;  %v2815_v10 = vmul.f32 0.015625, %v2789_v49  ;;  %v2845_v53 = vmul.f32 %v15108_v40, %v15108_v40  ;;  %v12838_v25 = vld [vmem:[%s13858_s8 + $0x28] sm:$0xff]   ;;  %v12839_v49 = vld [vmem:[%s13863_s14 + $0x38] sm:$0xff]  }
 0x9b3   :  { %v2792_v45 = vpop.xlane.xlu1 %2791  ;;  %12008 = vmatprep.subr.bf16.mxu1 %v12838_v25  ;;  %12036 = vmatprep.subr.bf16.mxu0 %v12839_v49 }
 0x9b4   :  { %v15116_v28 = vsub.f32 %v15018_v62, %v2815_v10  ;;  %v2816_v38 = vmul.f32 0.015625, %v2792_v45  ;;  %v2877_v23 = vsel %vm348_vm1, %v2845_v53, 0.0  ;;  %v2846_v16 = vmul.f32 %v15111_v55, %v15111_v55  ;;  %12009 = vmatpush3.bf16.msra.mxu1 %v12838_v25  ;;  %v12840_v10 = vld [vmem:[%s13858_s8 + $0x30] sm:$0xff]   ;;  %12037 = vmatpush3.bf16.msra.mxu0 %v12839_v49  ;;  %v12841_v53 = vld [vmem:[%s13858_s8 + $0x38] sm:$0xff]   ;;  %v15163_v45 = vld [vmem:[%s13828_s13] sm:$0xff]  }
 0x9b5   :  { %2878 = vadd.xlane.f32.xlu0 %v2877_v23  ;;  %12010 = vmatprep.subr.bf16.mxu1 %v12840_v10 }
 0x9b6   :  { %v15122_v27 = vsub.f32 %v15026_v56, %v2816_v38  ;;  %v2880_v37 = vsel %vm348_vm1, %v2846_v16, 0.0  ;;  %v2847_v5 = vmul.f32 %v15116_v28, %v15116_v28  ;;  %12078 = vmatprep.subr.bf16.mxu0 %v15163_v45  ;;  %v15167_v38 = vld [vmem:[%s13868_s19 + $0x20] sm:$0xff]  }
 0x9b7   :  { %2881 = vadd.xlane.f32.xlu1 %v2880_v37 }
 0x9b8   :  { %v2883_v26 = vsel %vm348_vm1, %v2847_v5, 0.0  ;;  %v2848_v54 = vmul.f32 %v15122_v27, %v15122_v27  ;;  %12011 = vmatpush3.bf16.msra.mxu1 %v12840_v10  ;;  %v15177_v10 = vld [vmem:[%s13853_s3 + $0x1] ss:$0 sm:$0xff] }
 0x9b9   :  { %2884 = vadd.xlane.f32.xlu0 %v2883_v26  ;;  %v2795_v30 = vpop.xlane.xlu0 %2794  ;;  %12012 = vmatprep.subr.bf16.mxu1 %v12841_v53 }
 0x9ba   :  { %v2886_v22 = vsel %vm348_vm1, %v2848_v54, 0.0  ;;  %v2817_v48 = vmul.f32 0.015625, %v2795_v30 }
 0x9bb   :  { %2887 = vadd.xlane.f32.xlu1 %v2886_v22  ;;  %v2798_v59 = vpop.xlane.xlu1 %2797 }
 0x9bc   :  { %v15132_v42 = vsub.f32 %v15037_v19, %v2817_v48  ;;  %v2818_v61 = vmul.f32 0.015625, %v2798_v59  ;;  %12013 = vmatpush3.bf16.msra.mxu1 %v12841_v53 }
 0x9bd   :  { %v2801_v2 = vpop.xlane.xlu0 %2800  ;;  %12054 = vmatprep.subr.bf16.mxu1 %v15167_v38 }
 0x9be   :  { %v15135_v9 = vsub.f32 %v15045_v41, %v2818_v61  ;;  %v2819_v31 = vmul.f32 0.015625, %v2801_v2  ;;  %v2849_v29 = vmul.f32 %v15132_v42, %v15132_v42 }
 0x9bf   :  { %v2804_v18 = vpop.xlane.xlu1 %2803 }
 0x9c0   :  { %v15140_v14 = vsub.f32 %v15042_v1, %v2819_v31  ;;  %v2820_v11 = vmul.f32 0.015625, %v2804_v18  ;;  %v2889_v24 = vsel %vm348_vm1, %v2849_v29, 0.0  ;;  %v2850_v4 = vmul.f32 %v15135_v9, %v15135_v9 }
 0x9c1   :  { %2890 = vadd.xlane.f32.xlu0 %v2889_v24  ;;  %v15171_v24 = vld [vmem:[%s13848_s29 + $0x1] ss:$0 sm:$0xff] }
 0x9c2   :  { %v15147_v15 = vsub.f32 %v15050_v7, %v2820_v11  ;;  %v2892_v35 = vsel %vm348_vm1, %v2850_v4, 0.0  ;;  %v2851_v33 = vmul.f32 %v15140_v14, %v15140_v14 }
 0x9c3   :  { %2893 = vadd.xlane.f32.xlu1 %v2892_v35 }
 0x9c4   :  { %v2895_v60 = vsel %vm348_vm1, %v2851_v33, 0.0  ;;  %v2852_v32 = vmul.f32 %v15147_v15, %v15147_v15 }
 0x9c5   :  { %2896 = vadd.xlane.f32.xlu0 %v2895_v60 }
 0x9c6   :  { %v2898_v13 = vsel %vm348_vm1, %v2852_v32, 0.0 }
 0x9c7   :  { %2899 = vadd.xlane.f32.xlu1 %v2898_v13 }
 0xa2a   :  { %v2855_v23 = vpop.xlane.xlu0 %2854 }
 0xa2b   :  { %v2901_v16 = vmul.f32 0.015625, %v2855_v23 }
 0xa2c   :  { %v2858_v37 = vpop.xlane.xlu1 %2857 }
 0xa2d   :  { %v2917_v5 = vadd.f32 1e-05, %v2901_v16  ;;  %v2902_v26 = vmul.f32 0.015625, %v2858_v37 }
 0xa2e   :  { %v2861_v54 = vpop.xlane.xlu0 %2860 }
 0xa2f   :  { %13126 = vrsqrt.f32 %v2917_v5  ;;  %v2918_v30 = vadd.f32 1e-05, %v2902_v26  ;;  %v2903_v22 = vmul.f32 0.015625, %v2861_v54 }
 0xa30   :  { %v2864_v48 = vpop.xlane.xlu1 %2863 }
 0xa31   :  { %13128 = vrsqrt.f32 %v2918_v30  ;;  %v2919_v59 = vadd.f32 1e-05, %v2903_v22  ;;  %v2904_v61 = vmul.f32 0.015625, %v2864_v48 }
 0xa33   :  { %13130 = vrsqrt.f32 %v2919_v59  ;;  %v2920_v2 = vadd.f32 1e-05, %v2904_v61 }
 0xa35   :  { %13132 = vrsqrt.f32 %v2920_v2 }
 0xa36   :  { %v2867_v31 = vpop.xlane.xlu0 %2866 }
 0xa37   :  { %v2905_v29 = vmul.f32 0.015625, %v2867_v31 }
 0xa38   :  { %v2870_v11 = vpop.xlane.xlu1 %2869 }
 0xa39   :  { %v13127_v18 = vpop.eup %13126  ;;  %v2921_v4 = vadd.f32 1e-05, %v2905_v29  ;;  %v2906_v21 = vmul.f32 0.015625, %v2870_v11 }
 0xa3a   :  { %v2949_v35 = vmul.f32 %v13127_v18, %v15060_v63  ;;  %v2873_v12 = vpop.xlane.xlu0 %2872 }
 0xa3b   :  { %v13129_v33 = vpop.eup %13128  ;;  %13134 = vrsqrt.f32 %v2921_v4  ;;  %v2922_v0 = vadd.f32 1e-05, %v2906_v21  ;;  %v2907_v60 = vmul.f32 0.015625, %v2873_v12  ;;  %v12843_v21 = vld [vmem:[%s13868_s19 + $0x28] sm:$0xff]  }
 0xa3c   :  { %v2950_v32 = vmul.f32 %v13129_v33, %v15063_v51  ;;  %v2876_v25 = vpop.xlane.xlu1 %2875  ;;  %v2971_v49 = vmul.f32 %v15171_v24, %v2949_v35 }
 0xa3d   :  { %v13131_v13 = vpop.eup %13130  ;;  %13136 = vrsqrt.f32 %v2922_v0  ;;  %v2923_v23 = vadd.f32 1e-05, %v2907_v60  ;;  %v2908_v16 = vmul.f32 0.015625, %v2876_v25 }
 0xa3e   :  { %v2951_v53 = vmul.f32 %v13131_v13, %v15068_v43  ;;  %v2972_v63 = vmul.f32 %v15171_v24, %v2950_v32  ;;  %v2993_v54 = vadd.f32 %v15177_v10, %v2971_v49 }
 0xa3f   :  { %v13133_v37 = vpop.eup %13132  ;;  %13138 = vrsqrt.f32 %v2923_v23  ;;  %v2924_v51 = vadd.f32 1e-05, %v2908_v16  ;;  %v15208_v23 = vld [vmem:[%s13828_s13 + $0x8] sm:$0xff]  }
 0xa40   :  { %v2973_v5 = vmul.f32 %v15171_v24, %v2951_v53  ;;  %v2952_v26 = vmul.f32 %v13133_v37, %v15074_v20  ;;  %v2994_v30 = vadd.f32 %v15177_v10, %v2972_v63  ;;  %v12844_v53 = vld [vmem:[%s13868_s19 + $0x30] sm:$0xff]  }
 0xa41   :  { %13140 = vrsqrt.f32 %v2924_v51 }
 0xa42   :  { %v2974_v22 = vmul.f32 %v15171_v24, %v2952_v26  ;;  %v2879_v43 = vpop.xlane.xlu0 %2878  ;;  %v15186_v59 = vpack.c.bf16 %v2994_v30, %v2993_v54  ;;  %v2995_v61 = vadd.f32 %v15177_v10, %v2973_v5  ;;  %v15219_v54 = vld [vmem:[%s13828_s13 + $0x10] sm:$0xff]  }
 0xa43   :  { %v2909_v48 = vmul.f32 0.015625, %v2879_v43  ;;  %v12845_v43 = vld [vmem:[%s13868_s19 + $0x38] sm:$0xff]  }
 0xa44   :  { %v2996_v2 = vadd.f32 %v15177_v10, %v2974_v22  ;;  %v2882_v31 = vpop.xlane.xlu1 %2881  ;;  %12014 = vmatprep.mubr.msk.bf16.mxu1 %vm348_vm1, %v15186_v59  ;;  %12038 = vmatprep.mubr.msk.bf16.mxu0 %vm348_vm1, %v15186_v59 }
 0xa45   :  { %v2925_v20 = vadd.f32 1e-05, %v2909_v48  ;;  %v2910_v29 = vmul.f32 0.015625, %v2882_v31  ;;  %v13135_v18 = vpop.eup %13134 }
 0xa46   :  { %v2885_v11 = vpop.xlane.xlu0 %2884  ;;  %v15194_v4 = vpack.c.bf16 %v2996_v2, %v2995_v61  ;;  %v2953_v12 = vmul.f32 %v13135_v18, %v15084_v6 }
 0xa47   :  { %13142 = vrsqrt.f32 %v2925_v20  ;;  %v2926_v35 = vadd.f32 1e-05, %v2910_v29  ;;  %v2911_v33 = vmul.f32 0.015625, %v2885_v11  ;;  %v13137_v0 = vpop.eup %13136 }
 0xa48   :  { %v2888_v60 = vpop.xlane.xlu1 %2887  ;;  %12015 = vmatmul.mubr.msk.bf16.vlgmr.msra.gmra.mrb[80].mxu1 %vm348_vm1, %v15194_v4  ;;  %12039 = vmatmul.mubr.msk.bf16.vlgmr.msra.gmra.mrb[96].mxu0 %vm348_vm1, %v15194_v4  ;;  %v2954_v25 = vmul.f32 %v13137_v0, %v15087_v3  ;;  %v2975_v6 = vmul.f32 %v15171_v24, %v2953_v12 }
 0xa49   :  { %13144 = vrsqrt.f32 %v2926_v35  ;;  %v2927_v32 = vadd.f32 1e-05, %v2911_v33  ;;  %v2912_v13 = vmul.f32 0.015625, %v2888_v60  ;;  %12055 = vmatpush3.bf16.msra.mxu1 %v15167_v38  ;;  %12079 = vmatpush3.bf16.msra.mxu0 %v15163_v45  ;;  %v13139_v49 = vpop.eup %13138  ;;  %v15237_v33 = vld [vmem:[%s13828_s13 + $0x18] sm:$0xff]  }
 0xa4a   :  { %12056 = vmatprep.subr.bf16.mxu1 %v12843_v21  ;;  %12080 = vmatprep.subr.bf16.mxu0 %v15208_v23  ;;  %v2976_v37 = vmul.f32 %v15171_v24, %v2954_v25  ;;  %v2955_v3 = vmul.f32 %v13139_v49, %v15092_v44  ;;  %v2997_v63 = vadd.f32 %v15177_v10, %v2975_v6 }
 0xa4b   :  { %13146 = vrsqrt.f32 %v2927_v32  ;;  %v2928_v16 = vadd.f32 1e-05, %v2912_v13  ;;  %v13141_v38 = vpop.eup %13140 }
 0xa4c   :  { %v2998_v5 = vadd.f32 %v15177_v10, %v2976_v37  ;;  %v2956_v26 = vmul.f32 %v13141_v38, %v15098_v46  ;;  %v2977_v51 = vmul.f32 %v15171_v24, %v2955_v3  ;;  %v13742_v37 = vld [vmem:[%s13833_s17] sm:$0x3] }
 0xa4d   :  { %13148 = vrsqrt.f32 %v2928_v16  ;;  %12057 = vmatpush3.bf16.msra.mxu1 %v12843_v21  ;;  %12081 = vmatpush3.bf16.msra.mxu0 %v15208_v23 }
 0xa4e   :  { %12058 = vmatprep.subr.bf16.mxu1 %v12844_v53  ;;  %12082 = vmatprep.subr.bf16.mxu0 %v15219_v54  ;;  %v2891_v30 = vpop.xlane.xlu0 %2890  ;;  %v15222_v44 = vpack.c.bf16 %v2998_v5, %v2997_v63  ;;  %v2978_v22 = vmul.f32 %v15171_v24, %v2956_v26  ;;  %v2999_v2 = vadd.f32 %v15177_v10, %v2977_v51 }
 0xa4f   :  { %v2913_v48 = vmul.f32 0.015625, %v2891_v30 }
 0xa50   :  { %v2894_v46 = vpop.xlane.xlu1 %2893  ;;  %12018 = vmatprep.mubr.msk.bf16.mxu1 %vm348_vm1, %v15222_v44  ;;  %12042 = vmatprep.mubr.msk.bf16.mxu0 %vm348_vm1, %v15222_v44  ;;  %v3000_v31 = vadd.f32 %v15177_v10, %v2978_v22 }
 0xa51   :  { %v13143_v61 = vpop.eup %13142  ;;  %v2929_v20 = vadd.f32 1e-05, %v2913_v48  ;;  %v2914_v29 = vmul.f32 0.015625, %v2894_v46  ;;  %12059 = vmatpush3.bf16.msra.mxu1 %v12844_v53  ;;  %12083 = vmatpush3.bf16.msra.mxu0 %v15219_v54 }
 0xa52   :  { %v2957_v18 = vmul.f32 %v13143_v61, %v15108_v40  ;;  %v2897_v21 = vpop.xlane.xlu0 %2896  ;;  %v15234_v35 = vpack.c.bf16 %v3000_v31, %v2999_v2  ;;  %12060 = vmatprep.subr.bf16.mxu1 %v12845_v43  ;;  %12084 = vmatprep.subr.bf16.mxu0 %v15237_v33 }
 0xa53   :  { %v13145_v11 = vpop.eup %13144  ;;  %13150 = vrsqrt.f32 %v2929_v20  ;;  %v2930_v12 = vadd.f32 1e-05, %v2914_v29  ;;  %v2915_v0 = vmul.f32 0.015625, %v2897_v21 }
 0xa54   :  { %v2958_v60 = vmul.f32 %v13145_v11, %v15111_v55  ;;  %v2900_v40 = vpop.xlane.xlu1 %2899  ;;  %12019 = vmatmul.mubr.msk.bf16.gmra.mrb[84].mxu1 %vm348_vm1, %v15234_v35  ;;  %12043 = vmatmul.mubr.msk.bf16.gmra.mrb[100].mxu0 %vm348_vm1, %v15234_v35  ;;  %v2979_v13 = vmul.f32 %v15171_v24, %v2957_v18 }
 0xa55   :  { %v13147_v32 = vpop.eup %13146  ;;  %13152 = vrsqrt.f32 %v2930_v12  ;;  %v2931_v25 = vadd.f32 1e-05, %v2915_v0  ;;  %v2916_v49 = vmul.f32 0.015625, %v2900_v40  ;;  %12061 = vmatpush3.bf16.msra.mxu1 %v12845_v43  ;;  %12085 = vmatpush3.bf16.msra.mxu0 %v15237_v33 }
 0xa56   :  { %v2980_v6 = vmul.f32 %v15171_v24, %v2958_v60  ;;  %v3001_v53 = vadd.f32 %v15177_v10, %v2979_v13  ;;  %v2959_v16 = vmul.f32 %v13147_v32, %v15116_v28  ;;  %12102 = vmatprep.subr.bf16.mxu1 %v15163_v45  ;;  %12760 = vmatprep.subr.msk.bf16.mxu0 %vm1581_vm2, %v13742_v37 }
 0xa57   :  { %v13149_v55 = vpop.eup %13148  ;;  %13154 = vrsqrt.f32 %v2931_v25  ;;  %v2932_v3 = vadd.f32 1e-05, %v2916_v49 }
 0xa58   :  { %v3002_v38 = vadd.f32 %v15177_v10, %v2980_v6  ;;  %v2960_v63 = vmul.f32 %v13149_v55, %v15122_v27  ;;  %v2981_v5 = vmul.f32 %v15171_v24, %v2959_v16 }
 0xa59   :  { %13156 = vrsqrt.f32 %v2932_v3 }
 0xa5a   :  { %v3013_v26 = vpack.c.bf16 %v3002_v38, %v3001_v53  ;;  %v2982_v51 = vmul.f32 %v15171_v24, %v2960_v63  ;;  %v3003_v28 = vadd.f32 %v15177_v10, %v2981_v5  ;;  %v18308_v5 = vld [vmem:[#allocation28_spill] sm:$0xff] }
 0xa5c   :  { %12022 = vmatprep.mubr.msk.bf16.mxu1 %vm348_vm1, %v3013_v26  ;;  %12046 = vmatprep.mubr.msk.bf16.mxu0 %vm348_vm1, %v3013_v26  ;;  %v3004_v30 = vadd.f32 %v15177_v10, %v2982_v51 }
 0xa5d   :  { %v13151_v22 = vpop.eup %13150 }
 0xa5e   :  { %v3014_v43 = vpack.c.bf16 %v3004_v30, %v3003_v28  ;;  %v2961_v48 = vmul.f32 %v13151_v22, %v15132_v42 }
 0xa5f   :  { %v13153_v61 = vpop.eup %13152 }
 0xa60   :  { %12023 = vmatmul.mubr.msk.bf16.gmra.mrb[88].mxu1 %vm348_vm1, %v3014_v43  ;;  %12047 = vmatmul.mubr.msk.bf16.gmra.mrb[104].mxu0 %vm348_vm1, %v3014_v43  ;;  %v2962_v27 = vmul.f32 %v13153_v61, %v15135_v9  ;;  %v2983_v46 = vmul.f32 %v15171_v24, %v2961_v48 }
 0xa61   :  { %v13155_v2 = vpop.eup %13154 }
 0xa62   :  { %v2984_v31 = vmul.f32 %v15171_v24, %v2962_v27  ;;  %v2963_v20 = vmul.f32 %v13155_v2, %v15140_v14  ;;  %v3005_v18 = vadd.f32 %v15177_v10, %v2983_v46 }
 0xa63   :  { %v13157_v29 = vpop.eup %13156 }
 0xa64   :  { %v3006_v11 = vadd.f32 %v15177_v10, %v2984_v31  ;;  %v2964_v42 = vmul.f32 %v13157_v29, %v15147_v15  ;;  %v2985_v21 = vmul.f32 %v15171_v24, %v2963_v20  ;;  %v15300_v15 = vld [vmem:[%s13873_s24 + $0x1] ss:$0 sm:$0xff] }
 0xa66   :  { %v3015_v12 = vpack.c.bf16 %v3006_v11, %v3005_v18  ;;  %v2986_v0 = vmul.f32 %v15171_v24, %v2964_v42  ;;  %v3007_v9 = vadd.f32 %v15177_v10, %v2985_v21 }
 0xa68   :  { %12026 = vmatprep.mubr.msk.bf16.mxu1 %vm348_vm1, %v3015_v12  ;;  %12050 = vmatprep.mubr.msk.bf16.mxu0 %vm348_vm1, %v3015_v12  ;;  %v3008_v14 = vadd.f32 %v15177_v10, %v2986_v0 }
 0xa6a   :  { %v3016_v60 = vpack.c.bf16 %v3008_v14, %v3007_v9 }
 0xa6c   :  { %12027 = vmatmul.mubr.msk.bf16.gmra.mrb[92].mxu1 %vm348_vm1, %v3016_v60  ;;  %12051 = vmatmul.mubr.msk.bf16.gmra.mrb[108].mxu0 %vm348_vm1, %v3016_v60 }
 0xa6d   :  { %12062 = vmatprep.mubr.msk.bf16.mxu1 %vm348_vm1, %v15186_v59 }
 0xa74   :  { %12063 = vmatmul.mubr.msk.bf16.vlgmr.msra.gmra.mrb[96].mxu1 %vm348_vm1, %v15194_v4 }
 0xa75   :  { %12066 = vmatprep.mubr.msk.bf16.mxu1 %vm348_vm1, %v15222_v44  ;;  %12103 = vmatpush3.bf16.msra.mxu1 %v15163_v45  ;;  %v15303_v45 = vld [vmem:[%s13878_s30 + $0x1] ss:$0 sm:$0xff] }
 0xa76   :  { %12104 = vmatprep.subr.bf16.mxu1 %v15208_v23 }
 0xa79   :  { %12105 = vmatpush3.bf16.msra.mxu1 %v15208_v23 }
 0xa7a   :  { %12106 = vmatprep.subr.bf16.mxu1 %v15219_v54 }
 0xa7c   :  { %12067 = vmatmul.mubr.msk.bf16.gmra.mrb[100].mxu1 %vm348_vm1, %v15234_v35 }
 0xa7d   :  { %12070 = vmatprep.mubr.msk.bf16.mxu1 %vm348_vm1, %v3013_v26  ;;  %12107 = vmatpush3.bf16.msra.mxu1 %v15219_v54 }
 0xa7e   :  { %12108 = vmatprep.subr.bf16.mxu1 %v15237_v33 }
 0xa81   :  { %12109 = vmatpush3.bf16.msra.mxu1 %v15237_v33 }
 0xa82   :  { %12761 = vmatprep.subr.msk.bf16.mxu1 %vm1581_vm2, %v13742_v37 }
 0xa84   :  { %12071 = vmatmul.mubr.msk.bf16.gmra.mrb[104].mxu1 %vm348_vm1, %v3014_v43 }
 0xa85   :  { %12074 = vmatprep.mubr.msk.bf16.mxu1 %vm348_vm1, %v3015_v12 }
 0xa8c   :  { %12075 = vmatmul.mubr.msk.bf16.gmra.mrb[108].mxu1 %vm348_vm1, %v3016_v60 }
 0xb1b   :  { %v12016_v24 = vpop.f32.mrb[80].mxu1  ;;  %v12040_v10 = vpop.f32.mrb[96].mxu0 }
 0xb1c   :  { %v3125_v59 = vadd.f32 %v12016_v24, %v15300_v15  ;;  %v3263_v4 = vadd.f32 %v12040_v10, %v15303_v45  ;;  %v3116_v23 = vpop.f32.mrb[81].mxu1  ;;  %v3254_v54 = vpop.f32.mrb[97].mxu0 }
 0xb1d   :  { %v3117_v44 = vadd.f32 %v15300_v15, %v3116_v23  ;;  %v3255_v35 = vadd.f32 %v15303_v45, %v3254_v54  ;;  %v12017_v33 = vpop.f32.mrb[82].mxu1  ;;  %v12041_v32 = vpop.f32.mrb[98].mxu0 }
 0xb1e   :  { %v3457_v40 = vmul.f32 %v3263_v4, %v3125_v59  ;;  %v3128_v13 = vadd.f32 %v12017_v33, %v15300_v15  ;;  %v3266_v25 = vadd.f32 %v12041_v32, %v15303_v45  ;;  %v3119_v49 = vpop.f32.mrb[83].mxu1  ;;  %v3257_v6 = vpop.f32.mrb[99].mxu0 }
 0xb1f   :  { %v3455_v55 = vmul.f32 %v3255_v35, %v3117_v44  ;;  %v3120_v53 = vadd.f32 %v15300_v15, %v3119_v49  ;;  %v3258_v16 = vadd.f32 %v15303_v45, %v3257_v6 }
 0xb20   :  { %v3458_v37 = vmul.f32 %v3266_v25, %v3128_v13 }
 0xb21   :  { %v3456_v3 = vmul.f32 %v3258_v16, %v3120_v53 }
 0xb22   :  { %v3472_v38 = vpack.c.bf16 %v3458_v37, %v3457_v40 }
 0xb23   :  { %v3471_v63 = vpack.c.bf16 %v3456_v3, %v3455_v55 }
 0xb25   :  { %12086 = vmatprep.mubr.msk.bf16.mxu0 %vm348_vm1, %v3471_v63 }
 0xb26   :  { %12087 = vmatmul.mubr.msk.bf16.vlgmr.msra.gmra.mrb[112].mxu0 %vm348_vm1, %v3472_v38 }
 0xb27   :  { %12127 = vmatpush3.bf16.msra.mxu0 %v18308_v5  ;;  %v12020_v26 = vpop.f32.mrb[84].mxu1  ;;  %v12044_v51 = vpop.f32.mrb[100].mxu0 }
 0xb28   :  { %v15317_v28 = vadd.f32 %v12020_v26, %v15300_v15  ;;  %v15320_v30 = vadd.f32 %v12044_v51, %v15303_v45  ;;  %v3132_v22 = vpop.f32.mrb[85].mxu1  ;;  %v3270_v43 = vpop.f32.mrb[101].mxu0 }
 0xb29   :  { %v15323_v48 = vadd.f32 %v15300_v15, %v3132_v22  ;;  %v15326_v61 = vadd.f32 %v15303_v45, %v3270_v43  ;;  %v12021_v27 = vpop.f32.mrb[86].mxu1  ;;  %v12045_v46 = vpop.f32.mrb[102].mxu0 }
 0xb2a   :  { %v3461_v2 = vmul.f32 %v15320_v30, %v15317_v28  ;;  %v15331_v31 = vadd.f32 %v12021_v27, %v15300_v15  ;;  %v15334_v20 = vadd.f32 %v12045_v46, %v15303_v45  ;;  %v3135_v29 = vpop.f32.mrb[87].mxu1  ;;  %v3273_v18 = vpop.f32.mrb[103].mxu0 }
 0xb2b   :  { %v3459_v11 = vmul.f32 %v15326_v61, %v15323_v48  ;;  %v15339_v42 = vadd.f32 %v15300_v15, %v3135_v29  ;;  %v15342_v21 = vadd.f32 %v15303_v45, %v3273_v18 }
 0xb2c   :  { %v3462_v12 = vmul.f32 %v15334_v20, %v15331_v31 }
 0xb2d   :  { %v3460_v0 = vmul.f32 %v15342_v21, %v15339_v42 }
 0xb2e   :  { %v3474_v9 = vpack.c.bf16 %v3462_v12, %v3461_v2 }
 0xb2f   :  { %v3473_v14 = vpack.c.bf16 %v3460_v0, %v3459_v11 }
 0xb31   :  { %12090 = vmatprep.mubr.msk.bf16.mxu0 %vm348_vm1, %v3473_v14 }
 0xb32   :  { %12091 = vmatmul.mubr.msk.bf16.gmra.mrb[116].mxu0 %vm348_vm1, %v3474_v9 }
 0xb33   :  { %v12024_v60 = vpop.f32.mrb[88].mxu1  ;;  %v12048_v24 = vpop.f32.mrb[104].mxu0 }
 0xb34   :  { %v3157_v10 = vadd.f32 %v12024_v60, %v15300_v15  ;;  %v3295_v23 = vadd.f32 %v12048_v24, %v15303_v45  ;;  %v3148_v54 = vpop.f32.mrb[89].mxu1  ;;  %v3286_v33 = vpop.f32.mrb[105].mxu0 }
 0xb35   :  { %v3149_v32 = vadd.f32 %v15300_v15, %v3148_v54  ;;  %v3287_v40 = vadd.f32 %v15303_v45, %v3286_v33  ;;  %v12025_v49 = vpop.f32.mrb[90].mxu1  ;;  %v12049_v6 = vpop.f32.mrb[106].mxu0 }
 0xb36   :  { %v3465_v55 = vmul.f32 %v3263_v4, %v3157_v10  ;;  %v3618_v37 = vmul.f32 %v3295_v23, %v3125_v59  ;;  %v15354_v3 = vmul.f32 %v3295_v23, %v3157_v10  ;;  %v3160_v38 = vadd.f32 %v12025_v49, %v15300_v15  ;;  %v3151_v63 = vpop.f32.mrb[91].mxu1  ;;  %v3289_v26 = vpop.f32.mrb[107].mxu0 }
 0xb37   :  { %v3463_v51 = vmul.f32 %v3255_v35, %v3149_v32  ;;  %v3616_v22 = vmul.f32 %v3287_v40, %v3117_v44  ;;  %v15357_v43 = vmul.f32 %v3287_v40, %v3149_v32  ;;  %v3298_v27 = vadd.f32 %v12049_v6, %v15303_v45 }
 0xb38   :  { %v3466_v46 = vmul.f32 %v3266_v25, %v3160_v38  ;;  %v3152_v2 = vadd.f32 %v15300_v15, %v3151_v63  ;;  %v3290_v29 = vadd.f32 %v15303_v45, %v3289_v26 }
 0xb39   :  { %v3619_v18 = vmul.f32 %v3298_v27, %v3128_v13  ;;  %v15362_v4 = vmul.f32 %v3298_v27, %v3160_v38 }
 0xb3a   :  { %v3476_v59 = vpack.c.bf16 %v3466_v46, %v3465_v55  ;;  %v3464_v11 = vmul.f32 %v3258_v16, %v3152_v2  ;;  %v3617_v12 = vmul.f32 %v3290_v29, %v3120_v53  ;;  %v3625_v0 = vmul.f32 %v3290_v29, %v3152_v2 }
 0xb3b   :  { %v3633_v9 = vpack.c.bf16 %v3619_v18, %v3618_v37  ;;  %v3637_v44 = vpack.c.bf16 %v15362_v4, %v15354_v3 }
 0xb3c   :  { %v3475_v35 = vpack.c.bf16 %v3464_v11, %v3463_v51  ;;  %v3632_v14 = vpack.c.bf16 %v3617_v12, %v3616_v22  ;;  %v3636_v60 = vpack.c.bf16 %v3625_v0, %v15357_v43 }
 0xb3e   :  { %12094 = vmatprep.mubr.msk.bf16.mxu0 %vm348_vm1, %v3475_v35  ;;  %12110 = vmatprep.mubr.msk.bf16.mxu1 %vm348_vm1, %v3632_v14 }
 0xb3f   :  { %12095 = vmatmul.mubr.msk.bf16.gmra.mrb[120].mxu0 %vm348_vm1, %v3476_v59  ;;  %12111 = vmatmul.mubr.msk.bf16.vlgmr.msra.gmra.mrb[112].mxu1 %vm348_vm1, %v3633_v9  ;;  %v12028_v13 = vpop.f32.mrb[92].mxu1  ;;  %v12052_v25 = vpop.f32.mrb[108].mxu0 }
 0xb40   :  { %12145 = vmatpush3.bf16.msra.mxu1 %v18308_v5  ;;  %v3173_v53 = vadd.f32 %v12028_v13, %v15300_v15  ;;  %v3311_v16 = vadd.f32 %v12052_v25, %v15303_v45  ;;  %v3164_v24 = vpop.f32.mrb[93].mxu1  ;;  %v3302_v10 = vpop.f32.mrb[109].mxu0 }
 0xb41   :  { %v3165_v23 = vadd.f32 %v15300_v15, %v3164_v24  ;;  %v3303_v54 = vadd.f32 %v15303_v45, %v3302_v10  ;;  %v12029_v33 = vpop.f32.mrb[94].mxu1  ;;  %v12053_v32 = vpop.f32.mrb[110].mxu0 }
 0xb42   :  { %v3469_v40 = vmul.f32 %v15320_v30, %v3173_v53  ;;  %v3622_v49 = vmul.f32 %v3311_v16, %v15317_v28  ;;  %v3630_v6 = vmul.f32 %v3311_v16, %v3173_v53  ;;  %v3176_v55 = vadd.f32 %v12029_v33, %v15300_v15  ;;  %v3167_v37 = vpop.f32.mrb[95].mxu1  ;;  %v3305_v3 = vpop.f32.mrb[111].mxu0 }
 0xb43   :  { %v3467_v38 = vmul.f32 %v15326_v61, %v3165_v23  ;;  %v3620_v63 = vmul.f32 %v3303_v54, %v15323_v48  ;;  %v3628_v26 = vmul.f32 %v3303_v54, %v3165_v23  ;;  %v3314_v51 = vadd.f32 %v12053_v32, %v15303_v45 }
 0xb44   :  { %v3470_v22 = vmul.f32 %v15334_v20, %v3176_v55  ;;  %v3168_v43 = vadd.f32 %v15300_v15, %v3167_v37  ;;  %v3306_v30 = vadd.f32 %v15303_v45, %v3305_v3 }
 0xb45   :  { %v3623_v28 = vmul.f32 %v3314_v51, %v15331_v31  ;;  %v3631_v27 = vmul.f32 %v3314_v51, %v3176_v55 }
 0xb46   :  { %v3478_v46 = vpack.c.bf16 %v3470_v22, %v3469_v40  ;;  %v3468_v2 = vmul.f32 %v15342_v21, %v3168_v43  ;;  %v3621_v29 = vmul.f32 %v3306_v30, %v15339_v42  ;;  %v3629_v61 = vmul.f32 %v3306_v30, %v3168_v43 }
 0xb47   :  { %v3635_v18 = vpack.c.bf16 %v3623_v28, %v3622_v49  ;;  %v3639_v48 = vpack.c.bf16 %v3631_v27, %v3630_v6  ;;  %v15388_v4 = vpop.f32.mrb[96].mxu1 }
 0xb48   :  { %v3477_v59 = vpack.c.bf16 %v3468_v2, %v3467_v38  ;;  %v3634_v11 = vpack.c.bf16 %v3621_v29, %v3620_v63  ;;  %v3638_v20 = vpack.c.bf16 %v3629_v61, %v3628_v26  ;;  %v15390_v12 = vpop.f32.mrb[97].mxu1 }
 0xb49   :  { %v15392_v15 = vpop.f32.mrb[98].mxu1 }
 0xb4a   :  { %12098 = vmatprep.mubr.msk.bf16.mxu0 %vm348_vm1, %v3477_v59  ;;  %12114 = vmatprep.mubr.msk.bf16.mxu1 %vm348_vm1, %v3634_v11  ;;  %v15396_v45 = vpop.f32.mrb[99].mxu1 }
 0xb4b   :  { %12099 = vmatmul.mubr.msk.bf16.gmra.mrb[124].mxu0 %vm348_vm1, %v3478_v46  ;;  %12115 = vmatmul.mubr.msk.bf16.gmra.mrb[116].mxu1 %vm348_vm1, %v3635_v18 }
 0xb4c   :  { %12118 = vmatprep.mubr.msk.bf16.mxu1 %vm348_vm1, %v3636_v60 }
 0xb4f   :  { %v15401_v31 = vpop.f32.mrb[100].mxu1 }
 0xb50   :  { %v15403_v42 = vpop.f32.mrb[101].mxu1 }
 0xb51   :  { %v15405_v21 = vpop.f32.mrb[102].mxu1 }
 0xb52   :  { %v15407_v0 = vpop.f32.mrb[103].mxu1 }
 0xb53   :  { %12119 = vmatmul.mubr.msk.bf16.gmra.mrb[120].mxu1 %vm348_vm1, %v3637_v44  ;;  %v15429_v44 = vld [vmem:[%s13888_s12 + $0x20] sm:$0xff]  }
 0xb54   :  { %12122 = vmatprep.mubr.msk.bf16.mxu1 %vm348_vm1, %v3638_v20  ;;  %12162 = vmatprep.subr.bf16.mxu0 %v15429_v44 }
 0xb57   :  { %v15411_v9 = vpop.f32.mrb[104].mxu1 }
 0xb58   :  { %v15413_v35 = vpop.f32.mrb[105].mxu1 }
 0xb59   :  { %v15415_v14 = vpop.f32.mrb[106].mxu1 }
 0xb5a   :  { %v15417_v60 = vpop.f32.mrb[107].mxu1 }
 0xb5b   :  { %12123 = vmatmul.mubr.msk.bf16.gmra.mrb[124].mxu1 %vm348_vm1, %v3639_v48 }
 0xb5f   :  { %v15420_v13 = vpop.f32.mrb[108].mxu1 }
 0xb60   :  { %v15422_v25 = vpop.f32.mrb[109].mxu1 }
 0xb61   :  { %v15424_v53 = vpop.f32.mrb[110].mxu1 }
 0xb62   :  { %v15426_v16 = vpop.f32.mrb[111].mxu1 }
 0xbf9   :  { %v12088_v24 = vpop.f32.mrb[112].mxu0 }
 0xbfa   :  { %v3537_v10 = vpop.f32.mrb[113].mxu0  ;;  %v3602_v37 = vmul.f32 0.25, %v12088_v24 }
 0xbfb   :  { %v12089_v23 = vpop.f32.mrb[114].mxu0  ;;  %v3600_v26 = vmul.f32 0.25, %v3537_v10 }
 0xbfc   :  { %v3540_v54 = vpop.f32.mrb[115].mxu0  ;;  %v3603_v30 = vmul.f32 0.25, %v12089_v23 }
 0xbfd   :  { %v3601_v29 = vmul.f32 0.25, %v3540_v54 }
 0xc05   :  { %v12092_v33 = vpop.f32.mrb[116].mxu0 }
 0xc06   :  { %v3553_v32 = vpop.f32.mrb[117].mxu0 }
 0xc07   :  { %v12093_v40 = vpop.f32.mrb[118].mxu0 }
 0xc08   :  { %v3556_v49 = vpop.f32.mrb[119].mxu0 }
 0xc12   :  { %v12096_v6 = vpop.f32.mrb[120].mxu0  ;;  %v12112_v55 = vpop.f32.mrb[112].mxu1 }
 0xc13   :  { %v3763_v3 = vmul.f32 0.25, %v12112_v55  ;;  %v3569_v38 = vpop.f32.mrb[121].mxu0  ;;  %v3698_v63 = vpop.f32.mrb[113].mxu1 }
 0xc14   :  { %v3761_v51 = vmul.f32 0.25, %v3698_v63  ;;  %v12097_v22 = vpop.f32.mrb[122].mxu0  ;;  %v12113_v43 = vpop.f32.mrb[114].mxu1 }
 0xc15   :  { %v3779_v28 = vmax.f32 %v3602_v37, %v3763_v3  ;;  %v3764_v27 = vmul.f32 0.25, %v12113_v43  ;;  %v15432_v46 = vpop.f32.mrb[123].mxu0  ;;  %v3701_v2 = vpop.f32.mrb[115].mxu1 }
 0xc16   :  { %v3777_v61 = vmax.f32 %v3600_v26, %v3761_v51  ;;  %v3762_v18 = vmul.f32 0.25, %v3701_v2 }
 0xc17   :  { %v3795_v48 = vsub.f32 %v3602_v37, %v3779_v28  ;;  %v3843_v59 = vsub.f32 %v3763_v3, %v3779_v28  ;;  %v3780_v11 = vmax.f32 %v3603_v30, %v3764_v27 }
 0xc18   :  { %v3793_v20 = vsub.f32 %v3600_v26, %v3777_v61  ;;  %v3841_v24 = vsub.f32 %v3761_v51, %v3777_v61  ;;  %v3778_v55 = vmax.f32 %v3601_v29, %v3762_v18  ;;  %v3606_v51 = vmul.f32 0.25, %v12092_v33 }
 0xc19   :  { %v3813_v5 = vmul.f32 1.442695, %v3795_v48  ;;  %v3861_v10 = vmul.f32 1.442695, %v3843_v59  ;;  %v3796_v63 = vsub.f32 %v3603_v30, %v3780_v11  ;;  %v3844_v7 = vsub.f32 %v3764_v27, %v3780_v11 }
 0xc1a   :  { %v3809_v41 = vmul.f32 1.442695, %v3793_v20  ;;  %v3857_v23 = vmul.f32 1.442695, %v3841_v24  ;;  %v3794_v1 = vsub.f32 %v3601_v29, %v3778_v55  ;;  %v3842_v43 = vsub.f32 %v3762_v18, %v3778_v55 }
 0xc1b   :  { %13158 = vpow2.f32 %v3813_v5  ;;  %v3815_v19 = vmul.f32 1.442695, %v3796_v63  ;;  %v3863_v54 = vmul.f32 1.442695, %v3844_v7  ;;  %v3604_v61 = vmul.f32 0.25, %v3553_v32 }
 0xc1c   :  { %13160 = vpow2.f32 %v3861_v10  ;;  %v3811_v2 = vmul.f32 1.442695, %v3794_v1  ;;  %v3859_v37 = vmul.f32 1.442695, %v3842_v43  ;;  %v3607_v7 = vmul.f32 0.25, %v12093_v40 }
 0xc1d   :  { %13162 = vpow2.f32 %v3809_v41  ;;  %v3605_v59 = vmul.f32 0.25, %v3556_v49  ;;  %v15440_v33 = vmul.f32 0.25, %v12096_v6  ;;  %v15442_v24 = vmul.f32 0.25, %v3569_v38 }
 0xc1e   :  { %13164 = vpow2.f32 %v3857_v23  ;;  %v12100_v3 = vpop.f32.mrb[124].mxu0  ;;  %v12116_v26 = vpop.f32.mrb[116].mxu1  ;;  %v15446_v23 = vmul.f32 0.25, %v12097_v22 }
 0xc1f   :  { %13166 = vpow2.f32 %v3815_v19  ;;  %v3767_v28 = vmul.f32 0.25, %v12116_v26  ;;  %v15434_v30 = vpop.f32.mrb[125].mxu0  ;;  %v3714_v27 = vpop.f32.mrb[117].mxu1 }
 0xc20   :  { %13168 = vpow2.f32 %v3863_v54  ;;  %v3765_v29 = vmul.f32 0.25, %v3714_v27  ;;  %v15436_v5 = vpop.f32.mrb[126].mxu0  ;;  %v12117_v18 = vpop.f32.mrb[118].mxu1 }
 0xc21   :  { %13170 = vpow2.f32 %v3811_v2  ;;  %v3783_v1 = vmax.f32 %v3606_v51, %v3767_v28  ;;  %v3768_v41 = vmul.f32 0.25, %v12117_v18  ;;  %v15438_v48 = vpop.f32.mrb[127].mxu0  ;;  %v3717_v19 = vpop.f32.mrb[119].mxu1 }
 0xc22   :  { %13172 = vpow2.f32 %v3859_v37  ;;  %v3781_v11 = vmax.f32 %v3604_v61, %v3765_v29  ;;  %v3766_v20 = vmul.f32 0.25, %v3717_v19 }
 0xc23   :  { %v3799_v32 = vsub.f32 %v3606_v51, %v3783_v1  ;;  %v3847_v55 = vsub.f32 %v3767_v28, %v3783_v1  ;;  %v3784_v10 = vmax.f32 %v3607_v7, %v3768_v41  ;;  %v15455_v51 = vmul.f32 0.25, %v15432_v46 }
 0xc24   :  { %v3797_v40 = vsub.f32 %v3604_v61, %v3781_v11  ;;  %v3845_v43 = vsub.f32 %v3765_v29, %v3781_v11  ;;  %v3782_v54 = vmax.f32 %v3605_v59, %v3766_v20  ;;  %v15457_v28 = vmul.f32 0.25, %v12100_v3 }
 0xc25   :  { %v15444_v63 = vpop.eup %13158  ;;  %v3821_v37 = vmul.f32 1.442695, %v3799_v32  ;;  %v3869_v49 = vmul.f32 1.442695, %v3847_v55  ;;  %v3800_v6 = vsub.f32 %v3607_v7, %v3784_v10  ;;  %v3848_v26 = vsub.f32 %v3768_v41, %v3784_v10 }
 0xc26   :  { %v15448_v2 = vpop.eup %13160  ;;  %v3798_v22 = vsub.f32 %v3605_v59, %v3782_v54  ;;  %v12120_v61 = vpop.f32.mrb[120].mxu1  ;;  %v3817_v18 = vmul.f32 1.442695, %v3797_v40  ;;  %v3865_v1 = vmul.f32 1.442695, %v3845_v43  ;;  %v3846_v19 = vsub.f32 %v3766_v20, %v3782_v54 }
 0xc27   :  { %v15450_v27 = vpop.eup %13162  ;;  %v3891_v38 = vadd.f32 %v15448_v2, %v15444_v63  ;;  %13174 = vpow2.f32 %v3821_v37  ;;  %v3730_v7 = vpop.f32.mrb[121].mxu1  ;;  %v3823_v32 = vmul.f32 1.442695, %v3800_v6  ;;  %v3771_v46 = vmul.f32 0.25, %v12120_v61 }
 0xc28   :  { %v15459_v29 = vpop.eup %13164  ;;  %v12121_v55 = vpop.f32.mrb[122].mxu1  ;;  %v3871_v59 = vmul.f32 1.442695, %v3848_v26  ;;  %v3769_v10 = vmul.f32 0.25, %v3730_v7  ;;  %v3819_v43 = vmul.f32 1.442695, %v3798_v22 }
 0xc29   :  { %v15461_v41 = vpop.eup %13166  ;;  %13176 = vrcp.f32 %v3891_v38  ;;  %v3889_v11 = vadd.f32 %v15459_v29, %v15450_v27  ;;  %v3772_v56 = vmul.f32 0.25, %v12121_v55  ;;  %v3733_v37 = vpop.f32.mrb[123].mxu1  ;;  %v3787_v54 = vmax.f32 %v15440_v33, %v3771_v46 }
 0xc2a   :  { %v15465_v3 = vpop.eup %13168  ;;  %13178 = vpow2.f32 %v3869_v49  ;;  %v3785_v6 = vmax.f32 %v15442_v24, %v3769_v10  ;;  %v15476_v26 = vmul.f32 0.25, %v3733_v37  ;;  %v3867_v62 = vmul.f32 1.442695, %v3846_v19 }
 0xc2b   :  { %v15467_v40 = vpop.eup %13170  ;;  %13180 = vrcp.f32 %v3889_v11  ;;  %v3892_v20 = vadd.f32 %v15465_v3, %v15461_v41  ;;  %v3788_v49 = vmax.f32 %v15446_v23, %v3772_v56  ;;  %v3803_v7 = vsub.f32 %v15440_v33, %v3787_v54 }
 0xc2c   :  { %v15472_v38 = vpop.eup %13172  ;;  %13182 = vpow2.f32 %v3817_v18  ;;  %v3851_v11 = vsub.f32 %v3771_v46, %v3787_v54  ;;  %v3801_v22 = vsub.f32 %v15442_v24, %v3785_v6  ;;  %v3849_v55 = vsub.f32 %v3769_v10, %v3785_v6 }
 0xc2d   :  { %13184 = vrcp.f32 %v3892_v20  ;;  %v3890_v61 = vadd.f32 %v15472_v38, %v15467_v40  ;;  %v3804_v57 = vsub.f32 %v15446_v23, %v3788_v49  ;;  %v15484_v18 = vmul.f32 0.25, %v15434_v30 }
 0xc2e   :  { %13186 = vpow2.f32 %v3865_v1  ;;  %v3852_v37 = vsub.f32 %v3772_v56, %v3788_v49  ;;  %v12124_v8 = vpop.f32.mrb[124].mxu1  ;;  %v15487_v20 = vmul.f32 0.25, %v15436_v5  ;;  %v15490_v33 = vmul.f32 0.25, %v15438_v48 }
 0xc2f   :  { %13188 = vrcp.f32 %v3890_v61  ;;  %v3829_v1 = vmul.f32 1.442695, %v3803_v7  ;;  %v3877_v24 = vmul.f32 1.442695, %v3851_v11  ;;  %v3786_v23 = vmax.f32 %v15455_v51, %v15476_v26  ;;  %v3746_v10 = vpop.f32.mrb[125].mxu1 }
 0xc30   :  { %13190 = vpow2.f32 %v3823_v32  ;;  %v3775_v46 = vmul.f32 0.25, %v12124_v8  ;;  %v3825_v56 = vmul.f32 1.442695, %v3801_v22  ;;  %v3873_v19 = vmul.f32 1.442695, %v3849_v55  ;;  %v12125_v5 = vpop.f32.mrb[126].mxu1 }
 0xc31   :  { %13192 = vpow2.f32 %v3871_v59  ;;  %v15494_v30 = vpop.eup %13174  ;;  %v15496_v54 = vmul.f32 0.25, %v3746_v10  ;;  %v3802_v48 = vsub.f32 %v15455_v51, %v3786_v23  ;;  %v3850_v59 = vsub.f32 %v15476_v26, %v3786_v23  ;;  %v3749_v49 = vpop.f32.mrb[127].mxu1 }
 0xc32   :  { %13194 = vpow2.f32 %v3819_v43  ;;  %v3791_v6 = vmax.f32 %v15457_v28, %v3775_v46  ;;  %v3831_v26 = vmul.f32 1.442695, %v3804_v57  ;;  %v3879_v11 = vmul.f32 1.442695, %v3852_v37 }
 0xc33   :  { %v13177_v32 = vpop.eup %13176  ;;  %13196 = vpow2.f32 %v3867_v62  ;;  %v3789_v7 = vmax.f32 %v15484_v18, %v15496_v54  ;;  %v3776_v10 = vmul.f32 0.25, %v12125_v5 }
 0xc34   :  { %v15501_v61 = vpop.eup %13178  ;;  %v15504_v8 = vmul.f32 %v13177_v32, %v15444_v63  ;;  %v15507_v43 = vmul.f32 %v13177_v32, %v15448_v2  ;;  %13198 = vpow2.f32 %v3829_v1  ;;  %v3807_v63 = vsub.f32 %v15457_v28, %v3791_v6 }
 0xc35   :  { %v13181_v62 = vpop.eup %13180  ;;  %v3895_v51 = vadd.f32 %v15501_v61, %v15494_v30  ;;  %13200 = vpow2.f32 %v3877_v24  ;;  %v3855_v55 = vsub.f32 %v3775_v46, %v3791_v6  ;;  %v3805_v2 = vsub.f32 %v15484_v18, %v3789_v7 }
 0xc36   :  { %v15513_v22 = vpop.eup %13182  ;;  %13202 = vpow2.f32 %v3825_v56  ;;  %v3853_v1 = vsub.f32 %v15496_v54, %v3789_v7  ;;  %v15518_v32 = vmul.f32 0.25, %v3749_v49  ;;  %v3827_v24 = vmul.f32 1.442695, %v3802_v48 }
 0xc37   :  { %v13185_v23 = vpop.eup %13184  ;;  %13204 = vrcp.f32 %v3895_v51  ;;  %v3875_v46 = vmul.f32 1.442695, %v3850_v59  ;;  %v3837_v56 = vmul.f32 1.442695, %v3807_v63  ;;  %v3885_v6 = vmul.f32 1.442695, %v3855_v55 }
 0xc38   :  { %v15520_v58 = vpop.eup %13186  ;;  %v3924_v57 = vmul.f32 %v13185_v23, %v15461_v41  ;;  %v15524_v37 = vmul.f32 %v13185_v23, %v15465_v3  ;;  %13206 = vpow2.f32 %v3873_v19  ;;  %v3792_v41 = vmax.f32 %v15487_v20, %v3776_v10 }
 0xc39   :  { %v13189_v28 = vpop.eup %13188  ;;  %v3893_v18 = vadd.f32 %v15520_v58, %v15513_v22  ;;  %13208 = vpow2.f32 %v3831_v26  ;;  %v3790_v19 = vmax.f32 %v15490_v33, %v15518_v32  ;;  %v3921_v48 = vmul.f32 %v13181_v62, %v15450_v27 }
 0xc3a   :  { %v15528_v54 = vpop.eup %13190  ;;  %v4099_v5 = vpack.c.bf16 %v15524_v37, %v15507_v43  ;;  %13210 = vpow2.f32 %v3879_v11  ;;  %v3922_v59 = vmul.f32 %v13189_v28, %v15467_v40  ;;  %v3808_v43 = vsub.f32 %v15487_v20, %v3792_v41 }
 0xc3b   :  { %v15533_v3 = vpop.eup %13192  ;;  %13212 = vrcp.f32 %v3893_v18  ;;  %v3856_v51 = vsub.f32 %v3776_v10, %v3792_v41  ;;  %v3806_v11 = vsub.f32 %v15490_v33, %v3790_v19  ;;  %v3854_v63 = vsub.f32 %v15518_v32, %v3790_v19 }
 0xc3c   :  { %v15539_v49 = vpop.eup %13194  ;;  %v3896_v7 = vadd.f32 %v15533_v3, %v15528_v54  ;;  %13214 = vpow2.f32 %v3827_v24  ;;  %v3937_v27 = vpack.c.bf16 %v3922_v59, %v3921_v48  ;;  %v3833_v20 = vmul.f32 1.442695, %v3805_v2 }
 0xc3d   :  { %v15544_v26 = vpop.eup %13196  ;;  %13216 = vpow2.f32 %v3875_v46  ;;  %v3881_v10 = vmul.f32 1.442695, %v3853_v1  ;;  %v4082_v37 = vmul.f32 %v13181_v62, %v15459_v29  ;;  %v4083_v24 = vmul.f32 %v13189_v28, %v15472_v38  ;;  %v12847_v46 = vld [vmem:[%s13888_s12 + $0x28] sm:$0xff]   ;;  %v12848_v28 = vld [vmem:[%s13888_s12 + $0x30] sm:$0xff]  }
 0xc3e   :  { %v15548_v55 = vpop.eup %13198  ;;  %13218 = vrcp.f32 %v3896_v7  ;;  %v3894_v40 = vadd.f32 %v15544_v26, %v15539_v49  ;;  %12128 = vmatprep.mubr.msk.bf16.mxu0 %vm1556_vm3, %v3937_v27  ;;  %v3938_v18 = vpack.c.bf16 %v3924_v57, %v15504_v8  ;;  %v3887_v57 = vmul.f32 1.442695, %v3856_v51 }
 0xc3f   :  { %v15552_v23 = vpop.eup %13200  ;;  %13220 = vpow2.f32 %v3837_v56  ;;  %v3839_v56 = vmul.f32 1.442695, %v3808_v43  ;;  %v4098_v1 = vpack.c.bf16 %v4083_v24, %v4082_v37  ;;  %v3883_v43 = vmul.f32 1.442695, %v3854_v63 }
 0xc40   :  { %v15556_v33 = vpop.eup %13202  ;;  %13222 = vrcp.f32 %v3894_v40  ;;  %v3899_v32 = vadd.f32 %v15552_v23, %v15548_v55  ;;  %12129 = vmatmul.mubr.msk.bf16.vlgmr.msra.gmra.mrb[128].mxu0 %vm1556_vm3, %v3938_v18 }
 0xc41   :  { %v13205_v41 = vpop.eup %13204  ;;  %13224 = vpow2.f32 %v3885_v6  ;;  %12163 = vmatpush3.bf16.msra.mxu0 %v15429_v44  ;;  %12146 = vmatprep.mubr.msk.bf16.mxu1 %vm1556_vm3, %v4098_v1 }
 0xc42   :  { %v15563_v2 = vpop.eup %13206  ;;  %13226 = vrcp.f32 %v3899_v32  ;;  %v3927_v29 = vmul.f32 %v13205_v41, %v15494_v30  ;;  %v4088_v62 = vmul.f32 %v13205_v41, %v15501_v61  ;;  %12164 = vmatprep.subr.bf16.mxu0 %v12847_v46  ;;  %v3835_v30 = vmul.f32 1.442695, %v3806_v11  ;;  %12147 = vmatmul.mubr.msk.bf16.vlgmr.msra.gmra.mrb[128].mxu1 %vm1556_vm3, %v4099_v5 }
 0xc43   :  { %v13209_v19 = vpop.eup %13208  ;;  %v3897_v38 = vadd.f32 %v15563_v2, %v15556_v33  ;;  %13228 = vpow2.f32 %v3833_v20 }
 0xc44   :  { %v13211_v8 = vpop.eup %13210  ;;  %13230 = vpow2.f32 %v3881_v10 }
 0xc45   :  { %v13213_v6 = vpop.eup %13212  ;;  %13232 = vrcp.f32 %v3897_v38  ;;  %v3900_v48 = vadd.f32 %v13211_v8, %v13209_v19  ;;  %12165 = vmatpush3.bf16.msra.mxu0 %v12847_v46 }
 0xc46   :  { %v13215_v61 = vpop.eup %13214  ;;  %13234 = vpow2.f32 %v3839_v56  ;;  %v3925_v59 = vmul.f32 %v13213_v6, %v15513_v22  ;;  %v4086_v7 = vmul.f32 %v13213_v6, %v15520_v58  ;;  %12166 = vmatprep.subr.bf16.mxu0 %v12848_v28 }
 0xc47   :  { %v13217_v44 = vpop.eup %13216  ;;  %13236 = vrcp.f32 %v3900_v48 }
 0xc48   :  { %v13219_v51 = vpop.eup %13218  ;;  %v3898_v27 = vadd.f32 %v13217_v44, %v13215_v61  ;;  %13238 = vpow2.f32 %v3887_v57 }
 0xc49   :  { %v13221_v40 = vpop.eup %13220  ;;  %13240 = vpow2.f32 %v3835_v30  ;;  %v3928_v11 = vmul.f32 %v13219_v51, %v15528_v54  ;;  %v4089_v5 = vmul.f32 %v13219_v51, %v15533_v3  ;;  %12167 = vmatpush3.bf16.msra.mxu0 %v12848_v28 }
 0xc4a   :  { %v13223_v20 = vpop.eup %13222  ;;  %13242 = vrcp.f32 %v3898_v27 }
 0xc4b   :  { %v13225_v10 = vpop.eup %13224  ;;  %13244 = vpow2.f32 %v3883_v43  ;;  %v3926_v58 = vmul.f32 %v13223_v20, %v15539_v49  ;;  %v4087_v22 = vmul.f32 %v13223_v20, %v15544_v26  ;;  %v3940_v63 = vpack.c.bf16 %v3928_v11, %v3927_v29 }
 0xc4c   :  { %v13227_v37 = vpop.eup %13226  ;;  %v3903_v32 = vadd.f32 %v13225_v10, %v13221_v40  ;;  %v4101_v24 = vpack.c.bf16 %v4089_v5, %v4088_v62 }
 0xc4d   :  { %v13229_v18 = vpop.eup %13228  ;;  %v3939_v46 = vpack.c.bf16 %v3926_v58, %v3925_v59  ;;  %v4100_v41 = vpack.c.bf16 %v4087_v22, %v4086_v7  ;;  %v3931_v54 = vmul.f32 %v13227_v37, %v15548_v55  ;;  %v4092_v3 = vmul.f32 %v13227_v37, %v15552_v23 }
 0xc4e   :  { %v13231_v56 = vpop.eup %13230  ;;  %13246 = vrcp.f32 %v3903_v32 }
 0xc4f   :  { %v13233_v1 = vpop.eup %13232  ;;  %v3901_v38 = vadd.f32 %v13231_v56, %v13229_v18  ;;  %12132 = vmatprep.mubr.msk.bf16.mxu0 %vm1556_vm3, %v3939_v46  ;;  %12150 = vmatprep.mubr.msk.bf16.mxu1 %vm1556_vm3, %v4100_v41 }
 0xc50   :  { %v13235_v49 = vpop.eup %13234  ;;  %12133 = vmatmul.mubr.msk.bf16.gmra.mrb[132].mxu0 %vm1556_vm3, %v3940_v63  ;;  %12151 = vmatmul.mubr.msk.bf16.gmra.mrb[132].mxu1 %vm1556_vm3, %v4101_v24  ;;  %v3929_v26 = vmul.f32 %v13233_v1, %v15556_v33  ;;  %v4090_v29 = vmul.f32 %v13233_v1, %v15563_v2 }
 0xc51   :  { %v13237_v55 = vpop.eup %13236  ;;  %13248 = vrcp.f32 %v3901_v38 }
 0xc52   :  { %v13239_v23 = vpop.eup %13238  ;;  %v3932_v62 = vmul.f32 %v13237_v55, %v13209_v19  ;;  %v4093_v57 = vmul.f32 %v13237_v55, %v13211_v8 }
 0xc53   :  { %v13241_v28 = vpop.eup %13240  ;;  %v3904_v6 = vadd.f32 %v13239_v23, %v13235_v49 }
 0xc54   :  { %v13243_v48 = vpop.eup %13242  ;;  %v3942_v30 = vpack.c.bf16 %v3932_v62, %v3931_v54  ;;  %v4103_v59 = vpack.c.bf16 %v4093_v57, %v4092_v3 }
 0xc55   :  { %v13245_v7 = vpop.eup %13244  ;;  %13250 = vrcp.f32 %v3904_v6  ;;  %v3930_v43 = vmul.f32 %v13243_v48, %v13215_v61  ;;  %v4091_v51 = vmul.f32 %v13243_v48, %v13217_v44 }
 0xc56   :  { %v3902_v27 = vadd.f32 %v13245_v7, %v13241_v28 }
 0xc57   :  { %v3941_v11 = vpack.c.bf16 %v3930_v43, %v3929_v26  ;;  %v4102_v5 = vpack.c.bf16 %v4091_v51, %v4090_v29 }
 0xc58   :  { %v13247_v33 = vpop.eup %13246  ;;  %13252 = vrcp.f32 %v3902_v27 }
 0xc59   :  { %12136 = vmatprep.mubr.msk.bf16.mxu0 %vm1556_vm3, %v3941_v11  ;;  %12154 = vmatprep.mubr.msk.bf16.mxu1 %vm1556_vm3, %v4102_v5  ;;  %v3935_v2 = vmul.f32 %v13247_v33, %v13221_v40  ;;  %v4096_v19 = vmul.f32 %v13247_v33, %v13225_v10  ;;  %v12849_v10 = vld [vmem:[%s13888_s12 + $0x38] sm:$0xff]  }
 0xc5a   :  { %12137 = vmatmul.mubr.msk.bf16.gmra.mrb[136].mxu0 %vm1556_vm3, %v3942_v30  ;;  %12155 = vmatmul.mubr.msk.bf16.gmra.mrb[136].mxu1 %vm1556_vm3, %v4103_v59 }
 0xc5b   :  { %v13249_v8 = vpop.eup %13248  ;;  %12168 = vmatprep.subr.bf16.mxu0 %v12849_v10 }
 0xc5c   :  { %v3933_v20 = vmul.f32 %v13249_v8, %v13229_v18  ;;  %v4094_v61 = vmul.f32 %v13249_v8, %v13231_v56  ;;  %12169 = vmatpush3.bf16.msra.mxu0 %v12849_v10  ;;  %v10752_v18 = vld [vmem:[%s18281_s0 + $0x1] ss:$0 sm:$0xff] }
 0xc5d   :  { %v15599_v54 = vadd.f32 %v15388_v4, %v10752_v18  ;;  %v15602_v3 = vadd.f32 %v10752_v18, %v15390_v12  ;;  %v15605_v1 = vadd.f32 %v15392_v15, %v10752_v18  ;;  %v15609_v26 = vadd.f32 %v10752_v18, %v15396_v45 }
 0xc5e   :  { %v3433_v29 = vadd.f32 %v15411_v9, %v10752_v18  ;;  %v3425_v4 = vadd.f32 %v10752_v18, %v15413_v35  ;;  %v3436_v15 = vadd.f32 %v15415_v14, %v10752_v18  ;;  %v15618_v45 = vadd.f32 %v10752_v18, %v15417_v60 }
 0xc5f   :  { %v13251_v44 = vpop.eup %13250  ;;  %v3417_v14 = vadd.f32 %v15401_v31, %v10752_v18  ;;  %v3409_v60 = vadd.f32 %v10752_v18, %v15403_v42 }
 0xc60   :  { %v3936_v58 = vmul.f32 %v13251_v44, %v13235_v49  ;;  %v4097_v22 = vmul.f32 %v13251_v44, %v13239_v23  ;;  %v3452_v44 = vadd.f32 %v15424_v53, %v10752_v18 }
 0xc62   :  { %v13253_v63 = vpop.eup %13252  ;;  %v3944_v37 = vpack.c.bf16 %v3936_v58, %v3935_v2  ;;  %v4105_v32 = vpack.c.bf16 %v4097_v22, %v4096_v19  ;;  %v3449_v2 = vadd.f32 %v15420_v13, %v10752_v18  ;;  %v3441_v19 = vadd.f32 %v10752_v18, %v15422_v25 }
 0xc63   :  { %v3934_v24 = vmul.f32 %v13253_v63, %v13241_v28  ;;  %v4095_v46 = vmul.f32 %v13253_v63, %v13245_v7  ;;  %v3412_v13 = vadd.f32 %v10752_v18, %v15407_v0 }
 0xc65   :  { %v3943_v41 = vpack.c.bf16 %v3934_v24, %v3933_v20  ;;  %v4104_v40 = vpack.c.bf16 %v4095_v46, %v4094_v61  ;;  %v3420_v61 = vadd.f32 %v15405_v21, %v10752_v18 }
 0xc67   :  { %12140 = vmatprep.mubr.msk.bf16.mxu0 %vm1556_vm3, %v3943_v41  ;;  %12158 = vmatprep.mubr.msk.bf16.mxu1 %vm1556_vm3, %v4104_v40 }
 0xc68   :  { %12141 = vmatmul.mubr.msk.bf16.gmra.mrb[140].mxu0 %vm1556_vm3, %v3944_v37  ;;  %12159 = vmatmul.mubr.msk.bf16.gmra.mrb[140].mxu1 %vm1556_vm3, %v4105_v32  ;;  %v3444_v37 = vadd.f32 %v10752_v18, %v15426_v16 }
 0xd13   :  { %v12130_v56 = vpop.f32.mrb[128].mxu0 }
 0xd14   :  { %v4068_v38 = vmul.f32 %v12130_v56, %v15599_v54  ;;  %v4003_v49 = vpop.f32.mrb[129].mxu0 }
 0xd15   :  { %v4066_v55 = vmul.f32 %v4003_v49, %v15602_v3  ;;  %v12131_v23 = vpop.f32.mrb[130].mxu0  ;;  %v12148_v62 = vpop.f32.mrb[128].mxu1 }
 0xd16   :  { %v4069_v12 = vmul.f32 %v12131_v23, %v15605_v1  ;;  %v4006_v57 = vpop.f32.mrb[131].mxu0  ;;  %v4229_v28 = vmul.f32 %v12148_v62, %v3433_v29  ;;  %v4164_v6 = vpop.f32.mrb[129].mxu1 }
 0xd17   :  { %v4067_v48 = vmul.f32 %v4006_v57, %v15609_v26  ;;  %v4227_v30 = vmul.f32 %v4164_v6, %v3425_v4  ;;  %v12149_v9 = vpop.f32.mrb[130].mxu1 }
 0xd18   :  { %v4245_v59 = vadd.f32 %v4229_v28, %v4068_v38  ;;  %v4230_v7 = vmul.f32 %v12149_v9, %v3436_v15  ;;  %v4167_v43 = vpop.f32.mrb[131].mxu1 }
 0xd19   :  { %v4243_v51 = vadd.f32 %v4227_v30, %v4066_v55  ;;  %v4228_v35 = vmul.f32 %v4167_v43, %v15618_v45 }
 0xd1a   :  { %v4246_v27 = vadd.f32 %v4230_v7, %v4069_v12 }
 0xd1b   :  { %v4244_v11 = vadd.f32 %v4228_v35, %v4067_v48 }
 0xd1c   :  { %v4260_v5 = vpack.c.bf16 %v4246_v27, %v4245_v59 }
 0xd1d   :  { %v4259_v33 = vpack.c.bf16 %v4244_v11, %v4243_v51 }
 0xd1f   :  { %12170 = vmatprep.mubr.msk.bf16.mxu0 %vm348_vm1, %v4259_v33 }
 0xd20   :  { %12171 = vmatmul.mubr.msk.bf16.vlgmr.msra.gmra.mrb[144].mxu0 %vm348_vm1, %v4260_v5 }
 0xd23   :  { %v12134_v8 = vpop.f32.mrb[132].mxu0  ;;  %v12152_v20 = vpop.f32.mrb[132].mxu1 }
 0xd24   :  { %v4072_v58 = vmul.f32 %v12134_v8, %v3417_v14  ;;  %v4233_v22 = vmul.f32 %v12152_v20, %v3449_v2  ;;  %v4019_v63 = vpop.f32.mrb[133].mxu0  ;;  %v4180_v31 = vpop.f32.mrb[133].mxu1 }
 0xd25   :  { %v4070_v32 = vmul.f32 %v4019_v63, %v3409_v60  ;;  %v4231_v42 = vmul.f32 %v4180_v31, %v3441_v19  ;;  %v12135_v24 = vpop.f32.mrb[134].mxu0  ;;  %v12153_v25 = vpop.f32.mrb[134].mxu1 }
 0xd26   :  { %v4249_v46 = vadd.f32 %v4233_v22, %v4072_v58  ;;  %v4073_v41 = vmul.f32 %v12135_v24, %v3420_v61  ;;  %v4234_v40 = vmul.f32 %v12153_v25, %v3452_v44  ;;  %v4022_v10 = vpop.f32.mrb[135].mxu0  ;;  %v4183_v56 = vpop.f32.mrb[135].mxu1 }
 0xd27   :  { %v4247_v21 = vadd.f32 %v4231_v42, %v4070_v32  ;;  %v4071_v38 = vmul.f32 %v4022_v10, %v3412_v13  ;;  %v4232_v53 = vmul.f32 %v4183_v56, %v3444_v37 }
 0xd28   :  { %v4250_v49 = vadd.f32 %v4234_v40, %v4073_v41 }
 0xd29   :  { %v4248_v55 = vadd.f32 %v4232_v53, %v4071_v38 }
 0xd2a   :  { %v4262_v23 = vpack.c.bf16 %v4250_v49, %v4249_v46 }
 0xd2b   :  { %v4261_v62 = vpack.c.bf16 %v4248_v55, %v4247_v21 }
 0xd2d   :  { %v12138_v12 = vpop.f32.mrb[136].mxu0  ;;  %v12156_v0 = vpop.f32.mrb[136].mxu1  ;;  %12174 = vmatprep.mubr.msk.bf16.mxu0 %vm348_vm1, %v4261_v62 }
 0xd2e   :  { %v4076_v16 = vmul.f32 %v12138_v12, %v15599_v54  ;;  %v4237_v18 = vmul.f32 %v12156_v0, %v3433_v29  ;;  %v4035_v57 = vpop.f32.mrb[137].mxu0  ;;  %v4196_v28 = vpop.f32.mrb[137].mxu1  ;;  %12175 = vmatmul.mubr.msk.bf16.gmra.mrb[148].mxu0 %vm348_vm1, %v4262_v23 }
 0xd2f   :  { %v4074_v6 = vmul.f32 %v4035_v57, %v15602_v3  ;;  %v4235_v48 = vmul.f32 %v4196_v28, %v3425_v4  ;;  %v12139_v30 = vpop.f32.mrb[138].mxu0  ;;  %v12157_v9 = vpop.f32.mrb[138].mxu1 }
 0xd30   :  { %v4253_v59 = vadd.f32 %v4237_v18, %v4076_v16  ;;  %v4077_v7 = vmul.f32 %v12139_v30, %v15605_v1  ;;  %v4238_v43 = vmul.f32 %v12157_v9, %v3436_v15  ;;  %v4038_v51 = vpop.f32.mrb[139].mxu0  ;;  %v4199_v35 = vpop.f32.mrb[139].mxu1 }
 0xd31   :  { %v4251_v27 = vadd.f32 %v4235_v48, %v4074_v6  ;;  %v4075_v11 = vmul.f32 %v4038_v51, %v15609_v26  ;;  %v4236_v54 = vmul.f32 %v4199_v35, %v15618_v45 }
 0xd32   :  { %v4254_v29 = vadd.f32 %v4238_v43, %v4077_v7  ;;  %v18309_v43 = vld [vmem:[#allocation18_spill] sm:$0xff] }
 0xd33   :  { %v4252_v5 = vadd.f32 %v4236_v54, %v4075_v11 }
 0xd34   :  { %v4264_v33 = vpack.c.bf16 %v4254_v29, %v4253_v59 }
 0xd35   :  { %v4263_v8 = vpack.c.bf16 %v4252_v5, %v4251_v27 }
 0xd37   :  { %12178 = vmatprep.mubr.msk.bf16.mxu0 %vm348_vm1, %v4263_v8 }
 0xd38   :  { %12179 = vmatmul.mubr.msk.bf16.gmra.mrb[152].mxu0 %vm348_vm1, %v4264_v33  ;;  %v18310_v33 = vld [vmem:[#allocation19_spill] sm:$0xff] }
 0xd3b   :  { %v12142_v3 = vpop.f32.mrb[140].mxu0  ;;  %v12160_v4 = vpop.f32.mrb[140].mxu1 }
 0xd3c   :  { %v4080_v20 = vmul.f32 %v12142_v3, %v3417_v14  ;;  %v4241_v1 = vmul.f32 %v12160_v4, %v3449_v2  ;;  %v4051_v15 = vpop.f32.mrb[141].mxu0  ;;  %v4212_v58 = vpop.f32.mrb[141].mxu1  ;;  %v15643_v2 = vld [vmem:[%s18282_s5 + $0x1] ss:$0 sm:$0xff] }
 0xd3d   :  { %v4078_v22 = vmul.f32 %v4051_v15, %v3409_v60  ;;  %v4239_v63 = vmul.f32 %v4212_v58, %v3441_v19  ;;  %v12143_v31 = vpop.f32.mrb[142].mxu0  ;;  %v12161_v26 = vpop.f32.mrb[142].mxu1  ;;  %v18312_v15 = vld [vmem:[#allocation21_spill] sm:$0xff] }
 0xd3e   :  { %v4257_v45 = vadd.f32 %v4241_v1, %v4080_v20  ;;  %v4081_v32 = vmul.f32 %v12143_v31, %v3420_v61  ;;  %v4242_v42 = vmul.f32 %v12161_v26, %v3452_v44  ;;  %v4054_v24 = vpop.f32.mrb[143].mxu0  ;;  %v4215_v25 = vpop.f32.mrb[143].mxu1  ;;  %v18311_v20 = vld [vmem:[#allocation20_spill] sm:$0xff] }
 0xd3f   :  { %v4255_v46 = vadd.f32 %v4239_v63, %v4078_v22  ;;  %v4079_v41 = vmul.f32 %v4054_v24, %v3412_v13  ;;  %v4240_v40 = vmul.f32 %v4215_v25, %v3444_v37  ;;  %v18313_v63 = vld [vmem:[#allocation22_spill] sm:$0xff] }
 0xd40   :  { %v4258_v10 = vadd.f32 %v4242_v42, %v4081_v32 }
 0xd41   :  { %v4256_v56 = vadd.f32 %v4240_v40, %v4079_v41 }
 0xd42   :  { %v4266_v21 = vpack.c.bf16 %v4258_v10, %v4257_v45  ;;  %v18314_v10 = vld [vmem:[#allocation23_spill] sm:$0xff] }
 0xd43   :  { %v4265_v14 = vpack.c.bf16 %v4256_v56, %v4255_v46 }
 0xd45   :  { %12182 = vmatprep.mubr.msk.bf16.mxu0 %vm348_vm1, %v4265_v14 }
 0xd46   :  { %12183 = vmatmul.mubr.msk.bf16.gmra.mrb[156].mxu0 %vm348_vm1, %v4266_v21 }
 0xdf3   :  { %v12172_v60 = vpop.f32.mrb[144].mxu0 }
 0xdf4   :  { %v4366_v19 = vpop.f32.mrb[145].mxu0  ;;  %v4375_v61 = vadd.f32 %v12172_v60, %v15643_v2  ;;  %v18315_v60 = vld [vmem:[#allocation24_spill] sm:$0xff] }
 0xdf5   :  { %v4367_v44 = vadd.f32 %v15643_v2, %v4366_v19  ;;  %v12173_v38 = vpop.f32.mrb[146].mxu0 }
 0xdf6   :  { %v4369_v53 = vpop.f32.mrb[147].mxu0  ;;  %v4378_v37 = vadd.f32 %v12173_v38, %v15643_v2  ;;  %v15653_v55 = vadd.f32 %v4375_v61, %v14975_v36  ;;  %v18316_v61 = vld [vmem:[#allocation25_spill] sm:$0xff] }
 0xdf7   :  { %v15648_v13 = vadd.f32 %v4367_v44, %v14967_v50  ;;  %v4370_v49 = vadd.f32 %v15643_v2, %v4369_v53  ;;  %v18317_v53 = vld [vmem:[#allocation26_spill] sm:$0xff] }
 0xdf8   :  { %v15661_v12 = vadd.f32 %v4378_v37, %v14980_v47  ;;  %v4455_v0 = vsel %vm348_vm1, %v15653_v55, 0.0 }
 0xdf9   :  { %v15656_v23 = vadd.f32 %v4370_v49, %v14972_v52  ;;  %v4449_v62 = vsel %vm348_vm1, %v15648_v13, 0.0 }
 0xdfa   :  { %4450 = vadd.xlane.f32.xlu0 %v4449_v62  ;;  %v4458_v52 = vsel %vm348_vm1, %v15661_v12, 0.0 }
 0xdfb   :  { %v4452_v50 = vsel %vm348_vm1, %v15656_v23, 0.0 }
 0xdfc   :  { %4453 = vadd.xlane.f32.xlu1 %v4452_v50  ;;  %v12850_v50 = vld [vmem:[%s18289_s9 + $0x20] sm:$0xff]  }
 0xdfd   :  { %12186 = vmatprep.subr.bf16.mxu1 %v12850_v50 }
 0xdfe   :  { %4456 = vadd.xlane.f32.xlu0 %v4455_v0  ;;  %12187 = vmatpush3.bf16.msra.mxu1 %v12850_v50 }
 0xe00   :  { %4459 = vadd.xlane.f32.xlu1 %v4458_v52 }
 0xe01   :  { %v12176_v16 = vpop.f32.mrb[148].mxu0 }
 0xe02   :  { %v4382_v36 = vpop.f32.mrb[149].mxu0  ;;  %v4391_v18 = vadd.f32 %v12176_v16, %v15643_v2 }
 0xe03   :  { %v4383_v57 = vadd.f32 %v15643_v2, %v4382_v36  ;;  %v12177_v28 = vpop.f32.mrb[150].mxu0 }
 0xe04   :  { %v4385_v47 = vpop.f32.mrb[151].mxu0  ;;  %v4394_v48 = vadd.f32 %v12177_v28, %v15643_v2  ;;  %v15677_v9 = vadd.f32 %v4391_v18, %v14994_v39 }
 0xe05   :  { %v15672_v6 = vadd.f32 %v4383_v57, %v14989_v17  ;;  %v4386_v30 = vadd.f32 %v15643_v2, %v4385_v47 }
 0xe06   :  { %v15685_v51 = vadd.f32 %v4394_v48, %v18309_v43  ;;  %v4467_v27 = vsel %vm348_vm1, %v15677_v9, 0.0 }
 0xe07   :  { %v15680_v59 = vadd.f32 %v4386_v30, %v14997_v34  ;;  %v4461_v7 = vsel %vm348_vm1, %v15672_v6, 0.0 }
 0xe08   :  { %4462 = vadd.xlane.f32.xlu0 %v4461_v7  ;;  %v4470_v29 = vsel %vm348_vm1, %v15685_v51, 0.0 }
 0xe09   :  { %v4464_v17 = vsel %vm348_vm1, %v15680_v59, 0.0 }
 0xe0a   :  { %4465 = vadd.xlane.f32.xlu1 %v4464_v17 }
 0xe0b   :  { %v12180_v35 = vpop.f32.mrb[152].mxu0 }
 0xe0c   :  { %v4398_v39 = vpop.f32.mrb[153].mxu0  ;;  %4468 = vadd.xlane.f32.xlu0 %v4467_v27  ;;  %v4407_v34 = vadd.f32 %v12180_v35, %v15643_v2 }
 0xe0d   :  { %v4399_v11 = vadd.f32 %v15643_v2, %v4398_v39  ;;  %v12181_v54 = vpop.f32.mrb[154].mxu0 }
 0xe0e   :  { %v4401_v5 = vpop.f32.mrb[155].mxu0  ;;  %4471 = vadd.xlane.f32.xlu1 %v4470_v29  ;;  %v4410_v3 = vadd.f32 %v12181_v54, %v15643_v2  ;;  %v15701_v1 = vadd.f32 %v4407_v34, %v18311_v20 }
 0xe0f   :  { %v15696_v8 = vadd.f32 %v4399_v11, %v18310_v33  ;;  %v4402_v4 = vadd.f32 %v15643_v2, %v4401_v5 }
 0xe10   :  { %v15709_v31 = vadd.f32 %v4410_v3, %v18313_v63  ;;  %v4479_v45 = vsel %vm348_vm1, %v15701_v1, 0.0 }
 0xe11   :  { %v15704_v58 = vadd.f32 %v4402_v4, %v18312_v15  ;;  %v4473_v22 = vsel %vm348_vm1, %v15696_v8, 0.0 }
 0xe12   :  { %4474 = vadd.xlane.f32.xlu0 %v4473_v22  ;;  %v4482_v32 = vsel %vm348_vm1, %v15709_v31, 0.0 }
 0xe13   :  { %v4476_v26 = vsel %vm348_vm1, %v15704_v58, 0.0 }
 0xe14   :  { %4477 = vadd.xlane.f32.xlu1 %v4476_v26 }
 0xe16   :  { %4480 = vadd.xlane.f32.xlu0 %v4479_v45 }
 0xe18   :  { %4483 = vadd.xlane.f32.xlu1 %v4482_v32 }
 0xe19   :  { %v12184_v42 = vpop.f32.mrb[156].mxu0 }
 0xe1a   :  { %v4414_v24 = vpop.f32.mrb[157].mxu0  ;;  %v4423_v25 = vadd.f32 %v12184_v42, %v15643_v2 }
 0xe1b   :  { %v4415_v46 = vadd.f32 %v15643_v2, %v4414_v24  ;;  %v12185_v41 = vpop.f32.mrb[158].mxu0 }
 0xe1c   :  { %v4417_v40 = vpop.f32.mrb[159].mxu0  ;;  %v4426_v21 = vadd.f32 %v12185_v41, %v15643_v2  ;;  %v15725_v19 = vadd.f32 %v4423_v25, %v18315_v60 }
 0xe1d   :  { %v15720_v56 = vadd.f32 %v4415_v46, %v18314_v10  ;;  %v4418_v14 = vadd.f32 %v15643_v2, %v4417_v40 }
 0xe1e   :  { %v15733_v37 = vadd.f32 %v4426_v21, %v18317_v53  ;;  %v4491_v2 = vsel %vm348_vm1, %v15725_v19, 0.0 }
 0xe1f   :  { %v15728_v44 = vadd.f32 %v4418_v14, %v18316_v61  ;;  %v4485_v38 = vsel %vm348_vm1, %v15720_v56, 0.0 }
 0xe20   :  { %4486 = vadd.xlane.f32.xlu0 %v4485_v38  ;;  %v4494_v62 = vsel %vm348_vm1, %v15733_v37, 0.0 }
 0xe21   :  { %v4488_v49 = vsel %vm348_vm1, %v15728_v44, 0.0 }
 0xe22   :  { %4489 = vadd.xlane.f32.xlu1 %v4488_v49 }
 0xe24   :  { %4492 = vadd.xlane.f32.xlu0 %v4491_v2 }
 0xe26   :  { %4495 = vadd.xlane.f32.xlu1 %v4494_v62 }
 0xe87   :  { %v4451_v0 = vpop.xlane.xlu0 %4450 }
 0xe88   :  { %v4497_v16 = vmul.f32 0.015625, %v4451_v0 }
 0xe89   :  { %v4454_v36 = vpop.xlane.xlu1 %4453 }
 0xe8a   :  { %v15743_v52 = vsub.f32 %v15648_v13, %v4497_v16  ;;  %v4498_v18 = vmul.f32 0.015625, %v4454_v36 }
 0xe8b   :  { %v4457_v57 = vpop.xlane.xlu0 %4456 }
 0xe8c   :  { %v15746_v28 = vsub.f32 %v15656_v23, %v4498_v18  ;;  %v4499_v47 = vmul.f32 0.015625, %v4457_v57  ;;  %v4529_v48 = vmul.f32 %v15743_v52, %v15743_v52 }
 0xe8d   :  { %v4460_v30 = vpop.xlane.xlu1 %4459 }
 0xe8e   :  { %v15751_v7 = vsub.f32 %v15653_v55, %v4499_v47  ;;  %v4500_v43 = vmul.f32 0.015625, %v4460_v30  ;;  %v4545_v17 = vsel %vm348_vm1, %v4529_v48, 0.0  ;;  %v4530_v35 = vmul.f32 %v15746_v28, %v15746_v28 }
 0xe8f   :  { %4546 = vadd.xlane.f32.xlu0 %v4545_v17 }
 0xe90   :  { %v15757_v27 = vsub.f32 %v15661_v12, %v4500_v43  ;;  %v4548_v39 = vsel %vm348_vm1, %v4530_v35, 0.0  ;;  %v4531_v34 = vmul.f32 %v15751_v7, %v15751_v7 }
 0xe91   :  { %4549 = vadd.xlane.f32.xlu1 %v4548_v39 }
 0xe92   :  { %v4551_v54 = vsel %vm348_vm1, %v4531_v34, 0.0  ;;  %v4532_v29 = vmul.f32 %v15757_v27, %v15757_v27 }
 0xe93   :  { %4552 = vadd.xlane.f32.xlu0 %v4551_v54 }
 0xe94   :  { %v4554_v3 = vsel %vm348_vm1, %v4532_v29, 0.0 }
 0xe95   :  { %v4463_v11 = vpop.xlane.xlu0 %4462  ;;  %4555 = vadd.xlane.f32.xlu1 %v4554_v3 }
 0xe96   :  { %v4501_v5 = vmul.f32 0.015625, %v4463_v11 }
 0xe97   :  { %v4466_v33 = vpop.xlane.xlu1 %4465 }
 0xe98   :  { %v15767_v4 = vsub.f32 %v15672_v6, %v4501_v5  ;;  %v4502_v20 = vmul.f32 0.015625, %v4466_v33 }
 0xe99   :  { %v4469_v15 = vpop.xlane.xlu0 %4468 }
 0xe9a   :  { %v15770_v22 = vsub.f32 %v15680_v59, %v4502_v20  ;;  %v4503_v63 = vmul.f32 0.015625, %v4469_v15  ;;  %v4533_v26 = vmul.f32 %v15767_v4, %v15767_v4 }
 0xe9b   :  { %v4472_v45 = vpop.xlane.xlu1 %4471 }
 0xe9c   :  { %v15775_v32 = vsub.f32 %v15677_v9, %v4503_v63  ;;  %v4504_v42 = vmul.f32 0.015625, %v4472_v45  ;;  %v4557_v24 = vsel %vm348_vm1, %v4533_v26, 0.0  ;;  %v4534_v25 = vmul.f32 %v15770_v22, %v15770_v22 }
 0xe9d   :  { %4558 = vadd.xlane.f32.xlu0 %v4557_v24 }
 0xe9e   :  { %v15781_v46 = vsub.f32 %v15685_v51, %v4504_v42  ;;  %v4560_v41 = vsel %vm348_vm1, %v4534_v25, 0.0  ;;  %v4535_v40 = vmul.f32 %v15775_v32, %v15775_v32 }
 0xe9f   :  { %v4475_v10 = vpop.xlane.xlu0 %4474  ;;  %4561 = vadd.xlane.f32.xlu1 %v4560_v41 }
 0xea0   :  { %v4505_v21 = vmul.f32 0.015625, %v4475_v10  ;;  %v4563_v14 = vsel %vm348_vm1, %v4535_v40, 0.0  ;;  %v4536_v60 = vmul.f32 %v15781_v46, %v15781_v46  ;;  %v12851_v10 = vld [vmem:[%s18289_s9 + $0x28] sm:$0xff]  }
 0xea1   :  { %v4478_v61 = vpop.xlane.xlu1 %4477  ;;  %4564 = vadd.xlane.f32.xlu0 %v4563_v14  ;;  %12188 = vmatprep.subr.bf16.mxu1 %v12851_v10 }
 0xea2   :  { %v15790_v38 = vsub.f32 %v15696_v8, %v4505_v21  ;;  %v4506_v53 = vmul.f32 0.015625, %v4478_v61  ;;  %v4566_v49 = vsel %vm348_vm1, %v4536_v60, 0.0  ;;  %v12852_v60 = vld [vmem:[%s18289_s9 + $0x30] sm:$0xff]   ;;  %12189 = vmatpush3.bf16.msra.mxu1 %v12851_v10 }
 0xea3   :  { %v4481_v2 = vpop.xlane.xlu0 %4480  ;;  %4567 = vadd.xlane.f32.xlu1 %v4566_v49  ;;  %12190 = vmatprep.subr.bf16.mxu1 %v12852_v60  ;;  %v12854_v49 = vld [vmem:[%s18294_s21 + $0x40] sm:$0xff]  }
 0xea4   :  { %v15794_v62 = vsub.f32 %v15704_v58, %v4506_v53  ;;  %v4507_v50 = vmul.f32 0.015625, %v4481_v2  ;;  %v4537_v0 = vmul.f32 %v15790_v38, %v15790_v38  ;;  %v12853_v53 = vld [vmem:[%s18289_s9 + $0x38] sm:$0xff]   ;;  %v12855_v2 = vld [vmem:[%s18294_s21 + $0x48] sm:$0xff]   ;;  %12210 = vmatprep.subr.bf16.mxu0 %v12854_v49 }
 0xea5   :  { %v4484_v16 = vpop.xlane.xlu1 %4483  ;;  %12211 = vmatpush3.bf16.msra.mxu0 %v12854_v49  ;;  %v15850_v49 = vld [vmem:[%s18296_s15 + $0x1] ss:$0 sm:$0xff] }
 0xea6   :  { %v15799_v36 = vsub.f32 %v15701_v1, %v4507_v50  ;;  %v4508_v18 = vmul.f32 0.015625, %v4484_v16  ;;  %v4569_v57 = vsel %vm348_vm1, %v4537_v0, 0.0  ;;  %v4538_v47 = vmul.f32 %v15794_v62, %v15794_v62  ;;  %12191 = vmatpush3.bf16.msra.mxu1 %v12852_v60  ;;  %12212 = vmatprep.subr.bf16.mxu0 %v12855_v2 }
 0xea7   :  { %4570 = vadd.xlane.f32.xlu0 %v4569_v57  ;;  %12192 = vmatprep.subr.bf16.mxu1 %v12853_v53 }
 0xea8   :  { %v15805_v48 = vsub.f32 %v15709_v31, %v4508_v18  ;;  %v4572_v30 = vsel %vm348_vm1, %v4538_v47, 0.0  ;;  %v4539_v43 = vmul.f32 %v15799_v36, %v15799_v36 }
 0xea9   :  { %4573 = vadd.xlane.f32.xlu1 %v4572_v30  ;;  %12213 = vmatpush3.bf16.msra.mxu0 %v12855_v2 }
 0xeaa   :  { %v4575_v17 = vsel %vm348_vm1, %v4539_v43, 0.0  ;;  %v4540_v35 = vmul.f32 %v15805_v48, %v15805_v48  ;;  %12193 = vmatpush3.bf16.msra.mxu1 %v12853_v53 }
 0xeab   :  { %4576 = vadd.xlane.f32.xlu0 %v4575_v17 }
 0xeac   :  { %v4578_v39 = vsel %vm348_vm1, %v4540_v35, 0.0 }
 0xead   :  { %v4487_v34 = vpop.xlane.xlu0 %4486  ;;  %4579 = vadd.xlane.f32.xlu1 %v4578_v39 }
 0xeae   :  { %v4509_v11 = vmul.f32 0.015625, %v4487_v34 }
 0xeaf   :  { %v4490_v54 = vpop.xlane.xlu1 %4489 }
 0xeb0   :  { %v15815_v29 = vsub.f32 %v15720_v56, %v4509_v11  ;;  %v4510_v5 = vmul.f32 0.015625, %v4490_v54 }
 0xeb1   :  { %v4493_v33 = vpop.xlane.xlu0 %4492 }
 0xeb2   :  { %v15818_v3 = vsub.f32 %v15728_v44, %v4510_v5  ;;  %v4511_v20 = vmul.f32 0.015625, %v4493_v33  ;;  %v4541_v15 = vmul.f32 %v15815_v29, %v15815_v29 }
 0xeb3   :  { %v4496_v63 = vpop.xlane.xlu1 %4495 }
 0xeb4   :  { %v15823_v26 = vsub.f32 %v15725_v19, %v4511_v20  ;;  %v4512_v45 = vmul.f32 0.015625, %v4496_v63  ;;  %v4581_v42 = vsel %vm348_vm1, %v4541_v15, 0.0  ;;  %v4542_v24 = vmul.f32 %v15818_v3, %v15818_v3 }
 0xeb5   :  { %4582 = vadd.xlane.f32.xlu0 %v4581_v42 }
 0xeb6   :  { %v15829_v25 = vsub.f32 %v15733_v37, %v4512_v45  ;;  %v4584_v41 = vsel %vm348_vm1, %v4542_v24, 0.0  ;;  %v4543_v40 = vmul.f32 %v15823_v26, %v15823_v26  ;;  %v15844_v45 = vld [vmem:[%s18295_s25 + $0x1] ss:$0 sm:$0xff] }
 0xeb7   :  { %4585 = vadd.xlane.f32.xlu1 %v4584_v41 }
 0xeb8   :  { %v4587_v21 = vsel %vm348_vm1, %v4543_v40, 0.0  ;;  %v4544_v14 = vmul.f32 %v15829_v25, %v15829_v25 }
 0xeb9   :  { %4588 = vadd.xlane.f32.xlu0 %v4587_v21 }
 0xeba   :  { %v4590_v61 = vsel %vm348_vm1, %v4544_v14, 0.0 }
 0xebb   :  { %4591 = vadd.xlane.f32.xlu1 %v4590_v61 }
 0xf1c   :  { %v4547_v50 = vpop.xlane.xlu0 %4546 }
 0xf1d   :  { %v4593_v0 = vmul.f32 0.015625, %v4547_v50 }
 0xf1e   :  { %v4550_v16 = vpop.xlane.xlu1 %4549 }
 0xf1f   :  { %v4609_v18 = vadd.f32 1e-05, %v4593_v0  ;;  %v4594_v57 = vmul.f32 0.015625, %v4550_v16 }
 0xf20   :  { %v4553_v47 = vpop.xlane.xlu0 %4552 }
 0xf21   :  { %13254 = vrsqrt.f32 %v4609_v18  ;;  %v4610_v30 = vadd.f32 1e-05, %v4594_v57  ;;  %v4595_v43 = vmul.f32 0.015625, %v4553_v47 }
 0xf22   :  { %v4556_v17 = vpop.xlane.xlu1 %4555 }
 0xf23   :  { %13256 = vrsqrt.f32 %v4610_v30  ;;  %v4611_v35 = vadd.f32 1e-05, %v4595_v43  ;;  %v4596_v39 = vmul.f32 0.015625, %v4556_v17 }
 0xf25   :  { %13258 = vrsqrt.f32 %v4611_v35  ;;  %v4612_v34 = vadd.f32 1e-05, %v4596_v39 }
 0xf27   :  { %13260 = vrsqrt.f32 %v4612_v34 }
 0xf2a   :  { %v4559_v11 = vpop.xlane.xlu0 %4558 }
 0xf2b   :  { %v4597_v54 = vmul.f32 0.015625, %v4559_v11  ;;  %v13255_v15 = vpop.eup %13254 }
 0xf2c   :  { %v4562_v5 = vpop.xlane.xlu1 %4561  ;;  %v4641_v41 = vmul.f32 %v13255_v15, %v15743_v52 }
 0xf2d   :  { %v4613_v33 = vadd.f32 1e-05, %v4597_v54  ;;  %v4598_v20 = vmul.f32 0.015625, %v4562_v5  ;;  %v13257_v40 = vpop.eup %13256 }
 0xf2e   :  { %v4565_v63 = vpop.xlane.xlu0 %4564  ;;  %v4642_v60 = vmul.f32 %v13257_v40, %v15746_v28  ;;  %v4663_v53 = vmul.f32 %v15844_v45, %v4641_v41 }
 0xf2f   :  { %13262 = vrsqrt.f32 %v4613_v33  ;;  %v4614_v42 = vadd.f32 1e-05, %v4598_v20  ;;  %v4599_v24 = vmul.f32 0.015625, %v4565_v63  ;;  %v13259_v61 = vpop.eup %13258 }
 0xf30   :  { %v4568_v10 = vpop.xlane.xlu1 %4567  ;;  %v4643_v2 = vmul.f32 %v13259_v61, %v15751_v7  ;;  %v4664_v0 = vmul.f32 %v15844_v45, %v4642_v60  ;;  %v4685_v30 = vadd.f32 %v15850_v49, %v4663_v53 }
 0xf31   :  { %13264 = vrsqrt.f32 %v4614_v42  ;;  %v4615_v21 = vadd.f32 1e-05, %v4599_v24  ;;  %v4600_v14 = vmul.f32 0.015625, %v4568_v10  ;;  %v13261_v16 = vpop.eup %13260 }
 0xf32   :  { %v4665_v18 = vmul.f32 %v15844_v45, %v4643_v2  ;;  %v4644_v57 = vmul.f32 %v13261_v16, %v15757_v27  ;;  %v4686_v43 = vadd.f32 %v15850_v49, %v4664_v0 }
 0xf33   :  { %13266 = vrsqrt.f32 %v4615_v21  ;;  %v4616_v50 = vadd.f32 1e-05, %v4600_v14 }
 0xf34   :  { %v4571_v52 = vpop.xlane.xlu0 %4570  ;;  %v4666_v17 = vmul.f32 %v15844_v45, %v4644_v57  ;;  %v4687_v39 = vadd.f32 %v15850_v49, %v4665_v18  ;;  %v4701_v11 = vpack.c.bf16 %v4686_v43, %v4685_v30 }
 0xf35   :  { %13268 = vrsqrt.f32 %v4616_v50  ;;  %v4601_v47 = vmul.f32 0.015625, %v4571_v52 }
 0xf36   :  { %v4574_v28 = vpop.xlane.xlu1 %4573  ;;  %v4688_v5 = vadd.f32 %v15850_v49, %v4666_v17  ;;  %12194 = vmatprep.mubr.msk.bf16.mxu1 %vm348_vm1, %v4701_v11 }
 0xf37   :  { %v4617_v7 = vadd.f32 1e-05, %v4601_v47  ;;  %v4602_v35 = vmul.f32 0.015625, %v4574_v28 }
 0xf38   :  { %v4577_v34 = vpop.xlane.xlu0 %4576  ;;  %v4702_v41 = vpack.c.bf16 %v4688_v5, %v4687_v39 }
 0xf39   :  { %v13263_v54 = vpop.eup %13262  ;;  %13270 = vrsqrt.f32 %v4617_v7  ;;  %v4618_v27 = vadd.f32 1e-05, %v4602_v35  ;;  %v4603_v33 = vmul.f32 0.015625, %v4577_v34 }
 0xf3a   :  { %v4580_v20 = vpop.xlane.xlu1 %4579  ;;  %v4645_v15 = vmul.f32 %v13263_v54, %v15767_v4  ;;  %12195 = vmatmul.mubr.msk.bf16.vlgmr.msra.gmra.mrb[144].mxu1 %vm348_vm1, %v4702_v41 }
 0xf3b   :  { %v13265_v63 = vpop.eup %13264  ;;  %13272 = vrsqrt.f32 %v4618_v27  ;;  %v4619_v42 = vadd.f32 1e-05, %v4603_v33  ;;  %v4604_v24 = vmul.f32 0.015625, %v4580_v20 }
 0xf3c   :  { %v4646_v40 = vmul.f32 %v13265_v63, %v15770_v22  ;;  %v4667_v10 = vmul.f32 %v15844_v45, %v4645_v15 }
 0xf3d   :  { %v13267_v21 = vpop.eup %13266  ;;  %13274 = vrsqrt.f32 %v4619_v42  ;;  %v4620_v14 = vadd.f32 1e-05, %v4604_v24 }
 0xf3e   :  { %v4668_v60 = vmul.f32 %v15844_v45, %v4646_v40  ;;  %v4647_v61 = vmul.f32 %v13267_v21, %v15775_v32  ;;  %v4689_v4 = vadd.f32 %v15850_v49, %v4667_v10 }
 0xf3f   :  { %v13269_v53 = vpop.eup %13268  ;;  %13276 = vrsqrt.f32 %v4620_v14 }
 0xf40   :  { %v4690_v2 = vadd.f32 %v15850_v49, %v4668_v60  ;;  %v4648_v50 = vmul.f32 %v13269_v53, %v15781_v46  ;;  %v4669_v22 = vmul.f32 %v15844_v45, %v4647_v61 }
 0xf42   :  { %v4583_v0 = vpop.xlane.xlu0 %4582  ;;  %v4703_v16 = vpack.c.bf16 %v4690_v2, %v4689_v4  ;;  %v4670_v52 = vmul.f32 %v15844_v45, %v4648_v50  ;;  %v4691_v32 = vadd.f32 %v15850_v49, %v4669_v22 }
 0xf43   :  { %v13271_v18 = vpop.eup %13270  ;;  %v4605_v57 = vmul.f32 0.015625, %v4583_v0 }
 0xf44   :  { %v4586_v47 = vpop.xlane.xlu1 %4585  ;;  %12198 = vmatprep.mubr.msk.bf16.mxu1 %vm348_vm1, %v4703_v16  ;;  %v4692_v28 = vadd.f32 %v15850_v49, %v4670_v52  ;;  %v4649_v30 = vmul.f32 %v13271_v18, %v15790_v38 }
 0xf45   :  { %v13273_v43 = vpop.eup %13272  ;;  %v4621_v17 = vadd.f32 1e-05, %v4605_v57  ;;  %v4606_v46 = vmul.f32 0.015625, %v4586_v47 }
 0xf46   :  { %v4589_v7 = vpop.xlane.xlu0 %4588  ;;  %v4704_v35 = vpack.c.bf16 %v4692_v28, %v4691_v32  ;;  %v4650_v39 = vmul.f32 %v13273_v43, %v15794_v62  ;;  %v4671_v34 = vmul.f32 %v15844_v45, %v4649_v30  ;;  %v12856_v30 = vld [vmem:[%s18294_s21 + $0x50] sm:$0xff]   ;;  %v12858_v43 = vld [vmem:[%s18294_s21 + $0x60] sm:$0xff]  }
 0xf47   :  { %v13275_v11 = vpop.eup %13274  ;;  %13278 = vrsqrt.f32 %v4621_v17  ;;  %v4622_v54 = vadd.f32 1e-05, %v4606_v46  ;;  %v4607_v5 = vmul.f32 0.015625, %v4589_v7  ;;  %12214 = vmatprep.subr.bf16.mxu0 %v12856_v30  ;;  %v12860_v17 = vld [vmem:[%s18294_s21 + $0x70] sm:$0xff]   ;;  %v15912_v46 = vld [vmem:[%s18297_s16 + $0x1] ss:$0 sm:$0xff] }
 0xf48   :  { %v4592_v27 = vpop.xlane.xlu1 %4591  ;;  %12199 = vmatmul.mubr.msk.bf16.gmra.mrb[148].mxu1 %vm348_vm1, %v4704_v35  ;;  %v4672_v33 = vmul.f32 %v15844_v45, %v4650_v39  ;;  %v4651_v38 = vmul.f32 %v13275_v11, %v15799_v36  ;;  %v4693_v42 = vadd.f32 %v15850_v49, %v4671_v34  ;;  %12215 = vmatpush3.bf16.msra.mxu0 %v12856_v30 }
 0xf49   :  { %v13277_v20 = vpop.eup %13276  ;;  %13280 = vrsqrt.f32 %v4622_v54  ;;  %v4623_v15 = vadd.f32 1e-05, %v4607_v5  ;;  %v4608_v63 = vmul.f32 0.015625, %v4592_v27 }
 0xf4a   :  { %v4694_v62 = vadd.f32 %v15850_v49, %v4672_v33  ;;  %v4652_v24 = vmul.f32 %v13277_v20, %v15805_v48  ;;  %v4673_v41 = vmul.f32 %v15844_v45, %v4651_v38 }
 0xf4b   :  { %13282 = vrsqrt.f32 %v4623_v15  ;;  %v4624_v40 = vadd.f32 1e-05, %v4608_v63 }
 0xf4c   :  { %v4705_v10 = vpack.c.bf16 %v4694_v62, %v4693_v42  ;;  %v4674_v21 = vmul.f32 %v15844_v45, %v4652_v24  ;;  %v4695_v36 = vadd.f32 %v15850_v49, %v4673_v41 }
 0xf4d   :  { %13284 = vrsqrt.f32 %v4624_v40 }
 0xf4e   :  { %12202 = vmatprep.mubr.msk.bf16.mxu1 %vm348_vm1, %v4705_v10  ;;  %v4696_v14 = vadd.f32 %v15850_v49, %v4674_v21 }
 0xf50   :  { %v4706_v60 = vpack.c.bf16 %v4696_v14, %v4695_v36 }
 0xf51   :  { %v13279_v61 = vpop.eup %13278 }
 0xf52   :  { %12203 = vmatmul.mubr.msk.bf16.gmra.mrb[152].mxu1 %vm348_vm1, %v4706_v60  ;;  %v4653_v48 = vmul.f32 %v13279_v61, %v15815_v29 }
 0xf53   :  { %v13281_v53 = vpop.eup %13280 }
 0xf54   :  { %v4654_v4 = vmul.f32 %v13281_v53, %v15818_v3  ;;  %v4675_v2 = vmul.f32 %v15844_v45, %v4653_v48 }
 0xf55   :  { %v13283_v50 = vpop.eup %13282 }
 0xf56   :  { %v4676_v22 = vmul.f32 %v15844_v45, %v4654_v4  ;;  %v4655_v0 = vmul.f32 %v13283_v50, %v15823_v26  ;;  %v4697_v52 = vadd.f32 %v15850_v49, %v4675_v2 }
 0xf57   :  { %v13285_v16 = vpop.eup %13284 }
 0xf58   :  { %v4698_v18 = vadd.f32 %v15850_v49, %v4676_v22  ;;  %v4656_v29 = vmul.f32 %v13285_v16, %v15829_v25  ;;  %v4677_v57 = vmul.f32 %v15844_v45, %v4655_v0  ;;  %v12857_v25 = vld [vmem:[%s18294_s21 + $0x58] sm:$0xff]  }
 0xf59   :  { %12216 = vmatprep.subr.bf16.mxu0 %v12857_v25 }
 0xf5a   :  { %v4707_v3 = vpack.c.bf16 %v4698_v18, %v4697_v52  ;;  %v4678_v47 = vmul.f32 %v15844_v45, %v4656_v29  ;;  %v4699_v32 = vadd.f32 %v15850_v49, %v4677_v57  ;;  %12217 = vmatpush3.bf16.msra.mxu0 %v12857_v25  ;;  %v12859_v45 = vld [vmem:[%s18294_s21 + $0x68] sm:$0xff]  }
 0xf5b   :  { %12218 = vmatprep.subr.bf16.mxu0 %v12858_v43 }
 0xf5c   :  { %12206 = vmatprep.mubr.msk.bf16.mxu1 %vm348_vm1, %v4707_v3  ;;  %v4700_v26 = vadd.f32 %v15850_v49, %v4678_v47  ;;  %v12861_v49 = vld [vmem:[%s18294_s21 + $0x78] sm:$0xff]  }
 0xf5e   :  { %v4708_v28 = vpack.c.bf16 %v4700_v26, %v4699_v32  ;;  %12219 = vmatpush3.bf16.msra.mxu0 %v12858_v43 }
 0xf5f   :  { %12220 = vmatprep.subr.bf16.mxu0 %v12859_v45 }
 0xf60   :  { %12207 = vmatmul.mubr.msk.bf16.gmra.mrb[156].mxu1 %vm348_vm1, %v4708_v28 }
 0xf62   :  { %12221 = vmatpush3.bf16.msra.mxu0 %v12859_v45 }
 0xf63   :  { %12222 = vmatprep.subr.bf16.mxu0 %v12860_v17 }
 0xf66   :  { %12223 = vmatpush3.bf16.msra.mxu0 %v12860_v17 }
 0xf67   :  { %12224 = vmatprep.subr.bf16.mxu0 %v12861_v49 }
 0xf6a   :  { %12225 = vmatpush3.bf16.msra.mxu0 %v12861_v49 }
0x100d   :  { %v12196_v7 = vpop.f32.mrb[144].mxu1 }
0x100e   :  { %v4817_v35 = vadd.f32 %v12196_v7, %v15912_v46  ;;  %v4808_v39 = vpop.f32.mrb[145].mxu1 }
0x100f   :  { %v4809_v34 = vadd.f32 %v15912_v46, %v4808_v39  ;;  %v12197_v11 = vpop.f32.mrb[146].mxu1 }
0x1010   :  { %v4889_v54 = vmul.f32 0.70710677, %v4817_v35  ;;  %v4820_v5 = vadd.f32 %v12197_v11, %v15912_v46  ;;  %v4811_v27 = vpop.f32.mrb[147].mxu1  ;;  %v4873_v0 = vmul.f32 0.5, %v4817_v35 }
0x1011   :  { %v4887_v33 = vmul.f32 0.70710677, %v4809_v34  ;;  %v4812_v38 = vadd.f32 %v15912_v46, %v4811_v27  ;;  %v4871_v18 = vmul.f32 0.5, %v4809_v34 }
0x1012   :  { %13286 = verf.f32 %v4889_v54  ;;  %v4890_v20 = vmul.f32 0.70710677, %v4820_v5  ;;  %v4874_v16 = vmul.f32 0.5, %v4820_v5 }
0x1013   :  { %13288 = verf.f32 %v4887_v33  ;;  %v4888_v15 = vmul.f32 0.70710677, %v4812_v38  ;;  %v4872_v29 = vmul.f32 0.5, %v4812_v38 }
0x1014   :  { %13290 = verf.f32 %v4890_v20 }
0x1015   :  { %13292 = verf.f32 %v4888_v15 }
0x101b   :  { %v12200_v63 = vpop.f32.mrb[148].mxu1 }
0x101c   :  { %v4833_v42 = vadd.f32 %v12200_v63, %v15912_v46  ;;  %v4824_v62 = vpop.f32.mrb[149].mxu1  ;;  %v13287_v36 = vpop.eup %13286 }
0x101d   :  { %v4825_v24 = vadd.f32 %v15912_v46, %v4824_v62  ;;  %v12201_v41 = vpop.f32.mrb[150].mxu1  ;;  %v13289_v61 = vpop.eup %13288  ;;  %v4921_v48 = vadd.f32 1.0, %v13287_v36 }
0x101e   :  { %v4893_v40 = vmul.f32 0.70710677, %v4833_v42  ;;  %v4836_v10 = vadd.f32 %v12201_v41, %v15912_v46  ;;  %v4827_v21 = vpop.f32.mrb[151].mxu1  ;;  %v13291_v4 = vpop.eup %13290  ;;  %v4919_v2 = vadd.f32 1.0, %v13289_v61  ;;  %v4877_v62 = vmul.f32 0.5, %v4833_v42 }
0x101f   :  { %v4891_v14 = vmul.f32 0.70710677, %v4825_v24  ;;  %v4828_v60 = vadd.f32 %v15912_v46, %v4827_v21  ;;  %v13293_v22 = vpop.eup %13292  ;;  %v4922_v52 = vadd.f32 1.0, %v13291_v4  ;;  %v4937_v3 = vmul.f32 %v4921_v48, %v4873_v0 }
0x1020   :  { %13294 = verf.f32 %v4893_v40  ;;  %v4894_v53 = vmul.f32 0.70710677, %v4836_v10  ;;  %v4920_v57 = vadd.f32 1.0, %v13293_v22  ;;  %v4935_v32 = vmul.f32 %v4919_v2, %v4871_v18 }
0x1021   :  { %13296 = verf.f32 %v4891_v14  ;;  %v4892_v50 = vmul.f32 0.70710677, %v4828_v60  ;;  %v4938_v47 = vmul.f32 %v4922_v52, %v4874_v16  ;;  %v4878_v41 = vmul.f32 0.5, %v4836_v10 }
0x1022   :  { %13298 = verf.f32 %v4894_v53  ;;  %v4936_v26 = vmul.f32 %v4920_v57, %v4872_v29  ;;  %v4875_v21 = vmul.f32 0.5, %v4825_v24  ;;  %v4876_v36 = vmul.f32 0.5, %v4828_v60 }
0x1023   :  { %13300 = verf.f32 %v4892_v50  ;;  %v4952_v30 = vpack.c.bf16 %v4938_v47, %v4937_v3 }
0x1024   :  { %v4951_v49 = vpack.c.bf16 %v4936_v26, %v4935_v32 }
0x1025   :  { %v12204_v28 = vpop.f32.mrb[152].mxu1 }
0x1026   :  { %v4849_v25 = vadd.f32 %v12204_v28, %v15912_v46  ;;  %v4840_v43 = vpop.f32.mrb[153].mxu1  ;;  %12226 = vmatprep.mubr.bf16.mxu0 %v4951_v49 }
0x1027   :  { %v4841_v45 = vadd.f32 %v15912_v46, %v4840_v43  ;;  %v12205_v17 = vpop.f32.mrb[154].mxu1  ;;  %12227 = vmatmul.mubr.bf16.vlgmr.msra.gmra.mrb[160].mxu0 %v4952_v30 }
0x1028   :  { %v4897_v7 = vmul.f32 0.70710677, %v4849_v25  ;;  %v4852_v35 = vadd.f32 %v12205_v17, %v15912_v46  ;;  %v4843_v39 = vpop.f32.mrb[155].mxu1  ;;  %v4881_v60 = vmul.f32 0.5, %v4849_v25 }
0x1029   :  { %v4895_v34 = vmul.f32 0.70710677, %v4841_v45  ;;  %v4844_v11 = vadd.f32 %v15912_v46, %v4843_v39  ;;  %v4879_v28 = vmul.f32 0.5, %v4841_v45 }
0x102a   :  { %v13295_v54 = vpop.eup %13294  ;;  %13302 = verf.f32 %v4897_v7  ;;  %v4898_v5 = vmul.f32 0.70710677, %v4852_v35  ;;  %v4882_v30 = vmul.f32 0.5, %v4852_v35 }
0x102b   :  { %v13297_v27 = vpop.eup %13296  ;;  %v4925_v33 = vadd.f32 1.0, %v13295_v54  ;;  %13304 = verf.f32 %v4895_v34  ;;  %v4896_v38 = vmul.f32 0.70710677, %v4844_v11  ;;  %v4880_v7 = vmul.f32 0.5, %v4844_v11 }
0x102c   :  { %v13299_v20 = vpop.eup %13298  ;;  %v4923_v15 = vadd.f32 1.0, %v13297_v27  ;;  %13306 = verf.f32 %v4898_v5 }
0x102d   :  { %v13301_v63 = vpop.eup %13300  ;;  %v4926_v40 = vadd.f32 1.0, %v13299_v20  ;;  %13308 = verf.f32 %v4896_v38  ;;  %v4941_v61 = vmul.f32 %v4925_v33, %v4877_v62 }
0x102e   :  { %v4924_v14 = vadd.f32 1.0, %v13301_v63  ;;  %v4939_v53 = vmul.f32 %v4923_v15, %v4875_v21 }
0x102f   :  { %v4942_v48 = vmul.f32 %v4926_v40, %v4878_v41 }
0x1030   :  { %v4940_v4 = vmul.f32 %v4924_v14, %v4876_v36 }
0x1031   :  { %v4954_v2 = vpack.c.bf16 %v4942_v48, %v4941_v61 }
0x1032   :  { %v4953_v50 = vpack.c.bf16 %v4940_v4, %v4939_v53 }
0x1033   :  { %v12208_v22 = vpop.f32.mrb[156].mxu1 }
0x1034   :  { %v13303_v0 = vpop.eup %13302  ;;  %v4865_v16 = vadd.f32 %v12208_v22, %v15912_v46  ;;  %v4856_v52 = vpop.f32.mrb[157].mxu1  ;;  %12230 = vmatprep.mubr.bf16.mxu0 %v4953_v50  ;;  %v15931_v22 = vld [vmem:[%s18298_s18 + $0x1] ss:$0 sm:$0xff] }
0x1035   :  { %v13305_v18 = vpop.eup %13304  ;;  %v4929_v42 = vadd.f32 1.0, %v13303_v0  ;;  %v4857_v10 = vadd.f32 %v15912_v46, %v4856_v52  ;;  %v12209_v29 = vpop.f32.mrb[158].mxu1  ;;  %12231 = vmatmul.mubr.bf16.gmra.mrb[164].mxu0 %v4954_v2 }
0x1036   :  { %v13307_v24 = vpop.eup %13306  ;;  %v4927_v57 = vadd.f32 1.0, %v13305_v18  ;;  %v4901_v3 = vmul.f32 0.70710677, %v4865_v16  ;;  %v4868_v47 = vadd.f32 %v12209_v29, %v15912_v46  ;;  %v4859_v32 = vpop.f32.mrb[159].mxu1  ;;  %v4885_v63 = vmul.f32 0.5, %v4865_v16 }
0x1037   :  { %v13309_v26 = vpop.eup %13308  ;;  %v4930_v43 = vadd.f32 1.0, %v13307_v24  ;;  %v4899_v17 = vmul.f32 0.70710677, %v4857_v10  ;;  %v4945_v49 = vmul.f32 %v4929_v42, %v4881_v60  ;;  %v4860_v5 = vadd.f32 %v15912_v46, %v4859_v32 }
0x1038   :  { %v4928_v39 = vadd.f32 1.0, %v13309_v26  ;;  %13310 = verf.f32 %v4901_v3  ;;  %v4902_v54 = vmul.f32 0.70710677, %v4868_v47  ;;  %v4943_v25 = vmul.f32 %v4927_v57, %v4879_v28 }
0x1039   :  { %v4946_v34 = vmul.f32 %v4930_v43, %v4882_v30  ;;  %13312 = verf.f32 %v4899_v17  ;;  %v4900_v33 = vmul.f32 0.70710677, %v4860_v5  ;;  %v4886_v41 = vmul.f32 0.5, %v4868_v47 }
0x103a   :  { %v4944_v27 = vmul.f32 %v4928_v39, %v4880_v7  ;;  %13314 = verf.f32 %v4902_v54  ;;  %v4883_v46 = vmul.f32 0.5, %v4857_v10  ;;  %v4884_v61 = vmul.f32 0.5, %v4860_v5 }
0x103b   :  { %v4956_v38 = vpack.c.bf16 %v4946_v34, %v4945_v49  ;;  %13316 = verf.f32 %v4900_v33 }
0x103c   :  { %v4955_v20 = vpack.c.bf16 %v4944_v27, %v4943_v25 }
0x103e   :  { %12234 = vmatprep.mubr.bf16.mxu0 %v4955_v20 }
0x103f   :  { %12235 = vmatmul.mubr.bf16.gmra.mrb[168].mxu0 %v4956_v38 }
0x1042   :  { %v13311_v45 = vpop.eup %13310 }
0x1043   :  { %v13313_v35 = vpop.eup %13312  ;;  %v4933_v15 = vadd.f32 1.0, %v13311_v45 }
0x1044   :  { %v13315_v11 = vpop.eup %13314  ;;  %v4931_v62 = vadd.f32 1.0, %v13313_v35 }
0x1045   :  { %v4934_v40 = vadd.f32 1.0, %v13315_v11  ;;  %v13317_v21 = vpop.eup %13316  ;;  %v4949_v36 = vmul.f32 %v4933_v15, %v4885_v63 }
0x1046   :  { %v4932_v48 = vadd.f32 1.0, %v13317_v21  ;;  %v4947_v53 = vmul.f32 %v4931_v62, %v4883_v46 }
0x1047   :  { %v4950_v14 = vmul.f32 %v4934_v40, %v4886_v41 }
0x1048   :  { %v4948_v4 = vmul.f32 %v4932_v48, %v4884_v61 }
0x1049   :  { %v4958_v2 = vpack.c.bf16 %v4950_v14, %v4949_v36 }
0x104a   :  { %v4957_v50 = vpack.c.bf16 %v4948_v4, %v4947_v53 }
0x104c   :  { %12238 = vmatprep.mubr.bf16.mxu0 %v4957_v50 }
0x104d   :  { %12239 = vmatmul.mubr.bf16.gmra.mrb[172].mxu0 %v4958_v2 }
0x10fa   :  { %v12228_v0 = vpop.f32.mrb[160].mxu0 }
0x10fb   :  { %v5066_v16 = vpop.f32.mrb[161].mxu0  ;;  %v5075_v52 = vadd.f32 %v12228_v0, %v15931_v22 }
0x10fc   :  { %v5067_v18 = vadd.f32 %v15931_v22, %v5066_v16  ;;  %v12229_v42 = vpop.f32.mrb[162].mxu0 }
0x10fd   :  { %v5069_v10 = vpop.f32.mrb[163].mxu0  ;;  %v5078_v24 = vadd.f32 %v12229_v42, %v15931_v22  ;;  %v15941_v57 = vadd.f32 %v5075_v52, %v15653_v55 }
0x10fe   :  { %v15936_v29 = vadd.f32 %v5067_v18, %v15648_v13  ;;  %v5070_v60 = vadd.f32 %v15931_v22, %v5069_v10 }
0x10ff   :  { %v15949_v32 = vadd.f32 %v5078_v24, %v15661_v12  ;;  %v5155_v26 = vsel %vm348_vm1, %v15941_v57, 0.0 }
0x1100   :  { %v15944_v3 = vadd.f32 %v5070_v60, %v15656_v23  ;;  %v5149_v47 = vsel %vm348_vm1, %v15936_v29, 0.0 }
0x1101   :  { %5150 = vadd.xlane.f32.xlu0 %v5149_v47  ;;  %v5158_v23 = vsel %vm348_vm1, %v15949_v32, 0.0 }
0x1102   :  { %v5152_v13 = vsel %vm348_vm1, %v15944_v3, 0.0 }
0x1103   :  { %5153 = vadd.xlane.f32.xlu1 %v5152_v13 }
0x1105   :  { %5156 = vadd.xlane.f32.xlu0 %v5155_v26 }
0x1107   :  { %5159 = vadd.xlane.f32.xlu1 %v5158_v23 }
0x1108   :  { %v12232_v28 = vpop.f32.mrb[164].mxu0 }
0x1109   :  { %v5082_v55 = vpop.f32.mrb[165].mxu0  ;;  %v5091_v30 = vadd.f32 %v12232_v28, %v15931_v22 }
0x110a   :  { %v5083_v43 = vadd.f32 %v15931_v22, %v5082_v55  ;;  %v12233_v17 = vpop.f32.mrb[166].mxu0 }
0x110b   :  { %v5085_v12 = vpop.f32.mrb[167].mxu0  ;;  %v5094_v7 = vadd.f32 %v12233_v17, %v15931_v22  ;;  %v15965_v34 = vadd.f32 %v5091_v30, %v15677_v9 }
0x110c   :  { %v15960_v49 = vadd.f32 %v5083_v43, %v15672_v6  ;;  %v5086_v39 = vadd.f32 %v15931_v22, %v5085_v12 }
0x110d   :  { %v15973_v25 = vadd.f32 %v5094_v7, %v15685_v51  ;;  %v5167_v33 = vsel %vm348_vm1, %v15965_v34, 0.0 }
0x110e   :  { %v15968_v54 = vadd.f32 %v5086_v39, %v15680_v59  ;;  %v5161_v5 = vsel %vm348_vm1, %v15960_v49, 0.0 }
0x110f   :  { %5162 = vadd.xlane.f32.xlu0 %v5161_v5  ;;  %18318 = vst [vmem:[#allocation27_spill] sm:$0xff] %v15973_v25  ;;  %v5170_v45 = vsel %vm348_vm1, %v15973_v25, 0.0 }
0x1110   :  { %v5164_v6 = vsel %vm348_vm1, %v15968_v54, 0.0 }
0x1111   :  { %5165 = vadd.xlane.f32.xlu1 %v5164_v6 }
0x1112   :  { %v12236_v27 = vpop.f32.mrb[168].mxu0 }
0x1113   :  { %v5098_v9 = vpop.f32.mrb[169].mxu0  ;;  %5168 = vadd.xlane.f32.xlu0 %v5167_v33  ;;  %v5107_v59 = vadd.f32 %v12236_v27, %v15931_v22 }
0x1114   :  { %v5099_v38 = vadd.f32 %v15931_v22, %v5098_v9  ;;  %v12237_v20 = vpop.f32.mrb[170].mxu0 }
0x1115   :  { %v5101_v51 = vpop.f32.mrb[171].mxu0  ;;  %5171 = vadd.xlane.f32.xlu1 %v5170_v45  ;;  %v5110_v15 = vadd.f32 %v12237_v20, %v15931_v22  ;;  %v15989_v63 = vadd.f32 %v5107_v59, %v15701_v1 }
0x1116   :  { %v15984_v35 = vadd.f32 %v5099_v38, %v15696_v8  ;;  %v5102_v11 = vadd.f32 %v15931_v22, %v5101_v51 }
0x1117   :  { %18320 = vst [vmem:[#allocation19_spill] sm:$0xff] %v15989_v63  ;;  %v15997_v40 = vadd.f32 %v5110_v15, %v15709_v31  ;;  %v5179_v21 = vsel %vm348_vm1, %v15989_v63, 0.0 }
0x1118   :  { %18319 = vst [vmem:[#allocation18_spill] sm:$0xff] %v15984_v35  ;;  %v15992_v62 = vadd.f32 %v5102_v11, %v15704_v58  ;;  %v5173_v41 = vsel %vm348_vm1, %v15984_v35, 0.0 }
0x1119   :  { %5174 = vadd.xlane.f32.xlu0 %v5173_v41  ;;  %18322 = vst [vmem:[#allocation21_spill] sm:$0xff] %v15997_v40  ;;  %v5182_v1 = vsel %vm348_vm1, %v15997_v40, 0.0 }
0x111a   :  { %18321 = vst [vmem:[#allocation20_spill] sm:$0xff] %v15992_v62  ;;  %v5176_v8 = vsel %vm348_vm1, %v15992_v62, 0.0 }
0x111b   :  { %5177 = vadd.xlane.f32.xlu1 %v5176_v8 }
0x111d   :  { %5180 = vadd.xlane.f32.xlu0 %v5179_v21 }
0x111f   :  { %5183 = vadd.xlane.f32.xlu1 %v5182_v1 }
0x1120   :  { %v12240_v58 = vpop.f32.mrb[172].mxu0 }
0x1121   :  { %v5114_v46 = vpop.f32.mrb[173].mxu0  ;;  %v5123_v36 = vadd.f32 %v12240_v58, %v15931_v22 }
0x1122   :  { %v5115_v14 = vadd.f32 %v15931_v22, %v5114_v46  ;;  %v12241_v31 = vpop.f32.mrb[174].mxu0 }
0x1123   :  { %v5117_v61 = vpop.f32.mrb[175].mxu0  ;;  %v5126_v53 = vadd.f32 %v12241_v31, %v15931_v22  ;;  %v16013_v2 = vadd.f32 %v5123_v36, %v15725_v19 }
0x1124   :  { %v16008_v48 = vadd.f32 %v5115_v14, %v15720_v56  ;;  %v5118_v4 = vadd.f32 %v15931_v22, %v5117_v61 }
0x1125   :  { %18324 = vst [vmem:[#allocation23_spill] sm:$0xff] %v16013_v2  ;;  %v16021_v16 = vadd.f32 %v5126_v53, %v15733_v37  ;;  %v5191_v22 = vsel %vm348_vm1, %v16013_v2, 0.0 }
0x1126   :  { %18323 = vst [vmem:[#allocation22_spill] sm:$0xff] %v16008_v48  ;;  %v16016_v50 = vadd.f32 %v5118_v4, %v15728_v44  ;;  %v5185_v0 = vsel %vm348_vm1, %v16008_v48, 0.0  ;;  %v12862_v44 = vld [vmem:[%s13863_s14 + $0x40] sm:$0xff]  }
0x1127   :  { %5186 = vadd.xlane.f32.xlu0 %v5185_v0  ;;  %18326 = vst [vmem:[#allocation25_spill] sm:$0xff] %v16021_v16  ;;  %v5194_v19 = vsel %vm348_vm1, %v16021_v16, 0.0  ;;  %12266 = vmatprep.subr.bf16.mxu0 %v12862_v44 }
0x1128   :  { %18325 = vst [vmem:[#allocation24_spill] sm:$0xff] %v16016_v50  ;;  %v5188_v56 = vsel %vm348_vm1, %v16016_v50, 0.0  ;;  %12267 = vmatpush3.bf16.msra.mxu0 %v12862_v44 }
0x1129   :  { %5189 = vadd.xlane.f32.xlu1 %v5188_v56 }
0x112b   :  { %5192 = vadd.xlane.f32.xlu0 %v5191_v22 }
0x112d   :  { %5195 = vadd.xlane.f32.xlu1 %v5194_v19 }
0x118e   :  { %v5151_v52 = vpop.xlane.xlu0 %5150 }
0x118f   :  { %v5197_v18 = vmul.f32 0.015625, %v5151_v52 }
0x1190   :  { %v5154_v42 = vpop.xlane.xlu1 %5153 }
0x1191   :  { %v16031_v37 = vsub.f32 %v15936_v29, %v5197_v18  ;;  %v5198_v10 = vmul.f32 0.015625, %v5154_v42 }
0x1192   :  { %v5157_v24 = vpop.xlane.xlu0 %5156 }
0x1193   :  { %v16034_v60 = vsub.f32 %v15944_v3, %v5198_v10  ;;  %v5199_v47 = vmul.f32 0.015625, %v5157_v24  ;;  %v5229_v13 = vmul.f32 %v16031_v37, %v16031_v37 }
0x1194   :  { %v5160_v26 = vpop.xlane.xlu1 %5159 }
0x1195   :  { %v16039_v28 = vsub.f32 %v15941_v57, %v5199_v47  ;;  %v5200_v55 = vmul.f32 0.015625, %v5160_v26  ;;  %v5245_v23 = vsel %vm348_vm1, %v5229_v13, 0.0  ;;  %v5230_v30 = vmul.f32 %v16034_v60, %v16034_v60 }
0x1196   :  { %5246 = vadd.xlane.f32.xlu0 %v5245_v23 }
0x1197   :  { %v16045_v43 = vsub.f32 %v15949_v32, %v5200_v55  ;;  %v5248_v17 = vsel %vm348_vm1, %v5230_v30, 0.0  ;;  %v5231_v12 = vmul.f32 %v16039_v28, %v16039_v28 }
0x1198   :  { %5249 = vadd.xlane.f32.xlu1 %v5248_v17 }
0x1199   :  { %v5251_v39 = vsel %vm348_vm1, %v5231_v12, 0.0  ;;  %v5232_v5 = vmul.f32 %v16045_v43, %v16045_v43 }
0x119a   :  { %5252 = vadd.xlane.f32.xlu0 %v5251_v39 }
0x119b   :  { %v5254_v33 = vsel %vm348_vm1, %v5232_v5, 0.0 }
0x119c   :  { %v5163_v7 = vpop.xlane.xlu0 %5162  ;;  %5255 = vadd.xlane.f32.xlu1 %v5254_v33 }
0x119d   :  { %v5201_v6 = vmul.f32 0.015625, %v5163_v7 }
0x119e   :  { %v5166_v27 = vpop.xlane.xlu1 %5165 }
0x119f   :  { %v16055_v9 = vsub.f32 %v15960_v49, %v5201_v6  ;;  %v5202_v59 = vmul.f32 0.015625, %v5166_v27 }
0x11a0   :  { %v5169_v38 = vpop.xlane.xlu0 %5168 }
0x11a1   :  { %v16058_v20 = vsub.f32 %v15968_v54, %v5202_v59  ;;  %v5203_v45 = vmul.f32 0.015625, %v5169_v38  ;;  %v5233_v51 = vmul.f32 %v16055_v9, %v16055_v9 }
0x11a2   :  { %v5172_v15 = vpop.xlane.xlu1 %5171 }
0x11a3   :  { %v16063_v11 = vsub.f32 %v15965_v34, %v5203_v45  ;;  %v5204_v41 = vmul.f32 0.015625, %v5172_v15  ;;  %v5257_v8 = vsel %vm348_vm1, %v5233_v51, 0.0  ;;  %v5234_v21 = vmul.f32 %v16058_v20, %v16058_v20 }
0x11a4   :  { %5258 = vadd.xlane.f32.xlu0 %v5257_v8 }
0x11a5   :  { %v16069_v1 = vsub.f32 %v15973_v25, %v5204_v41  ;;  %v5260_v58 = vsel %vm348_vm1, %v5234_v21, 0.0  ;;  %v5235_v46 = vmul.f32 %v16063_v11, %v16063_v11  ;;  %v12863_v21 = vld [vmem:[%s13863_s14 + $0x48] sm:$0xff]  }
0x11a6   :  { %v5175_v36 = vpop.xlane.xlu0 %5174  ;;  %5261 = vadd.xlane.f32.xlu1 %v5260_v58  ;;  %12268 = vmatprep.subr.bf16.mxu0 %v12863_v21 }
0x11a7   :  { %v5205_v14 = vmul.f32 0.015625, %v5175_v36  ;;  %v5263_v31 = vsel %vm348_vm1, %v5235_v46, 0.0  ;;  %v5236_v61 = vmul.f32 %v16069_v1, %v16069_v1  ;;  %12269 = vmatpush3.bf16.msra.mxu0 %v12863_v21 }
0x11a8   :  { %v5178_v53 = vpop.xlane.xlu1 %5177  ;;  %5264 = vadd.xlane.f32.xlu0 %v5263_v31  ;;  %v12865_v31 = vld [vmem:[%s13863_s14 + $0x50] sm:$0xff]  }
0x11a9   :  { %v16078_v4 = vsub.f32 %v15984_v35, %v5205_v14  ;;  %v5206_v0 = vmul.f32 0.015625, %v5178_v53  ;;  %v5266_v56 = vsel %vm348_vm1, %v5236_v61, 0.0  ;;  %v12864_v14 = vld [vmem:[%s13858_s8 + $0x40] sm:$0xff]   ;;  %v12866_v61 = vld [vmem:[%s13858_s8 + $0x48] sm:$0xff]   ;;  %12270 = vmatprep.subr.bf16.mxu0 %v12865_v31 }
0x11aa   :  { %v5181_v22 = vpop.xlane.xlu0 %5180  ;;  %5267 = vadd.xlane.f32.xlu1 %v5266_v56  ;;  %12242 = vmatprep.subr.bf16.mxu1 %v12864_v14 }
0x11ab   :  { %v16082_v19 = vsub.f32 %v15992_v62, %v5206_v0  ;;  %v5207_v44 = vmul.f32 0.015625, %v5181_v22  ;;  %v5237_v52 = vmul.f32 %v16078_v4, %v16078_v4  ;;  %12243 = vmatpush3.bf16.msra.mxu1 %v12864_v14  ;;  %v12867_v22 = vld [vmem:[%s13863_s14 + $0x58] sm:$0xff]   ;;  %12271 = vmatpush3.bf16.msra.mxu0 %v12865_v31 }
0x11ac   :  { %v5184_v18 = vpop.xlane.xlu1 %5183  ;;  %12244 = vmatprep.subr.bf16.mxu1 %v12866_v61  ;;  %12272 = vmatprep.subr.bf16.mxu0 %v12867_v22 }
0x11ad   :  { %v16087_v42 = vsub.f32 %v15989_v63, %v5207_v44  ;;  %v5208_v10 = vmul.f32 0.015625, %v5184_v18  ;;  %v5269_v24 = vsel %vm348_vm1, %v5237_v52, 0.0  ;;  %v5238_v47 = vmul.f32 %v16082_v19, %v16082_v19  ;;  %v12868_v44 = vld [vmem:[%s13858_s8 + $0x50] sm:$0xff]   ;;  %v16133_v52 = vld [vmem:[%s13828_s13] sm:$0xff]   ;;  %v12869_v18 = vld [vmem:[%s13858_s8 + $0x58] sm:$0xff]  }
0x11ae   :  { %5270 = vadd.xlane.f32.xlu0 %v5269_v24 }
0x11af   :  { %v16093_v13 = vsub.f32 %v15997_v40, %v5208_v10  ;;  %v5272_v26 = vsel %vm348_vm1, %v5238_v47, 0.0  ;;  %v5239_v55 = vmul.f32 %v16087_v42, %v16087_v42  ;;  %12245 = vmatpush3.bf16.msra.mxu1 %v12866_v61  ;;  %12273 = vmatpush3.bf16.msra.mxu0 %v12867_v22  ;;  %v16138_v10 = vld [vmem:[%s13868_s19 + $0x40] sm:$0xff]  }
0x11b0   :  { %5273 = vadd.xlane.f32.xlu1 %v5272_v26  ;;  %12246 = vmatprep.subr.bf16.mxu1 %v12868_v44 }
0x11b1   :  { %v5275_v23 = vsel %vm348_vm1, %v5239_v55, 0.0  ;;  %v5240_v30 = vmul.f32 %v16093_v13, %v16093_v13  ;;  %12314 = vmatprep.subr.bf16.mxu0 %v16133_v52 }
0x11b2   :  { %5276 = vadd.xlane.f32.xlu0 %v5275_v23 }
0x11b3   :  { %v5278_v17 = vsel %vm348_vm1, %v5240_v30, 0.0  ;;  %12247 = vmatpush3.bf16.msra.mxu1 %v12868_v44 }
0x11b4   :  { %5279 = vadd.xlane.f32.xlu1 %v5278_v17  ;;  %v5187_v12 = vpop.xlane.xlu0 %5186  ;;  %12248 = vmatprep.subr.bf16.mxu1 %v12869_v18 }
0x11b5   :  { %v5209_v7 = vmul.f32 0.015625, %v5187_v12 }
0x11b6   :  { %v5190_v39 = vpop.xlane.xlu1 %5189 }
0x11b7   :  { %v16103_v5 = vsub.f32 %v16008_v48, %v5209_v7  ;;  %v5210_v6 = vmul.f32 0.015625, %v5190_v39  ;;  %12249 = vmatpush3.bf16.msra.mxu1 %v12869_v18 }
0x11b8   :  { %v5193_v27 = vpop.xlane.xlu0 %5192  ;;  %12290 = vmatprep.subr.bf16.mxu1 %v16138_v10 }
0x11b9   :  { %v16106_v33 = vsub.f32 %v16016_v50, %v5210_v6  ;;  %v5211_v59 = vmul.f32 0.015625, %v5193_v27  ;;  %v5241_v38 = vmul.f32 %v16103_v5, %v16103_v5 }
0x11ba   :  { %v5196_v45 = vpop.xlane.xlu1 %5195 }
0x11bb   :  { %v16111_v51 = vsub.f32 %v16013_v2, %v5211_v59  ;;  %v5212_v15 = vmul.f32 0.015625, %v5196_v45  ;;  %v5281_v41 = vsel %vm348_vm1, %v5241_v38, 0.0  ;;  %v5242_v8 = vmul.f32 %v16106_v33, %v16106_v33 }
0x11bc   :  { %5282 = vadd.xlane.f32.xlu0 %v5281_v41 }
0x11bd   :  { %v16118_v58 = vsub.f32 %v16021_v16, %v5212_v15  ;;  %v5284_v46 = vsel %vm348_vm1, %v5242_v8, 0.0  ;;  %v5243_v36 = vmul.f32 %v16111_v51, %v16111_v51 }
0x11be   :  { %5285 = vadd.xlane.f32.xlu1 %v5284_v46  ;;  %v16142_v46 = vld [vmem:[%s13848_s29 + $0x2] ss:$0 sm:$0xff] }
0x11bf   :  { %v5287_v53 = vsel %vm348_vm1, %v5243_v36, 0.0  ;;  %v5244_v0 = vmul.f32 %v16118_v58, %v16118_v58 }
0x11c0   :  { %5288 = vadd.xlane.f32.xlu0 %v5287_v53 }
0x11c1   :  { %v5290_v56 = vsel %vm348_vm1, %v5244_v0, 0.0 }
0x11c2   :  { %5291 = vadd.xlane.f32.xlu1 %v5290_v56 }
0x1223   :  { %v5247_v24 = vpop.xlane.xlu0 %5246 }
0x1224   :  { %v5293_v47 = vmul.f32 0.015625, %v5247_v24  ;;  %v16148_v24 = vld [vmem:[%s13853_s3 + $0x2] ss:$0 sm:$0xff] }
0x1225   :  { %v5250_v26 = vpop.xlane.xlu1 %5249 }
0x1226   :  { %v5309_v55 = vadd.f32 1e-05, %v5293_v47  ;;  %v5294_v23 = vmul.f32 0.015625, %v5250_v26 }
0x1227   :  { %v5253_v30 = vpop.xlane.xlu0 %5252 }
0x1228   :  { %13318 = vrsqrt.f32 %v5309_v55  ;;  %v5310_v17 = vadd.f32 1e-05, %v5294_v23  ;;  %v5295_v12 = vmul.f32 0.015625, %v5253_v30 }
0x1229   :  { %v5256_v7 = vpop.xlane.xlu1 %5255 }
0x122a   :  { %13320 = vrsqrt.f32 %v5310_v17  ;;  %v5311_v39 = vadd.f32 1e-05, %v5295_v12  ;;  %v5296_v6 = vmul.f32 0.015625, %v5256_v7 }
0x122c   :  { %13322 = vrsqrt.f32 %v5311_v39  ;;  %v5312_v27 = vadd.f32 1e-05, %v5296_v6 }
0x122e   :  { %13324 = vrsqrt.f32 %v5312_v27 }
0x1231   :  { %v5259_v59 = vpop.xlane.xlu0 %5258 }
0x1232   :  { %v5297_v38 = vmul.f32 0.015625, %v5259_v59  ;;  %v13319_v8 = vpop.eup %13318 }
0x1233   :  { %v5262_v45 = vpop.xlane.xlu1 %5261  ;;  %v5341_v31 = vmul.f32 %v13319_v8, %v16031_v37 }
0x1234   :  { %v5313_v15 = vadd.f32 1e-05, %v5297_v38  ;;  %v5298_v41 = vmul.f32 0.015625, %v5262_v45  ;;  %v13321_v61 = vpop.eup %13320 }
0x1235   :  { %v5265_v21 = vpop.xlane.xlu0 %5264  ;;  %v5342_v22 = vmul.f32 %v13321_v61, %v16034_v60  ;;  %v5363_v18 = vmul.f32 %v16142_v46, %v5341_v31 }
0x1236   :  { %13326 = vrsqrt.f32 %v5313_v15  ;;  %v5314_v36 = vadd.f32 1e-05, %v5298_v41  ;;  %v5299_v14 = vmul.f32 0.015625, %v5265_v21  ;;  %v13323_v44 = vpop.eup %13322 }
0x1237   :  { %v5268_v53 = vpop.xlane.xlu1 %5267  ;;  %v5343_v47 = vmul.f32 %v13323_v44, %v16039_v28  ;;  %v5364_v55 = vmul.f32 %v16142_v46, %v5342_v22  ;;  %v5385_v7 = vadd.f32 %v16148_v24, %v5363_v18 }
0x1238   :  { %13328 = vrsqrt.f32 %v5314_v36  ;;  %v5315_v0 = vadd.f32 1e-05, %v5299_v14  ;;  %v5300_v56 = vmul.f32 0.015625, %v5268_v53  ;;  %v13325_v23 = vpop.eup %13324 }
0x1239   :  { %v5365_v30 = vmul.f32 %v16142_v46, %v5343_v47  ;;  %v5344_v17 = vmul.f32 %v13325_v23, %v16045_v43  ;;  %v5386_v39 = vadd.f32 %v16148_v24, %v5364_v55  ;;  %v16181_v55 = vld [vmem:[%s13828_s13 + $0x8] sm:$0xff]  }
0x123a   :  { %13330 = vrsqrt.f32 %v5315_v0  ;;  %v5316_v26 = vadd.f32 1e-05, %v5300_v56  ;;  %v12871_v0 = vld [vmem:[%s13868_s19 + $0x48] sm:$0xff]  }
0x123b   :  { %v5271_v37 = vpop.xlane.xlu0 %5270  ;;  %v5366_v6 = vmul.f32 %v16142_v46, %v5344_v17  ;;  %v5387_v59 = vadd.f32 %v16148_v24, %v5365_v30  ;;  %v16158_v45 = vpack.c.bf16 %v5386_v39, %v5385_v7  ;;  %v16194_v7 = vld [vmem:[%s13828_s13 + $0x10] sm:$0xff]  }
0x123c   :  { %13332 = vrsqrt.f32 %v5316_v26  ;;  %v5301_v12 = vmul.f32 0.015625, %v5271_v37  ;;  %v12872_v26 = vld [vmem:[%s13868_s19 + $0x50] sm:$0xff]  }
0x123d   :  { %v5274_v60 = vpop.xlane.xlu1 %5273  ;;  %v5388_v43 = vadd.f32 %v16148_v24, %v5366_v6  ;;  %12250 = vmatprep.mubr.msk.bf16.mxu1 %vm348_vm1, %v16158_v45  ;;  %12274 = vmatprep.mubr.msk.bf16.mxu0 %vm348_vm1, %v16158_v45 }
0x123e   :  { %v5317_v28 = vadd.f32 1e-05, %v5301_v12  ;;  %v5302_v27 = vmul.f32 0.015625, %v5274_v60  ;;  %v12873_v60 = vld [vmem:[%s13868_s19 + $0x58] sm:$0xff]  }
0x123f   :  { %v5277_v38 = vpop.xlane.xlu0 %5276  ;;  %v16166_v53 = vpack.c.bf16 %v5388_v43, %v5387_v59 }
0x1240   :  { %v13327_v15 = vpop.eup %13326  ;;  %13334 = vrsqrt.f32 %v5317_v28  ;;  %v5318_v41 = vadd.f32 1e-05, %v5302_v27  ;;  %v5303_v8 = vmul.f32 0.015625, %v5277_v38 }
0x1241   :  { %v5280_v21 = vpop.xlane.xlu1 %5279  ;;  %v5345_v36 = vmul.f32 %v13327_v15, %v16055_v9  ;;  %12251 = vmatmul.mubr.msk.bf16.vlgmr.msra.gmra.mrb[160].mxu1 %vm348_vm1, %v16166_v53  ;;  %12275 = vmatmul.mubr.msk.bf16.vlgmr.msra.gmra.mrb[176].mxu0 %vm348_vm1, %v16166_v53 }
0x1242   :  { %v13329_v14 = vpop.eup %13328  ;;  %13336 = vrsqrt.f32 %v5318_v41  ;;  %v5319_v31 = vadd.f32 1e-05, %v5303_v8  ;;  %v5304_v61 = vmul.f32 0.015625, %v5280_v21  ;;  %12291 = vmatpush3.bf16.msra.mxu1 %v16138_v10  ;;  %12315 = vmatpush3.bf16.msra.mxu0 %v16133_v52 }
0x1243   :  { %v5346_v56 = vmul.f32 %v13329_v14, %v16058_v20  ;;  %v5367_v22 = vmul.f32 %v16142_v46, %v5345_v36  ;;  %12292 = vmatprep.subr.bf16.mxu1 %v12871_v0  ;;  %12316 = vmatprep.subr.bf16.mxu0 %v16181_v55  ;;  %v16210_v14 = vld [vmem:[%s13828_s13 + $0x18] sm:$0xff]  }
0x1244   :  { %v13331_v44 = vpop.eup %13330  ;;  %13338 = vrsqrt.f32 %v5319_v31  ;;  %v5320_v18 = vadd.f32 1e-05, %v5304_v61 }
0x1245   :  { %v5368_v9 = vmul.f32 %v16142_v46, %v5346_v56  ;;  %v5347_v47 = vmul.f32 %v13331_v44, %v16063_v11  ;;  %v5389_v23 = vadd.f32 %v16148_v24, %v5367_v22 }
0x1246   :  { %v13333_v20 = vpop.eup %13332  ;;  %13340 = vrsqrt.f32 %v5320_v18  ;;  %12293 = vmatpush3.bf16.msra.mxu1 %v12871_v0  ;;  %12317 = vmatpush3.bf16.msra.mxu0 %v16181_v55 }
0x1247   :  { %v5390_v37 = vadd.f32 %v16148_v24, %v5368_v9  ;;  %v5348_v11 = vmul.f32 %v13333_v20, %v16069_v1  ;;  %v5369_v10 = vmul.f32 %v16142_v46, %v5347_v47  ;;  %12294 = vmatprep.subr.bf16.mxu1 %v12872_v26  ;;  %12318 = vmatprep.subr.bf16.mxu0 %v16194_v7 }
0x1249   :  { %v16188_v30 = vpack.c.bf16 %v5390_v37, %v5389_v23  ;;  %v5370_v17 = vmul.f32 %v16142_v46, %v5348_v11  ;;  %v5283_v39 = vpop.xlane.xlu0 %5282  ;;  %v5391_v1 = vadd.f32 %v16148_v24, %v5369_v10 }
0x124a   :  { %v13335_v12 = vpop.eup %13334  ;;  %v5305_v59 = vmul.f32 0.015625, %v5283_v39  ;;  %12295 = vmatpush3.bf16.msra.mxu1 %v12872_v26  ;;  %12319 = vmatpush3.bf16.msra.mxu0 %v16194_v7  ;;  %v13747_v26 = vld [vmem:[%s13833_s17] sm:$0x3] }
0x124b   :  { %12254 = vmatprep.mubr.msk.bf16.mxu1 %vm348_vm1, %v16188_v30  ;;  %12278 = vmatprep.mubr.msk.bf16.mxu0 %vm348_vm1, %v16188_v30  ;;  %v5392_v6 = vadd.f32 %v16148_v24, %v5370_v17  ;;  %v5349_v28 = vmul.f32 %v13335_v12, %v16078_v4  ;;  %v5286_v38 = vpop.xlane.xlu1 %5285 }
0x124c   :  { %v13337_v27 = vpop.eup %13336  ;;  %v5321_v21 = vadd.f32 1e-05, %v5305_v59  ;;  %v5306_v36 = vmul.f32 0.015625, %v5286_v38  ;;  %12296 = vmatprep.subr.bf16.mxu1 %v12873_v60  ;;  %12320 = vmatprep.subr.bf16.mxu0 %v16210_v14 }
0x124d   :  { %v16204_v15 = vpack.c.bf16 %v5392_v6, %v5391_v1  ;;  %v5350_v43 = vmul.f32 %v13337_v27, %v16082_v19  ;;  %v5371_v41 = vmul.f32 %v16142_v46, %v5349_v28  ;;  %v5289_v4 = vpop.xlane.xlu0 %5288 }
0x124e   :  { %v13339_v8 = vpop.eup %13338  ;;  %13342 = vrsqrt.f32 %v5321_v21  ;;  %v5322_v0 = vadd.f32 1e-05, %v5306_v36  ;;  %v5307_v56 = vmul.f32 0.015625, %v5289_v4  ;;  %12297 = vmatpush3.bf16.msra.mxu1 %v12873_v60  ;;  %12321 = vmatpush3.bf16.msra.mxu0 %v16210_v14 }
0x124f   :  { %12255 = vmatmul.mubr.msk.bf16.gmra.mrb[164].mxu1 %vm348_vm1, %v16204_v15  ;;  %12279 = vmatmul.mubr.msk.bf16.gmra.mrb[180].mxu0 %vm348_vm1, %v16204_v15  ;;  %v5372_v19 = vmul.f32 %v16142_v46, %v5350_v43  ;;  %v5351_v31 = vmul.f32 %v13339_v8, %v16087_v42  ;;  %v5393_v22 = vadd.f32 %v16148_v24, %v5371_v41  ;;  %v5292_v44 = vpop.xlane.xlu1 %5291 }
0x1250   :  { %v13341_v61 = vpop.eup %13340  ;;  %13344 = vrsqrt.f32 %v5322_v0  ;;  %v5323_v20 = vadd.f32 1e-05, %v5307_v56  ;;  %v5308_v42 = vmul.f32 0.015625, %v5292_v44  ;;  %12338 = vmatprep.subr.bf16.mxu1 %v16133_v52  ;;  %12762 = vmatprep.subr.msk.bf16.mxu0 %vm1581_vm2, %v13747_v26 }
0x1251   :  { %v5394_v18 = vadd.f32 %v16148_v24, %v5372_v19  ;;  %v5352_v9 = vmul.f32 %v13341_v61, %v16093_v13  ;;  %v5373_v47 = vmul.f32 %v16142_v46, %v5351_v31 }
0x1252   :  { %13346 = vrsqrt.f32 %v5323_v20  ;;  %v5324_v11 = vadd.f32 1e-05, %v5308_v42 }
0x1253   :  { %v5405_v23 = vpack.c.bf16 %v5394_v18, %v5393_v22  ;;  %v5374_v37 = vmul.f32 %v16142_v46, %v5352_v9  ;;  %v5395_v13 = vadd.f32 %v16148_v24, %v5373_v47 }
0x1254   :  { %13348 = vrsqrt.f32 %v5324_v11 }
0x1255   :  { %12258 = vmatprep.mubr.msk.bf16.mxu1 %vm348_vm1, %v5405_v23  ;;  %12282 = vmatprep.mubr.msk.bf16.mxu0 %vm348_vm1, %v5405_v23  ;;  %v5396_v10 = vadd.f32 %v16148_v24, %v5374_v37 }
0x1257   :  { %v5406_v17 = vpack.c.bf16 %v5396_v10, %v5395_v13 }
0x1258   :  { %v13343_v12 = vpop.eup %13342 }
0x1259   :  { %12259 = vmatmul.mubr.msk.bf16.gmra.mrb[168].mxu1 %vm348_vm1, %v5406_v17  ;;  %12283 = vmatmul.mubr.msk.bf16.gmra.mrb[184].mxu0 %vm348_vm1, %v5406_v17  ;;  %v5353_v60 = vmul.f32 %v13343_v12, %v16103_v5  ;;  %v18327_v12 = vld [vmem:[#allocation28_spill] sm:$0xff] }
0x125a   :  { %v13345_v39 = vpop.eup %13344 }
0x125b   :  { %v5354_v1 = vmul.f32 %v13345_v39, %v16106_v33  ;;  %v5375_v6 = vmul.f32 %v16142_v46, %v5353_v60 }
0x125c   :  { %v13347_v28 = vpop.eup %13346 }
0x125d   :  { %v5376_v27 = vmul.f32 %v16142_v46, %v5354_v1  ;;  %v5355_v59 = vmul.f32 %v13347_v28, %v16111_v51  ;;  %v5397_v43 = vadd.f32 %v16148_v24, %v5375_v6 }
0x125e   :  { %v13349_v38 = vpop.eup %13348 }
0x125f   :  { %v5398_v41 = vadd.f32 %v16148_v24, %v5376_v27  ;;  %v5356_v8 = vmul.f32 %v13349_v38, %v16118_v58  ;;  %v5377_v21 = vmul.f32 %v16142_v46, %v5355_v59  ;;  %v16271_v58 = vld [vmem:[%s13873_s24 + $0x2] ss:$0 sm:$0xff] }
0x1261   :  { %v5407_v5 = vpack.c.bf16 %v5398_v41, %v5397_v43  ;;  %v5378_v36 = vmul.f32 %v16142_v46, %v5356_v8  ;;  %v5399_v33 = vadd.f32 %v16148_v24, %v5377_v21 }
0x1263   :  { %12262 = vmatprep.mubr.msk.bf16.mxu1 %vm348_vm1, %v5407_v5  ;;  %12286 = vmatprep.mubr.msk.bf16.mxu0 %vm348_vm1, %v5407_v5  ;;  %v5400_v51 = vadd.f32 %v16148_v24, %v5378_v36 }
0x1265   :  { %v5408_v4 = vpack.c.bf16 %v5400_v51, %v5399_v33 }
0x1267   :  { %12263 = vmatmul.mubr.msk.bf16.gmra.mrb[172].mxu1 %vm348_vm1, %v5408_v4  ;;  %12287 = vmatmul.mubr.msk.bf16.gmra.mrb[188].mxu0 %vm348_vm1, %v5408_v4 }
0x1268   :  { %12298 = vmatprep.mubr.msk.bf16.mxu1 %vm348_vm1, %v16158_v45 }
0x126f   :  { %12299 = vmatmul.mubr.msk.bf16.vlgmr.msra.gmra.mrb[176].mxu1 %vm348_vm1, %v16166_v53 }
0x1270   :  { %12302 = vmatprep.mubr.msk.bf16.mxu1 %vm348_vm1, %v16188_v30  ;;  %12339 = vmatpush3.bf16.msra.mxu1 %v16133_v52  ;;  %v16274_v52 = vld [vmem:[%s13878_s30 + $0x2] ss:$0 sm:$0xff] }
0x1271   :  { %12340 = vmatprep.subr.bf16.mxu1 %v16181_v55 }
0x1274   :  { %12341 = vmatpush3.bf16.msra.mxu1 %v16181_v55 }
0x1275   :  { %12342 = vmatprep.subr.bf16.mxu1 %v16194_v7 }
0x1277   :  { %12303 = vmatmul.mubr.msk.bf16.gmra.mrb[180].mxu1 %vm348_vm1, %v16204_v15 }
0x1278   :  { %12306 = vmatprep.mubr.msk.bf16.mxu1 %vm348_vm1, %v5405_v23  ;;  %12343 = vmatpush3.bf16.msra.mxu1 %v16194_v7 }
0x1279   :  { %12344 = vmatprep.subr.bf16.mxu1 %v16210_v14 }
0x127c   :  { %12345 = vmatpush3.bf16.msra.mxu1 %v16210_v14 }
0x127d   :  { %12763 = vmatprep.subr.msk.bf16.mxu1 %vm1581_vm2, %v13747_v26 }
0x127f   :  { %12307 = vmatmul.mubr.msk.bf16.gmra.mrb[184].mxu1 %vm348_vm1, %v5406_v17 }
0x1280   :  { %12310 = vmatprep.mubr.msk.bf16.mxu1 %vm348_vm1, %v5407_v5 }
0x1287   :  { %12311 = vmatmul.mubr.msk.bf16.gmra.mrb[188].mxu1 %vm348_vm1, %v5408_v4 }
0x1314   :  { %v12252_v46 = vpop.f32.mrb[160].mxu1  ;;  %v12276_v24 = vpop.f32.mrb[176].mxu0 }
0x1315   :  { %v5517_v45 = vadd.f32 %v12252_v46, %v16271_v58  ;;  %v5655_v53 = vadd.f32 %v12276_v24, %v16274_v52  ;;  %v5508_v55 = vpop.f32.mrb[161].mxu1  ;;  %v5646_v30 = vpop.f32.mrb[177].mxu0 }
0x1316   :  { %v5509_v7 = vadd.f32 %v16271_v58, %v5508_v55  ;;  %v5647_v15 = vadd.f32 %v16274_v52, %v5646_v30  ;;  %v12253_v14 = vpop.f32.mrb[162].mxu1  ;;  %v12277_v19 = vpop.f32.mrb[178].mxu0 }
0x1317   :  { %v5849_v31 = vmul.f32 %v5655_v53, %v5517_v45  ;;  %v5520_v61 = vadd.f32 %v12253_v14, %v16271_v58  ;;  %v5658_v0 = vadd.f32 %v12277_v19, %v16274_v52  ;;  %v5511_v56 = vpop.f32.mrb[163].mxu1  ;;  %v5649_v22 = vpop.f32.mrb[179].mxu0 }
0x1318   :  { %v5847_v44 = vmul.f32 %v5647_v15, %v5509_v7  ;;  %v5512_v18 = vadd.f32 %v16271_v58, %v5511_v56  ;;  %v5650_v9 = vadd.f32 %v16274_v52, %v5649_v22 }
0x1319   :  { %v5850_v47 = vmul.f32 %v5658_v0, %v5520_v61 }
0x131a   :  { %v5848_v20 = vmul.f32 %v5650_v9, %v5512_v18 }
0x131b   :  { %v5864_v42 = vpack.c.bf16 %v5850_v47, %v5849_v31 }
0x131c   :  { %v5863_v26 = vpack.c.bf16 %v5848_v20, %v5847_v44 }
0x131e   :  { %12322 = vmatprep.mubr.msk.bf16.mxu0 %vm348_vm1, %v5863_v26 }
0x131f   :  { %12323 = vmatmul.mubr.msk.bf16.vlgmr.msra.gmra.mrb[192].mxu0 %vm348_vm1, %v5864_v42 }
0x1320   :  { %12363 = vmatpush3.bf16.msra.mxu0 %v18327_v12 }
0x1322   :  { %v12256_v23 = vpop.f32.mrb[164].mxu1  ;;  %v12280_v37 = vpop.f32.mrb[180].mxu0 }
0x1323   :  { %v16287_v11 = vadd.f32 %v12256_v23, %v16271_v58  ;;  %v16290_v13 = vadd.f32 %v12280_v37, %v16274_v52  ;;  %v5524_v10 = vpop.f32.mrb[165].mxu1  ;;  %v5662_v17 = vpop.f32.mrb[181].mxu0 }
0x1324   :  { %v16294_v60 = vadd.f32 %v16271_v58, %v5524_v10  ;;  %v16297_v39 = vadd.f32 %v16274_v52, %v5662_v17  ;;  %v12257_v1 = vpop.f32.mrb[166].mxu1  ;;  %v12281_v6 = vpop.f32.mrb[182].mxu0 }
0x1325   :  { %v5853_v28 = vmul.f32 %v16290_v13, %v16287_v11  ;;  %v16302_v27 = vadd.f32 %v12257_v1, %v16271_v58  ;;  %v16305_v59 = vadd.f32 %v12281_v6, %v16274_v52  ;;  %v5527_v38 = vpop.f32.mrb[167].mxu1  ;;  %v5665_v43 = vpop.f32.mrb[183].mxu0 }
0x1326   :  { %v5851_v41 = vmul.f32 %v16297_v39, %v16294_v60  ;;  %v16310_v8 = vadd.f32 %v16271_v58, %v5527_v38  ;;  %v16313_v21 = vadd.f32 %v16274_v52, %v5665_v43 }
0x1327   :  { %v5854_v5 = vmul.f32 %v16305_v59, %v16302_v27 }
0x1328   :  { %v5852_v36 = vmul.f32 %v16313_v21, %v16310_v8 }
0x1329   :  { %v5866_v33 = vpack.c.bf16 %v5854_v5, %v5853_v28 }
0x132a   :  { %v5865_v51 = vpack.c.bf16 %v5852_v36, %v5851_v41 }
0x132c   :  { %v12260_v4 = vpop.f32.mrb[168].mxu1  ;;  %v12284_v46 = vpop.f32.mrb[184].mxu0  ;;  %12326 = vmatprep.mubr.msk.bf16.mxu0 %vm348_vm1, %v5865_v51 }
0x132d   :  { %v5549_v24 = vadd.f32 %v12260_v4, %v16271_v58  ;;  %v5687_v55 = vadd.f32 %v12284_v46, %v16274_v52  ;;  %v5540_v30 = vpop.f32.mrb[169].mxu1  ;;  %v5678_v14 = vpop.f32.mrb[185].mxu0  ;;  %12327 = vmatmul.mubr.msk.bf16.gmra.mrb[196].mxu0 %vm348_vm1, %v5866_v33 }
0x132e   :  { %v5541_v19 = vadd.f32 %v16271_v58, %v5540_v30  ;;  %v5679_v31 = vadd.f32 %v16274_v52, %v5678_v14  ;;  %v12261_v56 = vpop.f32.mrb[170].mxu1  ;;  %v12285_v22 = vpop.f32.mrb[186].mxu0 }
0x132f   :  { %v5857_v44 = vmul.f32 %v5655_v53, %v5549_v24  ;;  %v6010_v47 = vmul.f32 %v5687_v55, %v5517_v45  ;;  %v16325_v20 = vmul.f32 %v5687_v55, %v5549_v24  ;;  %v5552_v42 = vadd.f32 %v12261_v56, %v16271_v58  ;;  %v5543_v26 = vpop.f32.mrb[171].mxu1  ;;  %v5681_v23 = vpop.f32.mrb[187].mxu0 }
0x1330   :  { %v5855_v37 = vmul.f32 %v5647_v15, %v5541_v19  ;;  %v6008_v10 = vmul.f32 %v5679_v31, %v5509_v7  ;;  %v16328_v17 = vmul.f32 %v5679_v31, %v5541_v19  ;;  %v5690_v1 = vadd.f32 %v12285_v22, %v16274_v52 }
0x1331   :  { %v5858_v6 = vmul.f32 %v5658_v0, %v5552_v42  ;;  %v5544_v28 = vadd.f32 %v16271_v58, %v5543_v26  ;;  %v5682_v38 = vadd.f32 %v16274_v52, %v5681_v23 }
0x1332   :  { %v6011_v43 = vmul.f32 %v5690_v1, %v5520_v61  ;;  %v16333_v53 = vmul.f32 %v5690_v1, %v5552_v42 }
0x1333   :  { %v5868_v45 = vpack.c.bf16 %v5858_v6, %v5857_v44  ;;  %v5856_v41 = vmul.f32 %v5650_v9, %v5544_v28  ;;  %v6009_v5 = vmul.f32 %v5682_v38, %v5512_v18  ;;  %v6017_v36 = vmul.f32 %v5682_v38, %v5544_v28 }
0x1334   :  { %v6025_v33 = vpack.c.bf16 %v6011_v43, %v6010_v47  ;;  %v6029_v7 = vpack.c.bf16 %v16333_v53, %v16325_v20 }
0x1335   :  { %v5867_v15 = vpack.c.bf16 %v5856_v41, %v5855_v37  ;;  %v6024_v51 = vpack.c.bf16 %v6009_v5, %v6008_v10  ;;  %v6028_v4 = vpack.c.bf16 %v6017_v36, %v16328_v17 }
0x1337   :  { %12330 = vmatprep.mubr.msk.bf16.mxu0 %vm348_vm1, %v5867_v15  ;;  %12346 = vmatprep.mubr.msk.bf16.mxu1 %vm348_vm1, %v6024_v51 }
0x1338   :  { %12331 = vmatmul.mubr.msk.bf16.gmra.mrb[200].mxu0 %vm348_vm1, %v5868_v45  ;;  %12347 = vmatmul.mubr.msk.bf16.vlgmr.msra.gmra.mrb[192].mxu1 %vm348_vm1, %v6025_v33 }
0x1339   :  { %12381 = vmatpush3.bf16.msra.mxu1 %v18327_v12 }
0x133a   :  { %v12264_v61 = vpop.f32.mrb[172].mxu1  ;;  %v12288_v0 = vpop.f32.mrb[188].mxu0 }
0x133b   :  { %v5565_v18 = vadd.f32 %v12264_v61, %v16271_v58  ;;  %v5703_v9 = vadd.f32 %v12288_v0, %v16274_v52  ;;  %v5556_v46 = vpop.f32.mrb[173].mxu1  ;;  %v5694_v24 = vpop.f32.mrb[189].mxu0 }
0x133c   :  { %v5557_v55 = vadd.f32 %v16271_v58, %v5556_v46  ;;  %v5695_v30 = vadd.f32 %v16274_v52, %v5694_v24  ;;  %v12265_v14 = vpop.f32.mrb[174].mxu1  ;;  %v12289_v19 = vpop.f32.mrb[190].mxu0 }
0x133d   :  { %v5861_v31 = vmul.f32 %v16290_v13, %v5565_v18  ;;  %v6014_v56 = vmul.f32 %v5703_v9, %v16287_v11  ;;  %v6022_v22 = vmul.f32 %v5703_v9, %v5565_v18  ;;  %v5568_v44 = vadd.f32 %v12265_v14, %v16271_v58  ;;  %v5559_v47 = vpop.f32.mrb[175].mxu1  ;;  %v5697_v20 = vpop.f32.mrb[191].mxu0 }
0x133e   :  { %v5859_v42 = vmul.f32 %v16297_v39, %v5557_v55  ;;  %v6012_v26 = vmul.f32 %v5695_v30, %v16294_v60  ;;  %v6020_v23 = vmul.f32 %v5695_v30, %v5557_v55  ;;  %v5706_v37 = vadd.f32 %v12289_v19, %v16274_v52 }
0x133f   :  { %v5862_v10 = vmul.f32 %v16305_v59, %v5568_v44  ;;  %v5560_v17 = vadd.f32 %v16271_v58, %v5559_v47  ;;  %v5698_v13 = vadd.f32 %v16274_v52, %v5697_v20 }
0x1340   :  { %v6015_v11 = vmul.f32 %v5706_v37, %v16302_v27  ;;  %v6023_v1 = vmul.f32 %v5706_v37, %v5568_v44 }
0x1341   :  { %v5870_v6 = vpack.c.bf16 %v5862_v10, %v5861_v31  ;;  %v5860_v28 = vmul.f32 %v16313_v21, %v5560_v17  ;;  %v6013_v38 = vmul.f32 %v5698_v13, %v16310_v8  ;;  %v6021_v39 = vmul.f32 %v5698_v13, %v5560_v17 }
0x1342   :  { %v6027_v43 = vpack.c.bf16 %v6015_v11, %v6014_v56  ;;  %v6031_v60 = vpack.c.bf16 %v6023_v1, %v6022_v22  ;;  %v16359_v53 = vpop.f32.mrb[176].mxu1 }
0x1343   :  { %v5869_v45 = vpack.c.bf16 %v5860_v28, %v5859_v42  ;;  %v6026_v41 = vpack.c.bf16 %v6013_v38, %v6012_v26  ;;  %v6030_v59 = vpack.c.bf16 %v6021_v39, %v6020_v23  ;;  %v16361_v5 = vpop.f32.mrb[177].mxu1 }
0x1344   :  { %v16363_v58 = vpop.f32.mrb[178].mxu1 }
0x1345   :  { %12334 = vmatprep.mubr.msk.bf16.mxu0 %vm348_vm1, %v5869_v45  ;;  %12350 = vmatprep.mubr.msk.bf16.mxu1 %vm348_vm1, %v6026_v41  ;;  %v16367_v52 = vpop.f32.mrb[179].mxu1 }
0x1346   :  { %12335 = vmatmul.mubr.msk.bf16.gmra.mrb[204].mxu0 %vm348_vm1, %v5870_v6  ;;  %12351 = vmatmul.mubr.msk.bf16.gmra.mrb[196].mxu1 %vm348_vm1, %v6027_v43 }
0x1347   :  { %12354 = vmatprep.mubr.msk.bf16.mxu1 %vm348_vm1, %v6028_v4 }
0x134a   :  { %v16372_v27 = vpop.f32.mrb[180].mxu1 }
0x134b   :  { %v16374_v8 = vpop.f32.mrb[181].mxu1 }
0x134c   :  { %v16376_v21 = vpop.f32.mrb[182].mxu1 }
0x134d   :  { %v16378_v36 = vpop.f32.mrb[183].mxu1 }
0x134e   :  { %12355 = vmatmul.mubr.msk.bf16.gmra.mrb[200].mxu1 %vm348_vm1, %v6029_v7  ;;  %v16400_v7 = vld [vmem:[%s13888_s12 + $0x40] sm:$0xff]  }
0x134f   :  { %12358 = vmatprep.mubr.msk.bf16.mxu1 %vm348_vm1, %v6030_v59  ;;  %12398 = vmatprep.subr.bf16.mxu0 %v16400_v7 }
0x1352   :  { %v16382_v33 = vpop.f32.mrb[184].mxu1 }
0x1353   :  { %v16384_v15 = vpop.f32.mrb[185].mxu1 }
0x1354   :  { %v16386_v51 = vpop.f32.mrb[186].mxu1 }
0x1355   :  { %v16388_v4 = vpop.f32.mrb[187].mxu1 }
0x1356   :  { %12359 = vmatmul.mubr.msk.bf16.gmra.mrb[204].mxu1 %vm348_vm1, %v6031_v60 }
0x135a   :  { %v16391_v61 = vpop.f32.mrb[188].mxu1 }
0x135b   :  { %v16393_v0 = vpop.f32.mrb[189].mxu1 }
0x135c   :  { %v16395_v18 = vpop.f32.mrb[190].mxu1 }
0x135d   :  { %v16397_v9 = vpop.f32.mrb[191].mxu1 }
0x13f2   :  { %v12324_v46 = vpop.f32.mrb[192].mxu0 }
0x13f3   :  { %v5929_v24 = vpop.f32.mrb[193].mxu0  ;;  %v5994_v47 = vmul.f32 0.25, %v12324_v46 }
0x13f4   :  { %v12325_v55 = vpop.f32.mrb[194].mxu0  ;;  %v5992_v23 = vmul.f32 0.25, %v5929_v24 }
0x13f5   :  { %v5932_v30 = vpop.f32.mrb[195].mxu0  ;;  %v5995_v13 = vmul.f32 0.25, %v12325_v55 }
0x13f6   :  { %v5993_v38 = vmul.f32 0.25, %v5932_v30 }
0x1400   :  { %v12328_v14 = vpop.f32.mrb[196].mxu0 }
0x1401   :  { %v5945_v19 = vpop.f32.mrb[197].mxu0 }
0x1402   :  { %v12329_v31 = vpop.f32.mrb[198].mxu0 }
0x1403   :  { %v5948_v56 = vpop.f32.mrb[199].mxu0 }
0x140b   :  { %v12332_v22 = vpop.f32.mrb[200].mxu0  ;;  %v12348_v44 = vpop.f32.mrb[192].mxu1 }
0x140c   :  { %v6155_v20 = vmul.f32 0.25, %v12348_v44  ;;  %v5961_v42 = vpop.f32.mrb[201].mxu0  ;;  %v6090_v26 = vpop.f32.mrb[193].mxu1 }
0x140d   :  { %v6153_v37 = vmul.f32 0.25, %v6090_v26  ;;  %v12333_v10 = vpop.f32.mrb[202].mxu0  ;;  %v12349_v17 = vpop.f32.mrb[194].mxu1 }
0x140e   :  { %v6171_v11 = vmax.f32 %v5994_v47, %v6155_v20  ;;  %v6156_v1 = vmul.f32 0.25, %v12349_v17  ;;  %v5964_v6 = vpop.f32.mrb[203].mxu0  ;;  %v6093_v28 = vpop.f32.mrb[195].mxu1 }
0x140f   :  { %v6169_v39 = vmax.f32 %v5992_v23, %v6153_v37  ;;  %v6154_v43 = vmul.f32 0.25, %v6093_v28 }
0x1410   :  { %v6187_v60 = vsub.f32 %v5994_v47, %v6171_v11  ;;  %v6235_v45 = vsub.f32 %v6155_v20, %v6171_v11  ;;  %v6172_v41 = vmax.f32 %v5995_v13, %v6156_v1 }
0x1411   :  { %v6185_v59 = vsub.f32 %v5992_v23, %v6169_v39  ;;  %v6233_v46 = vsub.f32 %v6153_v37, %v6169_v39  ;;  %v6170_v44 = vmax.f32 %v5993_v38, %v6154_v43  ;;  %v5998_v37 = vmul.f32 0.25, %v12328_v14 }
0x1412   :  { %v6205_v12 = vmul.f32 1.442695, %v6187_v60  ;;  %v6253_v16 = vmul.f32 1.442695, %v6235_v45  ;;  %v6188_v24 = vsub.f32 %v5995_v13, %v6172_v41  ;;  %v6236_v26 = vsub.f32 %v6156_v1, %v6172_v41 }
0x1413   :  { %v6201_v50 = vmul.f32 1.442695, %v6185_v59  ;;  %v6249_v2 = vmul.f32 1.442695, %v6233_v46  ;;  %v6186_v55 = vsub.f32 %v5993_v38, %v6170_v44  ;;  %v6234_v48 = vsub.f32 %v6154_v43, %v6170_v44 }
0x1414   :  { %13350 = vpow2.f32 %v6205_v12  ;;  %v6207_v17 = vmul.f32 1.442695, %v6188_v24  ;;  %v6255_v30 = vmul.f32 1.442695, %v6236_v26  ;;  %v5996_v38 = vmul.f32 0.25, %v5945_v19 }
0x1415   :  { %13352 = vpow2.f32 %v6253_v16  ;;  %v6203_v28 = vmul.f32 1.442695, %v6186_v55  ;;  %v6251_v47 = vmul.f32 1.442695, %v6234_v48  ;;  %v5999_v39 = vmul.f32 0.25, %v12329_v31 }
0x1416   :  { %13354 = vpow2.f32 %v6201_v50  ;;  %v5997_v12 = vmul.f32 0.25, %v5948_v56  ;;  %v16407_v48 = vmul.f32 0.25, %v5961_v42  ;;  %v16411_v44 = vmul.f32 0.25, %v12333_v10 }
0x1417   :  { %13356 = vpow2.f32 %v6249_v2  ;;  %v16405_v2 = vmul.f32 0.25, %v12332_v22  ;;  %v16413_v19 = vmul.f32 0.25, %v5964_v6 }
0x1418   :  { %13358 = vpow2.f32 %v6207_v17 }
0x1419   :  { %13360 = vpow2.f32 %v6255_v30  ;;  %v12336_v20 = vpop.f32.mrb[204].mxu0  ;;  %v12352_v23 = vpop.f32.mrb[196].mxu1 }
0x141a   :  { %13362 = vpow2.f32 %v6203_v28  ;;  %v6159_v13 = vmul.f32 0.25, %v12352_v23  ;;  %v5977_v11 = vpop.f32.mrb[205].mxu0  ;;  %v6106_v1 = vpop.f32.mrb[197].mxu1  ;;  %v16421_v30 = vmul.f32 0.25, %v12336_v20 }
0x141b   :  { %13364 = vpow2.f32 %v6251_v47  ;;  %v6157_v43 = vmul.f32 0.25, %v6106_v1  ;;  %v12337_v16 = vpop.f32.mrb[206].mxu0  ;;  %v12353_v60 = vpop.f32.mrb[198].mxu1 }
0x141c   :  { %v6175_v45 = vmax.f32 %v5998_v37, %v6159_v13  ;;  %v6160_v41 = vmul.f32 0.25, %v12353_v60  ;;  %v5980_v59 = vpop.f32.mrb[207].mxu0  ;;  %v6109_v46 = vpop.f32.mrb[199].mxu1  ;;  %v16427_v60 = vmul.f32 0.25, %v5977_v11 }
0x141d   :  { %v6173_v31 = vmax.f32 %v5996_v38, %v6157_v43  ;;  %v6158_v56 = vmul.f32 0.25, %v6109_v46  ;;  %v16439_v63 = vmul.f32 0.25, %v5980_v59 }
0x141e   :  { %v16403_v50 = vpop.eup %13350  ;;  %v6191_v26 = vsub.f32 %v5998_v37, %v6175_v45  ;;  %v6239_v42 = vsub.f32 %v6159_v13, %v6175_v45  ;;  %v6176_v55 = vmax.f32 %v5999_v39, %v6160_v41  ;;  %v16431_v13 = vmul.f32 0.25, %v12337_v16 }
0x141f   :  { %v16409_v14 = vpop.eup %13352  ;;  %v6189_v28 = vsub.f32 %v5996_v38, %v6173_v31  ;;  %v6237_v47 = vsub.f32 %v6157_v43, %v6173_v31  ;;  %v6174_v10 = vmax.f32 %v5997_v12, %v6158_v56 }
0x1420   :  { %v16415_v24 = vpop.eup %13354  ;;  %v6283_v22 = vadd.f32 %v16409_v14, %v16403_v50  ;;  %v6213_v1 = vmul.f32 1.442695, %v6191_v26  ;;  %v6261_v37 = vmul.f32 1.442695, %v6239_v42  ;;  %v6192_v45 = vsub.f32 %v5999_v39, %v6176_v55 }
0x1421   :  { %v16419_v17 = vpop.eup %13356  ;;  %v6240_v20 = vsub.f32 %v6160_v41, %v6176_v55  ;;  %v12356_v40 = vpop.f32.mrb[200].mxu1  ;;  %v6190_v31 = vsub.f32 %v5997_v12, %v6174_v10  ;;  %v6209_v11 = vmul.f32 1.442695, %v6189_v28  ;;  %v6257_v41 = vmul.f32 1.442695, %v6237_v47 }
0x1422   :  { %v16423_v23 = vpop.eup %13358  ;;  %13366 = vrcp.f32 %v6283_v22  ;;  %v6281_v6 = vadd.f32 %v16419_v17, %v16415_v24  ;;  %v6238_v22 = vsub.f32 %v6158_v56, %v6174_v10  ;;  %v6122_v62 = vpop.f32.mrb[201].mxu1  ;;  %v6163_v16 = vmul.f32 0.25, %v12356_v40 }
0x1423   :  { %v16429_v46 = vpop.eup %13360  ;;  %v12357_v42 = vpop.f32.mrb[202].mxu1  ;;  %v6215_v55 = vmul.f32 1.442695, %v6192_v45  ;;  %v6161_v56 = vmul.f32 0.25, %v6122_v62  ;;  %v6263_v35 = vmul.f32 1.442695, %v6240_v20 }
0x1424   :  { %v16433_v38 = vpop.eup %13362  ;;  %13368 = vrcp.f32 %v6281_v6  ;;  %v6284_v43 = vadd.f32 %v16429_v46, %v16423_v23  ;;  %v6125_v6 = vpop.f32.mrb[203].mxu1  ;;  %v6179_v12 = vmax.f32 %v16405_v2, %v6163_v16  ;;  %v6164_v10 = vmul.f32 0.25, %v12357_v42 }
0x1425   :  { %v16437_v26 = vpop.eup %13364  ;;  %13370 = vpow2.f32 %v6213_v1  ;;  %v6211_v1 = vmul.f32 1.442695, %v6190_v31  ;;  %v6162_v28 = vmul.f32 0.25, %v6125_v6  ;;  %v6259_v25 = vmul.f32 1.442695, %v6238_v22 }
0x1426   :  { %13372 = vrcp.f32 %v6284_v43  ;;  %v6282_v39 = vadd.f32 %v16437_v26, %v16433_v38  ;;  %v6195_v40 = vsub.f32 %v16405_v2, %v6179_v12  ;;  %v6243_v59 = vsub.f32 %v6163_v16, %v6179_v12 }
0x1427   :  { %13374 = vpow2.f32 %v6261_v37  ;;  %v6177_v43 = vmax.f32 %v16407_v48, %v6161_v56  ;;  %v6180_v47 = vmax.f32 %v16411_v44, %v6164_v10  ;;  %v6178_v37 = vmax.f32 %v16413_v19, %v6162_v28 }
0x1428   :  { %13376 = vrcp.f32 %v6282_v39  ;;  %v6221_v45 = vmul.f32 1.442695, %v6195_v40  ;;  %v6269_v62 = vmul.f32 1.442695, %v6243_v59 }
0x1429   :  { %13378 = vpow2.f32 %v6209_v11  ;;  %v6193_v42 = vsub.f32 %v16407_v48, %v6177_v43  ;;  %v12360_v20 = vpop.f32.mrb[204].mxu1  ;;  %v6241_v11 = vsub.f32 %v6161_v56, %v6177_v43  ;;  %v6196_v2 = vsub.f32 %v16411_v44, %v6180_v47 }
0x142a   :  { %13380 = vpow2.f32 %v6257_v41  ;;  %v6244_v16 = vsub.f32 %v6164_v10, %v6180_v47  ;;  %v6138_v39 = vpop.f32.mrb[205].mxu1  ;;  %v6194_v44 = vsub.f32 %v16413_v19, %v6178_v37  ;;  %v6242_v10 = vsub.f32 %v6162_v28, %v6178_v37 }
0x142b   :  { %13382 = vpow2.f32 %v6215_v55  ;;  %v6217_v55 = vmul.f32 1.442695, %v6193_v42  ;;  %v12361_v6 = vpop.f32.mrb[206].mxu1  ;;  %v6265_v48 = vmul.f32 1.442695, %v6241_v11 }
0x142c   :  { %v13367_v31 = vpop.eup %13366  ;;  %13384 = vpow2.f32 %v6263_v35  ;;  %v6223_v40 = vmul.f32 1.442695, %v6196_v2  ;;  %v6271_v35 = vmul.f32 1.442695, %v6244_v16  ;;  %v6141_v59 = vpop.f32.mrb[207].mxu1 }
0x142d   :  { %v16451_v41 = vmul.f32 %v13367_v31, %v16403_v50  ;;  %v16454_v22 = vmul.f32 %v13367_v31, %v16409_v14  ;;  %13386 = vpow2.f32 %v6211_v1  ;;  %v6167_v50 = vmul.f32 0.25, %v12360_v20 }
0x142e   :  { %v16456_v12 = vpop.eup %13368  ;;  %13388 = vpow2.f32 %v6259_v25  ;;  %v6165_v14 = vmul.f32 0.25, %v6138_v39  ;;  %v16461_v1 = vmul.f32 0.25, %v12361_v6  ;;  %v16463_v47 = vmul.f32 0.25, %v6141_v59 }
0x142f   :  { %v16458_v56 = vpop.eup %13370  ;;  %13390 = vpow2.f32 %v6221_v45  ;;  %v6219_v19 = vmul.f32 1.442695, %v6194_v44  ;;  %v6267_v45 = vmul.f32 1.442695, %v6242_v10 }
0x1430   :  { %v13373_v43 = vpop.eup %13372  ;;  %13392 = vpow2.f32 %v6269_v62  ;;  %v6183_v62 = vmax.f32 %v16421_v30, %v6167_v50 }
0x1431   :  { %v16465_v42 = vpop.eup %13374  ;;  %v16468_v25 = vmul.f32 %v13373_v43, %v16423_v23  ;;  %v16471_v31 = vmul.f32 %v13373_v43, %v16429_v46  ;;  %13394 = vpow2.f32 %v6217_v55  ;;  %v6181_v23 = vmax.f32 %v16427_v60, %v6165_v14 }
0x1432   :  { %v13377_v28 = vpop.eup %13376  ;;  %v6287_v37 = vadd.f32 %v16465_v42, %v16458_v56  ;;  %13396 = vpow2.f32 %v6265_v48  ;;  %v6184_v46 = vmax.f32 %v16431_v13, %v16461_v1  ;;  %v6199_v16 = vsub.f32 %v16421_v30, %v6183_v62 }
0x1433   :  { %v16476_v20 = vpop.eup %13378  ;;  %v6491_v11 = vpack.c.bf16 %v16471_v31, %v16454_v22  ;;  %13398 = vpow2.f32 %v6223_v40  ;;  %v6247_v39 = vsub.f32 %v6167_v50, %v6183_v62  ;;  %v16488_v55 = vmax.f32 %v16439_v63, %v16463_v47 }
0x1434   :  { %v16483_v2 = vpop.eup %13380  ;;  %13400 = vrcp.f32 %v6287_v37  ;;  %v6197_v40 = vsub.f32 %v16427_v60, %v6181_v23  ;;  %v6245_v44 = vsub.f32 %v6165_v14, %v6181_v23  ;;  %v6229_v59 = vmul.f32 1.442695, %v6199_v16 }
0x1435   :  { %v16490_v6 = vpop.eup %13382  ;;  %v6285_v48 = vadd.f32 %v16483_v2, %v16476_v20  ;;  %13402 = vpow2.f32 %v6271_v35  ;;  %v6200_v30 = vsub.f32 %v16431_v13, %v6184_v46  ;;  %v6277_v62 = vmul.f32 1.442695, %v6247_v39 }
0x1436   :  { %v16495_v10 = vpop.eup %13384  ;;  %13404 = vpow2.f32 %v6219_v19  ;;  %v6248_v35 = vsub.f32 %v16461_v1, %v6184_v46  ;;  %v6198_v60 = vsub.f32 %v16439_v63, %v16488_v55  ;;  %v6246_v19 = vsub.f32 %v16463_v47, %v16488_v55 }
0x1437   :  { %v16498_v50 = vpop.eup %13386  ;;  %13406 = vrcp.f32 %v6285_v48  ;;  %v6288_v43 = vadd.f32 %v16495_v10, %v16490_v6  ;;  %v6313_v23 = vmul.f32 %v16456_v12, %v16415_v24  ;;  %v6314_v1 = vmul.f32 %v13377_v28, %v16433_v38 }
0x1438   :  { %v16502_v37 = vpop.eup %13388  ;;  %13408 = vpow2.f32 %v6267_v45  ;;  %v6225_v45 = vmul.f32 1.442695, %v6197_v40  ;;  %v6273_v39 = vmul.f32 1.442695, %v6245_v44  ;;  %v6474_v47 = vmul.f32 %v16456_v12, %v16419_v17  ;;  %v12875_v44 = vld [vmem:[%s13888_s12 + $0x48] sm:$0xff]  }
0x1439   :  { %v16507_v14 = vpop.eup %13390  ;;  %13410 = vrcp.f32 %v6288_v43  ;;  %v6286_v13 = vadd.f32 %v16502_v37, %v16498_v50  ;;  %v6329_v24 = vpack.c.bf16 %v6314_v1, %v6313_v23  ;;  %v6475_v48 = vmul.f32 %v13377_v28, %v16437_v26 }
0x143a   :  { %v16515_v16 = vpop.eup %13392  ;;  %13412 = vpow2.f32 %v6229_v59  ;;  %v6330_v40 = vpack.c.bf16 %v16468_v25, %v16451_v41  ;;  %v6231_v43 = vmul.f32 1.442695, %v6200_v30  ;;  %v6279_v26 = vmul.f32 1.442695, %v6248_v35 }
0x143b   :  { %v16518_v63 = vpop.eup %13394  ;;  %13414 = vrcp.f32 %v6286_v13  ;;  %v6291_v46 = vadd.f32 %v16515_v16, %v16507_v14  ;;  %12364 = vmatprep.mubr.msk.bf16.mxu0 %vm1556_vm3, %v6329_v24  ;;  %v6490_v17 = vpack.c.bf16 %v6475_v48, %v6474_v47  ;;  %v6275_v35 = vmul.f32 1.442695, %v6246_v19 }
0x143c   :  { %v16524_v55 = vpop.eup %13396  ;;  %13416 = vpow2.f32 %v6277_v62  ;;  %12365 = vmatmul.mubr.msk.bf16.vlgmr.msra.gmra.mrb[208].mxu0 %vm1556_vm3, %v6330_v40  ;;  %v6227_v62 = vmul.f32 1.442695, %v6198_v60 }
0x143d   :  { %v16529_v38 = vpop.eup %13398  ;;  %13418 = vrcp.f32 %v6291_v46  ;;  %v6289_v59 = vadd.f32 %v16524_v55, %v16518_v63  ;;  %12382 = vmatprep.mubr.msk.bf16.mxu1 %vm1556_vm3, %v6490_v17  ;;  %12399 = vmatpush3.bf16.msra.mxu0 %v16400_v7 }
0x143e   :  { %v13401_v13 = vpop.eup %13400  ;;  %13420 = vpow2.f32 %v6225_v45  ;;  %12383 = vmatmul.mubr.msk.bf16.vlgmr.msra.gmra.mrb[208].mxu1 %vm1556_vm3, %v6491_v11  ;;  %12400 = vmatprep.subr.bf16.mxu0 %v12875_v44 }
0x143f   :  { %v13403_v12 = vpop.eup %13402  ;;  %13422 = vrcp.f32 %v6289_v59  ;;  %v6319_v41 = vmul.f32 %v13401_v13, %v16458_v56  ;;  %v6480_v25 = vmul.f32 %v13401_v13, %v16465_v42  ;;  %v12876_v56 = vld [vmem:[%s13888_s12 + $0x50] sm:$0xff]  }
0x1440   :  { %v16538_v28 = vpop.eup %13404  ;;  %v6292_v30 = vadd.f32 %v13403_v12, %v16529_v38  ;;  %13424 = vpow2.f32 %v6273_v39 }
0x1441   :  { %v13407_v23 = vpop.eup %13406  ;;  %13426 = vpow2.f32 %v6231_v43  ;;  %12401 = vmatpush3.bf16.msra.mxu0 %v12875_v44 }
0x1442   :  { %v13409_v42 = vpop.eup %13408  ;;  %13428 = vrcp.f32 %v6292_v30  ;;  %v6317_v45 = vmul.f32 %v13407_v23, %v16476_v20  ;;  %v6478_v60 = vmul.f32 %v13407_v23, %v16483_v2  ;;  %12402 = vmatprep.subr.bf16.mxu0 %v12876_v56 }
0x1443   :  { %v13411_v1 = vpop.eup %13410  ;;  %v6290_v46 = vadd.f32 %v13409_v42, %v16538_v28  ;;  %13430 = vpow2.f32 %v6279_v26 }
0x1444   :  { %v13413_v7 = vpop.eup %13412  ;;  %13432 = vpow2.f32 %v6227_v62  ;;  %v6320_v39 = vmul.f32 %v13411_v1, %v16490_v6  ;;  %v6481_v22 = vmul.f32 %v13411_v1, %v16495_v10 }
0x1445   :  { %v13415_v31 = vpop.eup %13414  ;;  %13434 = vrcp.f32 %v6290_v46  ;;  %12403 = vmatpush3.bf16.msra.mxu0 %v12876_v56 }
0x1446   :  { %v13417_v11 = vpop.eup %13416  ;;  %13436 = vpow2.f32 %v6275_v35  ;;  %v6318_v20 = vmul.f32 %v13415_v31, %v16498_v50  ;;  %v6479_v2 = vmul.f32 %v13415_v31, %v16502_v37  ;;  %v6332_v19 = vpack.c.bf16 %v6320_v39, %v6319_v41 }
0x1447   :  { %v13419_v47 = vpop.eup %13418  ;;  %v6295_v24 = vadd.f32 %v13417_v11, %v13413_v7  ;;  %v6493_v48 = vpack.c.bf16 %v6481_v22, %v6480_v25 }
0x1448   :  { %v13421_v40 = vpop.eup %13420  ;;  %v6331_v59 = vpack.c.bf16 %v6318_v20, %v6317_v45  ;;  %v6492_v43 = vpack.c.bf16 %v6479_v2, %v6478_v60  ;;  %v6323_v6 = vmul.f32 %v13419_v47, %v16507_v14  ;;  %v6484_v10 = vmul.f32 %v13419_v47, %v16515_v16 }
0x1449   :  { %v13423_v44 = vpop.eup %13422  ;;  %13438 = vrcp.f32 %v6295_v24 }
0x144a   :  { %v13425_v13 = vpop.eup %13424  ;;  %12368 = vmatprep.mubr.msk.bf16.mxu0 %vm1556_vm3, %v6331_v59  ;;  %12386 = vmatprep.mubr.msk.bf16.mxu1 %vm1556_vm3, %v6492_v43  ;;  %v6321_v50 = vmul.f32 %v13423_v44, %v16518_v63  ;;  %v6482_v37 = vmul.f32 %v13423_v44, %v16524_v55 }
0x144b   :  { %v13427_v17 = vpop.eup %13426  ;;  %v6293_v26 = vadd.f32 %v13425_v13, %v13421_v40  ;;  %12369 = vmatmul.mubr.msk.bf16.gmra.mrb[212].mxu0 %vm1556_vm3, %v6332_v19  ;;  %12387 = vmatmul.mubr.msk.bf16.gmra.mrb[212].mxu1 %vm1556_vm3, %v6493_v48 }
0x144c   :  { %v13429_v14 = vpop.eup %13428 }
0x144d   :  { %v13431_v16 = vpop.eup %13430  ;;  %13440 = vrcp.f32 %v6293_v26  ;;  %v6324_v41 = vmul.f32 %v13429_v14, %v16529_v38  ;;  %v6485_v25 = vmul.f32 %v13429_v14, %v13403_v12 }
0x144e   :  { %v13433_v30 = vpop.eup %13432  ;;  %v6296_v62 = vadd.f32 %v13431_v16, %v13427_v17 }
0x144f   :  { %v13435_v23 = vpop.eup %13434  ;;  %v6334_v56 = vpack.c.bf16 %v6324_v41, %v6323_v6  ;;  %v6495_v35 = vpack.c.bf16 %v6485_v25, %v6484_v10 }
0x1450   :  { %v13437_v63 = vpop.eup %13436  ;;  %13442 = vrcp.f32 %v6296_v62  ;;  %v6322_v55 = vmul.f32 %v13435_v23, %v16538_v28  ;;  %v6483_v45 = vmul.f32 %v13435_v23, %v13409_v42 }
0x1451   :  { %v6294_v60 = vadd.f32 %v13437_v63, %v13433_v30 }
0x1452   :  { %v6333_v1 = vpack.c.bf16 %v6322_v55, %v6321_v50  ;;  %v6494_v46 = vpack.c.bf16 %v6483_v45, %v6482_v37 }
0x1453   :  { %v13439_v39 = vpop.eup %13438  ;;  %13444 = vrcp.f32 %v6294_v60 }
0x1454   :  { %12372 = vmatprep.mubr.msk.bf16.mxu0 %vm1556_vm3, %v6333_v1  ;;  %12390 = vmatprep.mubr.msk.bf16.mxu1 %vm1556_vm3, %v6494_v46  ;;  %v6327_v38 = vmul.f32 %v13439_v39, %v13413_v7  ;;  %v6488_v12 = vmul.f32 %v13439_v39, %v13417_v11  ;;  %v12877_v11 = vld [vmem:[%s13888_s12 + $0x58] sm:$0xff]  }
0x1455   :  { %12373 = vmatmul.mubr.msk.bf16.gmra.mrb[216].mxu0 %vm1556_vm3, %v6334_v56  ;;  %12391 = vmatmul.mubr.msk.bf16.gmra.mrb[216].mxu1 %vm1556_vm3, %v6495_v35 }
0x1456   :  { %12404 = vmatprep.subr.bf16.mxu0 %v12877_v11 }
0x1457   :  { %v13441_v22 = vpop.eup %13440  ;;  %12405 = vmatpush3.bf16.msra.mxu0 %v12877_v11 }
0x1458   :  { %v6325_v31 = vmul.f32 %v13441_v22, %v13421_v40  ;;  %v6486_v28 = vmul.f32 %v13441_v22, %v13425_v13  ;;  %v10928_v40 = vld [vmem:[%s18281_s0 + $0x2] ss:$0 sm:$0xff] }
0x1459   :  { %v16576_v6 = vadd.f32 %v16359_v53, %v10928_v40  ;;  %v16579_v10 = vadd.f32 %v10928_v40, %v16361_v5  ;;  %v16582_v13 = vadd.f32 %v16363_v58, %v10928_v40  ;;  %v5825_v50 = vadd.f32 %v16382_v33, %v10928_v40 }
0x145a   :  { %v13443_v42 = vpop.eup %13442  ;;  %v16587_v26 = vadd.f32 %v10928_v40, %v16367_v52  ;;  %v16590_v14 = vadd.f32 %v10928_v40, %v16384_v15  ;;  %v16594_v41 = vadd.f32 %v16386_v51, %v10928_v40  ;;  %v16598_v62 = vadd.f32 %v10928_v40, %v16388_v4 }
0x145b   :  { %v6328_v20 = vmul.f32 %v13443_v42, %v13427_v17  ;;  %v6489_v2 = vmul.f32 %v13443_v42, %v13431_v16  ;;  %v5809_v39 = vadd.f32 %v16372_v27, %v10928_v40  ;;  %v5841_v4 = vadd.f32 %v16391_v61, %v10928_v40 }
0x145c   :  { %v5844_v42 = vadd.f32 %v16395_v18, %v10928_v40  ;;  %v5804_v27 = vadd.f32 %v10928_v40, %v16378_v36 }
0x145d   :  { %v13445_v19 = vpop.eup %13444  ;;  %v6336_v47 = vpack.c.bf16 %v6328_v20, %v6327_v38  ;;  %v6497_v24 = vpack.c.bf16 %v6489_v2, %v6488_v12  ;;  %v5801_v38 = vadd.f32 %v10928_v40, %v16374_v8  ;;  %v5833_v12 = vadd.f32 %v10928_v40, %v16393_v0 }
0x145e   :  { %v6326_v48 = vmul.f32 %v13445_v19, %v13433_v30  ;;  %v6487_v59 = vmul.f32 %v13445_v19, %v13437_v63  ;;  %v5836_v8 = vadd.f32 %v10928_v40, %v16397_v9 }
0x1460   :  { %v6335_v43 = vpack.c.bf16 %v6326_v48, %v6325_v31  ;;  %v6496_v7 = vpack.c.bf16 %v6487_v59, %v6486_v28  ;;  %v5812_v28 = vadd.f32 %v16376_v21, %v10928_v40 }
0x1462   :  { %12376 = vmatprep.mubr.msk.bf16.mxu0 %vm1556_vm3, %v6335_v43  ;;  %12394 = vmatprep.mubr.msk.bf16.mxu1 %vm1556_vm3, %v6496_v7 }
0x1463   :  { %12377 = vmatmul.mubr.msk.bf16.gmra.mrb[220].mxu0 %vm1556_vm3, %v6336_v47  ;;  %12395 = vmatmul.mubr.msk.bf16.gmra.mrb[220].mxu1 %vm1556_vm3, %v6497_v24 }
0x150f   :  { %v12366_v44 = vpop.f32.mrb[208].mxu0 }
0x1510   :  { %v6460_v37 = vmul.f32 %v12366_v44, %v16576_v6  ;;  %v6395_v17 = vpop.f32.mrb[209].mxu0 }
0x1511   :  { %v12384_v53 = vpop.f32.mrb[208].mxu1  ;;  %v6458_v16 = vmul.f32 %v6395_v17, %v16579_v10  ;;  %v12367_v5 = vpop.f32.mrb[210].mxu0 }
0x1512   :  { %v6621_v58 = vmul.f32 %v12384_v53, %v5825_v50  ;;  %v6556_v25 = vpop.f32.mrb[209].mxu1  ;;  %v6461_v33 = vmul.f32 %v12367_v5, %v16582_v13  ;;  %v6398_v30 = vpop.f32.mrb[211].mxu0 }
0x1513   :  { %v6619_v52 = vmul.f32 %v6556_v25, %v16590_v14  ;;  %v12385_v23 = vpop.f32.mrb[210].mxu1  ;;  %v6459_v15 = vmul.f32 %v6398_v30, %v16587_v26 }
0x1514   :  { %v6637_v56 = vadd.f32 %v6621_v58, %v6460_v37  ;;  %v6622_v35 = vmul.f32 %v12385_v23, %v16594_v41  ;;  %v6559_v63 = vpop.f32.mrb[211].mxu1 }
0x1515   :  { %v6635_v55 = vadd.f32 %v6619_v52, %v6458_v16  ;;  %v6620_v51 = vmul.f32 %v6559_v63, %v16598_v62 }
0x1516   :  { %v6638_v45 = vadd.f32 %v6622_v35, %v6461_v33 }
0x1517   :  { %v6636_v60 = vadd.f32 %v6620_v51, %v6459_v15 }
0x1518   :  { %v6652_v1 = vpack.c.bf16 %v6638_v45, %v6637_v56 }
0x1519   :  { %v6651_v46 = vpack.c.bf16 %v6636_v60, %v6635_v55 }
0x151b   :  { %12406 = vmatprep.mubr.msk.bf16.mxu0 %vm348_vm1, %v6651_v46 }
0x151c   :  { %12407 = vmatmul.mubr.msk.bf16.vlgmr.msra.gmra.mrb[224].mxu0 %vm348_vm1, %v6652_v1 }
0x151e   :  { %v12370_v22 = vpop.f32.mrb[212].mxu0  ;;  %v12388_v31 = vpop.f32.mrb[212].mxu1 }
0x151f   :  { %v6464_v20 = vmul.f32 %v12370_v22, %v5809_v39  ;;  %v6625_v2 = vmul.f32 %v12388_v31, %v5841_v4  ;;  %v6411_v19 = vpop.f32.mrb[213].mxu0  ;;  %v6572_v47 = vpop.f32.mrb[213].mxu1 }
0x1520   :  { %v6462_v61 = vmul.f32 %v6411_v19, %v5801_v38  ;;  %v6623_v0 = vmul.f32 %v6572_v47, %v5833_v12  ;;  %v12371_v24 = vpop.f32.mrb[214].mxu0  ;;  %v12389_v48 = vpop.f32.mrb[214].mxu1 }
0x1521   :  { %v6641_v59 = vadd.f32 %v6625_v2, %v6464_v20  ;;  %v6465_v43 = vmul.f32 %v12371_v24, %v5812_v28  ;;  %v6626_v7 = vmul.f32 %v12389_v48, %v5844_v42  ;;  %v6414_v21 = vpop.f32.mrb[215].mxu0  ;;  %v6575_v11 = vpop.f32.mrb[215].mxu1 }
0x1522   :  { %v6639_v18 = vadd.f32 %v6623_v0, %v6462_v61  ;;  %v6463_v44 = vmul.f32 %v6414_v21, %v5804_v27  ;;  %v6624_v37 = vmul.f32 %v6575_v11, %v5836_v8 }
0x1523   :  { %v6642_v17 = vadd.f32 %v6626_v7, %v6465_v43 }
0x1524   :  { %v6640_v53 = vadd.f32 %v6624_v37, %v6463_v44 }
0x1525   :  { %v6654_v16 = vpack.c.bf16 %v6642_v17, %v6641_v59 }
0x1526   :  { %v6653_v5 = vpack.c.bf16 %v6640_v53, %v6639_v18 }
0x1528   :  { %v12374_v58 = vpop.f32.mrb[216].mxu0  ;;  %v12392_v36 = vpop.f32.mrb[216].mxu1  ;;  %12410 = vmatprep.mubr.msk.bf16.mxu0 %vm348_vm1, %v6653_v5 }
0x1529   :  { %v6468_v9 = vmul.f32 %v12374_v58, %v16576_v6  ;;  %v6629_v40 = vmul.f32 %v12392_v36, %v5825_v50  ;;  %v6427_v25 = vpop.f32.mrb[217].mxu0  ;;  %v6588_v33 = vpop.f32.mrb[217].mxu1  ;;  %12411 = vmatmul.mubr.msk.bf16.gmra.mrb[228].mxu0 %vm348_vm1, %v6654_v16 }
0x152a   :  { %v6466_v30 = vmul.f32 %v6427_v25, %v16579_v10  ;;  %v6627_v52 = vmul.f32 %v6588_v33, %v16590_v14  ;;  %v12375_v23 = vpop.f32.mrb[218].mxu0  ;;  %v12393_v15 = vpop.f32.mrb[218].mxu1 }
0x152b   :  { %v6645_v56 = vadd.f32 %v6629_v40, %v6468_v9  ;;  %v6469_v35 = vmul.f32 %v12375_v23, %v16582_v13  ;;  %v6630_v63 = vmul.f32 %v12393_v15, %v16594_v41  ;;  %v6430_v55 = vpop.f32.mrb[219].mxu0  ;;  %v6591_v51 = vpop.f32.mrb[219].mxu1 }
0x152c   :  { %v6643_v45 = vadd.f32 %v6627_v52, %v6466_v30  ;;  %v6467_v6 = vmul.f32 %v6430_v55, %v16587_v26  ;;  %v6628_v50 = vmul.f32 %v6591_v51, %v16598_v62 }
0x152d   :  { %v6646_v60 = vadd.f32 %v6630_v63, %v6469_v35  ;;  %v18328_v63 = vld [vmem:[#allocation27_spill] sm:$0xff] }
0x152e   :  { %v6644_v1 = vadd.f32 %v6628_v50, %v6467_v6 }
0x152f   :  { %v6656_v46 = vpack.c.bf16 %v6646_v60, %v6645_v56 }
0x1530   :  { %v6655_v10 = vpack.c.bf16 %v6644_v1, %v6643_v45 }
0x1532   :  { %12414 = vmatprep.mubr.msk.bf16.mxu0 %vm348_vm1, %v6655_v10 }
0x1533   :  { %12415 = vmatmul.mubr.msk.bf16.gmra.mrb[232].mxu0 %vm348_vm1, %v6656_v46  ;;  %v18329_v46 = vld [vmem:[#allocation18_spill] sm:$0xff] }
0x1536   :  { %v12378_v14 = vpop.f32.mrb[220].mxu0  ;;  %v12396_v22 = vpop.f32.mrb[220].mxu1 }
0x1537   :  { %v6472_v13 = vmul.f32 %v12378_v14, %v5809_v39  ;;  %v6633_v31 = vmul.f32 %v12396_v22, %v5841_v4  ;;  %v6443_v41 = vpop.f32.mrb[221].mxu0  ;;  %v6604_v20 = vpop.f32.mrb[221].mxu1  ;;  %v16628_v4 = vld [vmem:[%s18282_s5 + $0x2] ss:$0 sm:$0xff] }
0x1538   :  { %v6470_v2 = vmul.f32 %v6443_v41, %v5801_v38  ;;  %v6631_v19 = vmul.f32 %v6604_v20, %v5833_v12  ;;  %v12379_v47 = vpop.f32.mrb[222].mxu0  ;;  %v12397_v26 = vpop.f32.mrb[222].mxu1  ;;  %v18331_v41 = vld [vmem:[#allocation20_spill] sm:$0xff] }
0x1539   :  { %v6649_v62 = vadd.f32 %v6633_v31, %v6472_v13  ;;  %v6473_v61 = vmul.f32 %v12379_v47, %v5812_v28  ;;  %v6634_v0 = vmul.f32 %v12397_v26, %v5844_v42  ;;  %v6446_v24 = vpop.f32.mrb[223].mxu0  ;;  %v6607_v48 = vpop.f32.mrb[223].mxu1  ;;  %v18330_v13 = vld [vmem:[#allocation19_spill] sm:$0xff] }
0x153a   :  { %v6647_v59 = vadd.f32 %v6631_v19, %v6470_v2  ;;  %v6471_v43 = vmul.f32 %v6446_v24, %v5804_v27  ;;  %v6632_v7 = vmul.f32 %v6607_v48, %v5836_v8  ;;  %v18332_v19 = vld [vmem:[#allocation21_spill] sm:$0xff] }
0x153b   :  { %v6650_v21 = vadd.f32 %v6634_v0, %v6473_v61 }
0x153c   :  { %v6648_v11 = vadd.f32 %v6632_v7, %v6471_v43 }
0x153d   :  { %v6658_v18 = vpack.c.bf16 %v6650_v21, %v6649_v62  ;;  %v18333_v21 = vld [vmem:[#allocation22_spill] sm:$0xff] }
0x153e   :  { %v6657_v39 = vpack.c.bf16 %v6648_v11, %v6647_v59 }
0x1540   :  { %12418 = vmatprep.mubr.msk.bf16.mxu0 %vm348_vm1, %v6657_v39 }
0x1541   :  { %12419 = vmatmul.mubr.msk.bf16.gmra.mrb[236].mxu0 %vm348_vm1, %v6658_v18 }
0x15ef   :  { %v12408_v38 = vpop.f32.mrb[224].mxu0 }
0x15f0   :  { %v6758_v12 = vpop.f32.mrb[225].mxu0  ;;  %v6767_v28 = vadd.f32 %v12408_v38, %v16628_v4  ;;  %v18334_v38 = vld [vmem:[#allocation23_spill] sm:$0xff] }
0x15f1   :  { %v6759_v42 = vadd.f32 %v16628_v4, %v6758_v12  ;;  %v12409_v44 = vpop.f32.mrb[226].mxu0 }
0x15f2   :  { %v6761_v37 = vpop.f32.mrb[227].mxu0  ;;  %v6770_v8 = vadd.f32 %v12409_v44, %v16628_v4  ;;  %v16638_v53 = vadd.f32 %v6767_v28, %v15941_v57  ;;  %v18335_v28 = vld [vmem:[#allocation24_spill] sm:$0xff] }
0x15f3   :  { %v16633_v27 = vadd.f32 %v6759_v42, %v15936_v29  ;;  %v6762_v17 = vadd.f32 %v16628_v4, %v6761_v37  ;;  %v18336_v37 = vld [vmem:[#allocation25_spill] sm:$0xff] }
0x15f4   :  { %v16646_v58 = vadd.f32 %v6770_v8, %v15949_v32  ;;  %v6847_v9 = vsel %vm348_vm1, %v16638_v53, 0.0 }
0x15f5   :  { %v16641_v16 = vadd.f32 %v6762_v17, %v15944_v3  ;;  %v6841_v5 = vsel %vm348_vm1, %v16633_v27, 0.0 }
0x15f6   :  { %6842 = vadd.xlane.f32.xlu0 %v6841_v5  ;;  %v6850_v33 = vsel %vm348_vm1, %v16646_v58, 0.0 }
0x15f7   :  { %v6844_v29 = vsel %vm348_vm1, %v16641_v16, 0.0 }
0x15f8   :  { %6845 = vadd.xlane.f32.xlu1 %v6844_v29  ;;  %v12878_v29 = vld [vmem:[%s18289_s9 + $0x40] sm:$0xff]  }
0x15f9   :  { %12422 = vmatprep.subr.bf16.mxu1 %v12878_v29 }
0x15fa   :  { %6848 = vadd.xlane.f32.xlu0 %v6847_v9  ;;  %12423 = vmatpush3.bf16.msra.mxu1 %v12878_v29 }
0x15fc   :  { %v12412_v36 = vpop.f32.mrb[228].mxu0  ;;  %6851 = vadd.xlane.f32.xlu1 %v6850_v33 }
0x15fd   :  { %v6774_v57 = vpop.f32.mrb[229].mxu0  ;;  %v6783_v3 = vadd.f32 %v12412_v36, %v16628_v4 }
0x15fe   :  { %v6775_v40 = vadd.f32 %v16628_v4, %v6774_v57  ;;  %v12413_v25 = vpop.f32.mrb[230].mxu0 }
0x15ff   :  { %v6777_v32 = vpop.f32.mrb[231].mxu0  ;;  %v6786_v52 = vadd.f32 %v12413_v25, %v16628_v4  ;;  %v16662_v15 = vadd.f32 %v6783_v3, %v15965_v34 }
0x1600   :  { %v16657_v30 = vadd.f32 %v6775_v40, %v15960_v49  ;;  %v6778_v23 = vadd.f32 %v16628_v4, %v6777_v32 }
0x1601   :  { %v16670_v55 = vadd.f32 %v6786_v52, %v18328_v63  ;;  %v6859_v45 = vsel %vm348_vm1, %v16662_v15, 0.0 }
0x1602   :  { %v16665_v56 = vadd.f32 %v6778_v23, %v15968_v54  ;;  %v6853_v35 = vsel %vm348_vm1, %v16657_v30, 0.0 }
0x1603   :  { %6854 = vadd.xlane.f32.xlu0 %v6853_v35  ;;  %v6862_v60 = vsel %vm348_vm1, %v16670_v55, 0.0 }
0x1604   :  { %v6856_v49 = vsel %vm348_vm1, %v16665_v56, 0.0 }
0x1605   :  { %6857 = vadd.xlane.f32.xlu1 %v6856_v49 }
0x1606   :  { %v12416_v51 = vpop.f32.mrb[232].mxu0 }
0x1607   :  { %v6790_v34 = vpop.f32.mrb[233].mxu0  ;;  %6860 = vadd.xlane.f32.xlu0 %v6859_v45  ;;  %v6799_v54 = vadd.f32 %v12416_v51, %v16628_v4 }
0x1608   :  { %v6791_v6 = vadd.f32 %v16628_v4, %v6790_v34  ;;  %v12417_v50 = vpop.f32.mrb[234].mxu0 }
0x1609   :  { %v6793_v1 = vpop.f32.mrb[235].mxu0  ;;  %6863 = vadd.xlane.f32.xlu1 %v6862_v60  ;;  %v6802_v14 = vadd.f32 %v12417_v50, %v16628_v4  ;;  %v16686_v31 = vadd.f32 %v6799_v54, %v18330_v13 }
0x160a   :  { %v16681_v10 = vadd.f32 %v6791_v6, %v18329_v46  ;;  %v6794_v22 = vadd.f32 %v16628_v4, %v6793_v1 }
0x160b   :  { %v16694_v47 = vadd.f32 %v6802_v14, %v18332_v19  ;;  %v6871_v62 = vsel %vm348_vm1, %v16686_v31, 0.0 }
0x160c   :  { %v16689_v20 = vadd.f32 %v6794_v22, %v18331_v41  ;;  %v6865_v2 = vsel %vm348_vm1, %v16681_v10, 0.0 }
0x160d   :  { %6866 = vadd.xlane.f32.xlu0 %v6865_v2  ;;  %v6874_v61 = vsel %vm348_vm1, %v16694_v47, 0.0 }
0x160e   :  { %v6868_v26 = vsel %vm348_vm1, %v16689_v20, 0.0 }
0x160f   :  { %6869 = vadd.xlane.f32.xlu1 %v6868_v26 }
0x1611   :  { %6872 = vadd.xlane.f32.xlu0 %v6871_v62 }
0x1613   :  { %6875 = vadd.xlane.f32.xlu1 %v6874_v61 }
0x1614   :  { %v12420_v0 = vpop.f32.mrb[236].mxu0 }
0x1615   :  { %v6806_v24 = vpop.f32.mrb[237].mxu0  ;;  %v6815_v48 = vadd.f32 %v12420_v0, %v16628_v4 }
0x1616   :  { %v6807_v59 = vadd.f32 %v16628_v4, %v6806_v24  ;;  %v12421_v43 = vpop.f32.mrb[238].mxu0 }
0x1617   :  { %v6809_v7 = vpop.f32.mrb[239].mxu0  ;;  %v6818_v18 = vadd.f32 %v12421_v43, %v16628_v4  ;;  %v16710_v12 = vadd.f32 %v6815_v48, %v18334_v38 }
0x1618   :  { %v16705_v11 = vadd.f32 %v6807_v59, %v18333_v21  ;;  %v6810_v39 = vadd.f32 %v16628_v4, %v6809_v7 }
0x1619   :  { %v16718_v8 = vadd.f32 %v6818_v18, %v18336_v37  ;;  %v6883_v4 = vsel %vm348_vm1, %v16710_v12, 0.0 }
0x161a   :  { %v16713_v42 = vadd.f32 %v6810_v39, %v18335_v28  ;;  %v6877_v44 = vsel %vm348_vm1, %v16705_v11, 0.0 }
0x161b   :  { %6878 = vadd.xlane.f32.xlu0 %v6877_v44  ;;  %v6886_v5 = vsel %vm348_vm1, %v16718_v8, 0.0 }
0x161c   :  { %v6880_v17 = vsel %vm348_vm1, %v16713_v42, 0.0 }
0x161d   :  { %6881 = vadd.xlane.f32.xlu1 %v6880_v17 }
0x161f   :  { %6884 = vadd.xlane.f32.xlu0 %v6883_v4 }
0x1621   :  { %6887 = vadd.xlane.f32.xlu1 %v6886_v5 }
0x1683   :  { %v6843_v36 = vpop.xlane.xlu0 %6842 }
0x1684   :  { %v6889_v9 = vmul.f32 0.015625, %v6843_v36 }
0x1685   :  { %v6846_v57 = vpop.xlane.xlu1 %6845 }
0x1686   :  { %v16728_v3 = vsub.f32 %v16633_v27, %v6889_v9  ;;  %v6890_v40 = vmul.f32 0.015625, %v6846_v57 }
0x1687   :  { %v6849_v25 = vpop.xlane.xlu0 %6848 }
0x1688   :  { %v16731_v33 = vsub.f32 %v16641_v16, %v6890_v40  ;;  %v6891_v32 = vmul.f32 0.015625, %v6849_v25  ;;  %v6921_v52 = vmul.f32 %v16728_v3, %v16728_v3 }
0x1689   :  { %v6852_v23 = vpop.xlane.xlu1 %6851 }
0x168a   :  { %v16736_v35 = vsub.f32 %v16638_v53, %v6891_v32  ;;  %v6892_v63 = vmul.f32 0.015625, %v6852_v23  ;;  %v6937_v49 = vsel %vm348_vm1, %v6921_v52, 0.0  ;;  %v6922_v51 = vmul.f32 %v16731_v33, %v16731_v33 }
0x168b   :  { %6938 = vadd.xlane.f32.xlu0 %v6937_v49 }
0x168c   :  { %v16742_v45 = vsub.f32 %v16646_v58, %v6892_v63  ;;  %v6940_v34 = vsel %vm348_vm1, %v6922_v51, 0.0  ;;  %v6923_v54 = vmul.f32 %v16736_v35, %v16736_v35 }
0x168d   :  { %6941 = vadd.xlane.f32.xlu1 %v6940_v34 }
0x168e   :  { %v6943_v60 = vsel %vm348_vm1, %v6923_v54, 0.0  ;;  %v6924_v1 = vmul.f32 %v16742_v45, %v16742_v45 }
0x168f   :  { %6944 = vadd.xlane.f32.xlu0 %v6943_v60 }
0x1690   :  { %v6855_v6 = vpop.xlane.xlu0 %6854  ;;  %v6946_v13 = vsel %vm348_vm1, %v6924_v1, 0.0 }
0x1691   :  { %v6893_v50 = vmul.f32 0.015625, %v6855_v6  ;;  %6947 = vadd.xlane.f32.xlu1 %v6946_v13 }
0x1692   :  { %v6858_v46 = vpop.xlane.xlu1 %6857 }
0x1693   :  { %v16751_v14 = vsub.f32 %v16657_v30, %v6893_v50  ;;  %v6894_v22 = vmul.f32 0.015625, %v6858_v46 }
0x1694   :  { %v6861_v41 = vpop.xlane.xlu0 %6860 }
0x1695   :  { %v16755_v2 = vsub.f32 %v16665_v56, %v6894_v22  ;;  %v6895_v19 = vmul.f32 0.015625, %v6861_v41  ;;  %v6925_v26 = vmul.f32 %v16751_v14, %v16751_v14 }
0x1696   :  { %v6864_v62 = vpop.xlane.xlu1 %6863 }
0x1697   :  { %v16760_v61 = vsub.f32 %v16662_v15, %v6895_v19  ;;  %v6896_v0 = vmul.f32 0.015625, %v6864_v62  ;;  %v6949_v24 = vsel %vm348_vm1, %v6925_v26, 0.0  ;;  %v6926_v48 = vmul.f32 %v16755_v2, %v16755_v2 }
0x1698   :  { %6950 = vadd.xlane.f32.xlu0 %v6949_v24 }
0x1699   :  { %v16766_v59 = vsub.f32 %v16670_v55, %v6896_v0  ;;  %v6952_v43 = vsel %vm348_vm1, %v6926_v48, 0.0  ;;  %v6927_v7 = vmul.f32 %v16760_v61, %v16760_v61 }
0x169a   :  { %v6867_v21 = vpop.xlane.xlu0 %6866  ;;  %6953 = vadd.xlane.f32.xlu1 %v6952_v43 }
0x169b   :  { %v6897_v18 = vmul.f32 0.015625, %v6867_v21  ;;  %v6955_v39 = vsel %vm348_vm1, %v6927_v7, 0.0  ;;  %v6928_v38 = vmul.f32 %v16766_v59, %v16766_v59 }
0x169c   :  { %v6870_v28 = vpop.xlane.xlu1 %6869  ;;  %6956 = vadd.xlane.f32.xlu0 %v6955_v39  ;;  %v12879_v39 = vld [vmem:[%s18289_s9 + $0x48] sm:$0xff]  }
0x169d   :  { %v16775_v44 = vsub.f32 %v16681_v10, %v6897_v18  ;;  %v6898_v37 = vmul.f32 0.015625, %v6870_v28  ;;  %v6958_v17 = vsel %vm348_vm1, %v6928_v38, 0.0  ;;  %12424 = vmatprep.subr.bf16.mxu1 %v12879_v39  ;;  %v12880_v28 = vld [vmem:[%s18289_s9 + $0x50] sm:$0xff]  }
0x169e   :  { %v6873_v4 = vpop.xlane.xlu0 %6872  ;;  %6959 = vadd.xlane.f32.xlu1 %v6958_v17  ;;  %12425 = vmatpush3.bf16.msra.mxu1 %v12879_v39  ;;  %v12882_v17 = vld [vmem:[%s18294_s21 + $0x80] sm:$0xff]  }
0x169f   :  { %v16779_v5 = vsub.f32 %v16689_v20, %v6898_v37  ;;  %v6899_v29 = vmul.f32 0.015625, %v6873_v4  ;;  %v6929_v36 = vmul.f32 %v16775_v44, %v16775_v44  ;;  %12426 = vmatprep.subr.bf16.mxu1 %v12880_v28  ;;  %v12881_v37 = vld [vmem:[%s18289_s9 + $0x58] sm:$0xff]   ;;  %v12883_v4 = vld [vmem:[%s18294_s21 + $0x88] sm:$0xff]   ;;  %12446 = vmatprep.subr.bf16.mxu0 %v12882_v17 }
0x16a0   :  { %v6876_v9 = vpop.xlane.xlu1 %6875  ;;  %12447 = vmatpush3.bf16.msra.mxu0 %v12882_v17  ;;  %v16835_v17 = vld [vmem:[%s18296_s15 + $0x2] ss:$0 sm:$0xff] }
0x16a1   :  { %v16784_v57 = vsub.f32 %v16686_v31, %v6899_v29  ;;  %v6900_v40 = vmul.f32 0.015625, %v6876_v9  ;;  %v6961_v25 = vsel %vm348_vm1, %v6929_v36, 0.0  ;;  %v6930_v32 = vmul.f32 %v16779_v5, %v16779_v5  ;;  %12448 = vmatprep.subr.bf16.mxu0 %v12883_v4 }
0x16a2   :  { %6962 = vadd.xlane.f32.xlu0 %v6961_v25  ;;  %12427 = vmatpush3.bf16.msra.mxu1 %v12880_v28 }
0x16a3   :  { %v16790_v52 = vsub.f32 %v16694_v47, %v6900_v40  ;;  %v6964_v23 = vsel %vm348_vm1, %v6930_v32, 0.0  ;;  %v6931_v63 = vmul.f32 %v16784_v57, %v16784_v57  ;;  %12428 = vmatprep.subr.bf16.mxu1 %v12881_v37 }
0x16a4   :  { %6965 = vadd.xlane.f32.xlu1 %v6964_v23  ;;  %12449 = vmatpush3.bf16.msra.mxu0 %v12883_v4 }
0x16a5   :  { %v6967_v49 = vsel %vm348_vm1, %v6931_v63, 0.0  ;;  %v6932_v51 = vmul.f32 %v16790_v52, %v16790_v52 }
0x16a6   :  { %6968 = vadd.xlane.f32.xlu0 %v6967_v49  ;;  %12429 = vmatpush3.bf16.msra.mxu1 %v12881_v37 }
0x16a7   :  { %v6970_v34 = vsel %vm348_vm1, %v6932_v51, 0.0 }
0x16a8   :  { %v6879_v54 = vpop.xlane.xlu0 %6878  ;;  %6971 = vadd.xlane.f32.xlu1 %v6970_v34 }
0x16a9   :  { %v6901_v6 = vmul.f32 0.015625, %v6879_v54 }
0x16aa   :  { %v6882_v50 = vpop.xlane.xlu1 %6881 }
0x16ab   :  { %v16800_v60 = vsub.f32 %v16705_v11, %v6901_v6  ;;  %v6902_v1 = vmul.f32 0.015625, %v6882_v50 }
0x16ac   :  { %v6885_v46 = vpop.xlane.xlu0 %6884 }
0x16ad   :  { %v16803_v22 = vsub.f32 %v16713_v42, %v6902_v1  ;;  %v6903_v13 = vmul.f32 0.015625, %v6885_v46  ;;  %v6933_v41 = vmul.f32 %v16800_v60, %v16800_v60 }
0x16ae   :  { %v6888_v19 = vpop.xlane.xlu1 %6887 }
0x16af   :  { %v16808_v26 = vsub.f32 %v16710_v12, %v6903_v13  ;;  %v6904_v62 = vmul.f32 0.015625, %v6888_v19  ;;  %v6973_v0 = vsel %vm348_vm1, %v6933_v41, 0.0  ;;  %v6934_v24 = vmul.f32 %v16803_v22, %v16803_v22 }
0x16b0   :  { %6974 = vadd.xlane.f32.xlu0 %v6973_v0 }
0x16b1   :  { %v16814_v48 = vsub.f32 %v16718_v8, %v6904_v62  ;;  %v6976_v43 = vsel %vm348_vm1, %v6934_v24, 0.0  ;;  %v6935_v7 = vmul.f32 %v16808_v26, %v16808_v26  ;;  %v16829_v62 = vld [vmem:[%s18295_s25 + $0x2] ss:$0 sm:$0xff] }
0x16b2   :  { %6977 = vadd.xlane.f32.xlu1 %v6976_v43 }
0x16b3   :  { %v6979_v21 = vsel %vm348_vm1, %v6935_v7, 0.0  ;;  %v6936_v18 = vmul.f32 %v16814_v48, %v16814_v48 }
0x16b4   :  { %6980 = vadd.xlane.f32.xlu0 %v6979_v21 }
0x16b5   :  { %v6982_v38 = vsel %vm348_vm1, %v6936_v18, 0.0 }
0x16b6   :  { %6983 = vadd.xlane.f32.xlu1 %v6982_v38 }
0x1718   :  { %v6939_v29 = vpop.xlane.xlu0 %6938 }
0x1719   :  { %v6985_v36 = vmul.f32 0.015625, %v6939_v29 }
0x171a   :  { %v6942_v9 = vpop.xlane.xlu1 %6941 }
0x171b   :  { %v7001_v40 = vadd.f32 1e-05, %v6985_v36  ;;  %v6986_v25 = vmul.f32 0.015625, %v6942_v9 }
0x171c   :  { %v6945_v32 = vpop.xlane.xlu0 %6944 }
0x171d   :  { %13446 = vrsqrt.f32 %v7001_v40  ;;  %v7002_v23 = vadd.f32 1e-05, %v6986_v25  ;;  %v6987_v63 = vmul.f32 0.015625, %v6945_v32 }
0x171e   :  { %v6948_v49 = vpop.xlane.xlu1 %6947 }
0x171f   :  { %13448 = vrsqrt.f32 %v7002_v23  ;;  %v7003_v51 = vadd.f32 1e-05, %v6987_v63  ;;  %v6988_v34 = vmul.f32 0.015625, %v6948_v49 }
0x1721   :  { %13450 = vrsqrt.f32 %v7003_v51  ;;  %v7004_v54 = vadd.f32 1e-05, %v6988_v34 }
0x1723   :  { %13452 = vrsqrt.f32 %v7004_v54 }
0x1725   :  { %v6951_v6 = vpop.xlane.xlu0 %6950 }
0x1726   :  { %v6989_v50 = vmul.f32 0.015625, %v6951_v6 }
0x1727   :  { %v6954_v1 = vpop.xlane.xlu1 %6953  ;;  %v13447_v19 = vpop.eup %13446 }
0x1728   :  { %v7005_v46 = vadd.f32 1e-05, %v6989_v50  ;;  %v6990_v13 = vmul.f32 0.015625, %v6954_v1  ;;  %v7033_v7 = vmul.f32 %v13447_v19, %v16728_v3 }
0x1729   :  { %v6957_v41 = vpop.xlane.xlu0 %6956  ;;  %v13449_v21 = vpop.eup %13448 }
0x172a   :  { %13454 = vrsqrt.f32 %v7005_v46  ;;  %v7006_v0 = vadd.f32 1e-05, %v6990_v13  ;;  %v6991_v24 = vmul.f32 0.015625, %v6957_v41  ;;  %v7034_v38 = vmul.f32 %v13449_v21, %v16731_v33 }
0x172b   :  { %v6960_v43 = vpop.xlane.xlu1 %6959  ;;  %v7055_v28 = vmul.f32 %v16829_v62, %v7033_v7  ;;  %v13451_v37 = vpop.eup %13450 }
0x172c   :  { %13456 = vrsqrt.f32 %v7006_v0  ;;  %v7007_v18 = vadd.f32 1e-05, %v6991_v24  ;;  %v6992_v39 = vmul.f32 0.015625, %v6960_v43  ;;  %v7035_v29 = vmul.f32 %v13451_v37, %v16736_v35 }
0x172d   :  { %v7056_v9 = vmul.f32 %v16829_v62, %v7034_v38  ;;  %v13453_v40 = vpop.eup %13452  ;;  %v7077_v23 = vadd.f32 %v16835_v17, %v7055_v28 }
0x172e   :  { %13458 = vrsqrt.f32 %v7007_v18  ;;  %v7008_v4 = vadd.f32 1e-05, %v6992_v39  ;;  %v7057_v25 = vmul.f32 %v16829_v62, %v7035_v29  ;;  %v7036_v32 = vmul.f32 %v13453_v40, %v16742_v45 }
0x172f   :  { %v6963_v36 = vpop.xlane.xlu0 %6962  ;;  %v7078_v63 = vadd.f32 %v16835_v17, %v7056_v9 }
0x1730   :  { %13460 = vrsqrt.f32 %v7008_v4  ;;  %v6993_v3 = vmul.f32 0.015625, %v6963_v36  ;;  %v7058_v34 = vmul.f32 %v16829_v62, %v7036_v32  ;;  %v7079_v46 = vadd.f32 %v16835_v17, %v7057_v25 }
0x1731   :  { %v6966_v33 = vpop.xlane.xlu1 %6965  ;;  %v7093_v54 = vpack.c.bf16 %v7078_v63, %v7077_v23 }
0x1732   :  { %v7009_v49 = vadd.f32 1e-05, %v6993_v3  ;;  %v6994_v51 = vmul.f32 0.015625, %v6966_v33  ;;  %v7080_v13 = vadd.f32 %v16835_v17, %v7058_v34 }
0x1733   :  { %v6969_v35 = vpop.xlane.xlu0 %6968  ;;  %12430 = vmatprep.mubr.msk.bf16.mxu1 %vm348_vm1, %v7093_v54 }
0x1734   :  { %v13455_v6 = vpop.eup %13454  ;;  %13462 = vrsqrt.f32 %v7009_v49  ;;  %v7010_v50 = vadd.f32 1e-05, %v6994_v51  ;;  %v6995_v1 = vmul.f32 0.015625, %v6969_v35  ;;  %v7094_v43 = vpack.c.bf16 %v7080_v13, %v7079_v46 }
0x1735   :  { %v6972_v45 = vpop.xlane.xlu1 %6971  ;;  %v7037_v41 = vmul.f32 %v13455_v6, %v16751_v14 }
0x1736   :  { %v13457_v19 = vpop.eup %13456  ;;  %13464 = vrsqrt.f32 %v7010_v50  ;;  %v7011_v0 = vadd.f32 1e-05, %v6995_v1  ;;  %v6996_v24 = vmul.f32 0.015625, %v6972_v45  ;;  %12431 = vmatmul.mubr.msk.bf16.vlgmr.msra.gmra.mrb[224].mxu1 %vm348_vm1, %v7094_v43 }
0x1737   :  { %v7038_v7 = vmul.f32 %v13457_v19, %v16755_v2  ;;  %v7059_v21 = vmul.f32 %v16829_v62, %v7037_v41 }
0x1738   :  { %v13459_v18 = vpop.eup %13458  ;;  %13466 = vrsqrt.f32 %v7011_v0  ;;  %v7012_v39 = vadd.f32 1e-05, %v6996_v24 }
0x1739   :  { %v7060_v38 = vmul.f32 %v16829_v62, %v7038_v7  ;;  %v7039_v28 = vmul.f32 %v13459_v18, %v16760_v61  ;;  %v7081_v14 = vadd.f32 %v16835_v17, %v7059_v21 }
0x173a   :  { %v13461_v37 = vpop.eup %13460  ;;  %13468 = vrsqrt.f32 %v7012_v39 }
0x173b   :  { %v7082_v4 = vadd.f32 %v16835_v17, %v7060_v38  ;;  %v7040_v29 = vmul.f32 %v13461_v37, %v16766_v59  ;;  %v7061_v2 = vmul.f32 %v16829_v62, %v7039_v28 }
0x173d   :  { %v6975_v36 = vpop.xlane.xlu0 %6974  ;;  %v7095_v9 = vpack.c.bf16 %v7082_v4, %v7081_v14  ;;  %v7062_v40 = vmul.f32 %v16829_v62, %v7040_v29  ;;  %v7083_v61 = vadd.f32 %v16835_v17, %v7061_v2 }
0x173e   :  { %v13463_v3 = vpop.eup %13462  ;;  %v6997_v25 = vmul.f32 0.015625, %v6975_v36 }
0x173f   :  { %v6978_v32 = vpop.xlane.xlu1 %6977  ;;  %12434 = vmatprep.mubr.msk.bf16.mxu1 %vm348_vm1, %v7095_v9  ;;  %v7084_v33 = vadd.f32 %v16835_v17, %v7062_v40  ;;  %v7041_v23 = vmul.f32 %v13463_v3, %v16775_v44 }
0x1740   :  { %v13465_v63 = vpop.eup %13464  ;;  %v7013_v49 = vadd.f32 1e-05, %v6997_v25  ;;  %v6998_v59 = vmul.f32 0.015625, %v6978_v32 }
0x1741   :  { %v6981_v51 = vpop.xlane.xlu0 %6980  ;;  %v7096_v34 = vpack.c.bf16 %v7084_v33, %v7083_v61  ;;  %v7042_v35 = vmul.f32 %v13465_v63, %v16779_v5  ;;  %v7063_v54 = vmul.f32 %v16829_v62, %v7041_v23  ;;  %v12885_v23 = vld [vmem:[%s18294_s21 + $0x98] sm:$0xff]   ;;  %v12886_v63 = vld [vmem:[%s18294_s21 + $0xa0] sm:$0xff]  }
0x1742   :  { %v13467_v6 = vpop.eup %13466  ;;  %13470 = vrsqrt.f32 %v7013_v49  ;;  %v7014_v50 = vadd.f32 1e-05, %v6998_v59  ;;  %v6999_v1 = vmul.f32 0.015625, %v6981_v51  ;;  %v12888_v49 = vld [vmem:[%s18294_s21 + $0xb0] sm:$0xff]   ;;  %v16897_v59 = vld [vmem:[%s18297_s16 + $0x2] ss:$0 sm:$0xff] }
0x1743   :  { %v6984_v46 = vpop.xlane.xlu1 %6983  ;;  %12435 = vmatmul.mubr.msk.bf16.gmra.mrb[228].mxu1 %vm348_vm1, %v7096_v34  ;;  %v7064_v13 = vmul.f32 %v16829_v62, %v7042_v35  ;;  %v7043_v44 = vmul.f32 %v13467_v6, %v16784_v57  ;;  %v7085_v0 = vadd.f32 %v16835_v17, %v7063_v54 }
0x1744   :  { %v13469_v45 = vpop.eup %13468  ;;  %13472 = vrsqrt.f32 %v7014_v50  ;;  %v7015_v41 = vadd.f32 1e-05, %v6999_v1  ;;  %v7000_v19 = vmul.f32 0.015625, %v6984_v46 }
0x1745   :  { %v7086_v5 = vadd.f32 %v16835_v17, %v7064_v13  ;;  %v7044_v24 = vmul.f32 %v13469_v45, %v16790_v52  ;;  %v7065_v43 = vmul.f32 %v16829_v62, %v7043_v44 }
0x1746   :  { %13474 = vrsqrt.f32 %v7015_v41  ;;  %v7016_v7 = vadd.f32 1e-05, %v7000_v19 }
0x1747   :  { %v7097_v21 = vpack.c.bf16 %v7086_v5, %v7085_v0  ;;  %v7066_v18 = vmul.f32 %v16829_v62, %v7044_v24  ;;  %v7087_v57 = vadd.f32 %v16835_v17, %v7065_v43 }
0x1748   :  { %13476 = vrsqrt.f32 %v7016_v7 }
0x1749   :  { %12438 = vmatprep.mubr.msk.bf16.mxu1 %vm348_vm1, %v7097_v21  ;;  %v7088_v39 = vadd.f32 %v16835_v17, %v7066_v18 }
0x174b   :  { %v7098_v38 = vpack.c.bf16 %v7088_v39, %v7087_v57 }
0x174c   :  { %v13471_v28 = vpop.eup %13470 }
0x174d   :  { %12439 = vmatmul.mubr.msk.bf16.gmra.mrb[232].mxu1 %vm348_vm1, %v7098_v38  ;;  %v7045_v52 = vmul.f32 %v13471_v28, %v16800_v60 }
0x174e   :  { %v13473_v37 = vpop.eup %13472 }
0x174f   :  { %v7046_v14 = vmul.f32 %v13473_v37, %v16803_v22  ;;  %v7067_v4 = vmul.f32 %v16829_v62, %v7045_v52 }
0x1750   :  { %v13475_v29 = vpop.eup %13474 }
0x1751   :  { %v7047_v2 = vmul.f32 %v13475_v29, %v16808_v26  ;;  %v7068_v36 = vmul.f32 %v16829_v62, %v7046_v14  ;;  %v7089_v3 = vadd.f32 %v16835_v17, %v7067_v4 }
0x1752   :  { %v13477_v9 = vpop.eup %13476 }
0x1753   :  { %v7048_v40 = vmul.f32 %v13477_v9, %v16814_v48  ;;  %v7090_v60 = vadd.f32 %v16835_v17, %v7068_v36  ;;  %v7069_v25 = vmul.f32 %v16829_v62, %v7047_v2  ;;  %v12884_v48 = vld [vmem:[%s18294_s21 + $0x90] sm:$0xff]  }
0x1754   :  { %12450 = vmatprep.subr.bf16.mxu0 %v12884_v48 }
0x1755   :  { %v7099_v22 = vpack.c.bf16 %v7090_v60, %v7089_v3  ;;  %v7070_v32 = vmul.f32 %v16829_v62, %v7048_v40  ;;  %v7091_v26 = vadd.f32 %v16835_v17, %v7069_v25  ;;  %12451 = vmatpush3.bf16.msra.mxu0 %v12884_v48  ;;  %v12887_v62 = vld [vmem:[%s18294_s21 + $0xa8] sm:$0xff]  }
0x1756   :  { %12452 = vmatprep.subr.bf16.mxu0 %v12885_v23 }
0x1757   :  { %12442 = vmatprep.mubr.msk.bf16.mxu1 %vm348_vm1, %v7099_v22  ;;  %v7092_v61 = vadd.f32 %v16835_v17, %v7070_v32  ;;  %v12889_v17 = vld [vmem:[%s18294_s21 + $0xb8] sm:$0xff]  }
0x1759   :  { %v7100_v33 = vpack.c.bf16 %v7092_v61, %v7091_v26  ;;  %12453 = vmatpush3.bf16.msra.mxu0 %v12885_v23 }
0x175a   :  { %12454 = vmatprep.subr.bf16.mxu0 %v12886_v63 }
0x175b   :  { %12443 = vmatmul.mubr.msk.bf16.gmra.mrb[236].mxu1 %vm348_vm1, %v7100_v33 }
0x175d   :  { %12455 = vmatpush3.bf16.msra.mxu0 %v12886_v63 }
0x175e   :  { %12456 = vmatprep.subr.bf16.mxu0 %v12887_v62 }
0x1761   :  { %12457 = vmatpush3.bf16.msra.mxu0 %v12887_v62 }
0x1762   :  { %12458 = vmatprep.subr.bf16.mxu0 %v12888_v49 }
0x1765   :  { %12459 = vmatpush3.bf16.msra.mxu0 %v12888_v49 }
0x1766   :  { %12460 = vmatprep.subr.bf16.mxu0 %v12889_v17 }
0x1769   :  { %12461 = vmatpush3.bf16.msra.mxu0 %v12889_v17 }
0x1809   :  { %v12432_v51 = vpop.f32.mrb[224].mxu1 }
0x180a   :  { %v7209_v34 = vadd.f32 %v12432_v51, %v16897_v59  ;;  %v7200_v35 = vpop.f32.mrb[225].mxu1 }
0x180b   :  { %v7201_v54 = vadd.f32 %v16897_v59, %v7200_v35  ;;  %v12433_v6 = vpop.f32.mrb[226].mxu1 }
0x180c   :  { %v7281_v50 = vmul.f32 0.70710677, %v7209_v34  ;;  %v7212_v1 = vadd.f32 %v12433_v6, %v16897_v59  ;;  %v7203_v46 = vpop.f32.mrb[227].mxu1  ;;  %v7265_v36 = vmul.f32 0.5, %v7209_v34 }
0x180d   :  { %v7279_v13 = vmul.f32 0.70710677, %v7201_v54  ;;  %v7204_v44 = vadd.f32 %v16897_v59, %v7203_v46  ;;  %v7263_v3 = vmul.f32 0.5, %v7201_v54 }
0x180e   :  { %13478 = verf.f32 %v7281_v50  ;;  %v7282_v45 = vmul.f32 0.70710677, %v7212_v1  ;;  %v7266_v9 = vmul.f32 0.5, %v7212_v1 }
0x180f   :  { %13480 = verf.f32 %v7279_v13  ;;  %v7280_v41 = vmul.f32 0.70710677, %v7204_v44  ;;  %v7264_v60 = vmul.f32 0.5, %v7204_v44 }
0x1810   :  { %13482 = verf.f32 %v7282_v45 }
0x1811   :  { %13484 = verf.f32 %v7280_v41 }
0x1816   :  { %v12436_v19 = vpop.f32.mrb[228].mxu1 }
0x1817   :  { %v7225_v0 = vadd.f32 %v12436_v19, %v16897_v59  ;;  %v7216_v5 = vpop.f32.mrb[229].mxu1 }
0x1818   :  { %v7217_v24 = vadd.f32 %v16897_v59, %v7216_v5  ;;  %v12437_v43 = vpop.f32.mrb[230].mxu1  ;;  %v13479_v38 = vpop.eup %13478 }
0x1819   :  { %v7285_v7 = vmul.f32 0.70710677, %v7225_v0  ;;  %v7228_v21 = vadd.f32 %v12437_v43, %v16897_v59  ;;  %v7219_v18 = vpop.f32.mrb[231].mxu1  ;;  %v13481_v52 = vpop.eup %13480  ;;  %v7313_v37 = vadd.f32 1.0, %v13479_v38  ;;  %v7269_v5 = vmul.f32 0.5, %v7225_v0 }
0x181a   :  { %v7283_v57 = vmul.f32 0.70710677, %v7217_v24  ;;  %v7220_v39 = vadd.f32 %v16897_v59, %v7219_v18  ;;  %v13483_v4 = vpop.eup %13482  ;;  %v7311_v29 = vadd.f32 1.0, %v13481_v52  ;;  %v7267_v18 = vmul.f32 0.5, %v7217_v24 }
0x181b   :  { %13486 = verf.f32 %v7285_v7  ;;  %v7286_v28 = vmul.f32 0.70710677, %v7228_v21  ;;  %v13485_v2 = vpop.eup %13484  ;;  %v7314_v40 = vadd.f32 1.0, %v13483_v4  ;;  %v7329_v22 = vmul.f32 %v7313_v37, %v7265_v36 }
0x181c   :  { %13488 = verf.f32 %v7283_v57  ;;  %v7284_v14 = vmul.f32 0.70710677, %v7220_v39  ;;  %v7312_v25 = vadd.f32 1.0, %v13485_v2  ;;  %v7327_v61 = vmul.f32 %v7311_v29, %v7263_v3 }
0x181d   :  { %13490 = verf.f32 %v7286_v28  ;;  %v7330_v32 = vmul.f32 %v7314_v40, %v7266_v9  ;;  %v7270_v43 = vmul.f32 0.5, %v7228_v21  ;;  %v7268_v57 = vmul.f32 0.5, %v7220_v39 }
0x181e   :  { %13492 = verf.f32 %v7284_v14  ;;  %v7328_v33 = vmul.f32 %v7312_v25, %v7264_v60 }
0x181f   :  { %v7344_v63 = vpack.c.bf16 %v7330_v32, %v7329_v22 }
0x1820   :  { %v12440_v26 = vpop.f32.mrb[232].mxu1  ;;  %v7343_v35 = vpack.c.bf16 %v7328_v33, %v7327_v61 }
0x1821   :  { %v7241_v48 = vadd.f32 %v12440_v26, %v16897_v59  ;;  %v7232_v23 = vpop.f32.mrb[233].mxu1 }
0x1822   :  { %v7233_v62 = vadd.f32 %v16897_v59, %v7232_v23  ;;  %v12441_v49 = vpop.f32.mrb[234].mxu1  ;;  %12462 = vmatprep.mubr.bf16.mxu0 %v7343_v35 }
0x1823   :  { %v7289_v17 = vmul.f32 0.70710677, %v7241_v48  ;;  %v7244_v51 = vadd.f32 %v12441_v49, %v16897_v59  ;;  %v7235_v34 = vpop.f32.mrb[235].mxu1  ;;  %12463 = vmatmul.mubr.bf16.vlgmr.msra.gmra.mrb[240].mxu0 %v7344_v63  ;;  %v7273_v39 = vmul.f32 0.5, %v7241_v48 }
0x1824   :  { %v7287_v54 = vmul.f32 0.70710677, %v7233_v62  ;;  %v7236_v6 = vadd.f32 %v16897_v59, %v7235_v34  ;;  %v7271_v33 = vmul.f32 0.5, %v7233_v62 }
0x1825   :  { %v13487_v50 = vpop.eup %13486  ;;  %13494 = verf.f32 %v7289_v17  ;;  %v7290_v1 = vmul.f32 0.70710677, %v7244_v51  ;;  %v7274_v23 = vmul.f32 0.5, %v7244_v51 }
0x1826   :  { %v13489_v46 = vpop.eup %13488  ;;  %v7317_v13 = vadd.f32 1.0, %v13487_v50  ;;  %13496 = verf.f32 %v7287_v54  ;;  %v7288_v44 = vmul.f32 0.70710677, %v7236_v6  ;;  %v7272_v34 = vmul.f32 0.5, %v7236_v6 }
0x1827   :  { %v13491_v45 = vpop.eup %13490  ;;  %v7315_v41 = vadd.f32 1.0, %v13489_v46  ;;  %13498 = verf.f32 %v7290_v1 }
0x1828   :  { %v13493_v19 = vpop.eup %13492  ;;  %v7318_v7 = vadd.f32 1.0, %v13491_v45  ;;  %13500 = verf.f32 %v7288_v44  ;;  %v7333_v28 = vmul.f32 %v7317_v13, %v7269_v5 }
0x1829   :  { %v7316_v38 = vadd.f32 1.0, %v13493_v19  ;;  %v7331_v37 = vmul.f32 %v7315_v41, %v7267_v18 }
0x182a   :  { %v7334_v52 = vmul.f32 %v7318_v7, %v7270_v43 }
0x182b   :  { %v7332_v14 = vmul.f32 %v7316_v38, %v7268_v57 }
0x182c   :  { %v7346_v4 = vpack.c.bf16 %v7334_v52, %v7333_v28 }
0x182d   :  { %v7345_v29 = vpack.c.bf16 %v7332_v14, %v7331_v37 }
0x182e   :  { %v12444_v2 = vpop.f32.mrb[236].mxu1 }
0x182f   :  { %v13495_v36 = vpop.eup %13494  ;;  %v7257_v9 = vadd.f32 %v12444_v2, %v16897_v59  ;;  %v7248_v40 = vpop.f32.mrb[237].mxu1  ;;  %12466 = vmatprep.mubr.bf16.mxu0 %v7345_v29  ;;  %v16916_v2 = vld [vmem:[%s18298_s18 + $0x2] ss:$0 sm:$0xff] }
0x1830   :  { %v13497_v3 = vpop.eup %13496  ;;  %v7321_v0 = vadd.f32 1.0, %v13495_v36  ;;  %v7249_v21 = vadd.f32 %v16897_v59, %v7248_v40  ;;  %v12445_v60 = vpop.f32.mrb[238].mxu1  ;;  %12467 = vmatmul.mubr.bf16.gmra.mrb[244].mxu0 %v7346_v4 }
0x1831   :  { %v13499_v24 = vpop.eup %13498  ;;  %v7319_v25 = vadd.f32 1.0, %v13497_v3  ;;  %v7293_v22 = vmul.f32 0.70710677, %v7257_v9  ;;  %v7260_v32 = vadd.f32 %v12445_v60, %v16897_v59  ;;  %v7251_v26 = vpop.f32.mrb[239].mxu1  ;;  %v7277_v19 = vmul.f32 0.5, %v7257_v9 }
0x1832   :  { %v13501_v61 = vpop.eup %13500  ;;  %v7322_v63 = vadd.f32 1.0, %v13499_v24  ;;  %v7291_v49 = vmul.f32 0.70710677, %v7249_v21  ;;  %v7337_v17 = vmul.f32 %v7321_v0, %v7273_v39  ;;  %v7252_v1 = vadd.f32 %v16897_v59, %v7251_v26 }
0x1833   :  { %v7320_v35 = vadd.f32 1.0, %v13501_v61  ;;  %13502 = verf.f32 %v7293_v22  ;;  %v7294_v50 = vmul.f32 0.70710677, %v7260_v32  ;;  %v7335_v48 = vmul.f32 %v7319_v25, %v7271_v33 }
0x1834   :  { %v7338_v54 = vmul.f32 %v7322_v63, %v7274_v23  ;;  %13504 = verf.f32 %v7291_v49  ;;  %v7292_v13 = vmul.f32 0.70710677, %v7252_v1  ;;  %v7278_v43 = vmul.f32 0.5, %v7260_v32 }
0x1835   :  { %v7336_v46 = vmul.f32 %v7320_v35, %v7272_v34  ;;  %13506 = verf.f32 %v7294_v50  ;;  %v7275_v59 = vmul.f32 0.5, %v7249_v21  ;;  %v7276_v28 = vmul.f32 0.5, %v7252_v1 }
0x1836   :  { %v7348_v44 = vpack.c.bf16 %v7338_v54, %v7337_v17  ;;  %13508 = verf.f32 %v7292_v13 }
0x1837   :  { %v7347_v45 = vpack.c.bf16 %v7336_v46, %v7335_v48 }
0x1839   :  { %12470 = vmatprep.mubr.bf16.mxu0 %v7347_v45 }
0x183a   :  { %12471 = vmatmul.mubr.bf16.gmra.mrb[248].mxu0 %v7348_v44 }
0x183d   :  { %v13503_v62 = vpop.eup %13502 }
0x183e   :  { %v13505_v51 = vpop.eup %13504  ;;  %v7325_v41 = vadd.f32 1.0, %v13503_v62 }
0x183f   :  { %v13507_v6 = vpop.eup %13506  ;;  %v7323_v5 = vadd.f32 1.0, %v13505_v51 }
0x1840   :  { %v7326_v7 = vadd.f32 1.0, %v13507_v6  ;;  %v13509_v18 = vpop.eup %13508  ;;  %v7341_v57 = vmul.f32 %v7325_v41, %v7277_v19 }
0x1841   :  { %v7324_v52 = vadd.f32 1.0, %v13509_v18  ;;  %v7339_v37 = vmul.f32 %v7323_v5, %v7275_v59 }
0x1842   :  { %v7342_v38 = vmul.f32 %v7326_v7, %v7278_v43 }
0x1843   :  { %v7340_v14 = vmul.f32 %v7324_v52, %v7276_v28 }
0x1844   :  { %v7350_v4 = vpack.c.bf16 %v7342_v38, %v7341_v57 }
0x1845   :  { %v7349_v29 = vpack.c.bf16 %v7340_v14, %v7339_v37 }
0x1847   :  { %12474 = vmatprep.mubr.bf16.mxu0 %v7349_v29 }
0x1848   :  { %12475 = vmatmul.mubr.bf16.gmra.mrb[252].mxu0 %v7350_v4 }
0x18f6   :  { %v12464_v36 = vpop.f32.mrb[240].mxu0 }
0x18f7   :  { %v7458_v9 = vpop.f32.mrb[241].mxu0  ;;  %v7467_v40 = vadd.f32 %v12464_v36, %v16916_v2 }
0x18f8   :  { %v7459_v3 = vadd.f32 %v16916_v2, %v7458_v9  ;;  %v12465_v0 = vpop.f32.mrb[242].mxu0 }
0x18f9   :  { %v7461_v21 = vpop.f32.mrb[243].mxu0  ;;  %v7470_v24 = vadd.f32 %v12465_v0, %v16916_v2  ;;  %v16926_v25 = vadd.f32 %v7467_v40, %v16638_v53 }
0x18fa   :  { %v16921_v60 = vadd.f32 %v7459_v3, %v16633_v27  ;;  %v7462_v39 = vadd.f32 %v16916_v2, %v7461_v21 }
0x18fb   :  { %v16934_v26 = vadd.f32 %v7470_v24, %v16646_v58  ;;  %v7547_v33 = vsel %vm348_vm1, %v16926_v25, 0.0 }
0x18fc   :  { %v16929_v22 = vadd.f32 %v7462_v39, %v16641_v16  ;;  %v7541_v32 = vsel %vm348_vm1, %v16921_v60, 0.0 }
0x18fd   :  { %7542 = vadd.xlane.f32.xlu0 %v7541_v32  ;;  %v7550_v49 = vsel %vm348_vm1, %v16934_v26, 0.0 }
0x18fe   :  { %v7544_v27 = vsel %vm348_vm1, %v16929_v22, 0.0 }
0x18ff   :  { %7545 = vadd.xlane.f32.xlu1 %v7544_v27 }
0x1901   :  { %7548 = vadd.xlane.f32.xlu0 %v7547_v33 }
0x1903   :  { %v12468_v61 = vpop.f32.mrb[244].mxu0  ;;  %7551 = vadd.xlane.f32.xlu1 %v7550_v49 }
0x1904   :  { %v7474_v53 = vpop.f32.mrb[245].mxu0  ;;  %v7483_v16 = vadd.f32 %v12468_v61, %v16916_v2 }
0x1905   :  { %v7475_v23 = vadd.f32 %v16916_v2, %v7474_v53  ;;  %v12469_v63 = vpop.f32.mrb[246].mxu0 }
0x1906   :  { %v7477_v58 = vpop.f32.mrb[247].mxu0  ;;  %v7486_v34 = vadd.f32 %v12469_v63, %v16916_v2  ;;  %v16950_v54 = vadd.f32 %v7483_v16, %v16662_v15 }
0x1907   :  { %v16945_v17 = vadd.f32 %v7475_v23, %v16657_v30  ;;  %v7478_v35 = vadd.f32 %v16916_v2, %v7477_v58 }
0x1908   :  { %v16958_v48 = vadd.f32 %v7486_v34, %v16670_v55  ;;  %v7559_v13 = vsel %vm348_vm1, %v16950_v54, 0.0 }
0x1909   :  { %v16953_v50 = vadd.f32 %v7478_v35, %v16665_v56  ;;  %v7553_v1 = vsel %vm348_vm1, %v16945_v17, 0.0 }
0x190a   :  { %7554 = vadd.xlane.f32.xlu0 %v7553_v1  ;;  %18337 = vst [vmem:[#allocation26_spill] sm:$0xff] %v16958_v48  ;;  %v7562_v62 = vsel %vm348_vm1, %v16958_v48, 0.0 }
0x190b   :  { %v7556_v30 = vsel %vm348_vm1, %v16953_v50, 0.0 }
0x190c   :  { %7557 = vadd.xlane.f32.xlu1 %v7556_v30 }
0x190d   :  { %v12472_v46 = vpop.f32.mrb[248].mxu0 }
0x190e   :  { %v7490_v15 = vpop.f32.mrb[249].mxu0  ;;  %7560 = vadd.xlane.f32.xlu0 %v7559_v13  ;;  %v7499_v56 = vadd.f32 %v12472_v46, %v16916_v2 }
0x190f   :  { %v7491_v44 = vadd.f32 %v16916_v2, %v7490_v15  ;;  %v12473_v45 = vpop.f32.mrb[250].mxu0 }
0x1910   :  { %v7493_v55 = vpop.f32.mrb[251].mxu0  ;;  %7563 = vadd.xlane.f32.xlu1 %v7562_v62  ;;  %v7502_v41 = vadd.f32 %v12473_v45, %v16916_v2  ;;  %v16974_v19 = vadd.f32 %v7499_v56, %v16686_v31 }
0x1911   :  { %v16969_v51 = vadd.f32 %v7491_v44, %v16681_v10  ;;  %v7494_v6 = vadd.f32 %v16916_v2, %v7493_v55 }
0x1912   :  { %18339 = vst [vmem:[#allocation18_spill] sm:$0xff] %v16974_v19  ;;  %v16982_v7 = vadd.f32 %v7502_v41, %v16694_v47  ;;  %v7571_v18 = vsel %vm348_vm1, %v16974_v19, 0.0 }
0x1913   :  { %18338 = vst [vmem:[#allocation27_spill] sm:$0xff] %v16969_v51  ;;  %v16977_v5 = vadd.f32 %v7494_v6, %v16689_v20  ;;  %v7565_v43 = vsel %vm348_vm1, %v16969_v51, 0.0 }
0x1914   :  { %7566 = vadd.xlane.f32.xlu0 %v7565_v43  ;;  %18341 = vst [vmem:[#allocation20_spill] sm:$0xff] %v16982_v7  ;;  %v7574_v31 = vsel %vm348_vm1, %v16982_v7, 0.0 }
0x1915   :  { %18340 = vst [vmem:[#allocation19_spill] sm:$0xff] %v16977_v5  ;;  %v7568_v10 = vsel %vm348_vm1, %v16977_v5, 0.0 }
0x1916   :  { %7569 = vadd.xlane.f32.xlu1 %v7568_v10 }
0x1918   :  { %7572 = vadd.xlane.f32.xlu0 %v7571_v18 }
0x191a   :  { %7575 = vadd.xlane.f32.xlu1 %v7574_v31 }
0x191b   :  { %v12476_v20 = vpop.f32.mrb[252].mxu0 }
0x191c   :  { %v7506_v59 = vpop.f32.mrb[253].mxu0  ;;  %v7515_v57 = vadd.f32 %v12476_v20, %v16916_v2 }
0x191d   :  { %v7507_v38 = vadd.f32 %v16916_v2, %v7506_v59  ;;  %v12477_v47 = vpop.f32.mrb[254].mxu0 }
0x191e   :  { %v7509_v28 = vpop.f32.mrb[255].mxu0  ;;  %v7518_v37 = vadd.f32 %v12477_v47, %v16916_v2  ;;  %v16998_v4 = vadd.f32 %v7515_v57, %v16710_v12 }
0x191f   :  { %v16993_v52 = vadd.f32 %v7507_v38, %v16705_v11  ;;  %v7510_v14 = vadd.f32 %v16916_v2, %v7509_v28 }
0x1920   :  { %18343 = vst [vmem:[#allocation22_spill] sm:$0xff] %v16998_v4  ;;  %v17006_v9 = vadd.f32 %v7518_v37, %v16718_v8  ;;  %v7583_v2 = vsel %vm348_vm1, %v16998_v4, 0.0 }
0x1921   :  { %18342 = vst [vmem:[#allocation21_spill] sm:$0xff] %v16993_v52  ;;  %v17001_v29 = vadd.f32 %v7510_v14, %v16713_v42  ;;  %v7577_v36 = vsel %vm348_vm1, %v16993_v52, 0.0  ;;  %v12890_v42 = vld [vmem:[%s13863_s14 + $0x60] sm:$0xff]  }
0x1922   :  { %7578 = vadd.xlane.f32.xlu0 %v7577_v36  ;;  %18345 = vst [vmem:[#allocation24_spill] sm:$0xff] %v17006_v9  ;;  %v7586_v12 = vsel %vm348_vm1, %v17006_v9, 0.0  ;;  %12502 = vmatprep.subr.bf16.mxu0 %v12890_v42 }
0x1923   :  { %18344 = vst [vmem:[#allocation23_spill] sm:$0xff] %v17001_v29  ;;  %v7580_v11 = vsel %vm348_vm1, %v17001_v29, 0.0  ;;  %12503 = vmatpush3.bf16.msra.mxu0 %v12890_v42 }
0x1924   :  { %7581 = vadd.xlane.f32.xlu1 %v7580_v11 }
0x1926   :  { %7584 = vadd.xlane.f32.xlu0 %v7583_v2 }
0x1928   :  { %7587 = vadd.xlane.f32.xlu1 %v7586_v12 }
0x198a   :  { %v7543_v40 = vpop.xlane.xlu0 %7542 }
0x198b   :  { %v7589_v3 = vmul.f32 0.015625, %v7543_v40 }
0x198c   :  { %v7546_v0 = vpop.xlane.xlu1 %7545 }
0x198d   :  { %v17016_v8 = vsub.f32 %v16921_v60, %v7589_v3  ;;  %v7590_v21 = vmul.f32 0.015625, %v7546_v0 }
0x198e   :  { %v7549_v24 = vpop.xlane.xlu0 %7548 }
0x198f   :  { %v17019_v39 = vsub.f32 %v16929_v22, %v7590_v21  ;;  %v7591_v32 = vmul.f32 0.015625, %v7549_v24  ;;  %v7621_v27 = vmul.f32 %v17016_v8, %v17016_v8 }
0x1990   :  { %v7552_v61 = vpop.xlane.xlu1 %7551 }
0x1991   :  { %v17024_v33 = vsub.f32 %v16926_v25, %v7591_v32  ;;  %v7592_v53 = vmul.f32 0.015625, %v7552_v61  ;;  %v7637_v16 = vsel %vm348_vm1, %v7621_v27, 0.0  ;;  %v7622_v23 = vmul.f32 %v17019_v39, %v17019_v39 }
0x1992   :  { %7638 = vadd.xlane.f32.xlu0 %v7637_v16 }
0x1993   :  { %v17030_v63 = vsub.f32 %v16934_v26, %v7592_v53  ;;  %v7640_v49 = vsel %vm348_vm1, %v7622_v23, 0.0  ;;  %v7623_v58 = vmul.f32 %v17024_v33, %v17024_v33 }
0x1994   :  { %7641 = vadd.xlane.f32.xlu1 %v7640_v49 }
0x1995   :  { %v7643_v1 = vsel %vm348_vm1, %v7623_v58, 0.0  ;;  %v7624_v30 = vmul.f32 %v17030_v63, %v17030_v63 }
0x1996   :  { %7644 = vadd.xlane.f32.xlu0 %v7643_v1 }
0x1997   :  { %v7555_v34 = vpop.xlane.xlu0 %7554  ;;  %v7646_v56 = vsel %vm348_vm1, %v7624_v30, 0.0 }
0x1998   :  { %v7593_v35 = vmul.f32 0.015625, %v7555_v34  ;;  %7647 = vadd.xlane.f32.xlu1 %v7646_v56 }
0x1999   :  { %v7558_v46 = vpop.xlane.xlu1 %7557 }
0x199a   :  { %v17039_v13 = vsub.f32 %v16945_v17, %v7593_v35  ;;  %v7594_v15 = vmul.f32 0.015625, %v7558_v46 }
0x199b   :  { %v7561_v44 = vpop.xlane.xlu0 %7560 }
0x199c   :  { %v17043_v45 = vsub.f32 %v16953_v50, %v7594_v15  ;;  %v7595_v62 = vmul.f32 0.015625, %v7561_v44  ;;  %v7625_v55 = vmul.f32 %v17039_v13, %v17039_v13 }
0x199d   :  { %v7564_v41 = vpop.xlane.xlu1 %7563 }
0x199e   :  { %v17048_v6 = vsub.f32 %v16950_v54, %v7595_v62  ;;  %v7596_v43 = vmul.f32 0.015625, %v7564_v41  ;;  %v7649_v10 = vsel %vm348_vm1, %v7625_v55, 0.0  ;;  %v7626_v18 = vmul.f32 %v17043_v45, %v17043_v45 }
0x199f   :  { %7650 = vadd.xlane.f32.xlu0 %v7649_v10 }
0x19a0   :  { %v17054_v31 = vsub.f32 %v16958_v48, %v7596_v43  ;;  %v7652_v20 = vsel %vm348_vm1, %v7626_v18, 0.0  ;;  %v7627_v59 = vmul.f32 %v17048_v6, %v17048_v6 }
0x19a1   :  { %v7567_v57 = vpop.xlane.xlu0 %7566  ;;  %7653 = vadd.xlane.f32.xlu1 %v7652_v20 }
0x19a2   :  { %v7597_v38 = vmul.f32 0.015625, %v7567_v57  ;;  %v7655_v47 = vsel %vm348_vm1, %v7627_v59, 0.0  ;;  %v7628_v28 = vmul.f32 %v17054_v31, %v17054_v31  ;;  %v12891_v57 = vld [vmem:[%s13863_s14 + $0x68] sm:$0xff]  }
0x19a3   :  { %v7570_v37 = vpop.xlane.xlu1 %7569  ;;  %7656 = vadd.xlane.f32.xlu0 %v7655_v47  ;;  %12504 = vmatprep.subr.bf16.mxu0 %v12891_v57 }
0x19a4   :  { %v17063_v14 = vsub.f32 %v16969_v51, %v7597_v38  ;;  %v7598_v36 = vmul.f32 0.015625, %v7570_v37  ;;  %v7658_v11 = vsel %vm348_vm1, %v7628_v28, 0.0  ;;  %v12892_v38 = vld [vmem:[%s13858_s8 + $0x60] sm:$0xff]   ;;  %12505 = vmatpush3.bf16.msra.mxu0 %v12891_v57 }
0x19a5   :  { %v7573_v2 = vpop.xlane.xlu0 %7572  ;;  %7659 = vadd.xlane.f32.xlu1 %v7658_v11  ;;  %12478 = vmatprep.subr.bf16.mxu1 %v12892_v38  ;;  %v12893_v11 = vld [vmem:[%s13863_s14 + $0x70] sm:$0xff]  }
0x19a6   :  { %v17067_v12 = vsub.f32 %v16977_v5, %v7598_v36  ;;  %v7599_v42 = vmul.f32 0.015625, %v7573_v2  ;;  %v7629_v40 = vmul.f32 %v17063_v14, %v17063_v14  ;;  %12479 = vmatpush3.bf16.msra.mxu1 %v12892_v38  ;;  %v12894_v36 = vld [vmem:[%s13858_s8 + $0x68] sm:$0xff]   ;;  %12506 = vmatprep.subr.bf16.mxu0 %v12893_v11  ;;  %v12896_v2 = vld [vmem:[%s13858_s8 + $0x70] sm:$0xff]  }
0x19a7   :  { %v7576_v3 = vpop.xlane.xlu1 %7575  ;;  %12480 = vmatprep.subr.bf16.mxu1 %v12894_v36 }
0x19a8   :  { %v17072_v0 = vsub.f32 %v16974_v19, %v7599_v42  ;;  %v7600_v21 = vmul.f32 0.015625, %v7576_v3  ;;  %v7661_v24 = vsel %vm348_vm1, %v7629_v40, 0.0  ;;  %v7630_v32 = vmul.f32 %v17067_v12, %v17067_v12  ;;  %12507 = vmatpush3.bf16.msra.mxu0 %v12893_v11  ;;  %v12895_v42 = vld [vmem:[%s13863_s14 + $0x78] sm:$0xff]   ;;  %v17119_v3 = vld [vmem:[%s13828_s13] sm:$0xff]   ;;  %s13809_s14 = smov [#allocation2]  }
0x19a9   :  { %7662 = vadd.xlane.f32.xlu0 %v7661_v24  ;;  %v12897_v40 = vld [vmem:[%s13858_s8 + $0x78] sm:$0xff]   ;;  %12508 = vmatprep.subr.bf16.mxu0 %v12895_v42  ;;  %s18360_s8 = sld [smem:[#allocation16_spill]] }
0x19aa   :  { %v17078_v27 = vsub.f32 %v16982_v7, %v7600_v21  ;;  %v7664_v61 = vsel %vm348_vm1, %v7630_v32, 0.0  ;;  %v7631_v53 = vmul.f32 %v17072_v0, %v17072_v0  ;;  %12481 = vmatpush3.bf16.msra.mxu1 %v12894_v36  ;;  %v17123_v21 = vld [vmem:[%s13868_s19 + $0x60] sm:$0xff]  }
0x19ab   :  { %7665 = vadd.xlane.f32.xlu1 %v7664_v61  ;;  %12482 = vmatprep.subr.bf16.mxu1 %v12896_v2 }
0x19ac   :  { %v7667_v16 = vsel %vm348_vm1, %v7631_v53, 0.0  ;;  %v7632_v23 = vmul.f32 %v17078_v27, %v17078_v27  ;;  %12509 = vmatpush3.bf16.msra.mxu0 %v12895_v42 }
0x19ad   :  { %7668 = vadd.xlane.f32.xlu0 %v7667_v16  ;;  %12550 = vmatprep.subr.bf16.mxu0 %v17119_v3 }
0x19ae   :  { %v7670_v49 = vsel %vm348_vm1, %v7632_v23, 0.0  ;;  %12483 = vmatpush3.bf16.msra.mxu1 %v12896_v2 }
0x19af   :  { %7671 = vadd.xlane.f32.xlu1 %v7670_v49  ;;  %v7579_v58 = vpop.xlane.xlu0 %7578  ;;  %12484 = vmatprep.subr.bf16.mxu1 %v12897_v40 }
0x19b0   :  { %v7601_v34 = vmul.f32 0.015625, %v7579_v58 }
0x19b1   :  { %v7582_v35 = vpop.xlane.xlu1 %7581 }
0x19b2   :  { %v17088_v1 = vsub.f32 %v16993_v52, %v7601_v34  ;;  %v7602_v30 = vmul.f32 0.015625, %v7582_v35  ;;  %12485 = vmatpush3.bf16.msra.mxu1 %v12897_v40 }
0x19b3   :  { %v7585_v46 = vpop.xlane.xlu0 %7584  ;;  %12526 = vmatprep.subr.bf16.mxu1 %v17123_v21 }
0x19b4   :  { %v17091_v15 = vsub.f32 %v17001_v29, %v7602_v30  ;;  %v7603_v56 = vmul.f32 0.015625, %v7585_v46  ;;  %v7633_v44 = vmul.f32 %v17088_v1, %v17088_v1 }
0x19b5   :  { %v7588_v62 = vpop.xlane.xlu1 %7587 }
0x19b6   :  { %v17096_v55 = vsub.f32 %v16998_v4, %v7603_v56  ;;  %v7604_v41 = vmul.f32 0.015625, %v7588_v62  ;;  %v7673_v43 = vsel %vm348_vm1, %v7633_v44, 0.0  ;;  %v7634_v10 = vmul.f32 %v17091_v15, %v17091_v15 }
0x19b7   :  { %7674 = vadd.xlane.f32.xlu0 %v7673_v43 }
0x19b8   :  { %v17102_v18 = vsub.f32 %v17006_v9, %v7604_v41  ;;  %v7676_v20 = vsel %vm348_vm1, %v7634_v10, 0.0  ;;  %v7635_v59 = vmul.f32 %v17096_v55, %v17096_v55 }
0x19b9   :  { %7677 = vadd.xlane.f32.xlu1 %v7676_v20 }
0x19ba   :  { %v7679_v47 = vsel %vm348_vm1, %v7635_v59, 0.0  ;;  %v7636_v28 = vmul.f32 %v17102_v18, %v17102_v18  ;;  %v17127_v59 = vld [vmem:[%s13848_s29 + $0x3] ss:$0 sm:$0xff]  ;;  %s18358_s29 = sld [smem:[#allocation13_spill]] }
0x19bb   :  { %7680 = vadd.xlane.f32.xlu0 %v7679_v47 }
0x19bc   :  { %v7682_v37 = vsel %vm348_vm1, %v7636_v28, 0.0 }
0x19bd   :  { %7683 = vadd.xlane.f32.xlu1 %v7682_v37 }
0x1a1f   :  { %v7639_v24 = vpop.xlane.xlu0 %7638 }
0x1a20   :  { %v7685_v32 = vmul.f32 0.015625, %v7639_v24  ;;  %v17133_v24 = vld [vmem:[%s13853_s3 + $0x3] ss:$0 sm:$0xff]  ;;  %s18359_s3 = sld [smem:[#allocation14_spill]] }
0x1a21   :  { %v7642_v61 = vpop.xlane.xlu1 %7641 }
0x1a22   :  { %v7701_v53 = vadd.f32 1e-05, %v7685_v32  ;;  %v7686_v16 = vmul.f32 0.015625, %v7642_v61 }
0x1a23   :  { %v7645_v23 = vpop.xlane.xlu0 %7644 }
0x1a24   :  { %13510 = vrsqrt.f32 %v7701_v53  ;;  %v7702_v49 = vadd.f32 1e-05, %v7686_v16  ;;  %v7687_v58 = vmul.f32 0.015625, %v7645_v23 }
0x1a25   :  { %v7648_v34 = vpop.xlane.xlu1 %7647 }
0x1a26   :  { %13512 = vrsqrt.f32 %v7702_v49  ;;  %v7703_v35 = vadd.f32 1e-05, %v7687_v58  ;;  %v7688_v30 = vmul.f32 0.015625, %v7648_v34 }
0x1a28   :  { %13514 = vrsqrt.f32 %v7703_v35  ;;  %v7704_v46 = vadd.f32 1e-05, %v7688_v30 }
0x1a2a   :  { %13516 = vrsqrt.f32 %v7704_v46 }
0x1a2c   :  { %v7651_v56 = vpop.xlane.xlu0 %7650 }
0x1a2d   :  { %v7689_v44 = vmul.f32 0.015625, %v7651_v56 }
0x1a2e   :  { %v7654_v62 = vpop.xlane.xlu1 %7653  ;;  %v13511_v20 = vpop.eup %13510 }
0x1a2f   :  { %v7705_v41 = vadd.f32 1e-05, %v7689_v44  ;;  %v7690_v43 = vmul.f32 0.015625, %v7654_v62  ;;  %v7733_v47 = vmul.f32 %v13511_v20, %v17016_v8 }
0x1a30   :  { %v7657_v10 = vpop.xlane.xlu0 %7656  ;;  %v13513_v37 = vpop.eup %13512 }
0x1a31   :  { %13518 = vrsqrt.f32 %v7705_v41  ;;  %v7706_v57 = vadd.f32 1e-05, %v7690_v43  ;;  %v7691_v38 = vmul.f32 0.015625, %v7657_v10  ;;  %v7734_v2 = vmul.f32 %v13513_v37, %v17019_v39 }
0x1a32   :  { %v7660_v28 = vpop.xlane.xlu1 %7659  ;;  %v7755_v42 = vmul.f32 %v17127_v59, %v7733_v47  ;;  %v13515_v40 = vpop.eup %13514 }
0x1a33   :  { %13520 = vrsqrt.f32 %v7706_v57  ;;  %v7707_v36 = vadd.f32 1e-05, %v7691_v38  ;;  %v7692_v11 = vmul.f32 0.015625, %v7660_v28  ;;  %v7735_v61 = vmul.f32 %v13515_v40, %v17024_v33 }
0x1a34   :  { %v7756_v16 = vmul.f32 %v17127_v59, %v7734_v2  ;;  %v13517_v8 = vpop.eup %13516  ;;  %v7777_v34 = vadd.f32 %v17133_v24, %v7755_v42  ;;  %v12899_v2 = vld [vmem:[%s13868_s19 + $0x68] sm:$0xff]  }
0x1a35   :  { %13522 = vrsqrt.f32 %v7707_v36  ;;  %v7708_v32 = vadd.f32 1e-05, %v7692_v11  ;;  %v7757_v49 = vmul.f32 %v17127_v59, %v7735_v61  ;;  %v7736_v58 = vmul.f32 %v13517_v8, %v17030_v63  ;;  %v17169_v8 = vld [vmem:[%s13828_s13 + $0x8] sm:$0xff]  }
0x1a36   :  { %v7663_v53 = vpop.xlane.xlu0 %7662  ;;  %v7778_v35 = vadd.f32 %v17133_v24, %v7756_v16 }
0x1a37   :  { %13524 = vrsqrt.f32 %v7708_v32  ;;  %v7693_v23 = vmul.f32 0.015625, %v7663_v53  ;;  %v7758_v56 = vmul.f32 %v17127_v59, %v7736_v58  ;;  %v7779_v10 = vadd.f32 %v17133_v24, %v7757_v49 }
0x1a38   :  { %v7666_v39 = vpop.xlane.xlu1 %7665  ;;  %v17142_v44 = vpack.c.bf16 %v7778_v35, %v7777_v34 }
0x1a39   :  { %v7709_v30 = vadd.f32 1e-05, %v7693_v23  ;;  %v7694_v46 = vmul.f32 0.015625, %v7666_v39  ;;  %v7780_v63 = vadd.f32 %v17133_v24, %v7758_v56  ;;  %v12900_v23 = vld [vmem:[%s13868_s19 + $0x70] sm:$0xff]   ;;  %v12901_v56 = vld [vmem:[%s13868_s19 + $0x78] sm:$0xff]   ;;  %s10531_s19 = sshll.u32 %s13809_s14, 4  ;;  %s10532_s19 = int_to_ptr.vmem [resolvable:$true] %s10531_s19 }
0x1a3a   :  { %v7669_v33 = vpop.xlane.xlu0 %7668  ;;  %12486 = vmatprep.mubr.msk.bf16.mxu1 %vm348_vm1, %v17142_v44  ;;  %12510 = vmatprep.mubr.msk.bf16.mxu0 %vm348_vm1, %v17142_v44  ;;  %p13758_p1 = scmp.lt.s32.totalorder %s10532_s19, %s10532_s19 }
0x1a3b   :  { %v13519_v62 = vpop.eup %13518  ;;  %13526 = vrsqrt.f32 %v7709_v30  ;;  %v7710_v41 = vadd.f32 1e-05, %v7694_v46  ;;  %v7695_v43 = vmul.f32 0.015625, %v7669_v33  ;;  %v17152_v36 = vpack.c.bf16 %v7780_v63, %v7779_v10  ;;  %v17186_v33 = vld [vmem:[%s13828_s13 + $0x10] sm:$0xff]  }
0x1a3c   :  { %v7737_v20 = vmul.f32 %v13519_v62, %v17039_v13  ;;  %v7672_v57 = vpop.xlane.xlu1 %7671 }
0x1a3d   :  { %v13521_v38 = vpop.eup %13520  ;;  %13528 = vrsqrt.f32 %v7710_v41  ;;  %v7711_v47 = vadd.f32 1e-05, %v7695_v43  ;;  %v7696_v28 = vmul.f32 0.015625, %v7672_v57  ;;  %12487 = vmatmul.mubr.msk.bf16.vlgmr.msra.gmra.mrb[240].mxu1 %vm348_vm1, %v17152_v36  ;;  %12511 = vmatmul.mubr.msk.bf16.vlgmr.msra.gmra.mrb[0].mxu0 %vm348_vm1, %v17152_v36 }
0x1a3e   :  { %v7738_v37 = vmul.f32 %v13521_v38, %v17043_v45  ;;  %v7759_v11 = vmul.f32 %v17127_v59, %v7737_v20  ;;  %12527 = vmatpush3.bf16.msra.mxu1 %v17123_v21  ;;  %12551 = vmatpush3.bf16.msra.mxu0 %v17119_v3 }
0x1a3f   :  { %v13523_v42 = vpop.eup %13522  ;;  %13530 = vrsqrt.f32 %v7711_v47  ;;  %v7712_v13 = vadd.f32 1e-05, %v7696_v28  ;;  %12528 = vmatprep.subr.bf16.mxu1 %v12899_v2  ;;  %12552 = vmatprep.subr.bf16.mxu0 %v17169_v8 }
0x1a40   :  { %v7739_v40 = vmul.f32 %v13523_v42, %v17048_v6  ;;  %v7760_v45 = vmul.f32 %v17127_v59, %v7738_v37  ;;  %v7781_v61 = vadd.f32 %v17133_v24, %v7759_v11  ;;  %v13751_v11 = vld [vmem:[%s13828_s13 + $0x18] sm:$0xff]   ;;  %s18356_s13 = sld [smem:[#allocation15_spill]] }
0x1a41   :  { %v13525_v32 = vpop.eup %13524  ;;  %13532 = vrsqrt.f32 %v7712_v13 }
0x1a42   :  { %v7740_v53 = vmul.f32 %v13525_v32, %v17054_v31  ;;  %v7782_v6 = vadd.f32 %v17133_v24, %v7760_v45  ;;  %v7761_v16 = vmul.f32 %v17127_v59, %v7739_v40  ;;  %12529 = vmatpush3.bf16.msra.mxu1 %v12899_v2  ;;  %12553 = vmatpush3.bf16.msra.mxu0 %v17169_v8 }
0x1a43   :  { %12530 = vmatprep.subr.bf16.mxu1 %v12900_v23  ;;  %12554 = vmatprep.subr.bf16.mxu0 %v17186_v33 }
0x1a44   :  { %v17173_v49 = vpack.c.bf16 %v7782_v6, %v7781_v61  ;;  %v7762_v21 = vmul.f32 %v17127_v59, %v7740_v53  ;;  %v7675_v39 = vpop.xlane.xlu0 %7674  ;;  %v7783_v34 = vadd.f32 %v17133_v24, %v7761_v16  ;;  %v13752_v6 = vld [vmem:[%s13833_s17] sm:$0x3]  ;;  %s18357_s17 = sld [smem:[#allocation17_spill]] }
0x1a45   :  { %v13527_v58 = vpop.eup %13526  ;;  %v7697_v46 = vmul.f32 0.015625, %v7675_v39 }
0x1a46   :  { %v7741_v31 = vmul.f32 %v13527_v58, %v17063_v14  ;;  %12490 = vmatprep.mubr.msk.bf16.mxu1 %vm348_vm1, %v17173_v49  ;;  %12514 = vmatprep.mubr.msk.bf16.mxu0 %vm348_vm1, %v17173_v49  ;;  %v7784_v35 = vadd.f32 %v17133_v24, %v7762_v21  ;;  %v7678_v62 = vpop.xlane.xlu1 %7677 }
0x1a47   :  { %v13529_v30 = vpop.eup %13528  ;;  %v7713_v63 = vadd.f32 1e-05, %v7697_v46  ;;  %v7698_v20 = vmul.f32 0.015625, %v7678_v62  ;;  %12531 = vmatpush3.bf16.msra.mxu1 %v12900_v23  ;;  %12555 = vmatpush3.bf16.msra.mxu0 %v17186_v33 }
0x1a48   :  { %v7742_v14 = vmul.f32 %v13529_v30, %v17067_v12  ;;  %v17190_v41 = vpack.c.bf16 %v7784_v35, %v7783_v34  ;;  %v7763_v43 = vmul.f32 %v17127_v59, %v7741_v31  ;;  %v7681_v38 = vpop.xlane.xlu0 %7680  ;;  %12532 = vmatprep.subr.bf16.mxu1 %v12901_v56  ;;  %12556 = vmatprep.subr.bf16.mxu0 %v13751_v11 }
0x1a49   :  { %v13531_v10 = vpop.eup %13530  ;;  %13534 = vrsqrt.f32 %v7713_v63  ;;  %v7714_v28 = vadd.f32 1e-05, %v7698_v20  ;;  %v7699_v37 = vmul.f32 0.015625, %v7681_v38 }
0x1a4a   :  { %v7743_v57 = vmul.f32 %v13531_v10, %v17072_v0  ;;  %12491 = vmatmul.mubr.msk.bf16.gmra.mrb[244].mxu1 %vm348_vm1, %v17190_v41  ;;  %12515 = vmatmul.mubr.msk.bf16.gmra.mrb[4].mxu0 %vm348_vm1, %v17190_v41  ;;  %v7764_v12 = vmul.f32 %v17127_v59, %v7742_v14  ;;  %v7684_v0 = vpop.xlane.xlu1 %7683  ;;  %v7785_v42 = vadd.f32 %v17133_v24, %v7763_v43 }
0x1a4b   :  { %v13533_v47 = vpop.eup %13532  ;;  %13536 = vrsqrt.f32 %v7714_v28  ;;  %v7715_v45 = vadd.f32 1e-05, %v7699_v37  ;;  %v7700_v32 = vmul.f32 0.015625, %v7684_v0  ;;  %12533 = vmatpush3.bf16.msra.mxu1 %v12901_v56  ;;  %12557 = vmatpush3.bf16.msra.mxu0 %v13751_v11 }
0x1a4c   :  { %v7744_v2 = vmul.f32 %v13533_v47, %v17078_v27  ;;  %v7786_v13 = vadd.f32 %v17133_v24, %v7764_v12  ;;  %v7765_v40 = vmul.f32 %v17127_v59, %v7743_v57  ;;  %12574 = vmatprep.subr.bf16.mxu1 %v17119_v3  ;;  %12764 = vmatprep.subr.msk.bf16.mxu0 %vm1581_vm2, %v13752_v6 }
0x1a4d   :  { %13538 = vrsqrt.f32 %v7715_v45  ;;  %v7716_v27 = vadd.f32 1e-05, %v7700_v32 }
0x1a4e   :  { %v7797_v61 = vpack.c.bf16 %v7786_v13, %v7785_v42  ;;  %v7766_v53 = vmul.f32 %v17127_v59, %v7744_v2  ;;  %v7787_v16 = vadd.f32 %v17133_v24, %v7765_v40 }
0x1a4f   :  { %13540 = vrsqrt.f32 %v7716_v27 }
0x1a50   :  { %12494 = vmatprep.mubr.msk.bf16.mxu1 %vm348_vm1, %v7797_v61  ;;  %12518 = vmatprep.mubr.msk.bf16.mxu0 %vm348_vm1, %v7797_v61  ;;  %v7788_v23 = vadd.f32 %v17133_v24, %v7766_v53 }
0x1a52   :  { %v7798_v21 = vpack.c.bf16 %v7788_v23, %v7787_v16 }
0x1a53   :  { %v13535_v58 = vpop.eup %13534 }
0x1a54   :  { %12495 = vmatmul.mubr.msk.bf16.gmra.mrb[248].mxu1 %vm348_vm1, %v7798_v21  ;;  %12519 = vmatmul.mubr.msk.bf16.gmra.mrb[8].mxu0 %vm348_vm1, %v7798_v21  ;;  %v7745_v31 = vmul.f32 %v13535_v58, %v17088_v1 }
0x1a55   :  { %v13537_v39 = vpop.eup %13536 }
0x1a56   :  { %v7746_v34 = vmul.f32 %v13537_v39, %v17091_v15  ;;  %v7767_v35 = vmul.f32 %v17127_v59, %v7745_v31 }
0x1a57   :  { %v13539_v30 = vpop.eup %13538 }
0x1a58   :  { %v7747_v46 = vmul.f32 %v13539_v30, %v17096_v55  ;;  %v7768_v56 = vmul.f32 %v17127_v59, %v7746_v34  ;;  %v7789_v43 = vadd.f32 %v17133_v24, %v7767_v35  ;;  %v18346_v35 = vld [vmem:[#allocation28_spill] sm:$0xff] }
0x1a59   :  { %v13541_v14 = vpop.eup %13540 }
0x1a5a   :  { %v7748_v62 = vmul.f32 %v13541_v14, %v17102_v18  ;;  %v7790_v10 = vadd.f32 %v17133_v24, %v7768_v56  ;;  %v7769_v63 = vmul.f32 %v17127_v59, %v7747_v46  ;;  %v17250_v18 = vld [vmem:[%s13873_s24 + $0x3] ss:$0 sm:$0xff]  ;;  %s13753_s24 = scalar_lea.vmem %s10532_s19, 32 }
0x1a5b   :  { %p13754_p0 = scmp.ne.s32.totalorder %s10532_s19, %s13753_s24  ;;  %p13759_p2 = scmp.lt.s32.totalorder %s13753_s24, %s13753_s24 }
0x1a5c   :  { %v7799_v1 = vpack.c.bf16 %v7790_v10, %v7789_v43  ;;  %v7770_v20 = vmul.f32 %v17127_v59, %v7748_v62  ;;  %v7791_v15 = vadd.f32 %v17133_v24, %v7769_v63 }
0x1a5d   :  { %p13760_p3 = por %p13759_p2, %p13758_p1 }
0x1a5e   :  { %12498 = vmatprep.mubr.msk.bf16.mxu1 %vm348_vm1, %v7799_v1  ;;  %12522 = vmatprep.mubr.msk.bf16.mxu0 %vm348_vm1, %v7799_v1  ;;  %v7792_v55 = vadd.f32 %v17133_v24, %v7770_v20 }
0x1a5f   :  { %p13761_p4 = pnand %p13760_p3, %p13754_p0 }
0x1a60   :  { %v7800_v57 = vpack.c.bf16 %v7792_v55, %v7791_v15 }
0x1a62   :  { %12499 = vmatmul.mubr.msk.bf16.gmra.mrb[252].mxu1 %vm348_vm1, %v7800_v57  ;;  %12523 = vmatmul.mubr.msk.bf16.gmra.mrb[12].mxu0 %vm348_vm1, %v7800_v57 }
0x1a63   :  { %12534 = vmatprep.mubr.msk.bf16.mxu1 %vm348_vm1, %v17142_v44 }
0x1a6a   :  { %12535 = vmatmul.mubr.msk.bf16.vlgmr.msra.gmra.mrb[0].mxu1 %vm348_vm1, %v17152_v36 }
0x1a6b   :  { %12538 = vmatprep.mubr.msk.bf16.mxu1 %vm348_vm1, %v17173_v49  ;;  %12575 = vmatpush3.bf16.msra.mxu1 %v17119_v3  ;;  %v17253_v3 = vld [vmem:[%s13878_s30 + $0x3] ss:$0 sm:$0xff] }
0x1a6c   :  { %12576 = vmatprep.subr.bf16.mxu1 %v17169_v8 }
0x1a6f   :  { %12577 = vmatpush3.bf16.msra.mxu1 %v17169_v8 }
0x1a70   :  { %12578 = vmatprep.subr.bf16.mxu1 %v17186_v33 }
0x1a72   :  { %12539 = vmatmul.mubr.msk.bf16.gmra.mrb[4].mxu1 %vm348_vm1, %v17190_v41 }
0x1a73   :  { %12542 = vmatprep.mubr.msk.bf16.mxu1 %vm348_vm1, %v7797_v61  ;;  %12579 = vmatpush3.bf16.msra.mxu1 %v17186_v33 }
0x1a74   :  { %12580 = vmatprep.subr.bf16.mxu1 %v13751_v11 }
0x1a77   :  { %12581 = vmatpush3.bf16.msra.mxu1 %v13751_v11 }
0x1a78   :  { %12765 = vmatprep.subr.msk.bf16.mxu1 %vm1581_vm2, %v13752_v6 }
0x1a7a   :  { %12543 = vmatmul.mubr.msk.bf16.gmra.mrb[8].mxu1 %vm348_vm1, %v7798_v21 }
0x1a7b   :  { %12546 = vmatprep.mubr.msk.bf16.mxu1 %vm348_vm1, %v7799_v1 }
0x1a82   :  { %12547 = vmatmul.mubr.msk.bf16.gmra.mrb[12].mxu1 %vm348_vm1, %v7800_v57 }
0x1b10   :  { %v12488_v59 = vpop.f32.mrb[240].mxu1  ;;  %v12512_v24 = vpop.f32.mrb[0].mxu0 }
0x1b11   :  { %v7909_v44 = vadd.f32 %v12488_v59, %v17250_v18  ;;  %v8047_v36 = vadd.f32 %v12512_v24, %v17253_v3  ;;  %v7900_v8 = vpop.f32.mrb[241].mxu1  ;;  %v8038_v49 = vpop.f32.mrb[1].mxu0 }
0x1b12   :  { %v7901_v33 = vadd.f32 %v17250_v18, %v7900_v8  ;;  %v8039_v41 = vadd.f32 %v17253_v3, %v8038_v49  ;;  %v12489_v38 = vpop.f32.mrb[242].mxu1  ;;  %v12513_v12 = vpop.f32.mrb[2].mxu0 }
0x1b13   :  { %v8241_v47 = vmul.f32 %v8047_v36, %v7909_v44  ;;  %v7912_v28 = vadd.f32 %v12489_v38, %v17250_v18  ;;  %v8050_v37 = vadd.f32 %v12513_v12, %v17253_v3  ;;  %v7903_v11 = vpop.f32.mrb[243].mxu1  ;;  %v8041_v2 = vpop.f32.mrb[3].mxu0 }
0x1b14   :  { %v8239_v0 = vmul.f32 %v8039_v41, %v7901_v33  ;;  %v7904_v42 = vadd.f32 %v17250_v18, %v7903_v11  ;;  %v8042_v13 = vadd.f32 %v17253_v3, %v8041_v2 }
0x1b15   :  { %v8242_v40 = vmul.f32 %v8050_v37, %v7912_v28 }
0x1b16   :  { %v8240_v45 = vmul.f32 %v8042_v13, %v7904_v42 }
0x1b17   :  { %v8256_v32 = vpack.c.bf16 %v8242_v40, %v8241_v47 }
0x1b18   :  { %v8255_v61 = vpack.c.bf16 %v8240_v45, %v8239_v0 }
0x1b1a   :  { %12558 = vmatprep.mubr.msk.bf16.mxu0 %vm348_vm1, %v8255_v61 }
0x1b1b   :  { %12559 = vmatmul.mubr.msk.bf16.vlgmr.msra.gmra.mrb[16].mxu0 %vm348_vm1, %v8256_v32 }
0x1b1c   :  { %12599 = vmatpush3.bf16.msra.mxu0 %v18346_v35 }
0x1b1d   :  { %v12492_v53 = vpop.f32.mrb[244].mxu1  ;;  %v12516_v6 = vpop.f32.mrb[4].mxu0 }
0x1b1e   :  { %v17265_v27 = vadd.f32 %v12492_v53, %v17250_v18  ;;  %v17268_v16 = vadd.f32 %v12516_v6, %v17253_v3  ;;  %v7916_v23 = vpop.f32.mrb[245].mxu1  ;;  %v8054_v21 = vpop.f32.mrb[5].mxu0 }
0x1b1f   :  { %v17272_v58 = vadd.f32 %v17250_v18, %v7916_v23  ;;  %v17275_v31 = vadd.f32 %v17253_v3, %v8054_v21  ;;  %v12493_v39 = vpop.f32.mrb[246].mxu1  ;;  %v12517_v34 = vpop.f32.mrb[6].mxu0 }
0x1b20   :  { %v8245_v30 = vmul.f32 %v17268_v16, %v17265_v27  ;;  %v17281_v46 = vadd.f32 %v12493_v39, %v17250_v18  ;;  %v17284_v56 = vadd.f32 %v12517_v34, %v17253_v3  ;;  %v7919_v14 = vpop.f32.mrb[247].mxu1  ;;  %v8057_v62 = vpop.f32.mrb[7].mxu0 }
0x1b21   :  { %v8243_v43 = vmul.f32 %v17275_v31, %v17272_v58  ;;  %v17289_v10 = vadd.f32 %v17250_v18, %v7919_v14  ;;  %v17292_v63 = vadd.f32 %v17253_v3, %v8057_v62 }
0x1b22   :  { %v8246_v1 = vmul.f32 %v17284_v56, %v17281_v46 }
0x1b23   :  { %v8244_v20 = vmul.f32 %v17292_v63, %v17289_v10 }
0x1b24   :  { %v8258_v15 = vpack.c.bf16 %v8246_v1, %v8245_v30 }
0x1b25   :  { %v8257_v55 = vpack.c.bf16 %v8244_v20, %v8243_v43 }
0x1b27   :  { %v12496_v57 = vpop.f32.mrb[248].mxu1  ;;  %v12520_v59 = vpop.f32.mrb[8].mxu0  ;;  %12562 = vmatprep.mubr.msk.bf16.mxu0 %vm348_vm1, %v8257_v55 }
0x1b28   :  { %v7941_v24 = vadd.f32 %v12496_v57, %v17250_v18  ;;  %v8079_v8 = vadd.f32 %v12520_v59, %v17253_v3  ;;  %v7932_v49 = vpop.f32.mrb[249].mxu1  ;;  %v8070_v38 = vpop.f32.mrb[9].mxu0  ;;  %12563 = vmatmul.mubr.msk.bf16.gmra.mrb[20].mxu0 %vm348_vm1, %v8258_v15 }
0x1b29   :  { %v7933_v12 = vadd.f32 %v17250_v18, %v7932_v49  ;;  %v8071_v47 = vadd.f32 %v17253_v3, %v8070_v38  ;;  %v12497_v11 = vpop.f32.mrb[250].mxu1  ;;  %v12521_v2 = vpop.f32.mrb[10].mxu0 }
0x1b2a   :  { %v8249_v0 = vmul.f32 %v8047_v36, %v7941_v24  ;;  %v8402_v40 = vmul.f32 %v8079_v8, %v7909_v44  ;;  %v17304_v45 = vmul.f32 %v8079_v8, %v7941_v24  ;;  %v7944_v32 = vadd.f32 %v12497_v11, %v17250_v18  ;;  %v7935_v61 = vpop.f32.mrb[251].mxu1  ;;  %v8073_v53 = vpop.f32.mrb[11].mxu0 }
0x1b2b   :  { %v8247_v6 = vmul.f32 %v8039_v41, %v7933_v12  ;;  %v8400_v23 = vmul.f32 %v8071_v47, %v7901_v33  ;;  %v17307_v21 = vmul.f32 %v8071_v47, %v7933_v12  ;;  %v8082_v39 = vadd.f32 %v12521_v2, %v17253_v3 }
0x1b2c   :  { %v8250_v34 = vmul.f32 %v8050_v37, %v7944_v32  ;;  %v7936_v30 = vadd.f32 %v17250_v18, %v7935_v61  ;;  %v8074_v14 = vadd.f32 %v17253_v3, %v8073_v53 }
0x1b2d   :  { %v8403_v62 = vmul.f32 %v8082_v39, %v7912_v28  ;;  %v17312_v36 = vmul.f32 %v8082_v39, %v7944_v32 }
0x1b2e   :  { %v8260_v44 = vpack.c.bf16 %v8250_v34, %v8249_v0  ;;  %v8248_v43 = vmul.f32 %v8042_v13, %v7936_v30  ;;  %v8401_v1 = vmul.f32 %v8074_v14, %v7904_v42  ;;  %v8409_v20 = vmul.f32 %v8074_v14, %v7936_v30 }
0x1b2f   :  { %v8417_v15 = vpack.c.bf16 %v8403_v62, %v8402_v40  ;;  %v8421_v33 = vpack.c.bf16 %v17312_v36, %v17304_v45 }
0x1b30   :  { %v8259_v41 = vpack.c.bf16 %v8248_v43, %v8247_v6  ;;  %v8416_v55 = vpack.c.bf16 %v8401_v1, %v8400_v23  ;;  %v8420_v57 = vpack.c.bf16 %v8409_v20, %v17307_v21 }
0x1b32   :  { %12566 = vmatprep.mubr.msk.bf16.mxu0 %vm348_vm1, %v8259_v41  ;;  %12582 = vmatprep.mubr.msk.bf16.mxu1 %vm348_vm1, %v8416_v55 }
0x1b33   :  { %12567 = vmatmul.mubr.msk.bf16.gmra.mrb[24].mxu0 %vm348_vm1, %v8260_v44  ;;  %12583 = vmatmul.mubr.msk.bf16.vlgmr.msra.gmra.mrb[16].mxu1 %vm348_vm1, %v8417_v15 }
0x1b34   :  { %12617 = vmatpush3.bf16.msra.mxu1 %v18346_v35 }
0x1b35   :  { %v12500_v28 = vpop.f32.mrb[252].mxu1  ;;  %v12524_v37 = vpop.f32.mrb[12].mxu0 }
0x1b36   :  { %v7957_v42 = vadd.f32 %v12500_v28, %v17250_v18  ;;  %v8095_v13 = vadd.f32 %v12524_v37, %v17253_v3  ;;  %v7948_v59 = vpop.f32.mrb[253].mxu1  ;;  %v8086_v24 = vpop.f32.mrb[13].mxu0 }
0x1b37   :  { %v7949_v8 = vadd.f32 %v17250_v18, %v7948_v59  ;;  %v8087_v49 = vadd.f32 %v17253_v3, %v8086_v24  ;;  %v12501_v38 = vpop.f32.mrb[254].mxu1  ;;  %v12525_v12 = vpop.f32.mrb[14].mxu0 }
0x1b38   :  { %v8253_v47 = vmul.f32 %v17268_v16, %v7957_v42  ;;  %v8406_v11 = vmul.f32 %v8095_v13, %v17265_v27  ;;  %v8414_v2 = vmul.f32 %v8095_v13, %v7957_v42  ;;  %v7960_v35 = vadd.f32 %v12501_v38, %v17250_v18  ;;  %v7951_v0 = vpop.f32.mrb[255].mxu1  ;;  %v8089_v40 = vpop.f32.mrb[15].mxu0 }
0x1b39   :  { %v8251_v45 = vmul.f32 %v17275_v31, %v7949_v8  ;;  %v8404_v32 = vmul.f32 %v8087_v49, %v17272_v58  ;;  %v8412_v61 = vmul.f32 %v8087_v49, %v7949_v8  ;;  %v8098_v53 = vadd.f32 %v12525_v12, %v17253_v3 }
0x1b3a   :  { %v8254_v6 = vmul.f32 %v17284_v56, %v7960_v35  ;;  %v7952_v23 = vadd.f32 %v17250_v18, %v7951_v0  ;;  %v8090_v16 = vadd.f32 %v17253_v3, %v8089_v40 }
0x1b3b   :  { %v8407_v27 = vmul.f32 %v8098_v53, %v17281_v46  ;;  %v8415_v21 = vmul.f32 %v8098_v53, %v7960_v35 }
0x1b3c   :  { %v8262_v39 = vpack.c.bf16 %v8254_v6, %v8253_v47  ;;  %v8252_v34 = vmul.f32 %v17292_v63, %v7952_v23  ;;  %v8405_v30 = vmul.f32 %v8090_v16, %v17289_v10  ;;  %v8413_v31 = vmul.f32 %v8090_v16, %v7952_v23 }
0x1b3d   :  { %v8419_v14 = vpack.c.bf16 %v8407_v27, %v8406_v11  ;;  %v8423_v58 = vpack.c.bf16 %v8415_v21, %v8414_v2  ;;  %v17338_v62 = vpop.f32.mrb[0].mxu1 }
0x1b3e   :  { %v8261_v36 = vpack.c.bf16 %v8252_v34, %v8251_v45  ;;  %v8418_v44 = vpack.c.bf16 %v8405_v30, %v8404_v32  ;;  %v8422_v56 = vpack.c.bf16 %v8413_v31, %v8412_v61  ;;  %v17340_v43 = vpop.f32.mrb[1].mxu1 }
0x1b3f   :  { %v17342_v18 = vpop.f32.mrb[2].mxu1 }
0x1b40   :  { %12570 = vmatprep.mubr.msk.bf16.mxu0 %vm348_vm1, %v8261_v36  ;;  %12586 = vmatprep.mubr.msk.bf16.mxu1 %vm348_vm1, %v8418_v44  ;;  %v17346_v3 = vpop.f32.mrb[3].mxu1 }
0x1b41   :  { %12571 = vmatmul.mubr.msk.bf16.gmra.mrb[28].mxu0 %vm348_vm1, %v8262_v39  ;;  %12587 = vmatmul.mubr.msk.bf16.gmra.mrb[20].mxu1 %vm348_vm1, %v8419_v14 }
0x1b42   :  { %12590 = vmatprep.mubr.msk.bf16.mxu1 %vm348_vm1, %v8420_v57 }
0x1b45   :  { %v17351_v46 = vpop.f32.mrb[4].mxu1 }
0x1b46   :  { %v17353_v10 = vpop.f32.mrb[5].mxu1 }
0x1b47   :  { %v17355_v63 = vpop.f32.mrb[6].mxu1 }
0x1b48   :  { %v17357_v1 = vpop.f32.mrb[7].mxu1 }
0x1b49   :  { %12591 = vmatmul.mubr.msk.bf16.gmra.mrb[24].mxu1 %vm348_vm1, %v8421_v33  ;;  %v17379_v33 = vld [vmem:[%s13888_s12 + $0x60] sm:$0xff]  }
0x1b4a   :  { %12594 = vmatprep.mubr.msk.bf16.mxu1 %vm348_vm1, %v8422_v56  ;;  %12634 = vmatprep.subr.bf16.mxu0 %v17379_v33 }
0x1b4d   :  { %v17361_v20 = vpop.f32.mrb[8].mxu1 }
0x1b4e   :  { %v17363_v15 = vpop.f32.mrb[9].mxu1 }
0x1b4f   :  { %v17365_v41 = vpop.f32.mrb[10].mxu1 }
0x1b50   :  { %v17367_v55 = vpop.f32.mrb[11].mxu1 }
0x1b51   :  { %12595 = vmatmul.mubr.msk.bf16.gmra.mrb[28].mxu1 %vm348_vm1, %v8423_v58 }
0x1b55   :  { %v17370_v57 = vpop.f32.mrb[12].mxu1 }
0x1b56   :  { %v17372_v28 = vpop.f32.mrb[13].mxu1 }
0x1b57   :  { %v17374_v37 = vpop.f32.mrb[14].mxu1 }
0x1b58   :  { %v17376_v42 = vpop.f32.mrb[15].mxu1 }
0x1bee   :  { %v12560_v13 = vpop.f32.mrb[16].mxu0 }
0x1bef   :  { %v8321_v59 = vpop.f32.mrb[17].mxu0  ;;  %v8386_v35 = vmul.f32 0.25, %v12560_v13 }
0x1bf0   :  { %v12561_v24 = vpop.f32.mrb[18].mxu0  ;;  %v8384_v32 = vmul.f32 0.25, %v8321_v59 }
0x1bf1   :  { %v8324_v8 = vpop.f32.mrb[19].mxu0  ;;  %v8387_v23 = vmul.f32 0.25, %v12561_v24 }
0x1bf2   :  { %v8385_v34 = vmul.f32 0.25, %v8324_v8 }
0x1bfb   :  { %v12564_v49 = vpop.f32.mrb[20].mxu0 }
0x1bfc   :  { %v8337_v38 = vpop.f32.mrb[21].mxu0 }
0x1bfd   :  { %v12565_v12 = vpop.f32.mrb[22].mxu0 }
0x1bfe   :  { %v8340_v47 = vpop.f32.mrb[23].mxu0 }
0x1c06   :  { %v12568_v11 = vpop.f32.mrb[24].mxu0  ;;  %v12584_v2 = vpop.f32.mrb[16].mxu1 }
0x1c07   :  { %v8547_v0 = vmul.f32 0.25, %v12584_v2  ;;  %v8353_v40 = vpop.f32.mrb[25].mxu0  ;;  %v8482_v45 = vpop.f32.mrb[17].mxu1 }
0x1c08   :  { %v8545_v61 = vmul.f32 0.25, %v8482_v45  ;;  %v12569_v53 = vpop.f32.mrb[26].mxu0  ;;  %v12585_v6 = vpop.f32.mrb[18].mxu1 }
0x1c09   :  { %v8563_v16 = vmax.f32 %v8386_v35, %v8547_v0  ;;  %v8548_v27 = vmul.f32 0.25, %v12585_v6  ;;  %v8356_v21 = vpop.f32.mrb[27].mxu0  ;;  %v8485_v39 = vpop.f32.mrb[19].mxu1 }
0x1c0a   :  { %v8561_v30 = vmax.f32 %v8384_v32, %v8545_v61  ;;  %v8546_v31 = vmul.f32 0.25, %v8485_v39 }
0x1c0b   :  { %v8579_v14 = vsub.f32 %v8386_v35, %v8563_v16  ;;  %v8627_v58 = vsub.f32 %v8547_v0, %v8563_v16  ;;  %v8564_v36 = vmax.f32 %v8387_v23, %v8548_v27 }
0x1c0c   :  { %v8577_v44 = vsub.f32 %v8384_v32, %v8561_v30  ;;  %v8625_v56 = vsub.f32 %v8545_v61, %v8561_v30  ;;  %v8562_v13 = vmax.f32 %v8385_v34, %v8546_v31  ;;  %v8390_v61 = vmul.f32 0.25, %v12564_v49 }
0x1c0d   :  { %v8597_v2 = vmul.f32 1.442695, %v8579_v14  ;;  %v8645_v9 = vmul.f32 1.442695, %v8627_v58  ;;  %v8580_v59 = vsub.f32 %v8387_v23, %v8564_v36  ;;  %v8628_v45 = vsub.f32 %v8548_v27, %v8564_v36 }
0x1c0e   :  { %v8593_v29 = vmul.f32 1.442695, %v8577_v44  ;;  %v8641_v4 = vmul.f32 1.442695, %v8625_v56  ;;  %v8578_v24 = vsub.f32 %v8385_v34, %v8562_v13  ;;  %v8626_v52 = vsub.f32 %v8546_v31, %v8562_v13 }
0x1c0f   :  { %13542 = vpow2.f32 %v8597_v2  ;;  %v8599_v6 = vmul.f32 1.442695, %v8580_v59  ;;  %v8647_v8 = vmul.f32 1.442695, %v8628_v45  ;;  %v8388_v34 = vmul.f32 0.25, %v8337_v38 }
0x1c10   :  { %13544 = vpow2.f32 %v8645_v9  ;;  %v8595_v39 = vmul.f32 1.442695, %v8578_v24  ;;  %v8643_v35 = vmul.f32 1.442695, %v8626_v52  ;;  %v8391_v30 = vmul.f32 0.25, %v12565_v12 }
0x1c11   :  { %13546 = vpow2.f32 %v8593_v29  ;;  %v8389_v29 = vmul.f32 0.25, %v8340_v47  ;;  %v17390_v49 = vmul.f32 0.25, %v8353_v40  ;;  %v17392_v2 = vmul.f32 0.25, %v12569_v53 }
0x1c12   :  { %13548 = vpow2.f32 %v8641_v4  ;;  %v17384_v4 = vmul.f32 0.25, %v12568_v11 }
0x1c13   :  { %13550 = vpow2.f32 %v8599_v6 }
0x1c14   :  { %13552 = vpow2.f32 %v8647_v8  ;;  %v12572_v0 = vpop.f32.mrb[28].mxu0  ;;  %v12588_v32 = vpop.f32.mrb[20].mxu1  ;;  %v17400_v8 = vmul.f32 0.25, %v8356_v21 }
0x1c15   :  { %13554 = vpow2.f32 %v8595_v39  ;;  %v8551_v23 = vmul.f32 0.25, %v12588_v32  ;;  %v8369_v16 = vpop.f32.mrb[29].mxu0  ;;  %v8498_v27 = vpop.f32.mrb[21].mxu1 }
0x1c16   :  { %13556 = vpow2.f32 %v8643_v35  ;;  %v8549_v31 = vmul.f32 0.25, %v8498_v27  ;;  %v12573_v14 = vpop.f32.mrb[30].mxu0  ;;  %v12589_v9 = vpop.f32.mrb[22].mxu1  ;;  %v17406_v27 = vmul.f32 0.25, %v12572_v0 }
0x1c17   :  { %v8567_v52 = vmax.f32 %v8390_v61, %v8551_v23  ;;  %v8552_v36 = vmul.f32 0.25, %v12589_v9  ;;  %v17386_v44 = vpop.f32.mrb[31].mxu0  ;;  %v8501_v56 = vpop.f32.mrb[23].mxu1  ;;  %v17418_v19 = vmul.f32 0.25, %v12573_v14 }
0x1c18   :  { %v8565_v38 = vmax.f32 %v8388_v34, %v8549_v31  ;;  %v8550_v12 = vmul.f32 0.25, %v8501_v56 }
0x1c19   :  { %v17382_v58 = vpop.eup %13542  ;;  %v8583_v11 = vsub.f32 %v8390_v61, %v8567_v52  ;;  %v8631_v45 = vsub.f32 %v8551_v23, %v8567_v52  ;;  %v8568_v24 = vmax.f32 %v8391_v30, %v8552_v36  ;;  %v17410_v23 = vmul.f32 0.25, %v8369_v16 }
0x1c1a   :  { %v17388_v13 = vpop.eup %13544  ;;  %v8581_v39 = vsub.f32 %v8388_v34, %v8565_v38  ;;  %v8629_v35 = vsub.f32 %v8549_v31, %v8565_v38  ;;  %v8566_v40 = vmax.f32 %v8389_v29, %v8550_v12 }
0x1c1b   :  { %v17394_v59 = vpop.eup %13546  ;;  %v8675_v47 = vadd.f32 %v17388_v13, %v17382_v58  ;;  %v8605_v9 = vmul.f32 1.442695, %v8583_v11  ;;  %v8653_v61 = vmul.f32 1.442695, %v8631_v45  ;;  %v8584_v52 = vsub.f32 %v8391_v30, %v8568_v24 }
0x1c1c   :  { %v17398_v6 = vpop.eup %13548  ;;  %v8632_v21 = vsub.f32 %v8552_v36, %v8568_v24  ;;  %v12592_v7 = vpop.f32.mrb[24].mxu1  ;;  %v8582_v38 = vsub.f32 %v8389_v29, %v8566_v40  ;;  %v8601_v11 = vmul.f32 1.442695, %v8581_v39  ;;  %v8649_v36 = vmul.f32 1.442695, %v8629_v35 }
0x1c1d   :  { %v17402_v32 = vpop.eup %13550  ;;  %13558 = vrcp.f32 %v8675_v47  ;;  %v8673_v53 = vadd.f32 %v17398_v6, %v17394_v59  ;;  %v8630_v47 = vsub.f32 %v8550_v12, %v8566_v40  ;;  %v8514_v5 = vpop.f32.mrb[25].mxu1  ;;  %v8555_v16 = vmul.f32 0.25, %v12592_v7 }
0x1c1e   :  { %v17408_v56 = vpop.eup %13552  ;;  %v12593_v45 = vpop.f32.mrb[26].mxu1  ;;  %v8607_v24 = vmul.f32 1.442695, %v8584_v52  ;;  %v8553_v12 = vmul.f32 0.25, %v8514_v5  ;;  %v8655_v51 = vmul.f32 1.442695, %v8632_v21 }
0x1c1f   :  { %v17412_v34 = vpop.eup %13554  ;;  %13560 = vrcp.f32 %v8673_v53  ;;  %v8676_v31 = vadd.f32 %v17408_v56, %v17402_v32  ;;  %v8517_v53 = vpop.f32.mrb[27].mxu1  ;;  %v8571_v29 = vmax.f32 %v17384_v4, %v8555_v16  ;;  %v8556_v40 = vmul.f32 0.25, %v12593_v45 }
0x1c20   :  { %v17416_v0 = vpop.eup %13556  ;;  %13562 = vpow2.f32 %v8605_v9  ;;  %v8603_v9 = vmul.f32 1.442695, %v8582_v38  ;;  %v8554_v39 = vmul.f32 0.25, %v8517_v53  ;;  %v8651_v48 = vmul.f32 1.442695, %v8630_v47 }
0x1c21   :  { %13564 = vrcp.f32 %v8676_v31  ;;  %v8674_v30 = vadd.f32 %v17416_v0, %v17412_v34  ;;  %v8587_v7 = vsub.f32 %v17384_v4, %v8571_v29  ;;  %v8635_v14 = vsub.f32 %v8555_v16, %v8571_v29 }
0x1c22   :  { %13566 = vpow2.f32 %v8653_v61  ;;  %v8569_v31 = vmax.f32 %v17390_v49, %v8553_v12  ;;  %v8572_v35 = vmax.f32 %v17392_v2, %v8556_v40  ;;  %v8570_v61 = vmax.f32 %v17400_v8, %v8554_v39 }
0x1c23   :  { %13568 = vrcp.f32 %v8674_v30  ;;  %v8613_v52 = vmul.f32 1.442695, %v8587_v7  ;;  %v8661_v5 = vmul.f32 1.442695, %v8635_v14 }
0x1c24   :  { %13570 = vpow2.f32 %v8601_v11  ;;  %v8585_v45 = vsub.f32 %v17390_v49, %v8569_v31  ;;  %v12596_v21 = vpop.f32.mrb[28].mxu1  ;;  %v8633_v11 = vsub.f32 %v8553_v12, %v8569_v31  ;;  %v8588_v4 = vsub.f32 %v17392_v2, %v8572_v35 }
0x1c25   :  { %13572 = vpow2.f32 %v8649_v36  ;;  %v8636_v16 = vsub.f32 %v8556_v40, %v8572_v35  ;;  %v8530_v30 = vpop.f32.mrb[29].mxu1  ;;  %v8586_v2 = vsub.f32 %v17400_v8, %v8570_v61  ;;  %v8634_v40 = vsub.f32 %v8554_v39, %v8570_v61 }
0x1c26   :  { %13574 = vpow2.f32 %v8607_v24  ;;  %v8609_v24 = vmul.f32 1.442695, %v8585_v45  ;;  %v12597_v53 = vpop.f32.mrb[30].mxu1  ;;  %v8657_v49 = vmul.f32 1.442695, %v8633_v11 }
0x1c27   :  { %v13559_v38 = vpop.eup %13558  ;;  %13576 = vpow2.f32 %v8655_v51  ;;  %v8615_v7 = vmul.f32 1.442695, %v8588_v4  ;;  %v8663_v51 = vmul.f32 1.442695, %v8636_v16  ;;  %v8533_v14 = vpop.f32.mrb[31].mxu1 }
0x1c28   :  { %v17430_v36 = vmul.f32 %v13559_v38, %v17382_v58  ;;  %v17433_v47 = vmul.f32 %v13559_v38, %v17388_v13  ;;  %13578 = vpow2.f32 %v8603_v9  ;;  %v8559_v58 = vmul.f32 0.25, %v12596_v21 }
0x1c29   :  { %v17435_v29 = vpop.eup %13560  ;;  %13580 = vpow2.f32 %v8651_v48  ;;  %v8557_v13 = vmul.f32 0.25, %v8530_v30  ;;  %v17440_v9 = vmul.f32 0.25, %v12597_v53  ;;  %v17442_v35 = vmul.f32 0.25, %v8533_v14 }
0x1c2a   :  { %v17437_v12 = vpop.eup %13562  ;;  %13582 = vpow2.f32 %v8613_v52  ;;  %v8611_v8 = vmul.f32 1.442695, %v8586_v2  ;;  %v8659_v52 = vmul.f32 1.442695, %v8634_v40  ;;  %v8397_v40 = vmul.f32 0.25, %v17386_v44 }
0x1c2b   :  { %v13565_v31 = vpop.eup %13564  ;;  %13584 = vpow2.f32 %v8661_v5  ;;  %v8575_v5 = vmax.f32 %v17406_v27, %v8559_v58  ;;  %v8705_v44 = vmul.f32 %v17435_v29, %v17394_v59  ;;  %v8866_v59 = vmul.f32 %v17435_v29, %v17398_v6 }
0x1c2c   :  { %v17444_v45 = vpop.eup %13566  ;;  %v17447_v48 = vmul.f32 %v13565_v31, %v17402_v32  ;;  %v17450_v38 = vmul.f32 %v13565_v31, %v17408_v56  ;;  %13586 = vpow2.f32 %v8609_v24  ;;  %v8573_v56 = vmax.f32 %v17410_v23, %v8557_v13 }
0x1c2d   :  { %v13569_v39 = vpop.eup %13568  ;;  %v8679_v61 = vadd.f32 %v17444_v45, %v17437_v12  ;;  %13588 = vpow2.f32 %v8657_v49  ;;  %v8591_v16 = vsub.f32 %v17406_v27, %v8575_v5  ;;  %v8639_v30 = vsub.f32 %v8559_v58, %v8575_v5 }
0x1c2e   :  { %v17455_v21 = vpop.eup %13570  ;;  %v8722_v11 = vpack.c.bf16 %v17447_v48, %v17430_v36  ;;  %v8883_v32 = vpack.c.bf16 %v17450_v38, %v17433_v47  ;;  %13590 = vpow2.f32 %v8615_v7  ;;  %v8576_v24 = vmax.f32 %v17418_v19, %v17440_v9 }
0x1c2f   :  { %v17462_v4 = vpop.eup %13572  ;;  %13592 = vrcp.f32 %v8679_v61  ;;  %v8589_v49 = vsub.f32 %v17410_v23, %v8573_v56  ;;  %v8637_v7 = vsub.f32 %v8557_v13, %v8573_v56  ;;  %v8621_v14 = vmul.f32 1.442695, %v8591_v16 }
0x1c30   :  { %v17467_v53 = vpop.eup %13574  ;;  %v8677_v36 = vadd.f32 %v17462_v4, %v17455_v21  ;;  %13594 = vpow2.f32 %v8663_v51  ;;  %v8592_v27 = vsub.f32 %v17418_v19, %v8576_v24  ;;  %v8669_v51 = vmul.f32 1.442695, %v8639_v30 }
0x1c31   :  { %v17472_v2 = vpop.eup %13576  ;;  %13596 = vpow2.f32 %v8611_v8  ;;  %v8640_v23 = vsub.f32 %v17440_v9, %v8576_v24  ;;  %v8574_v13 = vmax.f32 %v8397_v40, %v17442_v35  ;;  %v8706_v8 = vmul.f32 %v13569_v39, %v17412_v34 }
0x1c32   :  { %v17476_v58 = vpop.eup %13578  ;;  %13598 = vrcp.f32 %v8677_v36  ;;  %v8680_v31 = vadd.f32 %v17472_v2, %v17467_v53  ;;  %v8665_v34 = vmul.f32 1.442695, %v8637_v7 }
0x1c33   :  { %v17480_v48 = vpop.eup %13580  ;;  %13600 = vpow2.f32 %v8659_v52  ;;  %v8617_v52 = vmul.f32 1.442695, %v8589_v49  ;;  %v8590_v56 = vsub.f32 %v8397_v40, %v8574_v13  ;;  %v8638_v9 = vsub.f32 %v17442_v35, %v8574_v13  ;;  %v12903_v49 = vld [vmem:[%s13888_s12 + $0x68] sm:$0xff]  }
0x1c34   :  { %v17484_v61 = vpop.eup %13582  ;;  %13602 = vrcp.f32 %v8680_v31  ;;  %v8678_v19 = vadd.f32 %v17480_v48, %v17476_v58  ;;  %v8721_v24 = vpack.c.bf16 %v8706_v8, %v8705_v44  ;;  %v8623_v31 = vmul.f32 1.442695, %v8592_v27  ;;  %v12904_v44 = vld [vmem:[%s13888_s12 + $0x70] sm:$0xff]  }
0x1c35   :  { %v17491_v5 = vpop.eup %13584  ;;  %13604 = vpow2.f32 %v8621_v14  ;;  %v8867_v14 = vmul.f32 %v13569_v39, %v17416_v0  ;;  %v8671_v39 = vmul.f32 1.442695, %v8640_v23 }
0x1c36   :  { %v17494_v16 = vpop.eup %13586  ;;  %13606 = vrcp.f32 %v8678_v19  ;;  %v8683_v30 = vadd.f32 %v17491_v5, %v17484_v61  ;;  %12600 = vmatprep.mubr.msk.bf16.mxu0 %vm1556_vm3, %v8721_v24  ;;  %v8619_v19 = vmul.f32 1.442695, %v8590_v56 }
0x1c37   :  { %v17500_v36 = vpop.eup %13588  ;;  %13608 = vpow2.f32 %v8669_v51  ;;  %v8882_v6 = vpack.c.bf16 %v8867_v14, %v8866_v59  ;;  %12601 = vmatmul.mubr.msk.bf16.vlgmr.msra.gmra.mrb[32].mxu0 %vm1556_vm3, %v8722_v11 }
0x1c38   :  { %v17504_v40 = vpop.eup %13590  ;;  %13610 = vrcp.f32 %v8683_v30  ;;  %v8681_v35 = vadd.f32 %v17500_v36, %v17494_v16  ;;  %12635 = vmatpush3.bf16.msra.mxu0 %v17379_v33  ;;  %v8667_v33 = vmul.f32 1.442695, %v8638_v9 }
0x1c39   :  { %v13593_v13 = vpop.eup %13592  ;;  %13612 = vpow2.f32 %v8617_v52  ;;  %12618 = vmatprep.mubr.msk.bf16.mxu1 %vm1556_vm3, %v8882_v6  ;;  %12636 = vmatprep.subr.bf16.mxu0 %v12903_v49 }
0x1c3a   :  { %v13595_v29 = vpop.eup %13594  ;;  %v8711_v7 = vmul.f32 %v13593_v13, %v17437_v12  ;;  %v8872_v0 = vmul.f32 %v13593_v13, %v17444_v45  ;;  %13614 = vrcp.f32 %v8681_v35  ;;  %12619 = vmatmul.mubr.msk.bf16.vlgmr.msra.gmra.mrb[32].mxu1 %vm1556_vm3, %v8883_v32 }
0x1c3b   :  { %v17513_v51 = vpop.eup %13596  ;;  %v8684_v27 = vadd.f32 %v13595_v29, %v17504_v40  ;;  %13616 = vpow2.f32 %v8665_v34 }
0x1c3c   :  { %v13599_v11 = vpop.eup %13598  ;;  %13618 = vpow2.f32 %v8623_v31  ;;  %12637 = vmatpush3.bf16.msra.mxu0 %v12903_v49 }
0x1c3d   :  { %v13601_v12 = vpop.eup %13600  ;;  %13620 = vrcp.f32 %v8684_v27  ;;  %v8709_v45 = vmul.f32 %v13599_v11, %v17455_v21  ;;  %v8870_v23 = vmul.f32 %v13599_v11, %v17462_v4  ;;  %12638 = vmatprep.subr.bf16.mxu0 %v12904_v44 }
0x1c3e   :  { %v13603_v8 = vpop.eup %13602  ;;  %v8682_v52 = vadd.f32 %v13601_v12, %v17513_v51  ;;  %13622 = vpow2.f32 %v8671_v39 }
0x1c3f   :  { %v13605_v56 = vpop.eup %13604  ;;  %v8712_v30 = vmul.f32 %v13603_v8, %v17467_v53  ;;  %v8873_v24 = vmul.f32 %v13603_v8, %v17472_v2  ;;  %13624 = vpow2.f32 %v8619_v19 }
0x1c40   :  { %v13607_v47 = vpop.eup %13606  ;;  %13626 = vrcp.f32 %v8682_v52  ;;  %12639 = vmatpush3.bf16.msra.mxu0 %v12904_v44 }
0x1c41   :  { %v13609_v38 = vpop.eup %13608  ;;  %v8724_v32 = vpack.c.bf16 %v8712_v30, %v8711_v7  ;;  %v8885_v9 = vpack.c.bf16 %v8873_v24, %v8872_v0  ;;  %13628 = vpow2.f32 %v8667_v33  ;;  %v8710_v21 = vmul.f32 %v13607_v47, %v17476_v58 }
0x1c42   :  { %v13611_v4 = vpop.eup %13610  ;;  %v8687_v59 = vadd.f32 %v13609_v38, %v13605_v56  ;;  %v8871_v34 = vmul.f32 %v13607_v47, %v17480_v48 }
0x1c43   :  { %v13613_v14 = vpop.eup %13612  ;;  %v8715_v53 = vmul.f32 %v13611_v4, %v17484_v61  ;;  %v8876_v2 = vmul.f32 %v13611_v4, %v17491_v5  ;;  %v8723_v49 = vpack.c.bf16 %v8710_v21, %v8709_v45 }
0x1c44   :  { %v13615_v35 = vpop.eup %13614  ;;  %13630 = vrcp.f32 %v8687_v59  ;;  %v8884_v31 = vpack.c.bf16 %v8871_v34, %v8870_v23 }
0x1c45   :  { %v13617_v13 = vpop.eup %13616  ;;  %12604 = vmatprep.mubr.msk.bf16.mxu0 %vm1556_vm3, %v8723_v49  ;;  %v8713_v6 = vmul.f32 %v13615_v35, %v17494_v16  ;;  %v8874_v58 = vmul.f32 %v13615_v35, %v17500_v36 }
0x1c46   :  { %v13619_v7 = vpop.eup %13618  ;;  %v8685_v0 = vadd.f32 %v13617_v13, %v13613_v14  ;;  %12622 = vmatprep.mubr.msk.bf16.mxu1 %vm1556_vm3, %v8884_v31  ;;  %12605 = vmatmul.mubr.msk.bf16.gmra.mrb[36].mxu0 %vm1556_vm3, %v8724_v32 }
0x1c47   :  { %v13621_v48 = vpop.eup %13620  ;;  %12623 = vmatmul.mubr.msk.bf16.gmra.mrb[36].mxu1 %vm1556_vm3, %v8885_v9 }
0x1c48   :  { %v13623_v61 = vpop.eup %13622  ;;  %v8716_v5 = vmul.f32 %v13621_v48, %v17504_v40  ;;  %v8877_v39 = vmul.f32 %v13621_v48, %v13595_v29  ;;  %13632 = vrcp.f32 %v8685_v0 }
0x1c49   :  { %v13625_v27 = vpop.eup %13624  ;;  %v8688_v19 = vadd.f32 %v13623_v61, %v13619_v7 }
0x1c4a   :  { %v13627_v44 = vpop.eup %13626  ;;  %v8726_v16 = vpack.c.bf16 %v8716_v5, %v8715_v53  ;;  %v8887_v11 = vpack.c.bf16 %v8877_v39, %v8876_v2  ;;  %v11104_v2 = vld [vmem:[%s18281_s0 + $0x3] ss:$0 sm:$0xff] }
0x1c4b   :  { %v13629_v36 = vpop.eup %13628  ;;  %13634 = vrcp.f32 %v8688_v19  ;;  %v8714_v33 = vmul.f32 %v13627_v44, %v17513_v51  ;;  %v8875_v45 = vmul.f32 %v13627_v44, %v13601_v12  ;;  %v17550_v49 = vadd.f32 %v17338_v62, %v11104_v2 }
0x1c4c   :  { %v8686_v23 = vadd.f32 %v13629_v36, %v13625_v27  ;;  %v17553_v35 = vadd.f32 %v11104_v2, %v17340_v43  ;;  %v8217_v0 = vadd.f32 %v17361_v20, %v11104_v2  ;;  %v8209_v62 = vadd.f32 %v11104_v2, %v17363_v15 }
0x1c4d   :  { %v8725_v8 = vpack.c.bf16 %v8714_v33, %v8713_v6  ;;  %v8886_v52 = vpack.c.bf16 %v8875_v45, %v8874_v58 }
0x1c4e   :  { %v13631_v30 = vpop.eup %13630  ;;  %13636 = vrcp.f32 %v8686_v23 }
0x1c4f   :  { %v8719_v24 = vmul.f32 %v13631_v30, %v13605_v56  ;;  %v8880_v47 = vmul.f32 %v13631_v30, %v13609_v38  ;;  %12608 = vmatprep.mubr.msk.bf16.mxu0 %vm1556_vm3, %v8725_v8  ;;  %12626 = vmatprep.mubr.msk.bf16.mxu1 %vm1556_vm3, %v8886_v52 }
0x1c50   :  { %12609 = vmatmul.mubr.msk.bf16.gmra.mrb[40].mxu0 %vm1556_vm3, %v8726_v16  ;;  %12627 = vmatmul.mubr.msk.bf16.gmra.mrb[40].mxu1 %vm1556_vm3, %v8887_v11 }
0x1c52   :  { %v13633_v40 = vpop.eup %13632 }
0x1c53   :  { %v8717_v29 = vmul.f32 %v13633_v40, %v13613_v14  ;;  %v8878_v51 = vmul.f32 %v13633_v40, %v13617_v13  ;;  %v12905_v14 = vld [vmem:[%s13888_s12 + $0x78] sm:$0xff]   ;;  %v17556_v13 = vadd.f32 %v17342_v18, %v11104_v2  ;;  %v8220_v18 = vadd.f32 %v17365_v41, %v11104_v2 }
0x1c54   :  { %12640 = vmatprep.subr.bf16.mxu0 %v12905_v14  ;;  %v8201_v41 = vadd.f32 %v17351_v46, %v11104_v2  ;;  %v17579_v40 = vadd.f32 %v17355_v63, %v11104_v2  ;;  %v17584_v46 = vadd.f32 %v11104_v2, %v17357_v1  ;;  %v8228_v63 = vadd.f32 %v11104_v2, %v17376_v42 }
0x1c55   :  { %v13635_v12 = vpop.eup %13634  ;;  %12641 = vmatpush3.bf16.msra.mxu0 %v12905_v14 }
0x1c56   :  { %v8720_v32 = vmul.f32 %v13635_v12, %v13619_v7  ;;  %v8881_v9 = vmul.f32 %v13635_v12, %v13623_v61  ;;  %v17560_v7 = vadd.f32 %v11104_v2, %v17346_v3  ;;  %v17569_v3 = vadd.f32 %v11104_v2, %v17367_v55 }
0x1c57   :  { %v8233_v55 = vadd.f32 %v17370_v57, %v11104_v2 }
0x1c58   :  { %v13637_v21 = vpop.eup %13636  ;;  %v8728_v4 = vpack.c.bf16 %v8720_v32, %v8719_v24  ;;  %v8889_v56 = vpack.c.bf16 %v8881_v9, %v8880_v47  ;;  %v17574_v24 = vadd.f32 %v11104_v2, %v17353_v10  ;;  %v8236_v10 = vadd.f32 %v17374_v37, %v11104_v2 }
0x1c59   :  { %v8718_v38 = vmul.f32 %v13637_v21, %v13625_v27  ;;  %v8879_v59 = vmul.f32 %v13637_v21, %v13629_v36 }
0x1c5b   :  { %v8727_v34 = vpack.c.bf16 %v8718_v38, %v8717_v29  ;;  %v8888_v53 = vpack.c.bf16 %v8879_v59, %v8878_v51  ;;  %v8225_v29 = vadd.f32 %v11104_v2, %v17372_v28 }
0x1c5d   :  { %12612 = vmatprep.mubr.msk.bf16.mxu0 %vm1556_vm3, %v8727_v34  ;;  %12630 = vmatprep.mubr.msk.bf16.mxu1 %vm1556_vm3, %v8888_v53 }
0x1c5e   :  { %12613 = vmatmul.mubr.msk.bf16.gmra.mrb[44].mxu0 %vm1556_vm3, %v8728_v4  ;;  %12631 = vmatmul.mubr.msk.bf16.gmra.mrb[44].mxu1 %vm1556_vm3, %v8889_v56 }
0x1d0a   :  { %v12602_v31 = vpop.f32.mrb[32].mxu0 }
0x1d0b   :  { %v8852_v6 = vmul.f32 %v12602_v31, %v17550_v49  ;;  %v8787_v58 = vpop.f32.mrb[33].mxu0 }
0x1d0c   :  { %v8850_v48 = vmul.f32 %v8787_v58, %v17553_v35  ;;  %v12603_v61 = vpop.f32.mrb[34].mxu0 }
0x1d0d   :  { %v12620_v5 = vpop.f32.mrb[32].mxu1  ;;  %v8853_v43 = vmul.f32 %v12603_v61, %v17556_v13  ;;  %v8790_v39 = vpop.f32.mrb[35].mxu0 }
0x1d0e   :  { %v9013_v27 = vmul.f32 %v12620_v5, %v8217_v0  ;;  %v8948_v19 = vpop.f32.mrb[33].mxu1  ;;  %v8851_v44 = vmul.f32 %v8790_v39, %v17560_v7 }
0x1d0f   :  { %v9011_v16 = vmul.f32 %v8948_v19, %v8209_v62  ;;  %v12621_v20 = vpop.f32.mrb[34].mxu1 }
0x1d10   :  { %v9029_v11 = vadd.f32 %v9013_v27, %v8852_v6  ;;  %v9014_v36 = vmul.f32 %v12621_v20, %v8220_v18  ;;  %v8951_v33 = vpop.f32.mrb[35].mxu1 }
0x1d11   :  { %v9027_v45 = vadd.f32 %v9011_v16, %v8850_v48  ;;  %v9012_v15 = vmul.f32 %v8951_v33, %v17569_v3 }
0x1d12   :  { %v9030_v23 = vadd.f32 %v9014_v36, %v8853_v43 }
0x1d13   :  { %v9028_v8 = vadd.f32 %v9012_v15, %v8851_v44 }
0x1d14   :  { %v9044_v52 = vpack.c.bf16 %v9030_v23, %v9029_v11 }
0x1d15   :  { %v9043_v30 = vpack.c.bf16 %v9028_v8, %v9027_v45 }
0x1d17   :  { %12642 = vmatprep.mubr.msk.bf16.mxu0 %vm348_vm1, %v9043_v30 }
0x1d18   :  { %12643 = vmatmul.mubr.msk.bf16.vlgmr.msra.gmra.mrb[48].mxu0 %vm348_vm1, %v9044_v52 }
0x1d19   :  { %v12606_v47 = vpop.f32.mrb[36].mxu0 }
0x1d1a   :  { %v8856_v51 = vmul.f32 %v12606_v47, %v8201_v41  ;;  %v12624_v12 = vpop.f32.mrb[36].mxu1  ;;  %v8803_v32 = vpop.f32.mrb[37].mxu0 }
0x1d1b   :  { %v9017_v9 = vmul.f32 %v12624_v12, %v8233_v55  ;;  %v8854_v57 = vmul.f32 %v8803_v32, %v17574_v24  ;;  %v8964_v21 = vpop.f32.mrb[37].mxu1  ;;  %v12607_v4 = vpop.f32.mrb[38].mxu0 }
0x1d1c   :  { %v9015_v56 = vmul.f32 %v8964_v21, %v8225_v29  ;;  %v8857_v28 = vmul.f32 %v12607_v4, %v17579_v40  ;;  %v12625_v38 = vpop.f32.mrb[38].mxu1  ;;  %v8806_v59 = vpop.f32.mrb[39].mxu0 }
0x1d1d   :  { %v9033_v34 = vadd.f32 %v9017_v9, %v8856_v51  ;;  %v9018_v53 = vmul.f32 %v12625_v38, %v8236_v10  ;;  %v8855_v14 = vmul.f32 %v8806_v59, %v17584_v46  ;;  %v8967_v1 = vpop.f32.mrb[39].mxu1 }
0x1d1e   :  { %v9031_v31 = vadd.f32 %v9015_v56, %v8854_v57  ;;  %v9016_v6 = vmul.f32 %v8967_v1, %v8228_v63 }
0x1d1f   :  { %v9034_v37 = vadd.f32 %v9018_v53, %v8857_v28 }
0x1d20   :  { %v9032_v58 = vadd.f32 %v9016_v6, %v8855_v14 }
0x1d21   :  { %v9046_v48 = vpack.c.bf16 %v9034_v37, %v9033_v34 }
0x1d22   :  { %v9045_v61 = vpack.c.bf16 %v9032_v58, %v9031_v31 }
0x1d23   :  { %v12610_v5 = vpop.f32.mrb[40].mxu0  ;;  %v12628_v43 = vpop.f32.mrb[40].mxu1 }
0x1d24   :  { %v8860_v42 = vmul.f32 %v12610_v5, %v17550_v49  ;;  %v9021_v2 = vmul.f32 %v12628_v43, %v8217_v0  ;;  %v8819_v39 = vpop.f32.mrb[41].mxu0  ;;  %v8980_v27 = vpop.f32.mrb[41].mxu1  ;;  %12646 = vmatprep.mubr.msk.bf16.mxu0 %vm348_vm1, %v9045_v61 }
0x1d25   :  { %v8858_v19 = vmul.f32 %v8819_v39, %v17553_v35  ;;  %v9019_v44 = vmul.f32 %v8980_v27, %v8209_v62  ;;  %v12611_v16 = vpop.f32.mrb[42].mxu0  ;;  %v12629_v20 = vpop.f32.mrb[42].mxu1  ;;  %12647 = vmatmul.mubr.msk.bf16.gmra.mrb[52].mxu0 %vm348_vm1, %v9046_v48 }
0x1d26   :  { %v9037_v11 = vadd.f32 %v9021_v2, %v8860_v42  ;;  %v8861_v36 = vmul.f32 %v12611_v16, %v17556_v13  ;;  %v9022_v33 = vmul.f32 %v12629_v20, %v8220_v18  ;;  %v8822_v45 = vpop.f32.mrb[43].mxu0  ;;  %v8983_v15 = vpop.f32.mrb[43].mxu1 }
0x1d27   :  { %v9035_v23 = vadd.f32 %v9019_v44, %v8858_v19  ;;  %v8859_v49 = vmul.f32 %v8822_v45, %v17560_v7  ;;  %v9020_v0 = vmul.f32 %v8983_v15, %v17569_v3 }
0x1d28   :  { %v9038_v8 = vadd.f32 %v9022_v33, %v8861_v36  ;;  %v18347_v33 = vld [vmem:[#allocation26_spill] sm:$0xff] }
0x1d29   :  { %v9036_v52 = vadd.f32 %v9020_v0, %v8859_v49 }
0x1d2a   :  { %v9048_v30 = vpack.c.bf16 %v9038_v8, %v9037_v11 }
0x1d2b   :  { %v9047_v35 = vpack.c.bf16 %v9036_v52, %v9035_v23 }
0x1d2d   :  { %12650 = vmatprep.mubr.msk.bf16.mxu0 %vm348_vm1, %v9047_v35 }
0x1d2e   :  { %12651 = vmatmul.mubr.msk.bf16.gmra.mrb[56].mxu0 %vm348_vm1, %v9048_v30  ;;  %v18348_v30 = vld [vmem:[#allocation27_spill] sm:$0xff] }
0x1d31   :  { %v12614_v62 = vpop.f32.mrb[44].mxu0  ;;  %v12632_v47 = vpop.f32.mrb[44].mxu1 }
0x1d32   :  { %v8864_v51 = vmul.f32 %v12614_v62, %v8201_v41  ;;  %v9025_v13 = vmul.f32 %v12632_v47, %v8233_v55  ;;  %v8835_v18 = vpop.f32.mrb[45].mxu0  ;;  %v8996_v12 = vpop.f32.mrb[45].mxu1 }
0x1d33   :  { %v8862_v32 = vmul.f32 %v8835_v18, %v17574_v24  ;;  %v9023_v9 = vmul.f32 %v8996_v12, %v8225_v29  ;;  %v12615_v7 = vpop.f32.mrb[46].mxu0  ;;  %v12633_v3 = vpop.f32.mrb[46].mxu1  ;;  %v17606_v24 = vld [vmem:[%s18282_s5 + $0x3] ss:$0 sm:$0xff]  ;;  %v18350_v18 = vld [vmem:[#allocation19_spill] sm:$0xff] }
0x1d34   :  { %v9041_v57 = vadd.f32 %v9025_v13, %v8864_v51  ;;  %v8865_v21 = vmul.f32 %v12615_v7, %v17579_v40  ;;  %v9026_v4 = vmul.f32 %v12633_v3, %v8236_v10  ;;  %v8838_v56 = vpop.f32.mrb[47].mxu0  ;;  %v8999_v28 = vpop.f32.mrb[47].mxu1  ;;  %v18349_v51 = vld [vmem:[#allocation18_spill] sm:$0xff] }
0x1d35   :  { %v9039_v38 = vadd.f32 %v9023_v9, %v8862_v32  ;;  %v8863_v59 = vmul.f32 %v8838_v56, %v17584_v46  ;;  %v9024_v34 = vmul.f32 %v8999_v28, %v8228_v63  ;;  %v18351_v9 = vld [vmem:[#allocation20_spill] sm:$0xff] }
0x1d36   :  { %v9042_v41 = vadd.f32 %v9026_v4, %v8865_v21 }
0x1d37   :  { %v9040_v55 = vadd.f32 %v9024_v34, %v8863_v59 }
0x1d38   :  { %v9050_v53 = vpack.c.bf16 %v9042_v41, %v9041_v57  ;;  %v18352_v41 = vld [vmem:[#allocation21_spill] sm:$0xff] }
0x1d39   :  { %v9049_v14 = vpack.c.bf16 %v9040_v55, %v9039_v38 }
0x1d3b   :  { %12654 = vmatprep.mubr.msk.bf16.mxu0 %vm348_vm1, %v9049_v14 }
0x1d3c   :  { %12655 = vmatmul.mubr.msk.bf16.gmra.mrb[60].mxu0 %vm348_vm1, %v9050_v53 }
0x1deb   :  { %v12644_v29 = vpop.f32.mrb[48].mxu0 }
0x1dec   :  { %v9150_v1 = vpop.f32.mrb[49].mxu0  ;;  %v9159_v40 = vadd.f32 %v12644_v29, %v17606_v24  ;;  %v18353_v29 = vld [vmem:[#allocation22_spill] sm:$0xff] }
0x1ded   :  { %v9151_v10 = vadd.f32 %v17606_v24, %v9150_v1  ;;  %v12645_v31 = vpop.f32.mrb[50].mxu0 }
0x1dee   :  { %v9153_v6 = vpop.f32.mrb[51].mxu0  ;;  %v9162_v63 = vadd.f32 %v12645_v31, %v17606_v24  ;;  %v17616_v58 = vadd.f32 %v9159_v40, %v16926_v25  ;;  %v18354_v40 = vld [vmem:[#allocation23_spill] sm:$0xff] }
0x1def   :  { %v17611_v46 = vadd.f32 %v9151_v10, %v16921_v60  ;;  %v9154_v37 = vadd.f32 %v17606_v24, %v9153_v6  ;;  %v18355_v6 = vld [vmem:[#allocation24_spill] sm:$0xff] }
0x1df0   :  { %v17624_v5 = vadd.f32 %v9162_v63, %v16934_v26  ;;  %v9239_v43 = vsel %vm348_vm1, %v17616_v58, 0.0 }
0x1df1   :  { %v17619_v48 = vadd.f32 %v9154_v37, %v16929_v22  ;;  %v9233_v61 = vsel %vm348_vm1, %v17611_v46, 0.0 }
0x1df2   :  { %9234 = vadd.xlane.f32.xlu0 %v9233_v61  ;;  %v9242_v22 = vsel %vm348_vm1, %v17624_v5, 0.0 }
0x1df3   :  { %v9236_v60 = vsel %vm348_vm1, %v17619_v48, 0.0 }
0x1df4   :  { %9237 = vadd.xlane.f32.xlu1 %v9236_v60  ;;  %v12906_v60 = vld [vmem:[%s18289_s9 + $0x60] sm:$0xff]  }
0x1df5   :  { %12658 = vmatprep.subr.bf16.mxu1 %v12906_v60 }
0x1df6   :  { %9240 = vadd.xlane.f32.xlu0 %v9239_v43  ;;  %12659 = vmatpush3.bf16.msra.mxu1 %v12906_v60 }
0x1df8   :  { %v12648_v42 = vpop.f32.mrb[52].mxu0  ;;  %9243 = vadd.xlane.f32.xlu1 %v9242_v22 }
0x1df9   :  { %v9166_v25 = vpop.f32.mrb[53].mxu0  ;;  %v9175_v2 = vadd.f32 %v12648_v42, %v17606_v24 }
0x1dfa   :  { %v9167_v39 = vadd.f32 %v17606_v24, %v9166_v25  ;;  %v12649_v27 = vpop.f32.mrb[54].mxu0 }
0x1dfb   :  { %v9169_v26 = vpop.f32.mrb[55].mxu0  ;;  %v9178_v44 = vadd.f32 %v12649_v27, %v17606_v24  ;;  %v17640_v20 = vadd.f32 %v9175_v2, %v16950_v54 }
0x1dfc   :  { %v17635_v19 = vadd.f32 %v9167_v39, %v16945_v17  ;;  %v9170_v16 = vadd.f32 %v17606_v24, %v9169_v26 }
0x1dfd   :  { %v17648_v45 = vadd.f32 %v9178_v44, %v18347_v33  ;;  %v9251_v54 = vsel %vm348_vm1, %v17640_v20, 0.0 }
0x1dfe   :  { %v17643_v11 = vadd.f32 %v9170_v16, %v16953_v50  ;;  %v9245_v36 = vsel %vm348_vm1, %v17635_v19, 0.0 }
0x1dff   :  { %9246 = vadd.xlane.f32.xlu0 %v9245_v36  ;;  %v9254_v52 = vsel %vm348_vm1, %v17648_v45, 0.0 }
0x1e00   :  { %v9248_v17 = vsel %vm348_vm1, %v17643_v11, 0.0 }
0x1e01   :  { %v12652_v15 = vpop.f32.mrb[56].mxu0  ;;  %9249 = vadd.xlane.f32.xlu1 %v9248_v17 }
0x1e02   :  { %v9182_v23 = vpop.f32.mrb[57].mxu0  ;;  %v9191_v49 = vadd.f32 %v12652_v15, %v17606_v24 }
0x1e03   :  { %v9183_v50 = vadd.f32 %v17606_v24, %v9182_v23  ;;  %v12653_v0 = vpop.f32.mrb[58].mxu0  ;;  %9252 = vadd.xlane.f32.xlu0 %v9251_v54 }
0x1e04   :  { %v9185_v8 = vpop.f32.mrb[59].mxu0  ;;  %v9194_v62 = vadd.f32 %v12653_v0, %v17606_v24  ;;  %v17664_v13 = vadd.f32 %v9191_v49, %v18349_v51 }
0x1e05   :  { %v17659_v35 = vadd.f32 %v9183_v50, %v18348_v30  ;;  %v9186_v47 = vadd.f32 %v17606_v24, %v9185_v8  ;;  %9255 = vadd.xlane.f32.xlu1 %v9254_v52 }
0x1e06   :  { %v17672_v7 = vadd.f32 %v9194_v62, %v18351_v9  ;;  %v9263_v57 = vsel %vm348_vm1, %v17664_v13, 0.0 }
0x1e07   :  { %v17667_v12 = vadd.f32 %v9186_v47, %v18350_v18  ;;  %v9257_v32 = vsel %vm348_vm1, %v17659_v35, 0.0 }
0x1e08   :  { %9258 = vadd.xlane.f32.xlu0 %v9257_v32  ;;  %v9266_v21 = vsel %vm348_vm1, %v17672_v7, 0.0 }
0x1e09   :  { %v9260_v3 = vsel %vm348_vm1, %v17667_v12, 0.0 }
0x1e0a   :  { %9261 = vadd.xlane.f32.xlu1 %v9260_v3 }
0x1e0c   :  { %9264 = vadd.xlane.f32.xlu0 %v9263_v57 }
0x1e0e   :  { %9267 = vadd.xlane.f32.xlu1 %v9266_v21 }
0x1e0f   :  { %v12656_v4 = vpop.f32.mrb[60].mxu0 }
0x1e10   :  { %v9198_v56 = vpop.f32.mrb[61].mxu0  ;;  %v9207_v28 = vadd.f32 %v12656_v4, %v17606_v24 }
0x1e11   :  { %v9199_v38 = vadd.f32 %v17606_v24, %v9198_v56  ;;  %v12657_v59 = vpop.f32.mrb[62].mxu0 }
0x1e12   :  { %v9201_v34 = vpop.f32.mrb[63].mxu0  ;;  %v9210_v53 = vadd.f32 %v12657_v59, %v17606_v24  ;;  %v17688_v1 = vadd.f32 %v9207_v28, %v18353_v29 }
0x1e13   :  { %v17683_v55 = vadd.f32 %v9199_v38, %v18352_v41  ;;  %v9202_v14 = vadd.f32 %v17606_v24, %v9201_v34 }
0x1e14   :  { %v17696_v63 = vadd.f32 %v9210_v53, %v18355_v6  ;;  %v9275_v24 = vsel %vm348_vm1, %v17688_v1, 0.0 }
0x1e15   :  { %v17691_v10 = vadd.f32 %v9202_v14, %v18354_v40  ;;  %v9269_v31 = vsel %vm348_vm1, %v17683_v55, 0.0 }
0x1e16   :  { %9270 = vadd.xlane.f32.xlu0 %v9269_v31  ;;  %v9278_v61 = vsel %vm348_vm1, %v17696_v63, 0.0 }
0x1e17   :  { %v9272_v37 = vsel %vm348_vm1, %v17691_v10, 0.0 }
0x1e18   :  { %9273 = vadd.xlane.f32.xlu1 %v9272_v37 }
0x1e1a   :  { %9276 = vadd.xlane.f32.xlu0 %v9275_v24 }
0x1e1c   :  { %9279 = vadd.xlane.f32.xlu1 %v9278_v61 }
0x1e7f   :  { %v9235_v43 = vpop.xlane.xlu0 %9234 }
0x1e80   :  { %v9281_v42 = vmul.f32 0.015625, %v9235_v43 }
0x1e81   :  { %v9238_v25 = vpop.xlane.xlu1 %9237 }
0x1e82   :  { %v17706_v22 = vsub.f32 %v17611_v46, %v9281_v42  ;;  %v9282_v2 = vmul.f32 0.015625, %v9238_v25 }
0x1e83   :  { %v9241_v39 = vpop.xlane.xlu0 %9240 }
0x1e84   :  { %v17709_v27 = vsub.f32 %v17619_v48, %v9282_v2  ;;  %v9283_v26 = vmul.f32 0.015625, %v9241_v39  ;;  %v9313_v44 = vmul.f32 %v17706_v22, %v17706_v22 }
0x1e85   :  { %v9244_v16 = vpop.xlane.xlu1 %9243 }
0x1e86   :  { %v17714_v36 = vsub.f32 %v17616_v58, %v9283_v26  ;;  %v9284_v33 = vmul.f32 0.015625, %v9244_v16  ;;  %v9329_v17 = vsel %vm348_vm1, %v9313_v44, 0.0  ;;  %v9314_v15 = vmul.f32 %v17709_v27, %v17709_v27 }
0x1e87   :  { %9330 = vadd.xlane.f32.xlu0 %v9329_v17 }
0x1e88   :  { %v17720_v23 = vsub.f32 %v17624_v5, %v9284_v33  ;;  %v9332_v54 = vsel %vm348_vm1, %v9314_v15, 0.0  ;;  %v9315_v49 = vmul.f32 %v17714_v36, %v17714_v36 }
0x1e89   :  { %9333 = vadd.xlane.f32.xlu1 %v9332_v54 }
0x1e8a   :  { %v9335_v0 = vsel %vm348_vm1, %v9315_v49, 0.0  ;;  %v9316_v8 = vmul.f32 %v17720_v23, %v17720_v23 }
0x1e8b   :  { %9336 = vadd.xlane.f32.xlu0 %v9335_v0 }
0x1e8c   :  { %v9247_v50 = vpop.xlane.xlu0 %9246  ;;  %v9338_v62 = vsel %vm348_vm1, %v9316_v8, 0.0 }
0x1e8d   :  { %v9285_v52 = vmul.f32 0.015625, %v9247_v50  ;;  %9339 = vadd.xlane.f32.xlu1 %v9338_v62 }
0x1e8e   :  { %v9250_v30 = vpop.xlane.xlu1 %9249 }
0x1e8f   :  { %v17730_v47 = vsub.f32 %v17635_v19, %v9285_v52  ;;  %v9286_v51 = vmul.f32 0.015625, %v9250_v30 }
0x1e90   :  { %v9253_v18 = vpop.xlane.xlu0 %9252 }
0x1e91   :  { %v17733_v32 = vsub.f32 %v17643_v11, %v9286_v51  ;;  %v9287_v9 = vmul.f32 0.015625, %v9253_v18  ;;  %v9317_v3 = vmul.f32 %v17730_v47, %v17730_v47 }
0x1e92   :  { %v9256_v57 = vpop.xlane.xlu1 %9255 }
0x1e93   :  { %v17738_v21 = vsub.f32 %v17640_v20, %v9287_v9  ;;  %v9288_v4 = vmul.f32 0.015625, %v9256_v57  ;;  %v9341_v56 = vsel %vm348_vm1, %v9317_v3, 0.0  ;;  %v9318_v28 = vmul.f32 %v17733_v32, %v17733_v32 }
0x1e94   :  { %9342 = vadd.xlane.f32.xlu0 %v9341_v56 }
0x1e95   :  { %v17744_v38 = vsub.f32 %v17648_v45, %v9288_v4  ;;  %v9259_v59 = vpop.xlane.xlu0 %9258  ;;  %v9344_v34 = vsel %vm348_vm1, %v9318_v28, 0.0  ;;  %v9319_v41 = vmul.f32 %v17738_v21, %v17738_v21 }
0x1e96   :  { %v9289_v53 = vmul.f32 0.015625, %v9259_v59  ;;  %9345 = vadd.xlane.f32.xlu1 %v9344_v34 }
0x1e97   :  { %v9262_v14 = vpop.xlane.xlu1 %9261  ;;  %v9347_v29 = vsel %vm348_vm1, %v9319_v41, 0.0  ;;  %v9320_v40 = vmul.f32 %v17744_v38, %v17744_v38 }
0x1e98   :  { %v17753_v31 = vsub.f32 %v17659_v35, %v9289_v53  ;;  %v9290_v6 = vmul.f32 0.015625, %v9262_v14  ;;  %9348 = vadd.xlane.f32.xlu0 %v9347_v29  ;;  %v12907_v14 = vld [vmem:[%s18289_s9 + $0x68] sm:$0xff]  }
0x1e99   :  { %v9265_v37 = vpop.xlane.xlu0 %9264  ;;  %v9350_v24 = vsel %vm348_vm1, %v9320_v40, 0.0  ;;  %12660 = vmatprep.subr.bf16.mxu1 %v12907_v14  ;;  %v12908_v40 = vld [vmem:[%s18289_s9 + $0x70] sm:$0xff]  }
0x1e9a   :  { %v17757_v61 = vsub.f32 %v17667_v12, %v9290_v6  ;;  %v9291_v60 = vmul.f32 0.015625, %v9265_v37  ;;  %9351 = vadd.xlane.f32.xlu1 %v9350_v24  ;;  %v9321_v43 = vmul.f32 %v17753_v31, %v17753_v31  ;;  %12661 = vmatpush3.bf16.msra.mxu1 %v12907_v14  ;;  %v12909_v6 = vld [vmem:[%s18289_s9 + $0x78] sm:$0xff]   ;;  %v12910_v37 = vld [vmem:[%s18294_s21 + $0xc0] sm:$0xff]   ;;  %v12911_v24 = vld [vmem:[%s18294_s21 + $0xc8] sm:$0xff]  }
0x1e9b   :  { %v9268_v42 = vpop.xlane.xlu1 %9267  ;;  %12662 = vmatprep.subr.bf16.mxu1 %v12908_v40  ;;  %12682 = vmatprep.subr.bf16.mxu0 %v12910_v37  ;;  %v17812_v14 = vld [vmem:[%s18296_s15 + $0x3] ss:$0 sm:$0xff] }
0x1e9c   :  { %v17762_v25 = vsub.f32 %v17664_v13, %v9291_v60  ;;  %v9292_v2 = vmul.f32 0.015625, %v9268_v42  ;;  %v9353_v39 = vsel %vm348_vm1, %v9321_v43, 0.0  ;;  %v9322_v26 = vmul.f32 %v17757_v61, %v17757_v61  ;;  %12683 = vmatpush3.bf16.msra.mxu0 %v12910_v37 }
0x1e9d   :  { %9354 = vadd.xlane.f32.xlu0 %v9353_v39  ;;  %12684 = vmatprep.subr.bf16.mxu0 %v12911_v24 }
0x1e9e   :  { %v17768_v44 = vsub.f32 %v17672_v7, %v9292_v2  ;;  %v9356_v16 = vsel %vm348_vm1, %v9322_v26, 0.0  ;;  %v9323_v33 = vmul.f32 %v17762_v25, %v17762_v25  ;;  %12663 = vmatpush3.bf16.msra.mxu1 %v12908_v40 }
0x1e9f   :  { %9357 = vadd.xlane.f32.xlu1 %v9356_v16  ;;  %12664 = vmatprep.subr.bf16.mxu1 %v12909_v6 }
0x1ea0   :  { %v9359_v17 = vsel %vm348_vm1, %v9323_v33, 0.0  ;;  %v9324_v15 = vmul.f32 %v17768_v44, %v17768_v44  ;;  %12685 = vmatpush3.bf16.msra.mxu0 %v12911_v24 }
0x1ea1   :  { %9360 = vadd.xlane.f32.xlu0 %v9359_v17 }
0x1ea2   :  { %v9362_v54 = vsel %vm348_vm1, %v9324_v15, 0.0  ;;  %12665 = vmatpush3.bf16.msra.mxu1 %v12909_v6 }
0x1ea3   :  { %v9271_v49 = vpop.xlane.xlu0 %9270  ;;  %9363 = vadd.xlane.f32.xlu1 %v9362_v54 }
0x1ea4   :  { %v9293_v50 = vmul.f32 0.015625, %v9271_v49 }
0x1ea5   :  { %v9274_v0 = vpop.xlane.xlu1 %9273 }
0x1ea6   :  { %v17778_v8 = vsub.f32 %v17683_v55, %v9293_v50  ;;  %v9294_v52 = vmul.f32 0.015625, %v9274_v0 }
0x1ea7   :  { %v9277_v30 = vpop.xlane.xlu0 %9276 }
0x1ea8   :  { %v17781_v62 = vsub.f32 %v17691_v10, %v9294_v52  ;;  %v9295_v51 = vmul.f32 0.015625, %v9277_v30  ;;  %v9325_v18 = vmul.f32 %v17778_v8, %v17778_v8 }
0x1ea9   :  { %v9280_v9 = vpop.xlane.xlu1 %9279 }
0x1eaa   :  { %v17786_v3 = vsub.f32 %v17688_v1, %v9295_v51  ;;  %v9296_v57 = vmul.f32 0.015625, %v9280_v9  ;;  %v9365_v4 = vsel %vm348_vm1, %v9325_v18, 0.0  ;;  %v9326_v56 = vmul.f32 %v17781_v62, %v17781_v62 }
0x1eab   :  { %9366 = vadd.xlane.f32.xlu0 %v9365_v4  ;;  %v17808_v4 = vld [vmem:[%s18295_s25 + $0x3] ss:$0 sm:$0xff] }
0x1eac   :  { %v17792_v28 = vsub.f32 %v17696_v63, %v9296_v57  ;;  %v9368_v59 = vsel %vm348_vm1, %v9326_v56, 0.0  ;;  %v9327_v34 = vmul.f32 %v17786_v3, %v17786_v3 }
0x1ead   :  { %9369 = vadd.xlane.f32.xlu1 %v9368_v59 }
0x1eae   :  { %v9371_v41 = vsel %vm348_vm1, %v9327_v34, 0.0  ;;  %v9328_v53 = vmul.f32 %v17792_v28, %v17792_v28 }
0x1eaf   :  { %9372 = vadd.xlane.f32.xlu0 %v9371_v41 }
0x1eb0   :  { %v9374_v29 = vsel %vm348_vm1, %v9328_v53, 0.0 }
0x1eb1   :  { %9375 = vadd.xlane.f32.xlu1 %v9374_v29 }
0x1f14   :  { %v9331_v60 = vpop.xlane.xlu0 %9330 }
0x1f15   :  { %v9377_v43 = vmul.f32 0.015625, %v9331_v60 }
0x1f16   :  { %v9334_v42 = vpop.xlane.xlu1 %9333 }
0x1f17   :  { %v9393_v2 = vadd.f32 1e-05, %v9377_v43  ;;  %v9378_v39 = vmul.f32 0.015625, %v9334_v42 }
0x1f18   :  { %v9337_v26 = vpop.xlane.xlu0 %9336 }
0x1f19   :  { %13638 = vrsqrt.f32 %v9393_v2  ;;  %v9394_v16 = vadd.f32 1e-05, %v9378_v39  ;;  %v9379_v33 = vmul.f32 0.015625, %v9337_v26 }
0x1f1a   :  { %v9340_v17 = vpop.xlane.xlu1 %9339 }
0x1f1b   :  { %13640 = vrsqrt.f32 %v9394_v16  ;;  %v9395_v15 = vadd.f32 1e-05, %v9379_v33  ;;  %v9380_v54 = vmul.f32 0.015625, %v9340_v17 }
0x1f1d   :  { %13642 = vrsqrt.f32 %v9395_v15  ;;  %v9396_v49 = vadd.f32 1e-05, %v9380_v54 }
0x1f1f   :  { %13644 = vrsqrt.f32 %v9396_v49 }
0x1f21   :  { %v9343_v50 = vpop.xlane.xlu0 %9342 }
0x1f22   :  { %v9381_v0 = vmul.f32 0.015625, %v9343_v50 }
0x1f23   :  { %v9346_v52 = vpop.xlane.xlu1 %9345  ;;  %v13639_v18 = vpop.eup %13638 }
0x1f24   :  { %v9397_v30 = vadd.f32 1e-05, %v9381_v0  ;;  %v9382_v51 = vmul.f32 0.015625, %v9346_v52  ;;  %v9425_v57 = vmul.f32 %v13639_v18, %v17706_v22 }
0x1f25   :  { %v9349_v9 = vpop.xlane.xlu0 %9348  ;;  %v13641_v34 = vpop.eup %13640 }
0x1f26   :  { %13646 = vrsqrt.f32 %v9397_v30  ;;  %v9398_v56 = vadd.f32 1e-05, %v9382_v51  ;;  %v9383_v59 = vmul.f32 0.015625, %v9349_v9  ;;  %v9426_v53 = vmul.f32 %v13641_v34, %v17709_v27 }
0x1f27   :  { %v9352_v41 = vpop.xlane.xlu1 %9351  ;;  %v13643_v6 = vpop.eup %13642  ;;  %v9447_v37 = vmul.f32 %v17808_v4, %v9425_v57 }
0x1f28   :  { %13648 = vrsqrt.f32 %v9398_v56  ;;  %v9399_v29 = vadd.f32 1e-05, %v9383_v59  ;;  %v9384_v40 = vmul.f32 0.015625, %v9352_v41  ;;  %v9427_v24 = vmul.f32 %v13643_v6, %v17714_v36 }
0x1f29   :  { %v9448_v43 = vmul.f32 %v17808_v4, %v9426_v53  ;;  %v13645_v42 = vpop.eup %13644  ;;  %v9469_v39 = vadd.f32 %v17812_v14, %v9447_v37 }
0x1f2a   :  { %13650 = vrsqrt.f32 %v9399_v29  ;;  %v9400_v22 = vadd.f32 1e-05, %v9384_v40  ;;  %v9355_v60 = vpop.xlane.xlu0 %9354  ;;  %v9449_v27 = vmul.f32 %v17808_v4, %v9427_v24  ;;  %v9428_v26 = vmul.f32 %v13645_v42, %v17720_v23 }
0x1f2b   :  { %v9385_v2 = vmul.f32 0.015625, %v9355_v60  ;;  %v9470_v33 = vadd.f32 %v17812_v14, %v9448_v43 }
0x1f2c   :  { %13652 = vrsqrt.f32 %v9400_v22  ;;  %v9358_v16 = vpop.xlane.xlu1 %9357  ;;  %v9450_v36 = vmul.f32 %v17808_v4, %v9428_v26  ;;  %v9471_v30 = vadd.f32 %v17812_v14, %v9449_v27 }
0x1f2d   :  { %v9401_v17 = vadd.f32 1e-05, %v9385_v2  ;;  %v9386_v15 = vmul.f32 0.015625, %v9358_v16  ;;  %v9485_v49 = vpack.c.bf16 %v9470_v33, %v9469_v39 }
0x1f2e   :  { %v9361_v54 = vpop.xlane.xlu0 %9360  ;;  %v9472_v51 = vadd.f32 %v17812_v14, %v9450_v36 }
0x1f2f   :  { %13654 = vrsqrt.f32 %v9401_v17  ;;  %v9402_v50 = vadd.f32 1e-05, %v9386_v15  ;;  %v9387_v0 = vmul.f32 0.015625, %v9361_v54  ;;  %12666 = vmatprep.mubr.msk.bf16.mxu1 %vm348_vm1, %v9485_v49 }
0x1f30   :  { %v13647_v52 = vpop.eup %13646  ;;  %v9364_v18 = vpop.xlane.xlu1 %9363  ;;  %v9486_v59 = vpack.c.bf16 %v9472_v51, %v9471_v30 }
0x1f31   :  { %v9429_v23 = vmul.f32 %v13647_v52, %v17730_v47  ;;  %13656 = vrsqrt.f32 %v9402_v50  ;;  %v9403_v9 = vadd.f32 1e-05, %v9387_v0  ;;  %v9388_v57 = vmul.f32 0.015625, %v9364_v18 }
0x1f32   :  { %v13649_v56 = vpop.eup %13648  ;;  %12667 = vmatmul.mubr.msk.bf16.vlgmr.msra.gmra.mrb[48].mxu1 %vm348_vm1, %v9486_v59 }
0x1f33   :  { %v9430_v34 = vmul.f32 %v13649_v56, %v17733_v32  ;;  %13658 = vrsqrt.f32 %v9403_v9  ;;  %v9404_v41 = vadd.f32 1e-05, %v9388_v57  ;;  %v9451_v53 = vmul.f32 %v17808_v4, %v9429_v23 }
0x1f34   :  { %v13651_v29 = vpop.eup %13650 }
0x1f35   :  { %v9431_v40 = vmul.f32 %v13651_v29, %v17738_v21  ;;  %13660 = vrsqrt.f32 %v9404_v41  ;;  %v9452_v6 = vmul.f32 %v17808_v4, %v9430_v34  ;;  %v9473_v22 = vadd.f32 %v17812_v14, %v9451_v53 }
0x1f36   :  { %v13653_v47 = vpop.eup %13652 }
0x1f37   :  { %v9453_v37 = vmul.f32 %v17808_v4, %v9431_v40  ;;  %v9432_v24 = vmul.f32 %v13653_v47, %v17744_v38  ;;  %v9474_v32 = vadd.f32 %v17812_v14, %v9452_v6 }
0x1f38   :  { %v9367_v60 = vpop.xlane.xlu0 %9366 }
0x1f39   :  { %v13655_v43 = vpop.eup %13654  ;;  %v9454_v42 = vmul.f32 %v17808_v4, %v9432_v24  ;;  %v9389_v2 = vmul.f32 0.015625, %v9367_v60  ;;  %v9487_v39 = vpack.c.bf16 %v9474_v32, %v9473_v22  ;;  %v9475_v16 = vadd.f32 %v17812_v14, %v9453_v37 }
0x1f3a   :  { %v9433_v21 = vmul.f32 %v13655_v43, %v17753_v31  ;;  %v9370_v27 = vpop.xlane.xlu1 %9369 }
0x1f3b   :  { %v13657_v26 = vpop.eup %13656  ;;  %v9476_v33 = vadd.f32 %v17812_v14, %v9454_v42  ;;  %v9405_v17 = vadd.f32 1e-05, %v9389_v2  ;;  %v9390_v38 = vmul.f32 0.015625, %v9370_v27  ;;  %12670 = vmatprep.mubr.msk.bf16.mxu1 %vm348_vm1, %v9487_v39 }
0x1f3c   :  { %v9434_v15 = vmul.f32 %v13657_v26, %v17757_v61  ;;  %v9373_v36 = vpop.xlane.xlu0 %9372  ;;  %v9455_v54 = vmul.f32 %v17808_v4, %v9433_v21 }
0x1f3d   :  { %v13659_v49 = vpop.eup %13658  ;;  %v9488_v50 = vpack.c.bf16 %v9476_v33, %v9475_v16  ;;  %13662 = vrsqrt.f32 %v9405_v17  ;;  %v9406_v0 = vadd.f32 1e-05, %v9390_v38  ;;  %v9391_v31 = vmul.f32 0.015625, %v9373_v36  ;;  %v12913_v16 = vld [vmem:[%s18294_s21 + $0xd8] sm:$0xff]   ;;  %v12915_v33 = vld [vmem:[%s18294_s21 + $0xe8] sm:$0xff]  }
0x1f3e   :  { %v9435_v52 = vmul.f32 %v13659_v49, %v17762_v25  ;;  %v9376_v30 = vpop.xlane.xlu1 %9375  ;;  %v9456_v51 = vmul.f32 %v17808_v4, %v9434_v15  ;;  %v9477_v56 = vadd.f32 %v17812_v14, %v9455_v54  ;;  %v12917_v17 = vld [vmem:[%s18294_s21 + $0xf8] sm:$0xff]   ;;  %v17875_v38 = vld [vmem:[%s18297_s16 + $0x3] ss:$0 sm:$0xff] }
0x1f3f   :  { %v13661_v18 = vpop.eup %13660  ;;  %13664 = vrsqrt.f32 %v9406_v0  ;;  %v9407_v23 = vadd.f32 1e-05, %v9391_v31  ;;  %v9392_v9 = vmul.f32 0.015625, %v9376_v30  ;;  %12671 = vmatmul.mubr.msk.bf16.gmra.mrb[52].mxu1 %vm348_vm1, %v9488_v50 }
0x1f40   :  { %v9457_v61 = vmul.f32 %v17808_v4, %v9435_v52  ;;  %v9436_v57 = vmul.f32 %v13661_v18, %v17768_v44  ;;  %v9478_v59 = vadd.f32 %v17812_v14, %v9456_v51 }
0x1f41   :  { %13666 = vrsqrt.f32 %v9407_v23  ;;  %v9408_v34 = vadd.f32 1e-05, %v9392_v9 }
0x1f42   :  { %v9458_v25 = vmul.f32 %v17808_v4, %v9436_v57  ;;  %v9489_v41 = vpack.c.bf16 %v9478_v59, %v9477_v56  ;;  %v9479_v53 = vadd.f32 %v17812_v14, %v9457_v61 }
0x1f43   :  { %13668 = vrsqrt.f32 %v9408_v34 }
0x1f44   :  { %v9480_v29 = vadd.f32 %v17812_v14, %v9458_v25  ;;  %12674 = vmatprep.mubr.msk.bf16.mxu1 %vm348_vm1, %v9489_v41 }
0x1f46   :  { %v9490_v40 = vpack.c.bf16 %v9480_v29, %v9479_v53 }
0x1f47   :  { %v13663_v6 = vpop.eup %13662 }
0x1f48   :  { %v9437_v44 = vmul.f32 %v13663_v6, %v17778_v8  ;;  %12675 = vmatmul.mubr.msk.bf16.gmra.mrb[56].mxu1 %vm348_vm1, %v9490_v40 }
0x1f49   :  { %v13665_v47 = vpop.eup %13664 }
0x1f4a   :  { %v9438_v37 = vmul.f32 %v13665_v47, %v17781_v62  ;;  %v9459_v24 = vmul.f32 %v17808_v4, %v9437_v44 }
0x1f4b   :  { %v13667_v22 = vpop.eup %13666 }
0x1f4c   :  { %v9439_v32 = vmul.f32 %v13667_v22, %v17786_v3  ;;  %v9460_v60 = vmul.f32 %v17808_v4, %v9438_v37  ;;  %v9481_v8 = vadd.f32 %v17812_v14, %v9459_v24 }
0x1f4d   :  { %v13669_v43 = vpop.eup %13668 }
0x1f4e   :  { %v9461_v42 = vmul.f32 %v17808_v4, %v9439_v32  ;;  %v9440_v2 = vmul.f32 %v13669_v43, %v17792_v28  ;;  %v9482_v39 = vadd.f32 %v17812_v14, %v9460_v60  ;;  %v12912_v28 = vld [vmem:[%s18294_s21 + $0xd0] sm:$0xff]  }
0x1f4f   :  { %12686 = vmatprep.subr.bf16.mxu0 %v12912_v28 }
0x1f50   :  { %v9462_v62 = vmul.f32 %v17808_v4, %v9440_v2  ;;  %v9491_v21 = vpack.c.bf16 %v9482_v39, %v9481_v8  ;;  %v9483_v27 = vadd.f32 %v17812_v14, %v9461_v42  ;;  %12687 = vmatpush3.bf16.msra.mxu0 %v12912_v28  ;;  %v12914_v4 = vld [vmem:[%s18294_s21 + $0xe0] sm:$0xff]  }
0x1f51   :  { %12688 = vmatprep.subr.bf16.mxu0 %v12913_v16 }
0x1f52   :  { %v9484_v3 = vadd.f32 %v17812_v14, %v9462_v62  ;;  %12678 = vmatprep.mubr.msk.bf16.mxu1 %vm348_vm1, %v9491_v21  ;;  %v12916_v14 = vld [vmem:[%s18294_s21 + $0xf0] sm:$0xff]  }
0x1f54   :  { %v9492_v26 = vpack.c.bf16 %v9484_v3, %v9483_v27  ;;  %12689 = vmatpush3.bf16.msra.mxu0 %v12913_v16 }
0x1f55   :  { %12690 = vmatprep.subr.bf16.mxu0 %v12914_v4 }
0x1f56   :  { %12679 = vmatmul.mubr.msk.bf16.gmra.mrb[60].mxu1 %vm348_vm1, %v9492_v26 }
0x1f58   :  { %12691 = vmatpush3.bf16.msra.mxu0 %v12914_v4 }
0x1f59   :  { %12692 = vmatprep.subr.bf16.mxu0 %v12915_v33 }
0x1f5c   :  { %12693 = vmatpush3.bf16.msra.mxu0 %v12915_v33 }
0x1f5d   :  { %12694 = vmatprep.subr.bf16.mxu0 %v12916_v14 }
0x1f60   :  { %12695 = vmatpush3.bf16.msra.mxu0 %v12916_v14 }
0x1f61   :  { %12696 = vmatprep.subr.bf16.mxu0 %v12917_v17 }
0x1f64   :  { %12697 = vmatpush3.bf16.msra.mxu0 %v12917_v17 }
0x2005   :  { %v12668_v15 = vpop.f32.mrb[48].mxu1 }
0x2006   :  { %v9601_v36 = vadd.f32 %v12668_v15, %v17875_v38  ;;  %v9592_v54 = vpop.f32.mrb[49].mxu1 }
0x2007   :  { %v9593_v49 = vadd.f32 %v17875_v38, %v9592_v54  ;;  %v12669_v50 = vpop.f32.mrb[50].mxu1 }
0x2008   :  { %v9673_v0 = vmul.f32 0.70710677, %v9601_v36  ;;  %v9604_v31 = vadd.f32 %v12669_v50, %v17875_v38  ;;  %v9595_v52 = vpop.f32.mrb[51].mxu1  ;;  %v9657_v60 = vmul.f32 0.5, %v9601_v36 }
0x2009   :  { %v9671_v30 = vmul.f32 0.70710677, %v9593_v49  ;;  %v9596_v51 = vadd.f32 %v17875_v38, %v9595_v52  ;;  %v9655_v2 = vmul.f32 0.5, %v9593_v49 }
0x200a   :  { %13670 = verf.f32 %v9673_v0  ;;  %v9674_v18 = vmul.f32 0.70710677, %v9604_v31  ;;  %v9658_v43 = vmul.f32 0.5, %v9604_v31 }
0x200b   :  { %13672 = verf.f32 %v9671_v30  ;;  %v9672_v23 = vmul.f32 0.70710677, %v9596_v51  ;;  %v9656_v8 = vmul.f32 0.5, %v9596_v51 }
0x200c   :  { %13674 = verf.f32 %v9674_v18 }
0x200d   :  { %13676 = verf.f32 %v9672_v23 }
0x2012   :  { %v12672_v9 = vpop.f32.mrb[52].mxu1 }
0x2013   :  { %v9617_v61 = vadd.f32 %v12672_v9, %v17875_v38  ;;  %v9608_v57 = vpop.f32.mrb[53].mxu1 }
0x2014   :  { %v9609_v56 = vadd.f32 %v17875_v38, %v9608_v57  ;;  %v12673_v59 = vpop.f32.mrb[54].mxu1  ;;  %v13671_v53 = vpop.eup %13670 }
0x2015   :  { %v9677_v34 = vmul.f32 0.70710677, %v9617_v61  ;;  %v9620_v25 = vadd.f32 %v12673_v59, %v17875_v38  ;;  %v9611_v41 = vpop.f32.mrb[55].mxu1  ;;  %v13673_v6 = vpop.eup %13672  ;;  %v9705_v44 = vadd.f32 1.0, %v13671_v53  ;;  %v9661_v57 = vmul.f32 0.5, %v9617_v61 }
0x2016   :  { %v9675_v29 = vmul.f32 0.70710677, %v9609_v56  ;;  %v9612_v40 = vadd.f32 %v17875_v38, %v9611_v41  ;;  %v13675_v37 = vpop.eup %13674  ;;  %v9703_v24 = vadd.f32 1.0, %v13673_v6  ;;  %v9659_v41 = vmul.f32 0.5, %v9609_v56 }
0x2017   :  { %13678 = verf.f32 %v9677_v34  ;;  %v9678_v47 = vmul.f32 0.70710677, %v9620_v25  ;;  %v13677_v32 = vpop.eup %13676  ;;  %v9706_v42 = vadd.f32 1.0, %v13675_v37  ;;  %v9721_v62 = vmul.f32 %v9705_v44, %v9657_v60 }
0x2018   :  { %13680 = verf.f32 %v9675_v29  ;;  %v9676_v22 = vmul.f32 0.70710677, %v9612_v40  ;;  %v9704_v39 = vadd.f32 1.0, %v13677_v32  ;;  %v9719_v3 = vmul.f32 %v9703_v24, %v9655_v2 }
0x2019   :  { %13682 = verf.f32 %v9678_v47  ;;  %v9722_v21 = vmul.f32 %v9706_v42, %v9658_v43  ;;  %v9662_v59 = vmul.f32 0.5, %v9620_v25  ;;  %v9660_v53 = vmul.f32 0.5, %v9612_v40 }
0x201a   :  { %13684 = verf.f32 %v9676_v22  ;;  %v9720_v26 = vmul.f32 %v9704_v39, %v9656_v8 }
0x201b   :  { %v12676_v27 = vpop.f32.mrb[56].mxu1  ;;  %v9736_v4 = vpack.c.bf16 %v9722_v21, %v9721_v62 }
0x201c   :  { %v9633_v28 = vadd.f32 %v12676_v27, %v17875_v38  ;;  %v9624_v16 = vpop.f32.mrb[57].mxu1  ;;  %v9735_v54 = vpack.c.bf16 %v9720_v26, %v9719_v3 }
0x201d   :  { %v9625_v33 = vadd.f32 %v17875_v38, %v9624_v16  ;;  %v12677_v14 = vpop.f32.mrb[58].mxu1 }
0x201e   :  { %v9681_v17 = vmul.f32 0.70710677, %v9633_v28  ;;  %v9636_v15 = vadd.f32 %v12677_v14, %v17875_v38  ;;  %v9627_v36 = vpop.f32.mrb[59].mxu1  ;;  %12698 = vmatprep.mubr.bf16.mxu0 %v9735_v54  ;;  %v9665_v40 = vmul.f32 0.5, %v9633_v28 }
0x201f   :  { %v9679_v49 = vmul.f32 0.70710677, %v9625_v33  ;;  %v9628_v50 = vadd.f32 %v17875_v38, %v9627_v36  ;;  %12699 = vmatmul.mubr.bf16.vlgmr.msra.gmra.mrb[64].mxu0 %v9736_v4  ;;  %v9663_v26 = vmul.f32 0.5, %v9625_v33 }
0x2020   :  { %13686 = verf.f32 %v9681_v17  ;;  %v9682_v0 = vmul.f32 0.70710677, %v9636_v15  ;;  %v9666_v16 = vmul.f32 0.5, %v9636_v15 }
0x2021   :  { %v13679_v31 = vpop.eup %13678  ;;  %13688 = verf.f32 %v9679_v49  ;;  %v9680_v52 = vmul.f32 0.70710677, %v9628_v50  ;;  %v9664_v36 = vmul.f32 0.5, %v9628_v50 }
0x2022   :  { %v13681_v30 = vpop.eup %13680  ;;  %v9709_v51 = vadd.f32 1.0, %v13679_v31  ;;  %13690 = verf.f32 %v9682_v0 }
0x2023   :  { %v13683_v18 = vpop.eup %13682  ;;  %v9707_v23 = vadd.f32 1.0, %v13681_v30  ;;  %13692 = verf.f32 %v9680_v52 }
0x2024   :  { %v13685_v9 = vpop.eup %13684  ;;  %v9710_v34 = vadd.f32 1.0, %v13683_v18  ;;  %v9725_v6 = vmul.f32 %v9709_v51, %v9661_v57 }
0x2025   :  { %v9708_v29 = vadd.f32 1.0, %v13685_v9  ;;  %v9723_v47 = vmul.f32 %v9707_v23, %v9659_v41 }
0x2026   :  { %v9726_v44 = vmul.f32 %v9710_v34, %v9662_v59 }
0x2027   :  { %v9724_v37 = vmul.f32 %v9708_v29, %v9660_v53 }
0x2028   :  { %v9738_v24 = vpack.c.bf16 %v9726_v44, %v9725_v6 }
0x2029   :  { %v12680_v22 = vpop.f32.mrb[60].mxu1  ;;  %v9737_v32 = vpack.c.bf16 %v9724_v37, %v9723_v47 }
0x202a   :  { %v13687_v60 = vpop.eup %13686  ;;  %v9649_v43 = vadd.f32 %v12680_v22, %v17875_v38  ;;  %v9640_v42 = vpop.f32.mrb[61].mxu1 }
0x202b   :  { %v13689_v2 = vpop.eup %13688  ;;  %v9713_v8 = vadd.f32 1.0, %v13687_v60  ;;  %v9641_v61 = vadd.f32 %v17875_v38, %v9640_v42  ;;  %v12681_v25 = vpop.f32.mrb[62].mxu1  ;;  %12702 = vmatprep.mubr.bf16.mxu0 %v9737_v32  ;;  %v17894_v32 = vld [vmem:[%s18298_s18 + $0x3] ss:$0 sm:$0xff] }
0x202c   :  { %v13691_v56 = vpop.eup %13690  ;;  %v9711_v39 = vadd.f32 1.0, %v13689_v2  ;;  %v9685_v62 = vmul.f32 0.70710677, %v9649_v43  ;;  %v9652_v21 = vadd.f32 %v12681_v25, %v17875_v38  ;;  %v9643_v27 = vpop.f32.mrb[63].mxu1  ;;  %12703 = vmatmul.mubr.bf16.gmra.mrb[68].mxu0 %v9738_v24  ;;  %v9669_v9 = vmul.f32 0.5, %v9649_v43 }
0x202d   :  { %v13693_v3 = vpop.eup %13692  ;;  %v9714_v4 = vadd.f32 1.0, %v13691_v56  ;;  %v9683_v14 = vmul.f32 0.70710677, %v9641_v61  ;;  %v9729_v17 = vmul.f32 %v9713_v8, %v9665_v40  ;;  %v9644_v28 = vadd.f32 %v17875_v38, %v9643_v27 }
0x202e   :  { %v9712_v54 = vadd.f32 1.0, %v13693_v3  ;;  %13694 = verf.f32 %v9685_v62  ;;  %v9686_v0 = vmul.f32 0.70710677, %v9652_v21  ;;  %v9727_v31 = vmul.f32 %v9711_v39, %v9663_v26 }
0x202f   :  { %v9730_v49 = vmul.f32 %v9714_v4, %v9666_v16  ;;  %13696 = verf.f32 %v9683_v14  ;;  %v9684_v51 = vmul.f32 0.70710677, %v9644_v28  ;;  %v9670_v59 = vmul.f32 0.5, %v9652_v21 }
0x2030   :  { %v9728_v52 = vmul.f32 %v9712_v54, %v9664_v36  ;;  %13698 = verf.f32 %v9686_v0  ;;  %v9667_v38 = vmul.f32 0.5, %v9641_v61  ;;  %v9668_v6 = vmul.f32 0.5, %v9644_v28 }
0x2031   :  { %v9740_v30 = vpack.c.bf16 %v9730_v49, %v9729_v17  ;;  %13700 = verf.f32 %v9684_v51 }
0x2032   :  { %v9739_v18 = vpack.c.bf16 %v9728_v52, %v9727_v31 }
0x2034   :  { %12706 = vmatprep.mubr.bf16.mxu0 %v9739_v18 }
0x2035   :  { %12707 = vmatmul.mubr.bf16.gmra.mrb[72].mxu0 %v9740_v30 }
0x2038   :  { %v13695_v33 = vpop.eup %13694 }
0x2039   :  { %v13697_v15 = vpop.eup %13696  ;;  %v9717_v23 = vadd.f32 1.0, %v13695_v33 }
0x203a   :  { %v13699_v50 = vpop.eup %13698  ;;  %v9715_v57 = vadd.f32 1.0, %v13697_v15 }
0x203b   :  { %v9718_v34 = vadd.f32 1.0, %v13699_v50  ;;  %v13701_v41 = vpop.eup %13700  ;;  %v9733_v53 = vmul.f32 %v9717_v23, %v9669_v9 }
0x203c   :  { %v9716_v44 = vadd.f32 1.0, %v13701_v41  ;;  %v9731_v47 = vmul.f32 %v9715_v57, %v9667_v38 }
0x203d   :  { %v9734_v29 = vmul.f32 %v9718_v34, %v9670_v59 }
0x203e   :  { %v9732_v24 = vmul.f32 %v9716_v44, %v9668_v6 }
0x203f   :  { %v9742_v37 = vpack.c.bf16 %v9734_v29, %v9733_v53 }
0x2040   :  { %v9741_v22 = vpack.c.bf16 %v9732_v24, %v9731_v47 }
0x2042   :  { %12710 = vmatprep.mubr.bf16.mxu0 %v9741_v22 }
0x2043   :  { %12711 = vmatmul.mubr.bf16.gmra.mrb[76].mxu0 %v9742_v37 }
0x20f2   :  { %v12700_v60 = vpop.f32.mrb[64].mxu0 }
0x20f3   :  { %v9859_v43 = vadd.f32 %v12700_v60, %v17894_v32  ;;  %v9850_v42 = vpop.f32.mrb[65].mxu0 }
0x20f4   :  { %v9851_v2 = vadd.f32 %v17894_v32, %v9850_v42  ;;  %v12701_v8 = vpop.f32.mrb[66].mxu0 }
0x20f5   :  { %v17899_v61 = vadd.f32 %v9859_v43, %v17616_v58  ;;  %v9853_v25 = vpop.f32.mrb[67].mxu0  ;;  %v9862_v39 = vadd.f32 %v12701_v8, %v17894_v32 }
0x20f6   :  { %v9854_v56 = vadd.f32 %v17894_v32, %v9853_v25  ;;  %v17903_v40 = vadd.f32 %v9851_v2, %v17611_v46 }
0x20f7   :  { %v9937_v62 = vsel %vm348_vm1, %v17899_v61, 0.0  ;;  %v17914_v58 = vadd.f32 %v9862_v39, %v17624_v5 }
0x20f8   :  { %v17909_v21 = vadd.f32 %v9854_v56, %v17619_v48  ;;  %9938 = vadd.xlane.f32.xlu0 %v9937_v62  ;;  %v9931_v46 = vsel %vm348_vm1, %v17903_v40, 0.0 }
0x20f9   :  { %v9940_v48 = vsel %vm348_vm1, %v17914_v58, 0.0 }
0x20fa   :  { %v9934_v27 = vsel %vm348_vm1, %v17909_v21, 0.0 }
0x20fb   :  { %9935 = vadd.xlane.f32.xlu1 %v9934_v27 }
0x20fc   :  { %9932 = vadd.xlane.f32.xlu0 %v9931_v46 }
0x20ff   :  { %v12704_v3 = vpop.f32.mrb[68].mxu0 }
0x2100   :  { %v9866_v26 = vpop.f32.mrb[69].mxu0  ;;  %9941 = vadd.xlane.f32.xlu0 %v9940_v48  ;;  %v9875_v23 = vadd.f32 %v12704_v3, %v17894_v32 }
0x2101   :  { %v9867_v16 = vadd.f32 %v17894_v32, %v9866_v26  ;;  %v12705_v4 = vpop.f32.mrb[70].mxu0 }
0x2102   :  { %v9869_v14 = vpop.f32.mrb[71].mxu0  ;;  %v17954_v9 = vadd.f32 %v9875_v23, %v17640_v20  ;;  %v9878_v57 = vadd.f32 %v12705_v4, %v17894_v32 }
0x2103   :  { %v17922_v17 = vadd.f32 %v9867_v16, %v17635_v19  ;;  %v9870_v0 = vadd.f32 %v17894_v32, %v9869_v14 }
0x2104   :  { %v17962_v34 = vadd.f32 %v9878_v57, %v17648_v45 }
0x2105   :  { %v9943_v5 = vsel %vm348_vm1, %v17922_v17, 0.0  ;;  %v17944_v50 = vadd.f32 %v9870_v0, %v17643_v11 }
0x2106   :  { %9944 = vadd.xlane.f32.xlu0 %v9943_v5  ;;  %v9952_v6 = vsel %vm348_vm1, %v17962_v34, 0.0 }
0x2107   :  { %v9946_v11 = vsel %vm348_vm1, %v17944_v50, 0.0 }
0x2108   :  { %v12708_v36 = vpop.f32.mrb[72].mxu0 }
0x2109   :  { %v9891_v54 = vadd.f32 %v12708_v36, %v17894_v32  ;;  %v9882_v49 = vpop.f32.mrb[73].mxu0 }
0x210a   :  { %v9883_v28 = vadd.f32 %v17894_v32, %v9882_v49  ;;  %v12709_v31 = vpop.f32.mrb[74].mxu0 }
0x210b   :  { %v17930_v52 = vadd.f32 %v9891_v54, %v17664_v13  ;;  %v9894_v30 = vadd.f32 %v12709_v31, %v17894_v32  ;;  %v9885_v19 = vpop.f32.mrb[75].mxu0 }
0x210c   :  { %v17934_v51 = vadd.f32 %v9883_v28, %v17659_v35  ;;  %v9886_v33 = vadd.f32 %v17894_v32, %v9885_v19 }
0x210d   :  { %v17937_v18 = vadd.f32 %v9894_v30, %v17672_v7  ;;  %v9961_v15 = vsel %vm348_vm1, %v17930_v52, 0.0 }
0x210e   :  { %9962 = vadd.xlane.f32.xlu1 %v9961_v15  ;;  %v9955_v13 = vsel %vm348_vm1, %v17934_v51, 0.0  ;;  %v17949_v35 = vadd.f32 %v9886_v33, %v17667_v12  ;;  %v9949_v12 = vsel %vm348_vm1, %v17954_v9, 0.0 }
0x210f   :  { %9956 = vadd.xlane.f32.xlu0 %v9955_v13  ;;  %v9964_v7 = vsel %vm348_vm1, %v17937_v18, 0.0 }
0x2110   :  { %v9958_v59 = vsel %vm348_vm1, %v17949_v35, 0.0 }
0x2112   :  { %9965 = vadd.xlane.f32.xlu1 %v9964_v7 }
0x2113   :  { %9947 = vadd.xlane.f32.xlu0 %v9946_v11 }
0x2116   :  { %9959 = vadd.xlane.f32.xlu1 %v9958_v59  ;;  %v12712_v20 = vpop.f32.mrb[76].mxu0 }
0x2117   :  { %9950 = vadd.xlane.f32.xlu0 %v9949_v12  ;;  %v9907_v41 = vadd.f32 %v12712_v20, %v17894_v32  ;;  %v9898_v38 = vpop.f32.mrb[77].mxu0 }
0x2118   :  { %v9899_v53 = vadd.f32 %v17894_v32, %v9898_v38  ;;  %v12713_v29 = vpop.f32.mrb[78].mxu0 }
0x2119   :  { %v17971_v44 = vadd.f32 %v9907_v41, %v17688_v1  ;;  %v9901_v45 = vpop.f32.mrb[79].mxu0  ;;  %v9910_v22 = vadd.f32 %v12713_v29, %v17894_v32 }
0x211a   :  { %v17974_v47 = vadd.f32 %v9899_v53, %v17683_v55  ;;  %v9902_v37 = vadd.f32 %v17894_v32, %v9901_v45 }
0x211b   :  { %9953 = vadd.xlane.f32.xlu0 %v9952_v6  ;;  %v9973_v24 = vsel %vm348_vm1, %v17971_v44, 0.0  ;;  %v17986_v43 = vadd.f32 %v9910_v22, %v17696_v63 }
0x211c   :  { %9974 = vadd.xlane.f32.xlu1 %v9973_v24  ;;  %v17981_v60 = vadd.f32 %v9902_v37, %v17691_v10  ;;  %v9967_v1 = vsel %vm348_vm1, %v17974_v47, 0.0 }
0x211d   :  { %v9976_v42 = vsel %vm348_vm1, %v17986_v43, 0.0 }
0x211e   :  { %v9970_v55 = vsel %vm348_vm1, %v17981_v60, 0.0 }
0x2120   :  { %9968 = vadd.xlane.f32.xlu1 %v9967_v1 }
0x2124   :  { %9971 = vadd.xlane.f32.xlu1 %v9970_v55 }
0x2128   :  { %9977 = vadd.xlane.f32.xlu1 %v9976_v42 }
0x2185   :  { %v9939_v2 = vpop.xlane.xlu0 %9938 }
0x2186   :  { %v9981_v32 = vmul.f32 0.015625, %v9939_v2 }
0x2188   :  { %v17993_v10 = vsub.f32 %v17899_v61, %v9981_v32  ;;  %v9936_v8 = vpop.xlane.xlu1 %9935 }
0x2189   :  { %v9980_v25 = vmul.f32 0.015625, %v9936_v8  ;;  %v9933_v56 = vpop.xlane.xlu0 %9932 }
0x218a   :  { %v9979_v39 = vmul.f32 0.015625, %v9933_v56  ;;  %v10013_v63 = vmul.f32 %v17993_v10, %v17993_v10 }
0x218b   :  { %v17998_v62 = vsub.f32 %v17909_v21, %v9980_v25 }
0x218c   :  { %v18001_v27 = vsub.f32 %v17903_v40, %v9979_v39  ;;  %v10033_v46 = vsel %vm348_vm1, %v10013_v63, 0.0 }
0x218d   :  { %10034 = vadd.xlane.f32.xlu0 %v10033_v46  ;;  %v9942_v3 = vpop.xlane.xlu0 %9941  ;;  %v10012_v61 = vmul.f32 %v17998_v62, %v17998_v62 }
0x218e   :  { %v9982_v26 = vmul.f32 0.015625, %v9942_v3  ;;  %v10011_v16 = vmul.f32 %v18001_v27, %v18001_v27 }
0x218f   :  { %v10030_v4 = vsel %vm348_vm1, %v10012_v61, 0.0 }
0x2190   :  { %v18010_v48 = vsub.f32 %v17914_v58, %v9982_v26  ;;  %10031 = vadd.xlane.f32.xlu1 %v10030_v4  ;;  %v10027_v40 = vsel %vm348_vm1, %v10011_v16, 0.0 }
0x2191   :  { %10028 = vadd.xlane.f32.xlu0 %v10027_v40 }
0x2192   :  { %v10014_v5 = vmul.f32 %v18010_v48, %v18010_v48 }
0x2193   :  { %v9945_v21 = vpop.xlane.xlu0 %9944 }
0x2194   :  { %v9983_v14 = vmul.f32 0.015625, %v9945_v21  ;;  %v10036_v54 = vsel %vm348_vm1, %v10014_v5, 0.0 }
0x2195   :  { %10037 = vadd.xlane.f32.xlu0 %v10036_v54  ;;  %v12918_v54 = vld [vmem:[%s18356_s13] sm:$0xff]  }
0x2196   :  { %v18016_v36 = vsub.f32 %v17922_v17, %v9983_v14 }
0x2198   :  { %v10015_v49 = vmul.f32 %v18016_v36, %v18016_v36 }
0x219a   :  { %v10039_v58 = vsel %vm348_vm1, %v10015_v49, 0.0  ;;  %v13807_v49 = vmov 0.0  }
0x219b   :  { %v9963_v0 = vpop.xlane.xlu1 %9962  ;;  %10040 = vadd.xlane.f32.xlu0 %v10039_v58  ;;  %12714 = vmatprep.subr.bf16.mxu1 %v13807_v49  ;;  %v12920_v58 = vld [vmem:[%s18356_s13 + $0x10] sm:$0xff]  }
0x219c   :  { %v9989_v28 = vmul.f32 0.015625, %v9963_v0  ;;  %v9957_v31 = vpop.xlane.xlu0 %9956  ;;  %12726 = vmatprep.subr.bf16.mxu0 %v13807_v49  ;;  %12715 = vmatpush3.bf16.msra.mxu1 %v12918_v54  ;;  %v12921_v0 = vld [vmem:[%s18356_s13 + $0x18] sm:$0xff]   ;;  %v18117_v54 = vld [vmem:[%s18359_s3] ss:$0 sm:$0xff] }
0x219d   :  { %v9987_v30 = vmul.f32 0.015625, %v9957_v31  ;;  %12716 = vmatprep.subr.bf16.mxu1 %v13807_v49  ;;  %12722 = vmatprep.mubr.msk.bf16.mxu1 %vm13808_vm4, %v13807_v49  ;;  %v12923_v31 = vld [vmem:[%s18357_s17 + $0x8] sm:$0xff]  }
0x219e   :  { %v18023_v19 = vsub.f32 %v17930_v52, %v9989_v28  ;;  %12742 = vmatprep.mubr.msk.bf16.mxu0 %vm13808_vm4, %v13807_v49  ;;  %v12922_v28 = vld [vmem:[%s18357_s17] sm:$0xff]  }
0x219f   :  { %v18026_v33 = vsub.f32 %v17934_v51, %v9987_v30  ;;  %v9966_v17 = vpop.xlane.xlu1 %9965  ;;  %12727 = vmatpush3.bf16.msra.mxu0 %v12922_v28  ;;  %v12924_v30 = vld [vmem:[%s18357_s17 + $0x10] sm:$0xff]  }
0x21a0   :  { %v9990_v15 = vmul.f32 0.015625, %v9966_v17  ;;  %v9948_v23 = vpop.xlane.xlu0 %9947  ;;  %v10021_v13 = vmul.f32 %v18023_v19, %v18023_v19  ;;  %12728 = vmatprep.subr.bf16.mxu0 %v13807_v49 }
0x21a1   :  { %v9984_v7 = vmul.f32 0.015625, %v9948_v23  ;;  %v10019_v57 = vmul.f32 %v18026_v33, %v18026_v33 }
0x21a2   :  { %v18033_v11 = vsub.f32 %v17937_v18, %v9990_v15  ;;  %v10057_v59 = vsel %vm348_vm1, %v10021_v13, 0.0 }
0x21a3   :  { %v18037_v52 = vsub.f32 %v17944_v50, %v9984_v7  ;;  %v9960_v51 = vpop.xlane.xlu1 %9959  ;;  %10058 = vadd.xlane.f32.xlu1 %v10057_v59  ;;  %v10051_v12 = vsel %vm348_vm1, %v10019_v57, 0.0  ;;  %12729 = vmatpush3.bf16.msra.mxu0 %v12923_v31 }
0x21a4   :  { %v9988_v20 = vmul.f32 0.015625, %v9960_v51  ;;  %10052 = vadd.xlane.f32.xlu0 %v10051_v12  ;;  %v9951_v41 = vpop.xlane.xlu0 %9950  ;;  %v10022_v38 = vmul.f32 %v18033_v11, %v18033_v11  ;;  %12730 = vmatprep.subr.bf16.mxu0 %v13807_v49 }
0x21a5   :  { %v9985_v53 = vmul.f32 0.015625, %v9951_v41  ;;  %v10016_v18 = vmul.f32 %v18037_v52, %v18037_v52 }
0x21a6   :  { %v18045_v29 = vsub.f32 %v17949_v35, %v9988_v20  ;;  %v10060_v50 = vsel %vm348_vm1, %v10022_v38, 0.0 }
0x21a7   :  { %v18049_v6 = vsub.f32 %v17954_v9, %v9985_v53  ;;  %10061 = vadd.xlane.f32.xlu1 %v10060_v50  ;;  %v10042_v45 = vsel %vm348_vm1, %v10016_v18, 0.0  ;;  %12731 = vmatpush3.bf16.msra.mxu0 %v12924_v30 }
0x21a8   :  { %10043 = vadd.xlane.f32.xlu0 %v10042_v45  ;;  %v9954_v37 = vpop.xlane.xlu0 %9953  ;;  %v10020_v24 = vmul.f32 %v18045_v29, %v18045_v29  ;;  %12732 = vmatprep.subr.bf16.mxu0 %v13807_v49 }
0x21a9   :  { %v9986_v22 = vmul.f32 0.015625, %v9954_v37  ;;  %v10017_v1 = vmul.f32 %v18049_v6, %v18049_v6  ;;  %v9975_v55 = vpop.xlane.xlu1 %9974 }
0x21aa   :  { %v10054_v35 = vsel %vm348_vm1, %v10020_v24, 0.0  ;;  %v9993_v2 = vmul.f32 0.015625, %v9975_v55 }
0x21ab   :  { %v18058_v42 = vsub.f32 %v17962_v34, %v9986_v22  ;;  %10055 = vadd.xlane.f32.xlu1 %v10054_v35  ;;  %v10045_v9 = vsel %vm348_vm1, %v10017_v1, 0.0 }
0x21ac   :  { %10046 = vadd.xlane.f32.xlu0 %v10045_v9  ;;  %v18064_v8 = vsub.f32 %v17971_v44, %v9993_v2 }
0x21ad   :  { %v10018_v32 = vmul.f32 %v18058_v42, %v18058_v42  ;;  %v9969_v25 = vpop.xlane.xlu1 %9968 }
0x21ae   :  { %v9991_v39 = vmul.f32 0.015625, %v9969_v25  ;;  %v10025_v63 = vmul.f32 %v18064_v8, %v18064_v8 }
0x21af   :  { %v10048_v56 = vsel %vm348_vm1, %v10018_v32, 0.0 }
0x21b0   :  { %10049 = vadd.xlane.f32.xlu0 %v10048_v56  ;;  %v18070_v34 = vsub.f32 %v17974_v47, %v9991_v39  ;;  %v10069_v46 = vsel %vm348_vm1, %v10025_v63, 0.0  ;;  %v18111_v63 = vld [vmem:[%s18358_s29] ss:$0 sm:$0xff] }
0x21b1   :  { %10070 = vadd.xlane.f32.xlu1 %v10069_v46  ;;  %v9972_v3 = vpop.xlane.xlu1 %9971 }
0x21b2   :  { %v9992_v61 = vmul.f32 0.015625, %v9972_v3  ;;  %v10023_v44 = vmul.f32 %v18070_v34, %v18070_v34 }
0x21b4   :  { %v18076_v26 = vsub.f32 %v17981_v60, %v9992_v61  ;;  %v10063_v16 = vsel %vm348_vm1, %v10023_v44, 0.0 }
0x21b5   :  { %10064 = vadd.xlane.f32.xlu1 %v10063_v16  ;;  %v9978_v4 = vpop.xlane.xlu1 %9977 }
0x21b6   :  { %v9994_v40 = vmul.f32 0.015625, %v9978_v4  ;;  %v10024_v47 = vmul.f32 %v18076_v26, %v18076_v26 }
0x21b8   :  { %v18082_v21 = vsub.f32 %v17986_v43, %v9994_v40  ;;  %v10066_v14 = vsel %vm348_vm1, %v10024_v47, 0.0  ;;  %v12919_v43 = vld [vmem:[%s18356_s13 + $0x8] sm:$0xff]  }
0x21b9   :  { %10067 = vadd.xlane.f32.xlu1 %v10066_v14  ;;  %12717 = vmatpush3.bf16.msra.mxu1 %v12919_v43 }
0x21ba   :  { %v10026_v60 = vmul.f32 %v18082_v21, %v18082_v21  ;;  %12718 = vmatprep.subr.bf16.mxu1 %v13807_v49 }
0x21bc   :  { %v10072_v5 = vsel %vm348_vm1, %v10026_v60, 0.0 }
0x21bd   :  { %10073 = vadd.xlane.f32.xlu1 %v10072_v5  ;;  %12719 = vmatpush3.bf16.msra.mxu1 %v12920_v58 }
0x21be   :  { %12720 = vmatprep.subr.bf16.mxu1 %v13807_v49 }
0x21c1   :  { %12721 = vmatpush3.bf16.msra.mxu1 %v12921_v0 }
0x21c2   :  { %12746 = vmatprep.subr.bf16.mxu1 %v13807_v49 }
0x221a   :  { %v10035_v17 = vpop.xlane.xlu0 %10034 }
0x221b   :  { %v10077_v12 = vmul.f32 0.015625, %v10035_v17 }
0x221d   :  { %v10032_v15 = vpop.xlane.xlu1 %10031  ;;  %v10093_v38 = vadd.f32 1e-05, %v10077_v12 }
0x221e   :  { %v10076_v23 = vmul.f32 0.015625, %v10032_v15  ;;  %v10029_v13 = vpop.xlane.xlu0 %10028 }
0x221f   :  { %v10075_v7 = vmul.f32 0.015625, %v10029_v13 }
0x2220   :  { %v10092_v57 = vadd.f32 1e-05, %v10076_v23 }
0x2221   :  { %v10091_v59 = vadd.f32 1e-05, %v10075_v7 }
0x2222   :  { %v10038_v51 = vpop.xlane.xlu0 %10037  ;;  %13702 = vrsqrt.f32 %v10092_v57 }
0x2223   :  { %v10078_v20 = vmul.f32 0.015625, %v10038_v51  ;;  %13704 = vrsqrt.f32 %v10091_v59 }
0x2224   :  { %13706 = vrsqrt.f32 %v10093_v38 }
0x2225   :  { %v10094_v18 = vadd.f32 1e-05, %v10078_v20 }
0x2227   :  { %13708 = vrsqrt.f32 %v10094_v18 }
0x2228   :  { %v10041_v41 = vpop.xlane.xlu0 %10040 }
0x2229   :  { %v10079_v53 = vmul.f32 0.015625, %v10041_v41 }
0x222b   :  { %v10095_v50 = vadd.f32 1e-05, %v10079_v53 }
0x222c   :  { %v13703_v37 = vpop.eup %13702 }
0x222d   :  { %v13705_v22 = vpop.eup %13704  ;;  %13710 = vrsqrt.f32 %v10095_v50  ;;  %v10124_v35 = vmul.f32 %v13703_v37, %v17998_v62 }
0x222e   :  { %v10123_v2 = vmul.f32 %v13705_v22, %v18001_v27  ;;  %v13707_v39 = vpop.eup %13706 }
0x222f   :  { %v10146_v46 = vmul.f32 %v18111_v63, %v10124_v35  ;;  %v10125_v27 = vmul.f32 %v13707_v39, %v17993_v10 }
0x2230   :  { %v10059_v45 = vpop.xlane.xlu1 %10058  ;;  %v10145_v4 = vmul.f32 %v18111_v63, %v10123_v2 }
0x2231   :  { %v10053_v24 = vpop.xlane.xlu0 %10052  ;;  %v10085_v55 = vmul.f32 0.015625, %v10059_v45  ;;  %v13709_v16 = vpop.eup %13708  ;;  %v10168_v0 = vadd.f32 %v18117_v54, %v10146_v46  ;;  %v10147_v17 = vmul.f32 %v18111_v63, %v10125_v27 }
0x2232   :  { %v10083_v1 = vmul.f32 0.015625, %v10053_v24  ;;  %v10126_v43 = vmul.f32 %v13709_v16, %v18010_v48  ;;  %v10167_v28 = vadd.f32 %v18117_v54, %v10145_v4 }
0x2233   :  { %v10101_v3 = vadd.f32 1e-05, %v10085_v55  ;;  %v10184_v48 = vsel %vm348_vm1, %v10168_v0, 0.0  ;;  %v10169_v51 = vadd.f32 %v18117_v54, %v10147_v17 }
0x2234   :  { %v10062_v9 = vpop.xlane.xlu1 %10061  ;;  %v10099_v32 = vadd.f32 1e-05, %v10083_v1  ;;  %v10148_v23 = vmul.f32 %v18111_v63, %v10126_v43  ;;  %v10183_v57 = vsel %vm348_vm1, %v10167_v28, 0.0 }
0x2235   :  { %v10044_v25 = vpop.xlane.xlu0 %10043  ;;  %v10086_v62 = vmul.f32 0.015625, %v10062_v9  ;;  %v10185_v53 = vadd.f32 %v10184_v48, %v10183_v57  ;;  %v10186_v24 = vsel %vm348_vm1, %v10169_v51, 0.0 }
0x2236   :  { %v10080_v56 = vmul.f32 0.015625, %v10044_v25  ;;  %13712 = vrsqrt.f32 %v10099_v32 }
0x2237   :  { %v13711_v5 = vpop.eup %13710  ;;  %v10102_v31 = vadd.f32 1e-05, %v10086_v62  ;;  %v10187_v32 = vadd.f32 %v10186_v24, %v10185_v53 }
0x2238   :  { %v10096_v61 = vadd.f32 1e-05, %v10080_v56  ;;  %v10056_v44 = vpop.xlane.xlu1 %10055  ;;  %v10127_v15 = vmul.f32 %v13711_v5, %v18016_v36  ;;  %v10170_v36 = vadd.f32 %v18117_v54, %v10148_v23 }
0x2239   :  { %v10084_v40 = vmul.f32 0.015625, %v10056_v44  ;;  %v10047_v47 = vpop.xlane.xlu0 %10046 }
0x223a   :  { %13714 = vrsqrt.f32 %v10096_v61  ;;  %v10081_v14 = vmul.f32 0.015625, %v10047_v47  ;;  %v10149_v20 = vmul.f32 %v18111_v63, %v10127_v15  ;;  %v10188_v25 = vsel %vm348_vm1, %v10170_v36, 0.0 }
0x223b   :  { %v10100_v60 = vadd.f32 1e-05, %v10084_v40  ;;  %13716 = vrsqrt.f32 %v10101_v3  ;;  %v10189_v47 = vadd.f32 %v10188_v25, %v10187_v32 }
0x223c   :  { %v10097_v58 = vadd.f32 1e-05, %v10081_v14  ;;  %v10171_v35 = vadd.f32 %v18117_v54, %v10149_v20 }
0x223d   :  { %13718 = vrsqrt.f32 %v10100_v60  ;;  %v10050_v30 = vpop.xlane.xlu0 %10049 }
0x223e   :  { %13720 = vrsqrt.f32 %v10097_v58  ;;  %v10082_v10 = vmul.f32 0.015625, %v10050_v30  ;;  %v10071_v13 = vpop.xlane.xlu1 %10070  ;;  %v10190_v4 = vsel %vm348_vm1, %v10171_v35, 0.0 }
0x223f   :  { %13722 = vrsqrt.f32 %v10102_v31  ;;  %v10089_v59 = vmul.f32 0.015625, %v10071_v13  ;;  %v10191_v43 = vadd.f32 %v10190_v4, %v10189_v47 }
0x2240   :  { %v10098_v7 = vadd.f32 1e-05, %v10082_v10  ;;  %v13713_v12 = vpop.eup %13712 }
0x2241   :  { %v10105_v41 = vadd.f32 1e-05, %v10089_v59  ;;  %v10131_v22 = vmul.f32 %v13713_v12, %v18026_v33 }
0x2242   :  { %13724 = vrsqrt.f32 %v10098_v7  ;;  %v10065_v18 = vpop.xlane.xlu1 %10064 }
0x2243   :  { %v10087_v45 = vmul.f32 0.015625, %v10065_v18  ;;  %13726 = vrsqrt.f32 %v10105_v41  ;;  %v10153_v61 = vmul.f32 %v18111_v63, %v10131_v22 }
0x2244   :  { %v13715_v38 = vpop.eup %13714 }
0x2245   :  { %v10128_v50 = vmul.f32 %v13715_v38, %v18037_v52  ;;  %v13717_v37 = vpop.eup %13716  ;;  %v10103_v9 = vadd.f32 1e-05, %v10087_v45  ;;  %v10175_v0 = vadd.f32 %v18117_v54, %v10153_v61 }
0x2246   :  { %v10068_v52 = vpop.xlane.xlu1 %10067  ;;  %v10133_v3 = vmul.f32 %v13717_v37, %v18023_v19 }
0x2247   :  { %v13719_v1 = vpop.eup %13718  ;;  %v10150_v55 = vmul.f32 %v18111_v63, %v10128_v50  ;;  %13728 = vrsqrt.f32 %v10103_v9  ;;  %v10088_v33 = vmul.f32 0.015625, %v10068_v52  ;;  %v10204_v7 = vsel %vm348_vm1, %v10175_v0, 0.0 }
0x2248   :  { %v13721_v2 = vpop.eup %13720  ;;  %v10132_v56 = vmul.f32 %v13719_v1, %v18045_v29  ;;  %v10155_v58 = vmul.f32 %v18111_v63, %v10133_v3 }
0x2249   :  { %v10172_v39 = vadd.f32 %v18117_v54, %v10150_v55  ;;  %v10129_v46 = vmul.f32 %v13721_v2, %v18049_v6  ;;  %v13723_v16 = vpop.eup %13722  ;;  %v10104_v40 = vadd.f32 1e-05, %v10088_v33 }
0x224a   :  { %v10154_v44 = vmul.f32 %v18111_v63, %v10132_v56  ;;  %v10074_v14 = vpop.xlane.xlu1 %10073  ;;  %v10134_v28 = vmul.f32 %v13723_v16, %v18033_v11  ;;  %v10177_v13 = vadd.f32 %v18117_v54, %v10155_v58 }
0x224b   :  { %v10151_v62 = vmul.f32 %v18111_v63, %v10129_v46  ;;  %v10192_v27 = vsel %vm348_vm1, %v10172_v39, 0.0  ;;  %13730 = vrsqrt.f32 %v10104_v40  ;;  %v10090_v5 = vmul.f32 0.015625, %v10074_v14 }
0x224c   :  { %v13725_v29 = vpop.eup %13724  ;;  %v10176_v6 = vadd.f32 %v18117_v54, %v10154_v44  ;;  %v10193_v10 = vadd.f32 %v10192_v27, %v10191_v43  ;;  %v10156_v48 = vmul.f32 %v18111_v63, %v10134_v28  ;;  %v10207_v38 = vsel %vm348_vm1, %v10177_v13, 0.0  ;;  %v12925_v28 = vld [vmem:[%s18357_s17 + $0x18] sm:$0xff]  }
0x224d   :  { %v10173_v60 = vadd.f32 %v18117_v54, %v10151_v62  ;;  %v10130_v19 = vmul.f32 %v13725_v29, %v18058_v42  ;;  %v10106_v17 = vadd.f32 1e-05, %v10090_v5  ;;  %v13727_v23 = vpop.eup %13726  ;;  %12733 = vmatpush3.bf16.msra.mxu0 %v12925_v28 }
0x224e   :  { %v10205_v15 = vsel %vm348_vm1, %v10176_v6, 0.0  ;;  %v10137_v12 = vmul.f32 %v13727_v23, %v18064_v8  ;;  %v10178_v53 = vadd.f32 %v18117_v54, %v10156_v48  ;;  %12734 = vmatprep.subr.bf16.mxu0 %v13807_v49 }
0x224f   :  { %v10194_v31 = vsel %vm348_vm1, %v10173_v60, 0.0  ;;  %v10152_v30 = vmul.f32 %v18111_v63, %v10130_v19  ;;  %13732 = vrsqrt.f32 %v10106_v17  ;;  %v10206_v59 = vadd.f32 %v10205_v15, %v10204_v7  ;;  %v12928_v17 = vld [vmem:[%s18357_s17 + $0x30] sm:$0xff]   ;;  %v11225_v15 = vld [vmem:[%s18360_s8] ss:$0 sm:$0xff] }
0x2250   :  { %v10195_v57 = vadd.f32 %v10194_v31, %v10193_v10  ;;  %v10159_v37 = vmul.f32 %v18111_v63, %v10137_v12  ;;  %v10209_v8 = vsel %vm348_vm1, %v10178_v53, 0.0  ;;  %v12926_v31 = vld [vmem:[%s18357_s17 + $0x20] sm:$0xff]   ;;  %v12929_v10 = vld [vmem:[%s18357_s17 + $0x38] sm:$0xff]   ;;  %v12932_v53 = vld [vmem:[%s13958_s27 + $0x10] sm:$0xff]  }
0x2251   :  { %v10174_v42 = vadd.f32 %v18117_v54, %v10152_v30  ;;  %v13729_v11 = vpop.eup %13728  ;;  %v10208_v45 = vadd.f32 %v10207_v38, %v10206_v59  ;;  %12735 = vmatpush3.bf16.msra.mxu0 %v12926_v31  ;;  %v12927_v30 = vld [vmem:[%s18357_s17 + $0x28] sm:$0xff]  }
0x2252   :  { %v10135_v41 = vmul.f32 %v13729_v11, %v18070_v34  ;;  %v10181_v2 = vadd.f32 %v18117_v54, %v10159_v37  ;;  %12736 = vmatprep.subr.bf16.mxu0 %v13807_v49  ;;  %v12931_v38 = vld [vmem:[%s13958_s27 + $0x8] sm:$0xff]  }
0x2253   :  { %v10196_v51 = vsel %vm348_vm1, %v10174_v42, 0.0  ;;  %v10210_v9 = vadd.f32 %v10209_v8, %v10208_v45 }
0x2254   :  { %v10197_v20 = vadd.f32 %v10196_v51, %v10195_v57  ;;  %v10157_v18 = vmul.f32 %v18111_v63, %v10135_v41  ;;  %v10215_v33 = vsel %vm348_vm1, %v10181_v2, 0.0  ;;  %v12930_v41 = vld [vmem:[%s13958_s27] sm:$0xff]  }
0x2255   :  { %v13731_v50 = vpop.eup %13730  ;;  %12737 = vmatpush3.bf16.msra.mxu0 %v12927_v30  ;;  %v11240_v2 = vld [vmem:[%s13963_s4] ss:$0 sm:$0xff] }
0x2256   :  { %v10198_v36 = vrot.slane %v10197_v20, 4  ;;  %v10179_v24 = vadd.f32 %v18117_v54, %v10157_v18  ;;  %v10136_v22 = vmul.f32 %v13731_v50, %v18076_v26  ;;  %12738 = vmatprep.subr.bf16.mxu0 %v13807_v49  ;;  %v11231_v18 = vld [vmem:[%s13953_s20] ss:$0 sm:$0xff] }
0x2258   :  { %v10199_v1 = vadd.f32 %v10198_v36, %v10197_v20  ;;  %v10211_v34 = vsel %vm348_vm1, %v10179_v24, 0.0  ;;  %v10158_v35 = vmul.f32 %v18111_v63, %v10136_v22  ;;  %v12933_v36 = vld [vmem:[%s13958_s27 + $0x18] sm:$0xff]  }
0x2259   :  { %v13733_v55 = vpop.eup %13732  ;;  %v10212_v52 = vadd.f32 %v10211_v34, %v10210_v9  ;;  %12739 = vmatpush3.bf16.msra.mxu0 %v12928_v17 }
0x225a   :  { %v10180_v32 = vadd.f32 %v18117_v54, %v10158_v35  ;;  %v10138_v25 = vmul.f32 %v13733_v55, %v18082_v21  ;;  %v10200_v56 = vrot.slane %v10199_v1, 2  ;;  %12740 = vmatprep.subr.bf16.mxu0 %v13807_v49 }
0x225c   :  { %v10213_v39 = vsel %vm348_vm1, %v10180_v32, 0.0  ;;  %v10160_v26 = vmul.f32 %v18111_v63, %v10138_v25  ;;  %v10201_v61 = vadd.f32 %v10200_v56, %v10199_v1 }
0x225d   :  { %v10214_v46 = vadd.f32 %v10213_v39, %v10212_v52  ;;  %12741 = vmatpush3.bf16.msra.mxu0 %v12929_v10 }
0x225e   :  { %v10182_v3 = vadd.f32 %v18117_v54, %v10160_v26  ;;  %v10202_v62 = vrot.slane %v10201_v61, 1 }
0x225f   :  { %v10216_v44 = vadd.f32 %v10215_v33, %v10214_v46 }
0x2260   :  { %v10217_v16 = vsel %vm348_vm1, %v10182_v3, 0.0  ;;  %v10203_v21 = vadd.f32 %v10202_v62, %v10201_v61 }
0x2261   :  { %v10218_v4 = vadd.f32 %v10217_v16, %v10216_v44 }
0x2262   :  { %v10225_v6 = vmul.f32 0.015625, %v10203_v21 }
0x2263   :  { %v10219_v40 = vrot.slane %v10218_v4, 4 }
0x2264   :  { %v10227_v60 = vpack.c.bf16 %v10225_v6, %v10225_v6 }
0x2265   :  { %v10220_v29 = vadd.f32 %v10219_v40, %v10218_v4 }
0x2266   :  { %v10246_v5 = vunpack.c.l.b16 %v10227_v60 }
0x2267   :  { %v10221_v47 = vrot.slane %v10220_v29, 2 }
0x2269   :  { %v10222_v27 = vadd.f32 %v10221_v47, %v10220_v29 }
0x226b   :  { %v10223_v63 = vrot.slane %v10222_v27, 1 }
0x226d   :  { %v10224_v14 = vadd.f32 %v10223_v63, %v10222_v27 }
0x226f   :  { %v10226_v19 = vmul.f32 0.015625, %v10224_v14 }
0x2271   :  { %v10228_v54 = vpack.c.bf16 %v10226_v19, %v10226_v19 }
0x2273   :  { %v10247_v43 = vunpack.c.l.b16 %v10228_v54 }
0x2275   :  { %v10249_v58 = vsel %vm10248_vm5, %v10247_v43, %v10246_v5 }
0x2276   :  { %v10250_v0 = vpack.c.b16 %v10249_v58, %v10249_v58 }
0x2278   :  { %12723 = vmatmul.mubr.msk.bf16.vlgmr.msra.gmra.mrb[64].mxu1 %vm348_vm1, %v10250_v0 }
0x2279   :  { %12754 = vmatprep.mubr.msk.bf16.mxu1 %vm13808_vm4, %v13807_v49  ;;  %12747 = vmatpush3.bf16.msra.mxu1 %v12930_v41 }
0x227a   :  { %12748 = vmatprep.subr.bf16.mxu1 %v13807_v49 }
0x227d   :  { %12749 = vmatpush3.bf16.msra.mxu1 %v12931_v38 }
0x227e   :  { %12750 = vmatprep.subr.bf16.mxu1 %v13807_v49 }
0x2281   :  { %12751 = vmatpush3.bf16.msra.mxu1 %v12932_v53 }
0x2282   :  { %12752 = vmatprep.subr.bf16.mxu1 %v13807_v49 }
0x2285   :  { %12753 = vmatpush3.bf16.msra.mxu1 %v12933_v36 }
0x234b   :  { %v10312_v23 = vpop.f32.mrb[64].mxu1 }
0x234c   :  { %v10313_v42 = vadd.f32 %v11225_v15, %v10312_v23  ;;  %v12724_v13 = vpop.f32.mrb[65].mxu1 }
0x234d   :  { %v10315_v7 = vpop.f32.mrb[66].mxu1 }
0x234e   :  { %v10319_v48 = vmul.f32 0.70710677, %v10313_v42  ;;  %v12725_v57 = vpop.f32.mrb[67].mxu1  ;;  %v10318_v59 = vmul.f32 0.5, %v10313_v42 }
0x2350   :  { %13734 = verf.f32 %v10319_v48 }
0x235a   :  { %v13735_v11 = vpop.eup %13734 }
0x235b   :  { %v10321_v51 = vadd.f32 1.0, %v13735_v11 }
0x235d   :  { %v10322_v12 = vmul.f32 %v10321_v51, %v10318_v59 }
0x235f   :  { %v10323_v20 = vpack.c.bf16 %v10322_v12, %v10322_v12 }
0x2361   :  { %12743 = vmatmul.mubr.bf16.vlgmr.msra.gmra.mrb[80].mxu0 %v10323_v20 }
0x2434   :  { %v10429_v50 = vpop.f32.mrb[80].mxu0 }
0x2435   :  { %v10430_v45 = vadd.f32 %v11231_v18, %v10429_v50  ;;  %v12744_v37 = vpop.f32.mrb[81].mxu0 }
0x2436   :  { %v10432_v24 = vpop.f32.mrb[82].mxu0 }
0x2437   :  { %v10436_v22 = vmul.f32 0.70710677, %v10430_v45  ;;  %v12745_v1 = vpop.f32.mrb[83].mxu0  ;;  %v10435_v34 = vmul.f32 0.5, %v10430_v45 }
0x2439   :  { %13736 = verf.f32 %v10436_v22 }
0x2443   :  { %v13737_v8 = vpop.eup %13736 }
0x2444   :  { %v10438_v35 = vadd.f32 1.0, %v13737_v8 }
0x2446   :  { %v10439_v55 = vmul.f32 %v10438_v35, %v10435_v34 }
0x2448   :  { %v10440_v9 = vpack.c.bf16 %v10439_v55, %v10439_v55 }
0x244a   :  { %12755 = vmatmul.mubr.msk.bf16.vlgmr.msra.gmra.mrb[68].mxu1 %vm348_vm1, %v10440_v9 }
0x251d   :  { %v10517_v49 = vpop.f32.mrb[68].mxu1 }
0x251e   :  { %v10518_v32 = vadd.f32 %v11240_v2, %v10517_v49  ;;  %v12756_v25 = vpop.f32.mrb[69].mxu1 }
0x251f   :  { %v10520_v56 = vpop.f32.mrb[70].mxu1 }
0x2520   :  { %v12757_v52 = vpop.f32.mrb[71].mxu1  ;;  %10524 = vst.msk [vmem:[#allocation2] sm:$0x3] %vm10523_vm6, %v10518_v32 }
0x2521   :  { %13764 = shalt.err (!%p13761_p4)
}
0x2522   :  { %s13765_s30 = scalar_lea.hbm %s13968_s6, 32 }
0x2523   :  { %p13766_p5 = scmp.ne.s32.totalorder %s13968_s6, %s13765_s30  ;;  %p13769_p6 = scmp.lt.u32.totalorder %s13765_s30, %s13968_s6 }
0x2525   :  { %p13771_p7 = pnand %p13769_p6, %p13766_p5 }
0x2527   :  { %13774 = shalt.err (!%p13771_p7)
}
0x2528   :  { %10534 = dma.vmem_to_hbm [thread:$0]  %s10532_s19, 32, %s13968_s6, [#allocation3]  }
0x2529   :  { %13775 = dma.done.wait [#allocation3], 32  }
0x252a   :  { %13776 = vsyncadd [#allocation3], 4294967264 }
0x252b   :  { %10538 = vsyncpa [#allocation3], 1 }

</bundles_post_ra>
